<compile_context>
chip_gen: v6e
topology: v6e:2x2x1
jax: 0.10.0
libtpu: 0.0.40
codegen_flags: <defaults>
</compile_context>

<pallas_src>
import jax
import jax.numpy as jnp
from jax.experimental import pallas as pl
from jax.experimental.pallas import tpu as pltpu

D_MODEL = 128
N_HEAD = 8
HEAD_DIM = D_MODEL // N_HEAD
FF_DIM = 2048          # nn.TransformerEncoderLayer default dim_feedforward
INPUT_DIM = 4          # module's input_dim
INPUT_PAD = 8          # contraction dim padded to 8 (tile-friendly)
TF_LAYERS = 2          # module's tf_layers
LN_EPS = 1e-5
NEG_BIG = -1e30


def _round_up(x, m):
    return (x + m - 1) // m * m


def _layernorm(x, w, b):
    # x: (M, 128) f32, w/b: (1, 128). PyTorch LayerNorm: biased var, eps=1e-5.
    mu = jnp.mean(x, axis=-1, keepdims=True)
    var = jnp.mean(jnp.square(x - mu), axis=-1, keepdims=True)
    return (x - mu) * jax.lax.rsqrt(var + LN_EPS) * w + b


# ----------------------------------------------------------------------------
# Pallas kernel (one grid step == one batch element)
# ----------------------------------------------------------------------------
def make_pose_net_kernel(n_valid, n_pad, tq):
    """Builds the kernel for a given (static) token count / padding / tile."""
    n_tiles = n_pad // tq
    padded = n_pad != n_valid

    def for_each_tile(body):
        # Single-tile case: run the body with a static index (all-static
        # slices, zero loop overhead).  Multi-tile: in-kernel scf.for.
        if n_tiles == 1:
            body(0)
        else:
            pl.loop(0, n_tiles)(body)

    def kernel(x_ref, win_ref, bin_ref,
               wqkv_ref, bqkv_ref, wo_ref, bo_ref,
               w1_ref, b1_ref, w2_ref, b2_ref,
               ln1w_ref, ln1b_ref, ln2w_ref, ln2b_ref,
               wfc1_ref, bfc1_ref, wfc2_ref, bfc2_ref,
               whead_ref, bhead_ref, out_ref,
               h_ref, qkv_ref, ctx_ref):
        # p_in: 1x1 Conv2d == per-token matmul, then ReLU (tiny, keep f32).
        x = x_ref[0]                                     # (n_pad, 8) f32
        h_ref[...] = jnp.maximum(
            jnp.dot(x, win_ref[...], preferred_element_type=jnp.float32)
            + bin_ref[...], 0.0)                         # (n_pad, 128) f32

        if padded:
            key_mask = jax.lax.broadcasted_iota(
                jnp.int32, (1, n_pad), 1) < n_valid      # mask padded keys

        # TransformerEncoder (post-norm layers, ReLU FFN, dropout no-op @eval)
        for l in range(TF_LAYERS):
            wqkv_l = wqkv_ref[l]                          # (128, 384) bf16
            bqkv_l = bqkv_ref[l]                          # (1, 384)  f32 (Q pre-scaled)
            wo_l = wo_ref[l]                              # (128, 128) bf16
            bo_l = bo_ref[l]
            w1_l = w1_ref[l]                              # (128, 2048) bf16
            b1_l = b1_ref[l]
            w2_l = w2_ref[l]                              # (2048, 128) bf16
            b2_l = b2_ref[l]
            ln1w, ln1b = ln1w_ref[l], ln1b_ref[l]
            ln2w, ln2b = ln2w_ref[l], ln2b_ref[l]

            # ---- pass 1: fused QKV projection, tiled over tokens ----------
            def qkv_tile(t):
                r0 = t * tq
                if n_tiles > 1:
                    r0 = pl.multiple_of(r0, tq)
                ht = h_ref[pl.ds(r0, tq), :].astype(jnp.bfloat16)
                qkv = (jnp.dot(ht, wqkv_l, preferred_element_type=jnp.float32)
                       + bqkv_l)                          # (tq, 384) f32
                qkv_ref[pl.ds(r0, tq), :] = qkv.astype(jnp.bfloat16)

            for_each_tile(qkv_tile)

            # ---- pass 2: attention + out-proj + FFN, tiled over queries ----
            def layer_tile(t):
                r0 = t * tq
                if n_tiles > 1:
                    r0 = pl.multiple_of(r0, tq)
                rows = pl.ds(r0, tq)

                # Per-head attention; ctx lands lane-contiguously in ctx_ref
                # so the out-projection is a single 128-contraction matmul.
                for hh in range(N_HEAD):
                    c0 = hh * HEAD_DIM
                    q_h = qkv_ref[rows, c0:c0 + HEAD_DIM]                 # (tq,16) bf16
                    k_h = qkv_ref[:, D_MODEL + c0:D_MODEL + c0 + HEAD_DIM]        # (n,16)
                    v_h = qkv_ref[:, 2 * D_MODEL + c0:2 * D_MODEL + c0 + HEAD_DIM]

                    s = jax.lax.dot_general(
                        q_h, k_h, (((1,), (1,)), ((), ())),
                        preferred_element_type=jnp.float32)               # (tq, n_pad)
                    if padded:
                        s = jnp.where(key_mask, s, NEG_BIG)
                    m = jnp.max(s, axis=-1, keepdims=True)
                    p = jnp.exp(s - m)
                    r = pl.reciprocal(jnp.sum(p, axis=-1, keepdims=True),
                                      approx=True)
                    p_bf = (p * r).astype(jnp.bfloat16)
                    ctx_ref[:, c0:c0 + HEAD_DIM] = jnp.dot(
                        p_bf, v_h, preferred_element_type=jnp.float32)    # (tq,16)

                attn = (jnp.dot(ctx_ref[...].astype(jnp.bfloat16), wo_l,
                                preferred_element_type=jnp.float32) + bo_l)

                h1 = _layernorm(h_ref[rows, :] + attn, ln1w, ln1b)

                # FFN on this query tile only (bounds the (tq, 2048) temp).
                ff = jnp.maximum(
                    jnp.dot(h1.astype(jnp.bfloat16), w1_l,
                            preferred_element_type=jnp.float32) + b1_l, 0.0)
                ff2 = (jnp.dot(ff.astype(jnp.bfloat16), w2_l,
                               preferred_element_type=jnp.float32) + b2_l)
                h_ref[rows, :] = _layernorm(h1 + ff2, ln2w, ln2b)

            for_each_tile(layer_tile)

        # AdaptiveAvgPool2d((1,1)) over the (valid) token dimension -> (1,128)
        hfin = h_ref[...]
        if padded:
            row_mask = jax.lax.broadcasted_iota(
                jnp.int32, (n_pad, 1), 0) < n_valid
            hfin = jnp.where(row_mask, hfin, 0.0)
        pooled = jnp.sum(hfin, axis=0, keepdims=True) * (1.0 / n_valid)

        f = jnp.maximum(
            jnp.dot(pooled, wfc1_ref[...], preferred_element_type=jnp.float32)
            + bfc1_ref[...], 0.0)
        f = jnp.maximum(
            jnp.dot(f, wfc2_ref[...], preferred_element_type=jnp.float32)
            + bfc2_ref[...], 0.0)

        # fused rot/t/size heads: one lane-dense (128,128) matmul + one store
        out_ref[...] = (jnp.dot(f, whead_ref[...],
                                preferred_element_type=jnp.float32)
                        + bhead_ref[...])[None]          # (1, 1, 128)

    return kernel


# ----------------------------------------------------------------------------
# pytorch3d rotation conversions (tiny per-batch glue, plain JAX, f32)
# ----------------------------------------------------------------------------
def _normalize(v, eps=1e-12):
    return v / jnp.maximum(jnp.linalg.norm(v, axis=-1, keepdims=True), eps)


def rotation_6d_to_matrix(d6):
    a1, a2 = d6[..., :3], d6[..., 3:]
    b1 = _normalize(a1)
    b2 = a2 - jnp.sum(b1 * a2, axis=-1, keepdims=True) * b1
    b2 = _normalize(b2)
    b3 = jnp.cross(b1, b2)
    return jnp.stack((b1, b2, b3), axis=-2)


def _sqrt_positive_part(x):
    return jnp.where(x > 0, jnp.sqrt(jnp.where(x > 0, x, 1.0)), 0.0)


def matrix_to_quaternion(matrix):
    batch_dim = matrix.shape[:-2]
    m = matrix.reshape(batch_dim + (9,))
    m00, m01, m02, m10, m11, m12, m20, m21, m22 = [m[..., i] for i in range(9)]
    q_abs = _sqrt_positive_part(jnp.stack([
        1.0 + m00 + m11 + m22,
        1.0 + m00 - m11 - m22,
        1.0 - m00 + m11 - m22,
        1.0 - m00 - m11 + m22], axis=-1))
    quat_by_rijk = jnp.stack([
        jnp.stack([q_abs[..., 0] ** 2, m21 - m12, m02 - m20, m10 - m01], axis=-1),
        jnp.stack([m21 - m12, q_abs[..., 1] ** 2, m10 + m01, m02 + m20], axis=-1),
        jnp.stack([m02 - m20, m10 + m01, q_abs[..., 2] ** 2, m12 + m21], axis=-1),
        jnp.stack([m10 - m01, m02 + m20, m12 + m21, q_abs[..., 3] ** 2], axis=-1),
    ], axis=-2)
    quat_candidates = quat_by_rijk / (2.0 * jnp.maximum(q_abs[..., None], 0.1))
    best = jax.nn.one_hot(jnp.argmax(q_abs, axis=-1), 4, dtype=matrix.dtype)
    return jnp.sum(quat_candidates * best[..., None], axis=-2)


def quaternion_to_axis_angle(q):
    norms = jnp.linalg.norm(q[..., 1:], axis=-1, keepdims=True)
    half_angles = jnp.arctan2(norms, q[..., :1])
    angles = 2.0 * half_angles
    small = jnp.abs(angles) < 1e-6
    safe_angles = jnp.where(small, 1.0, angles)
    sin_half_over = jnp.where(small,
                              0.5 - (angles * angles) / 48.0,
                              jnp.sin(half_angles) / safe_angles)
    return q[..., 1:] / sin_half_over


# ----------------------------------------------------------------------------
# Wrapper: host-side weight/input prep + pallas_call with batch-parallel grid
# ----------------------------------------------------------------------------
def _const_index_map(ndim):
    def idx(b):
        return (0,) * ndim
    return idx


def _vmem_limit_bytes(n_pad, tq):
    """Scoped-VMEM request derived from the actual working set (review item).

    Resident: residual stream + bf16 QKV + ctx scratch; double-buffered bf16
    weights; per-tile softmax/FFN temporaries with headroom.  Capped below
    v7x's 64 MiB physical VMEM.
    """
    f32, bf16 = 4, 2
    resident = (n_pad * D_MODEL * f32            # h_ref
                + n_pad * 3 * D_MODEL * bf16     # qkv_ref
                + tq * D_MODEL * f32)            # ctx_ref
    weights = 2 * TF_LAYERS * (D_MODEL * 3 * D_MODEL + D_MODEL * D_MODEL
                               + 2 * D_MODEL * FF_DIM) * bf16
    x_blk = 2 * n_pad * INPUT_PAD * f32
    attn_tmp = 3 * tq * n_pad * (2 * f32 + bf16)   # logits + probs (+bf16 copy)
    ffn_tmp = tq * FF_DIM * (2 * f32 + bf16)
    est = resident + weights + x_blk + attn_tmp + ffn_tmp
    return int(min(56 * 2**20, max(32 * 2**20, 2 * est)))


def transformer_pose_net(x, params, *, tq_max=128):
    (win, bin_, wqkv, bqkv, wo, bo, w1, b1, w2, b2,
     ln1w, ln1b, ln2w, ln2b, wfc1, bfc1, wfc2, bfc2,
     wrot, brot, wt, bt, wsz, bsz) = params

    B, N, _ = x.shape

    # ---- query-tile size & token padding (static, N known at trace time)
    if N <= tq_max:
        n_pad = max(_round_up(N, 8), 8)
        tq = n_pad
    else:
        tq = tq_max
        n_pad = _round_up(N, tq)

    # ---- host-side input prep: channel slice + zero-pad channels (->8) and
    #      tokens (->n_pad); padded key rows are masked inside the kernel.
    x_in = x[:, :, :INPUT_DIM]
    x_in = jnp.pad(x_in, ((0, 0), (0, n_pad - N), (0, INPUT_PAD - INPUT_DIM)))
    win_p = jnp.pad(win, ((0, INPUT_PAD - INPUT_DIM), (0, 0)))      # (8, 128)

    # ---- fold 1/sqrt(head_dim) into the Q columns of weight AND bias
    #      (PyTorch applies the scale after the bias add).
    scale = 1.0 / (HEAD_DIM ** 0.5)
    wqkv_s = wqkv.at[:, :, :D_MODEL].multiply(scale)
    bqkv_s = bqkv.at[:, :, :D_MODEL].multiply(scale)

    # ---- bf16 weights for the big matmuls (f32 accumulation in-kernel)
    wqkv_bf = wqkv_s.astype(jnp.bfloat16)
    wo_bf = wo.astype(jnp.bfloat16)
    w1_bf = w1.astype(jnp.bfloat16)
    w2_bf = w2.astype(jnp.bfloat16)

    # ---- fuse rot/t/size heads into one lane-dense (128, 128) matmul
    whead = jnp.concatenate([wrot, wt, wsz], axis=1)                # (128, 12)
    whead = jnp.pad(whead, ((0, 0), (0, D_MODEL - whead.shape[1])))
    bhead = jnp.concatenate([brot, bt, bsz], axis=1)                # (1, 12)
    bhead = jnp.pad(bhead, ((0, 0), (0, D_MODEL - bhead.shape[1])))

    args = (x_in, win_p, bin_, wqkv_bf, bqkv_s, wo_bf, bo, w1_bf, b1, w2_bf, b2,
            ln1w, ln1b, ln2w, ln2b, wfc1, bfc1, wfc2, bfc2, whead, bhead)

    in_specs = [pl.BlockSpec((1, n_pad, INPUT_PAD), lambda b: (b, 0, 0))]
    in_specs += [pl.BlockSpec(a.shape, _const_index_map(a.ndim))
                 for a in args[1:]]
    out_spec = pl.BlockSpec((1, 1, D_MODEL), lambda b: (b, 0, 0))

    raw = pl.pallas_call(
        make_pose_net_kernel(N, n_pad, tq),
        grid=(B,),
        in_specs=in_specs,
        out_specs=out_spec,
        out_shape=jax.ShapeDtypeStruct((B, 1, D_MODEL), jnp.float32),
        scratch_shapes=[
            pltpu.VMEM((n_pad, D_MODEL), jnp.float32),      # residual stream
            pltpu.VMEM((n_pad, 3 * D_MODEL), jnp.bfloat16),  # fused QKV
            pltpu.VMEM((tq, D_MODEL), jnp.float32),          # per-tile ctx
        ],
        compiler_params=pltpu.CompilerParams(
            dimension_semantics=("parallel",),
            vmem_limit_bytes=_vmem_limit_bytes(n_pad, tq)),
    )(*args)

    raw = raw.reshape(B, D_MODEL)
    rot6d = jnp.tanh(raw[:, 0:6])
    t = jnp.tanh(raw[:, 6:9])
    size = jax.nn.sigmoid(raw[:, 9:12])

    R = rotation_6d_to_matrix(rot6d)
    quat = matrix_to_quaternion(R)
    axis_angle = quaternion_to_axis_angle(quat)
    return size, axis_angle, t


# ----------------------------------------------------------------------------
# Deterministic synthetic parameters (shapes from __init__; weights stored as
# (in, out) == PyTorch weight.T)
# ----------------------------------------------------------------------------
def init_params(key, input_dim=INPUT_DIM, tf_layers=TF_LAYERS):
    ks = iter(jax.random.split(key, 64))

    def w(shape, scale=0.05):
        return (scale * jax.random.normal(next(ks), shape)).astype(jnp.float32)

    win = w((input_dim, D_MODEL));               bin_ = w((1, D_MODEL), 0.02)
    wqkv = w((tf_layers, D_MODEL, 3 * D_MODEL)); bqkv = w((tf_layers, 1, 3 * D_MODEL), 0.02)
    wo = w((tf_layers, D_MODEL, D_MODEL));       bo = w((tf_layers, 1, D_MODEL), 0.02)
    w1 = w((tf_layers, D_MODEL, FF_DIM));        b1 = w((tf_layers, 1, FF_DIM), 0.02)
    w2 = w((tf_layers, FF_DIM, D_MODEL), 0.02);  b2 = w((tf_layers, 1, D_MODEL), 0.02)
    ln1w = jnp.ones((tf_layers, 1, D_MODEL), jnp.float32)
    ln1b = jnp.zeros((tf_layers, 1, D_MODEL), jnp.float32)
    ln2w = jnp.ones((tf_layers, 1, D_MODEL), jnp.float32)
    ln2b = jnp.zeros((tf_layers, 1, D_MODEL), jnp.float32)
    wfc1 = w((D_MODEL, D_MODEL)); bfc1 = w((1, D_MODEL), 0.02)
    wfc2 = w((D_MODEL, D_MODEL)); bfc2 = w((1, D_MODEL), 0.02)
    wrot = w((D_MODEL, 6)); brot = w((1, 6), 0.02)
    wt = w((D_MODEL, 3));   bt = w((1, 3), 0.02)
    wsz = w((D_MODEL, 3));  bsz = w((1, 3), 0.02)
    return (win, bin_, wqkv, bqkv, wo, bo, w1, b1, w2, b2,
            ln1w, ln1b, ln2w, ln2b, wfc1, bfc1, wfc2, bfc2,
            wrot, brot, wt, bt, wsz, bsz)


if __name__ == "__main__":
    key = jax.random.PRNGKey(0)
    kx, kp = jax.random.split(key)

    # x: (B, N, C_total) — only the first INPUT_DIM channels are used (as in
    # `inputs_[:, 0:self.input_dim]`).
    # NOTE: this demo size is per-grid-step-overhead / weight-DMA bound; it is
    # a correctness smoke test, not a performance benchmark (benchmark at
    # N >= 1024, B >= 8 with xprof min-of-runs).
    B, N, C = 2, 16, 6
    x = jax.random.normal(kx, (B, N, C), dtype=jnp.float32)
    params = init_params(kp)

    size, axis_angle, t = transformer_pose_net(x, params)
    jax.block_until_ready((size, axis_angle, t))

    assert size.shape == (B, 3)
    assert axis_angle.shape == (B, 3)
    assert t.shape == (B, 3)
    assert bool(jnp.all(jnp.isfinite(size)))
    assert bool(jnp.all(jnp.isfinite(axis_angle)))
    assert bool(jnp.all(jnp.isfinite(t)))
    print("KERNEL_OK")
</pallas_src>

<mosaic_0001>
module attributes {stable_mosaic.version = 11 : i64} {
  func.func @kernel(%arg0: i32, %arg1: memref<1x16x8xf32, #tpu.memory_space<vmem>>, %arg2: memref<8x128xf32, #tpu.memory_space<vmem>>, %arg3: memref<1x128xf32, #tpu.memory_space<vmem>>, %arg4: memref<2x128x384xbf16, #tpu.memory_space<vmem>>, %arg5: memref<2x1x384xf32, #tpu.memory_space<vmem>>, %arg6: memref<2x128x128xbf16, #tpu.memory_space<vmem>>, %arg7: memref<2x1x128xf32, #tpu.memory_space<vmem>>, %arg8: memref<2x128x2048xbf16, #tpu.memory_space<vmem>>, %arg9: memref<2x1x2048xf32, #tpu.memory_space<vmem>>, %arg10: memref<2x2048x128xbf16, #tpu.memory_space<vmem>>, %arg11: memref<2x1x128xf32, #tpu.memory_space<vmem>>, %arg12: memref<2x1x128xf32, #tpu.memory_space<vmem>>, %arg13: memref<2x1x128xf32, #tpu.memory_space<vmem>>, %arg14: memref<2x1x128xf32, #tpu.memory_space<vmem>>, %arg15: memref<2x1x128xf32, #tpu.memory_space<vmem>>, %arg16: memref<128x128xf32, #tpu.memory_space<vmem>>, %arg17: memref<1x128xf32, #tpu.memory_space<vmem>>, %arg18: memref<128x128xf32, #tpu.memory_space<vmem>>, %arg19: memref<1x128xf32, #tpu.memory_space<vmem>>, %arg20: memref<128x128xf32, #tpu.memory_space<vmem>>, %arg21: memref<1x128xf32, #tpu.memory_space<vmem>>, %arg22: memref<1x1x128xf32, #tpu.memory_space<vmem>>, %arg23: memref<16x128xf32, #tpu.memory_space<vmem>>, %arg24: memref<16x384xbf16, #tpu.memory_space<vmem>>, %arg25: memref<16x128xf32, #tpu.memory_space<vmem>>) attributes {dimension_semantics = [#tpu.dimension_semantics<parallel>], iteration_bounds = array<i64: 2>, scalar_prefetch = 0 : i64, scratch_operands = 3 : i64, tpu.core_type = #tpu.core_type<tc>, window_params = [{transform_indices = @transform_0, window_bounds = array<i64: 1, 16, 8>}, {pipeline_mode = #tpu.pipeline_mode<synchronous>, transform_indices = @transform_1, window_bounds = array<i64: 8, 128>}, {pipeline_mode = #tpu.pipeline_mode<synchronous>, transform_indices = @transform_2, window_bounds = array<i64: 1, 128>}, {pipeline_mode = #tpu.pipeline_mode<synchronous>, transform_indices = @transform_3, window_bounds = array<i64: 2, 128, 384>}, {pipeline_mode = #tpu.pipeline_mode<synchronous>, transform_indices = @transform_4, window_bounds = array<i64: 2, 1, 384>}, {pipeline_mode = #tpu.pipeline_mode<synchronous>, transform_indices = @transform_5, window_bounds = array<i64: 2, 128, 128>}, {pipeline_mode = #tpu.pipeline_mode<synchronous>, transform_indices = @transform_6, window_bounds = array<i64: 2, 1, 128>}, {pipeline_mode = #tpu.pipeline_mode<synchronous>, transform_indices = @transform_7, window_bounds = array<i64: 2, 128, 2048>}, {pipeline_mode = #tpu.pipeline_mode<synchronous>, transform_indices = @transform_8, window_bounds = array<i64: 2, 1, 2048>}, {pipeline_mode = #tpu.pipeline_mode<synchronous>, transform_indices = @transform_9, window_bounds = array<i64: 2, 2048, 128>}, {pipeline_mode = #tpu.pipeline_mode<synchronous>, transform_indices = @transform_10, window_bounds = array<i64: 2, 1, 128>}, {pipeline_mode = #tpu.pipeline_mode<synchronous>, transform_indices = @transform_11, window_bounds = array<i64: 2, 1, 128>}, {pipeline_mode = #tpu.pipeline_mode<synchronous>, transform_indices = @transform_12, window_bounds = array<i64: 2, 1, 128>}, {pipeline_mode = #tpu.pipeline_mode<synchronous>, transform_indices = @transform_13, window_bounds = array<i64: 2, 1, 128>}, {pipeline_mode = #tpu.pipeline_mode<synchronous>, transform_indices = @transform_14, window_bounds = array<i64: 2, 1, 128>}, {pipeline_mode = #tpu.pipeline_mode<synchronous>, transform_indices = @transform_15, window_bounds = array<i64: 128, 128>}, {pipeline_mode = #tpu.pipeline_mode<synchronous>, transform_indices = @transform_16, window_bounds = array<i64: 1, 128>}, {pipeline_mode = #tpu.pipeline_mode<synchronous>, transform_indices = @transform_17, window_bounds = array<i64: 128, 128>}, {pipeline_mode = #tpu.pipeline_mode<synchronous>, transform_indices = @transform_18, window_bounds = array<i64: 1, 128>}, {pipeline_mode = #tpu.pipeline_mode<synchronous>, transform_indices = @transform_19, window_bounds = array<i64: 128, 128>}, {pipeline_mode = #tpu.pipeline_mode<synchronous>, transform_indices = @transform_20, window_bounds = array<i64: 1, 128>}, {transform_indices = @transform_21, window_bounds = array<i64: 1, 1, 128>}]} {
    %c0 = arith.constant 0 : index
    %c0_0 = arith.constant 0 : index
    %c0_1 = arith.constant 0 : index
    %0 = vector.load %arg1[%c0, %c0_0, %c0_1] : memref<1x16x8xf32, #tpu.memory_space<vmem>>, vector<1x16x8xf32>
    %1 = vector.shape_cast %0 : vector<1x16x8xf32> to vector<16x8xf32>
    %c0_2 = arith.constant 0 : index
    %c0_3 = arith.constant 0 : index
    %2 = vector.load %arg2[%c0_2, %c0_3] : memref<8x128xf32, #tpu.memory_space<vmem>>, vector<8x128xf32>
    %cst = arith.constant dense<0.000000e+00> : vector<16x128xf32>
    %3 = tpu.matmul %1, %2, %cst {dimension_numbers = #tpu.dot_dimension_numbers<[1], [0], [0], [1], [0, 0, 1, 1], [], []>} : vector<16x8xf32>, vector<8x128xf32>, vector<16x128xf32> -> vector<16x128xf32>
    %c0_4 = arith.constant 0 : index
    %c0_5 = arith.constant 0 : index
    %4 = vector.load %arg3[%c0_4, %c0_5] : memref<1x128xf32, #tpu.memory_space<vmem>>, vector<1x128xf32>
    %5 = vector.broadcast %4 : vector<1x128xf32> to vector<16x128xf32>
    %6 = arith.addf %3, %5 : vector<16x128xf32>
    %cst_6 = arith.constant 0.000000e+00 : f32
    %7 = vector.broadcast %cst_6 : f32 to vector<16x128xf32>
    %8 = arith.maximumf %6, %7 : vector<16x128xf32>
    %c0_7 = arith.constant 0 : index
    %c0_8 = arith.constant 0 : index
    %9 = vector.load %arg23[%c0_7, %c0_8] : memref<16x128xf32, #tpu.memory_space<vmem>>, vector<16x128xf32>
    tpu.vector_store %arg23[%c0_7, %c0_8], %8 {strides = array<i32>} : memref<16x128xf32, #tpu.memory_space<vmem>>, vector<16x128xf32>,
    %c0_9 = arith.constant 0 : index
    %c0_10 = arith.constant 0 : index
    %c0_11 = arith.constant 0 : index
    %10 = vector.load %arg4[%c0_9, %c0_10, %c0_11] : memref<2x128x384xbf16, #tpu.memory_space<vmem>>, vector<1x128x384xbf16>
    %11 = vector.shape_cast %10 : vector<1x128x384xbf16> to vector<128x384xbf16>
    %c0_12 = arith.constant 0 : index
    %c0_13 = arith.constant 0 : index
    %c0_14 = arith.constant 0 : index
    %12 = vector.load %arg5[%c0_12, %c0_13, %c0_14] : memref<2x1x384xf32, #tpu.memory_space<vmem>>, vector<1x1x384xf32>
    %13 = vector.shape_cast %12 : vector<1x1x384xf32> to vector<1x384xf32>
    %c0_15 = arith.constant 0 : index
    %c0_16 = arith.constant 0 : index
    %c0_17 = arith.constant 0 : index
    %14 = vector.load %arg6[%c0_15, %c0_16, %c0_17] : memref<2x128x128xbf16, #tpu.memory_space<vmem>>, vector<1x128x128xbf16>
    %15 = vector.shape_cast %14 : vector<1x128x128xbf16> to vector<128x128xbf16>
    %c0_18 = arith.constant 0 : index
    %c0_19 = arith.constant 0 : index
    %c0_20 = arith.constant 0 : index
    %16 = vector.load %arg7[%c0_18, %c0_19, %c0_20] : memref<2x1x128xf32, #tpu.memory_space<vmem>>, vector<1x1x128xf32>
    %17 = vector.shape_cast %16 : vector<1x1x128xf32> to vector<1x128xf32>
    %c0_21 = arith.constant 0 : index
    %c0_22 = arith.constant 0 : index
    %c0_23 = arith.constant 0 : index
    %18 = vector.load %arg8[%c0_21, %c0_22, %c0_23] : memref<2x128x2048xbf16, #tpu.memory_space<vmem>>, vector<1x128x2048xbf16>
    %19 = vector.shape_cast %18 : vector<1x128x2048xbf16> to vector<128x2048xbf16>
    %c0_24 = arith.constant 0 : index
    %c0_25 = arith.constant 0 : index
    %c0_26 = arith.constant 0 : index
    %20 = vector.load %arg9[%c0_24, %c0_25, %c0_26] : memref<2x1x2048xf32, #tpu.memory_space<vmem>>, vector<1x1x2048xf32>
    %21 = vector.shape_cast %20 : vector<1x1x2048xf32> to vector<1x2048xf32>
    %c0_27 = arith.constant 0 : index
    %c0_28 = arith.constant 0 : index
    %c0_29 = arith.constant 0 : index
    %22 = vector.load %arg10[%c0_27, %c0_28, %c0_29] : memref<2x2048x128xbf16, #tpu.memory_space<vmem>>, vector<1x2048x128xbf16>
    %23 = vector.shape_cast %22 : vector<1x2048x128xbf16> to vector<2048x128xbf16>
    %c0_30 = arith.constant 0 : index
    %c0_31 = arith.constant 0 : index
    %c0_32 = arith.constant 0 : index
    %24 = vector.load %arg11[%c0_30, %c0_31, %c0_32] : memref<2x1x128xf32, #tpu.memory_space<vmem>>, vector<1x1x128xf32>
    %25 = vector.shape_cast %24 : vector<1x1x128xf32> to vector<1x128xf32>
    %c0_33 = arith.constant 0 : index
    %c0_34 = arith.constant 0 : index
    %c0_35 = arith.constant 0 : index
    %26 = vector.load %arg12[%c0_33, %c0_34, %c0_35] : memref<2x1x128xf32, #tpu.memory_space<vmem>>, vector<1x1x128xf32>
    %27 = vector.shape_cast %26 : vector<1x1x128xf32> to vector<1x128xf32>
    %c0_36 = arith.constant 0 : index
    %c0_37 = arith.constant 0 : index
    %c0_38 = arith.constant 0 : index
    %28 = vector.load %arg13[%c0_36, %c0_37, %c0_38] : memref<2x1x128xf32, #tpu.memory_space<vmem>>, vector<1x1x128xf32>
    %29 = vector.shape_cast %28 : vector<1x1x128xf32> to vector<1x128xf32>
    %c0_39 = arith.constant 0 : index
    %c0_40 = arith.constant 0 : index
    %c0_41 = arith.constant 0 : index
    %30 = vector.load %arg14[%c0_39, %c0_40, %c0_41] : memref<2x1x128xf32, #tpu.memory_space<vmem>>, vector<1x1x128xf32>
    %31 = vector.shape_cast %30 : vector<1x1x128xf32> to vector<1x128xf32>
    %c0_42 = arith.constant 0 : index
    %c0_43 = arith.constant 0 : index
    %c0_44 = arith.constant 0 : index
    %32 = vector.load %arg15[%c0_42, %c0_43, %c0_44] : memref<2x1x128xf32, #tpu.memory_space<vmem>>, vector<1x1x128xf32>
    %33 = vector.shape_cast %32 : vector<1x1x128xf32> to vector<1x128xf32>
    %c0_45 = arith.constant 0 : index
    %c0_46 = arith.constant 0 : index
    %34 = vector.load %arg23[%c0_45, %c0_46] : memref<16x128xf32, #tpu.memory_space<vmem>>, vector<16x128xf32>
    %35 = arith.truncf %34 : vector<16x128xf32> to vector<16x128xbf16>
    %cst_47 = arith.constant dense<0.000000e+00> : vector<16x384xf32>
    %36 = tpu.matmul %35, %11, %cst_47 {dimension_numbers = #tpu.dot_dimension_numbers<[1], [0], [0], [1], [0, 0, 1, 1], [], []>} : vector<16x128xbf16>, vector<128x384xbf16>, vector<16x384xf32> -> vector<16x384xf32>
    %37 = vector.broadcast %13 : vector<1x384xf32> to vector<16x384xf32>
    %38 = arith.addf %36, %37 : vector<16x384xf32>
    %39 = arith.truncf %38 : vector<16x384xf32> to vector<16x384xbf16>
    %c0_48 = arith.constant 0 : index
    %c0_49 = arith.constant 0 : index
    %40 = vector.load %arg24[%c0_48, %c0_49] : memref<16x384xbf16, #tpu.memory_space<vmem>>, vector<16x384xbf16>
    tpu.vector_store %arg24[%c0_48, %c0_49], %39 {strides = array<i32>} : memref<16x384xbf16, #tpu.memory_space<vmem>>, vector<16x384xbf16>,
    %c0_50 = arith.constant 0 : index
    %c0_51 = arith.constant 0 : index
    %41 = vector.load %arg24[%c0_50, %c0_51] : memref<16x384xbf16, #tpu.memory_space<vmem>>, vector<16x16xbf16>
    %c0_52 = arith.constant 0 : index
    %c128 = arith.constant 128 : index
    %42 = vector.load %arg24[%c0_52, %c128] : memref<16x384xbf16, #tpu.memory_space<vmem>>, vector<16x16xbf16>
    %c0_53 = arith.constant 0 : index
    %c256 = arith.constant 256 : index
    %43 = vector.load %arg24[%c0_53, %c256] : memref<16x384xbf16, #tpu.memory_space<vmem>>, vector<16x16xbf16>
    %cst_54 = arith.constant dense<0.000000e+00> : vector<16x16xf32>
    %44 = tpu.matmul %41, %42, %cst_54 {dimension_numbers = #tpu.dot_dimension_numbers<[1], [1], [0], [0], [0, 0, 1, 0], [], []>} : vector<16x16xbf16>, vector<16x16xbf16>, vector<16x16xf32> -> vector<16x16xf32>
    %cst_55 = arith.constant dense<0xFF800000> : vector<16xf32>
    %45 = vector.multi_reduction <maximumf>, %44, %cst_55 [1] : vector<16x16xf32> to vector<16xf32>
    %46 = vector.shape_cast %45 : vector<16xf32> to vector<16x1xf32>
    %47 = vector.broadcast %46 : vector<16x1xf32> to vector<16x16xf32>
    %48 = arith.subf %44, %47 : vector<16x16xf32>
    %49 = math.exp %48 : vector<16x16xf32>
    %cst_56 = arith.constant dense<0.000000e+00> : vector<16xf32>
    %50 = vector.multi_reduction <add>, %49, %cst_56 [1] : vector<16x16xf32> to vector<16xf32>
    %51 = vector.shape_cast %50 : vector<16xf32> to vector<16x1xf32>
    %52 = tpu.reciprocal %51 {approx = true} : vector<16x1xf32> -> vector<16x1xf32>
    %53 = vector.broadcast %52 : vector<16x1xf32> to vector<16x16xf32>
    %54 = arith.mulf %49, %53 : vector<16x16xf32>
    %55 = arith.truncf %54 : vector<16x16xf32> to vector<16x16xbf16>
    %cst_57 = arith.constant dense<0.000000e+00> : vector<16x16xf32>
    %56 = tpu.matmul %55, %43, %cst_57 {dimension_numbers = #tpu.dot_dimension_numbers<[1], [0], [0], [1], [0, 0, 1, 1], [], []>} : vector<16x16xbf16>, vector<16x16xbf16>, vector<16x16xf32> -> vector<16x16xf32>
    %c0_58 = arith.constant 0 : index
    %c0_59 = arith.constant 0 : index
    %57 = vector.load %arg25[%c0_58, %c0_59] : memref<16x128xf32, #tpu.memory_space<vmem>>, vector<16x16xf32>
    tpu.vector_store %arg25[%c0_58, %c0_59], %56 {strides = array<i32>} : memref<16x128xf32, #tpu.memory_space<vmem>>, vector<16x16xf32>,
    %c0_60 = arith.constant 0 : index
    %c16 = arith.constant 16 : index
    %58 = vector.load %arg24[%c0_60, %c16] : memref<16x384xbf16, #tpu.memory_space<vmem>>, vector<16x16xbf16>
    %c0_61 = arith.constant 0 : index
    %c144 = arith.constant 144 : index
    %59 = vector.load %arg24[%c0_61, %c144] : memref<16x384xbf16, #tpu.memory_space<vmem>>, vector<16x16xbf16>
    %c0_62 = arith.constant 0 : index
    %c272 = arith.constant 272 : index
    %60 = vector.load %arg24[%c0_62, %c272] : memref<16x384xbf16, #tpu.memory_space<vmem>>, vector<16x16xbf16>
    %cst_63 = arith.constant dense<0.000000e+00> : vector<16x16xf32>
    %61 = tpu.matmul %58, %59, %cst_63 {dimension_numbers = #tpu.dot_dimension_numbers<[1], [1], [0], [0], [0, 0, 1, 0], [], []>} : vector<16x16xbf16>, vector<16x16xbf16>, vector<16x16xf32> -> vector<16x16xf32>
    %cst_64 = arith.constant dense<0xFF800000> : vector<16xf32>
    %62 = vector.multi_reduction <maximumf>, %61, %cst_64 [1] : vector<16x16xf32> to vector<16xf32>
    %63 = vector.shape_cast %62 : vector<16xf32> to vector<16x1xf32>
    %64 = vector.broadcast %63 : vector<16x1xf32> to vector<16x16xf32>
    %65 = arith.subf %61, %64 : vector<16x16xf32>
    %66 = math.exp %65 : vector<16x16xf32>
    %cst_65 = arith.constant dense<0.000000e+00> : vector<16xf32>
    %67 = vector.multi_reduction <add>, %66, %cst_65 [1] : vector<16x16xf32> to vector<16xf32>
    %68 = vector.shape_cast %67 : vector<16xf32> to vector<16x1xf32>
    %69 = tpu.reciprocal %68 {approx = true} : vector<16x1xf32> -> vector<16x1xf32>
    %70 = vector.broadcast %69 : vector<16x1xf32> to vector<16x16xf32>
    %71 = arith.mulf %66, %70 : vector<16x16xf32>
    %72 = arith.truncf %71 : vector<16x16xf32> to vector<16x16xbf16>
    %cst_66 = arith.constant dense<0.000000e+00> : vector<16x16xf32>
    %73 = tpu.matmul %72, %60, %cst_66 {dimension_numbers = #tpu.dot_dimension_numbers<[1], [0], [0], [1], [0, 0, 1, 1], [], []>} : vector<16x16xbf16>, vector<16x16xbf16>, vector<16x16xf32> -> vector<16x16xf32>
    %c0_67 = arith.constant 0 : index
    %c16_68 = arith.constant 16 : index
    %74 = vector.load %arg25[%c0_67, %c16_68] : memref<16x128xf32, #tpu.memory_space<vmem>>, vector<16x16xf32>
    tpu.vector_store %arg25[%c0_67, %c16_68], %73 {strides = array<i32>} : memref<16x128xf32, #tpu.memory_space<vmem>>, vector<16x16xf32>,
    %c0_69 = arith.constant 0 : index
    %c32 = arith.constant 32 : index
    %75 = vector.load %arg24[%c0_69, %c32] : memref<16x384xbf16, #tpu.memory_space<vmem>>, vector<16x16xbf16>
    %c0_70 = arith.constant 0 : index
    %c160 = arith.constant 160 : index
    %76 = vector.load %arg24[%c0_70, %c160] : memref<16x384xbf16, #tpu.memory_space<vmem>>, vector<16x16xbf16>
    %c0_71 = arith.constant 0 : index
    %c288 = arith.constant 288 : index
    %77 = vector.load %arg24[%c0_71, %c288] : memref<16x384xbf16, #tpu.memory_space<vmem>>, vector<16x16xbf16>
    %cst_72 = arith.constant dense<0.000000e+00> : vector<16x16xf32>
    %78 = tpu.matmul %75, %76, %cst_72 {dimension_numbers = #tpu.dot_dimension_numbers<[1], [1], [0], [0], [0, 0, 1, 0], [], []>} : vector<16x16xbf16>, vector<16x16xbf16>, vector<16x16xf32> -> vector<16x16xf32>
    %cst_73 = arith.constant dense<0xFF800000> : vector<16xf32>
    %79 = vector.multi_reduction <maximumf>, %78, %cst_73 [1] : vector<16x16xf32> to vector<16xf32>
    %80 = vector.shape_cast %79 : vector<16xf32> to vector<16x1xf32>
    %81 = vector.broadcast %80 : vector<16x1xf32> to vector<16x16xf32>
    %82 = arith.subf %78, %81 : vector<16x16xf32>
    %83 = math.exp %82 : vector<16x16xf32>
    %cst_74 = arith.constant dense<0.000000e+00> : vector<16xf32>
    %84 = vector.multi_reduction <add>, %83, %cst_74 [1] : vector<16x16xf32> to vector<16xf32>
    %85 = vector.shape_cast %84 : vector<16xf32> to vector<16x1xf32>
    %86 = tpu.reciprocal %85 {approx = true} : vector<16x1xf32> -> vector<16x1xf32>
    %87 = vector.broadcast %86 : vector<16x1xf32> to vector<16x16xf32>
    %88 = arith.mulf %83, %87 : vector<16x16xf32>
    %89 = arith.truncf %88 : vector<16x16xf32> to vector<16x16xbf16>
    %cst_75 = arith.constant dense<0.000000e+00> : vector<16x16xf32>
    %90 = tpu.matmul %89, %77, %cst_75 {dimension_numbers = #tpu.dot_dimension_numbers<[1], [0], [0], [1], [0, 0, 1, 1], [], []>} : vector<16x16xbf16>, vector<16x16xbf16>, vector<16x16xf32> -> vector<16x16xf32>
    %c0_76 = arith.constant 0 : index
    %c32_77 = arith.constant 32 : index
    %91 = vector.load %arg25[%c0_76, %c32_77] : memref<16x128xf32, #tpu.memory_space<vmem>>, vector<16x16xf32>
    tpu.vector_store %arg25[%c0_76, %c32_77], %90 {strides = array<i32>} : memref<16x128xf32, #tpu.memory_space<vmem>>, vector<16x16xf32>,
    %c0_78 = arith.constant 0 : index
    %c48 = arith.constant 48 : index
    %92 = vector.load %arg24[%c0_78, %c48] : memref<16x384xbf16, #tpu.memory_space<vmem>>, vector<16x16xbf16>
    %c0_79 = arith.constant 0 : index
    %c176 = arith.constant 176 : index
    %93 = vector.load %arg24[%c0_79, %c176] : memref<16x384xbf16, #tpu.memory_space<vmem>>, vector<16x16xbf16>
    %c0_80 = arith.constant 0 : index
    %c304 = arith.constant 304 : index
    %94 = vector.load %arg24[%c0_80, %c304] : memref<16x384xbf16, #tpu.memory_space<vmem>>, vector<16x16xbf16>
    %cst_81 = arith.constant dense<0.000000e+00> : vector<16x16xf32>
    %95 = tpu.matmul %92, %93, %cst_81 {dimension_numbers = #tpu.dot_dimension_numbers<[1], [1], [0], [0], [0, 0, 1, 0], [], []>} : vector<16x16xbf16>, vector<16x16xbf16>, vector<16x16xf32> -> vector<16x16xf32>
    %cst_82 = arith.constant dense<0xFF800000> : vector<16xf32>
    %96 = vector.multi_reduction <maximumf>, %95, %cst_82 [1] : vector<16x16xf32> to vector<16xf32>
    %97 = vector.shape_cast %96 : vector<16xf32> to vector<16x1xf32>
    %98 = vector.broadcast %97 : vector<16x1xf32> to vector<16x16xf32>
    %99 = arith.subf %95, %98 : vector<16x16xf32>
    %100 = math.exp %99 : vector<16x16xf32>
    %cst_83 = arith.constant dense<0.000000e+00> : vector<16xf32>
    %101 = vector.multi_reduction <add>, %100, %cst_83 [1] : vector<16x16xf32> to vector<16xf32>
    %102 = vector.shape_cast %101 : vector<16xf32> to vector<16x1xf32>
    %103 = tpu.reciprocal %102 {approx = true} : vector<16x1xf32> -> vector<16x1xf32>
    %104 = vector.broadcast %103 : vector<16x1xf32> to vector<16x16xf32>
    %105 = arith.mulf %100, %104 : vector<16x16xf32>
    %106 = arith.truncf %105 : vector<16x16xf32> to vector<16x16xbf16>
    %cst_84 = arith.constant dense<0.000000e+00> : vector<16x16xf32>
    %107 = tpu.matmul %106, %94, %cst_84 {dimension_numbers = #tpu.dot_dimension_numbers<[1], [0], [0], [1], [0, 0, 1, 1], [], []>} : vector<16x16xbf16>, vector<16x16xbf16>, vector<16x16xf32> -> vector<16x16xf32>
    %c0_85 = arith.constant 0 : index
    %c48_86 = arith.constant 48 : index
    %108 = vector.load %arg25[%c0_85, %c48_86] : memref<16x128xf32, #tpu.memory_space<vmem>>, vector<16x16xf32>
    tpu.vector_store %arg25[%c0_85, %c48_86], %107 {strides = array<i32>} : memref<16x128xf32, #tpu.memory_space<vmem>>, vector<16x16xf32>,
    %c0_87 = arith.constant 0 : index
    %c64 = arith.constant 64 : index
    %109 = vector.load %arg24[%c0_87, %c64] : memref<16x384xbf16, #tpu.memory_space<vmem>>, vector<16x16xbf16>
    %c0_88 = arith.constant 0 : index
    %c192 = arith.constant 192 : index
    %110 = vector.load %arg24[%c0_88, %c192] : memref<16x384xbf16, #tpu.memory_space<vmem>>, vector<16x16xbf16>
    %c0_89 = arith.constant 0 : index
    %c320 = arith.constant 320 : index
    %111 = vector.load %arg24[%c0_89, %c320] : memref<16x384xbf16, #tpu.memory_space<vmem>>, vector<16x16xbf16>
    %cst_90 = arith.constant dense<0.000000e+00> : vector<16x16xf32>
    %112 = tpu.matmul %109, %110, %cst_90 {dimension_numbers = #tpu.dot_dimension_numbers<[1], [1], [0], [0], [0, 0, 1, 0], [], []>} : vector<16x16xbf16>, vector<16x16xbf16>, vector<16x16xf32> -> vector<16x16xf32>
    %cst_91 = arith.constant dense<0xFF800000> : vector<16xf32>
    %113 = vector.multi_reduction <maximumf>, %112, %cst_91 [1] : vector<16x16xf32> to vector<16xf32>
    %114 = vector.shape_cast %113 : vector<16xf32> to vector<16x1xf32>
    %115 = vector.broadcast %114 : vector<16x1xf32> to vector<16x16xf32>
    %116 = arith.subf %112, %115 : vector<16x16xf32>
    %117 = math.exp %116 : vector<16x16xf32>
    %cst_92 = arith.constant dense<0.000000e+00> : vector<16xf32>
    %118 = vector.multi_reduction <add>, %117, %cst_92 [1] : vector<16x16xf32> to vector<16xf32>
    %119 = vector.shape_cast %118 : vector<16xf32> to vector<16x1xf32>
    %120 = tpu.reciprocal %119 {approx = true} : vector<16x1xf32> -> vector<16x1xf32>
    %121 = vector.broadcast %120 : vector<16x1xf32> to vector<16x16xf32>
    %122 = arith.mulf %117, %121 : vector<16x16xf32>
    %123 = arith.truncf %122 : vector<16x16xf32> to vector<16x16xbf16>
    %cst_93 = arith.constant dense<0.000000e+00> : vector<16x16xf32>
    %124 = tpu.matmul %123, %111, %cst_93 {dimension_numbers = #tpu.dot_dimension_numbers<[1], [0], [0], [1], [0, 0, 1, 1], [], []>} : vector<16x16xbf16>, vector<16x16xbf16>, vector<16x16xf32> -> vector<16x16xf32>
    %c0_94 = arith.constant 0 : index
    %c64_95 = arith.constant 64 : index
    %125 = vector.load %arg25[%c0_94, %c64_95] : memref<16x128xf32, #tpu.memory_space<vmem>>, vector<16x16xf32>
    tpu.vector_store %arg25[%c0_94, %c64_95], %124 {strides = array<i32>} : memref<16x128xf32, #tpu.memory_space<vmem>>, vector<16x16xf32>,
    %c0_96 = arith.constant 0 : index
    %c80 = arith.constant 80 : index
    %126 = vector.load %arg24[%c0_96, %c80] : memref<16x384xbf16, #tpu.memory_space<vmem>>, vector<16x16xbf16>
    %c0_97 = arith.constant 0 : index
    %c208 = arith.constant 208 : index
    %127 = vector.load %arg24[%c0_97, %c208] : memref<16x384xbf16, #tpu.memory_space<vmem>>, vector<16x16xbf16>
    %c0_98 = arith.constant 0 : index
    %c336 = arith.constant 336 : index
    %128 = vector.load %arg24[%c0_98, %c336] : memref<16x384xbf16, #tpu.memory_space<vmem>>, vector<16x16xbf16>
    %cst_99 = arith.constant dense<0.000000e+00> : vector<16x16xf32>
    %129 = tpu.matmul %126, %127, %cst_99 {dimension_numbers = #tpu.dot_dimension_numbers<[1], [1], [0], [0], [0, 0, 1, 0], [], []>} : vector<16x16xbf16>, vector<16x16xbf16>, vector<16x16xf32> -> vector<16x16xf32>
    %cst_100 = arith.constant dense<0xFF800000> : vector<16xf32>
    %130 = vector.multi_reduction <maximumf>, %129, %cst_100 [1] : vector<16x16xf32> to vector<16xf32>
    %131 = vector.shape_cast %130 : vector<16xf32> to vector<16x1xf32>
    %132 = vector.broadcast %131 : vector<16x1xf32> to vector<16x16xf32>
    %133 = arith.subf %129, %132 : vector<16x16xf32>
    %134 = math.exp %133 : vector<16x16xf32>
    %cst_101 = arith.constant dense<0.000000e+00> : vector<16xf32>
    %135 = vector.multi_reduction <add>, %134, %cst_101 [1] : vector<16x16xf32> to vector<16xf32>
    %136 = vector.shape_cast %135 : vector<16xf32> to vector<16x1xf32>
    %137 = tpu.reciprocal %136 {approx = true} : vector<16x1xf32> -> vector<16x1xf32>
    %138 = vector.broadcast %137 : vector<16x1xf32> to vector<16x16xf32>
    %139 = arith.mulf %134, %138 : vector<16x16xf32>
    %140 = arith.truncf %139 : vector<16x16xf32> to vector<16x16xbf16>
    %cst_102 = arith.constant dense<0.000000e+00> : vector<16x16xf32>
    %141 = tpu.matmul %140, %128, %cst_102 {dimension_numbers = #tpu.dot_dimension_numbers<[1], [0], [0], [1], [0, 0, 1, 1], [], []>} : vector<16x16xbf16>, vector<16x16xbf16>, vector<16x16xf32> -> vector<16x16xf32>
    %c0_103 = arith.constant 0 : index
    %c80_104 = arith.constant 80 : index
    %142 = vector.load %arg25[%c0_103, %c80_104] : memref<16x128xf32, #tpu.memory_space<vmem>>, vector<16x16xf32>
    tpu.vector_store %arg25[%c0_103, %c80_104], %141 {strides = array<i32>} : memref<16x128xf32, #tpu.memory_space<vmem>>, vector<16x16xf32>,
    %c0_105 = arith.constant 0 : index
    %c96 = arith.constant 96 : index
    %143 = vector.load %arg24[%c0_105, %c96] : memref<16x384xbf16, #tpu.memory_space<vmem>>, vector<16x16xbf16>
    %c0_106 = arith.constant 0 : index
    %c224 = arith.constant 224 : index
    %144 = vector.load %arg24[%c0_106, %c224] : memref<16x384xbf16, #tpu.memory_space<vmem>>, vector<16x16xbf16>
    %c0_107 = arith.constant 0 : index
    %c352 = arith.constant 352 : index
    %145 = vector.load %arg24[%c0_107, %c352] : memref<16x384xbf16, #tpu.memory_space<vmem>>, vector<16x16xbf16>
    %cst_108 = arith.constant dense<0.000000e+00> : vector<16x16xf32>
    %146 = tpu.matmul %143, %144, %cst_108 {dimension_numbers = #tpu.dot_dimension_numbers<[1], [1], [0], [0], [0, 0, 1, 0], [], []>} : vector<16x16xbf16>, vector<16x16xbf16>, vector<16x16xf32> -> vector<16x16xf32>
    %cst_109 = arith.constant dense<0xFF800000> : vector<16xf32>
    %147 = vector.multi_reduction <maximumf>, %146, %cst_109 [1] : vector<16x16xf32> to vector<16xf32>
    %148 = vector.shape_cast %147 : vector<16xf32> to vector<16x1xf32>
    %149 = vector.broadcast %148 : vector<16x1xf32> to vector<16x16xf32>
    %150 = arith.subf %146, %149 : vector<16x16xf32>
    %151 = math.exp %150 : vector<16x16xf32>
    %cst_110 = arith.constant dense<0.000000e+00> : vector<16xf32>
    %152 = vector.multi_reduction <add>, %151, %cst_110 [1] : vector<16x16xf32> to vector<16xf32>
    %153 = vector.shape_cast %152 : vector<16xf32> to vector<16x1xf32>
    %154 = tpu.reciprocal %153 {approx = true} : vector<16x1xf32> -> vector<16x1xf32>
    %155 = vector.broadcast %154 : vector<16x1xf32> to vector<16x16xf32>
    %156 = arith.mulf %151, %155 : vector<16x16xf32>
    %157 = arith.truncf %156 : vector<16x16xf32> to vector<16x16xbf16>
    %cst_111 = arith.constant dense<0.000000e+00> : vector<16x16xf32>
    %158 = tpu.matmul %157, %145, %cst_111 {dimension_numbers = #tpu.dot_dimension_numbers<[1], [0], [0], [1], [0, 0, 1, 1], [], []>} : vector<16x16xbf16>, vector<16x16xbf16>, vector<16x16xf32> -> vector<16x16xf32>
    %c0_112 = arith.constant 0 : index
    %c96_113 = arith.constant 96 : index
    %159 = vector.load %arg25[%c0_112, %c96_113] : memref<16x128xf32, #tpu.memory_space<vmem>>, vector<16x16xf32>
    tpu.vector_store %arg25[%c0_112, %c96_113], %158 {strides = array<i32>} : memref<16x128xf32, #tpu.memory_space<vmem>>, vector<16x16xf32>,
    %c0_114 = arith.constant 0 : index
    %c112 = arith.constant 112 : index
    %160 = vector.load %arg24[%c0_114, %c112] : memref<16x384xbf16, #tpu.memory_space<vmem>>, vector<16x16xbf16>
    %c0_115 = arith.constant 0 : index
    %c240 = arith.constant 240 : index
    %161 = vector.load %arg24[%c0_115, %c240] : memref<16x384xbf16, #tpu.memory_space<vmem>>, vector<16x16xbf16>
    %c0_116 = arith.constant 0 : index
    %c368 = arith.constant 368 : index
    %162 = vector.load %arg24[%c0_116, %c368] : memref<16x384xbf16, #tpu.memory_space<vmem>>, vector<16x16xbf16>
    %cst_117 = arith.constant dense<0.000000e+00> : vector<16x16xf32>
    %163 = tpu.matmul %160, %161, %cst_117 {dimension_numbers = #tpu.dot_dimension_numbers<[1], [1], [0], [0], [0, 0, 1, 0], [], []>} : vector<16x16xbf16>, vector<16x16xbf16>, vector<16x16xf32> -> vector<16x16xf32>
    %cst_118 = arith.constant dense<0xFF800000> : vector<16xf32>
    %164 = vector.multi_reduction <maximumf>, %163, %cst_118 [1] : vector<16x16xf32> to vector<16xf32>
    %165 = vector.shape_cast %164 : vector<16xf32> to vector<16x1xf32>
    %166 = vector.broadcast %165 : vector<16x1xf32> to vector<16x16xf32>
    %167 = arith.subf %163, %166 : vector<16x16xf32>
    %168 = math.exp %167 : vector<16x16xf32>
    %cst_119 = arith.constant dense<0.000000e+00> : vector<16xf32>
    %169 = vector.multi_reduction <add>, %168, %cst_119 [1] : vector<16x16xf32> to vector<16xf32>
    %170 = vector.shape_cast %169 : vector<16xf32> to vector<16x1xf32>
    %171 = tpu.reciprocal %170 {approx = true} : vector<16x1xf32> -> vector<16x1xf32>
    %172 = vector.broadcast %171 : vector<16x1xf32> to vector<16x16xf32>
    %173 = arith.mulf %168, %172 : vector<16x16xf32>
    %174 = arith.truncf %173 : vector<16x16xf32> to vector<16x16xbf16>
    %cst_120 = arith.constant dense<0.000000e+00> : vector<16x16xf32>
    %175 = tpu.matmul %174, %162, %cst_120 {dimension_numbers = #tpu.dot_dimension_numbers<[1], [0], [0], [1], [0, 0, 1, 1], [], []>} : vector<16x16xbf16>, vector<16x16xbf16>, vector<16x16xf32> -> vector<16x16xf32>
    %c0_121 = arith.constant 0 : index
    %c112_122 = arith.constant 112 : index
    %176 = vector.load %arg25[%c0_121, %c112_122] : memref<16x128xf32, #tpu.memory_space<vmem>>, vector<16x16xf32>
    tpu.vector_store %arg25[%c0_121, %c112_122], %175 {strides = array<i32>} : memref<16x128xf32, #tpu.memory_space<vmem>>, vector<16x16xf32>,
    %c0_123 = arith.constant 0 : index
    %c0_124 = arith.constant 0 : index
    %177 = vector.load %arg25[%c0_123, %c0_124] : memref<16x128xf32, #tpu.memory_space<vmem>>, vector<16x128xf32>
    %178 = arith.truncf %177 : vector<16x128xf32> to vector<16x128xbf16>
    %cst_125 = arith.constant dense<0.000000e+00> : vector<16x128xf32>
    %179 = tpu.matmul %178, %15, %cst_125 {dimension_numbers = #tpu.dot_dimension_numbers<[1], [0], [0], [1], [0, 0, 1, 1], [], []>} : vector<16x128xbf16>, vector<128x128xbf16>, vector<16x128xf32> -> vector<16x128xf32>
    %180 = vector.broadcast %17 : vector<1x128xf32> to vector<16x128xf32>
    %181 = arith.addf %179, %180 : vector<16x128xf32>
    %c0_126 = arith.constant 0 : index
    %c0_127 = arith.constant 0 : index
    %182 = vector.load %arg23[%c0_126, %c0_127] : memref<16x128xf32, #tpu.memory_space<vmem>>, vector<16x128xf32>
    %183 = arith.addf %182, %181 : vector<16x128xf32>
    %cst_128 = arith.constant dense<0.000000e+00> : vector<16xf32>
    %184 = vector.multi_reduction <add>, %183, %cst_128 [1] : vector<16x128xf32> to vector<16xf32>
    %185 = vector.shape_cast %184 : vector<16xf32> to vector<16x1xf32>
    %cst_129 = arith.constant 1.280000e+02 : f32
    %186 = vector.broadcast %cst_129 : f32 to vector<16x1xf32>
    %187 = arith.divf %185, %186 : vector<16x1xf32>
    %188 = vector.broadcast %187 : vector<16x1xf32> to vector<16x128xf32>
    %189 = arith.subf %183, %188 : vector<16x128xf32>
    %190 = arith.mulf %189, %189 : vector<16x128xf32>
    %cst_130 = arith.constant dense<0.000000e+00> : vector<16xf32>
    %191 = vector.multi_reduction <add>, %190, %cst_130 [1] : vector<16x128xf32> to vector<16xf32>
    %192 = vector.shape_cast %191 : vector<16xf32> to vector<16x1xf32>
    %cst_131 = arith.constant 1.280000e+02 : f32
    %193 = vector.broadcast %cst_131 : f32 to vector<16x1xf32>
    %194 = arith.divf %192, %193 : vector<16x1xf32>
    %195 = vector.broadcast %187 : vector<16x1xf32> to vector<16x128xf32>
    %196 = arith.subf %183, %195 : vector<16x128xf32>
    %cst_132 = arith.constant 9.99999974E-6 : f32
    %197 = vector.broadcast %cst_132 : f32 to vector<16x1xf32>
    %198 = arith.addf %194, %197 : vector<16x1xf32>
    %199 = math.rsqrt %198 : vector<16x1xf32>
    %200 = vector.broadcast %199 : vector<16x1xf32> to vector<16x128xf32>
    %201 = arith.mulf %196, %200 : vector<16x128xf32>
    %202 = vector.broadcast %27 : vector<1x128xf32> to vector<16x128xf32>
    %203 = arith.mulf %201, %202 : vector<16x128xf32>
    %204 = vector.broadcast %29 : vector<1x128xf32> to vector<16x128xf32>
    %205 = arith.addf %203, %204 : vector<16x128xf32>
    %206 = arith.truncf %205 : vector<16x128xf32> to vector<16x128xbf16>
    %cst_133 = arith.constant dense<0.000000e+00> : vector<16x2048xf32>
    %207 = tpu.matmul %206, %19, %cst_133 {dimension_numbers = #tpu.dot_dimension_numbers<[1], [0], [0], [1], [0, 0, 1, 1], [], []>} : vector<16x128xbf16>, vector<128x2048xbf16>, vector<16x2048xf32> -> vector<16x2048xf32>
    %208 = vector.broadcast %21 : vector<1x2048xf32> to vector<16x2048xf32>
    %209 = arith.addf %207, %208 : vector<16x2048xf32>
    %cst_134 = arith.constant 0.000000e+00 : f32
    %210 = vector.broadcast %cst_134 : f32 to vector<16x2048xf32>
    %211 = arith.maximumf %209, %210 : vector<16x2048xf32>
    %212 = arith.truncf %211 : vector<16x2048xf32> to vector<16x2048xbf16>
    %cst_135 = arith.constant dense<0.000000e+00> : vector<16x128xf32>
    %213 = tpu.matmul %212, %23, %cst_135 {dimension_numbers = #tpu.dot_dimension_numbers<[1], [0], [0], [1], [0, 0, 1, 1], [], []>} : vector<16x2048xbf16>, vector<2048x128xbf16>, vector<16x128xf32> -> vector<16x128xf32>
    %214 = vector.broadcast %25 : vector<1x128xf32> to vector<16x128xf32>
    %215 = arith.addf %213, %214 : vector<16x128xf32>
    %216 = arith.addf %205, %215 : vector<16x128xf32>
    %cst_136 = arith.constant dense<0.000000e+00> : vector<16xf32>
    %217 = vector.multi_reduction <add>, %216, %cst_136 [1] : vector<16x128xf32> to vector<16xf32>
    %218 = vector.shape_cast %217 : vector<16xf32> to vector<16x1xf32>
    %cst_137 = arith.constant 1.280000e+02 : f32
    %219 = vector.broadcast %cst_137 : f32 to vector<16x1xf32>
    %220 = arith.divf %218, %219 : vector<16x1xf32>
    %221 = vector.broadcast %220 : vector<16x1xf32> to vector<16x128xf32>
    %222 = arith.subf %216, %221 : vector<16x128xf32>
    %223 = arith.mulf %222, %222 : vector<16x128xf32>
    %cst_138 = arith.constant dense<0.000000e+00> : vector<16xf32>
    %224 = vector.multi_reduction <add>, %223, %cst_138 [1] : vector<16x128xf32> to vector<16xf32>
    %225 = vector.shape_cast %224 : vector<16xf32> to vector<16x1xf32>
    %cst_139 = arith.constant 1.280000e+02 : f32
    %226 = vector.broadcast %cst_139 : f32 to vector<16x1xf32>
    %227 = arith.divf %225, %226 : vector<16x1xf32>
    %228 = vector.broadcast %220 : vector<16x1xf32> to vector<16x128xf32>
    %229 = arith.subf %216, %228 : vector<16x128xf32>
    %cst_140 = arith.constant 9.99999974E-6 : f32
    %230 = vector.broadcast %cst_140 : f32 to vector<16x1xf32>
    %231 = arith.addf %227, %230 : vector<16x1xf32>
    %232 = math.rsqrt %231 : vector<16x1xf32>
    %233 = vector.broadcast %232 : vector<16x1xf32> to vector<16x128xf32>
    %234 = arith.mulf %229, %233 : vector<16x128xf32>
    %235 = vector.broadcast %31 : vector<1x128xf32> to vector<16x128xf32>
    %236 = arith.mulf %234, %235 : vector<16x128xf32>
    %237 = vector.broadcast %33 : vector<1x128xf32> to vector<16x128xf32>
    %238 = arith.addf %236, %237 : vector<16x128xf32>
    %c0_141 = arith.constant 0 : index
    %c0_142 = arith.constant 0 : index
    %239 = vector.load %arg23[%c0_141, %c0_142] : memref<16x128xf32, #tpu.memory_space<vmem>>, vector<16x128xf32>
    tpu.vector_store %arg23[%c0_141, %c0_142], %238 {strides = array<i32>} : memref<16x128xf32, #tpu.memory_space<vmem>>, vector<16x128xf32>,
    %c1 = arith.constant 1 : index
    %c0_143 = arith.constant 0 : index
    %c0_144 = arith.constant 0 : index
    %240 = vector.load %arg4[%c1, %c0_143, %c0_144] : memref<2x128x384xbf16, #tpu.memory_space<vmem>>, vector<1x128x384xbf16>
    %241 = vector.shape_cast %240 : vector<1x128x384xbf16> to vector<128x384xbf16>
    %c1_145 = arith.constant 1 : index
    %c0_146 = arith.constant 0 : index
    %c0_147 = arith.constant 0 : index
    %242 = vector.load %arg5[%c1_145, %c0_146, %c0_147] : memref<2x1x384xf32, #tpu.memory_space<vmem>>, vector<1x1x384xf32>
    %243 = vector.shape_cast %242 : vector<1x1x384xf32> to vector<1x384xf32>
    %c1_148 = arith.constant 1 : index
    %c0_149 = arith.constant 0 : index
    %c0_150 = arith.constant 0 : index
    %244 = vector.load %arg6[%c1_148, %c0_149, %c0_150] : memref<2x128x128xbf16, #tpu.memory_space<vmem>>, vector<1x128x128xbf16>
    %245 = vector.shape_cast %244 : vector<1x128x128xbf16> to vector<128x128xbf16>
    %c1_151 = arith.constant 1 : index
    %c0_152 = arith.constant 0 : index
    %c0_153 = arith.constant 0 : index
    %246 = vector.load %arg7[%c1_151, %c0_152, %c0_153] : memref<2x1x128xf32, #tpu.memory_space<vmem>>, vector<1x1x128xf32>
    %247 = vector.shape_cast %246 : vector<1x1x128xf32> to vector<1x128xf32>
    %c1_154 = arith.constant 1 : index
    %c0_155 = arith.constant 0 : index
    %c0_156 = arith.constant 0 : index
    %248 = vector.load %arg8[%c1_154, %c0_155, %c0_156] : memref<2x128x2048xbf16, #tpu.memory_space<vmem>>, vector<1x128x2048xbf16>
    %249 = vector.shape_cast %248 : vector<1x128x2048xbf16> to vector<128x2048xbf16>
    %c1_157 = arith.constant 1 : index
    %c0_158 = arith.constant 0 : index
    %c0_159 = arith.constant 0 : index
    %250 = vector.load %arg9[%c1_157, %c0_158, %c0_159] : memref<2x1x2048xf32, #tpu.memory_space<vmem>>, vector<1x1x2048xf32>
    %251 = vector.shape_cast %250 : vector<1x1x2048xf32> to vector<1x2048xf32>
    %c1_160 = arith.constant 1 : index
    %c0_161 = arith.constant 0 : index
    %c0_162 = arith.constant 0 : index
    %252 = vector.load %arg10[%c1_160, %c0_161, %c0_162] : memref<2x2048x128xbf16, #tpu.memory_space<vmem>>, vector<1x2048x128xbf16>
    %253 = vector.shape_cast %252 : vector<1x2048x128xbf16> to vector<2048x128xbf16>
    %c1_163 = arith.constant 1 : index
    %c0_164 = arith.constant 0 : index
    %c0_165 = arith.constant 0 : index
    %254 = vector.load %arg11[%c1_163, %c0_164, %c0_165] : memref<2x1x128xf32, #tpu.memory_space<vmem>>, vector<1x1x128xf32>
    %255 = vector.shape_cast %254 : vector<1x1x128xf32> to vector<1x128xf32>
    %c1_166 = arith.constant 1 : index
    %c0_167 = arith.constant 0 : index
    %c0_168 = arith.constant 0 : index
    %256 = vector.load %arg12[%c1_166, %c0_167, %c0_168] : memref<2x1x128xf32, #tpu.memory_space<vmem>>, vector<1x1x128xf32>
    %257 = vector.shape_cast %256 : vector<1x1x128xf32> to vector<1x128xf32>
    %c1_169 = arith.constant 1 : index
    %c0_170 = arith.constant 0 : index
    %c0_171 = arith.constant 0 : index
    %258 = vector.load %arg13[%c1_169, %c0_170, %c0_171] : memref<2x1x128xf32, #tpu.memory_space<vmem>>, vector<1x1x128xf32>
    %259 = vector.shape_cast %258 : vector<1x1x128xf32> to vector<1x128xf32>
    %c1_172 = arith.constant 1 : index
    %c0_173 = arith.constant 0 : index
    %c0_174 = arith.constant 0 : index
    %260 = vector.load %arg14[%c1_172, %c0_173, %c0_174] : memref<2x1x128xf32, #tpu.memory_space<vmem>>, vector<1x1x128xf32>
    %261 = vector.shape_cast %260 : vector<1x1x128xf32> to vector<1x128xf32>
    %c1_175 = arith.constant 1 : index
    %c0_176 = arith.constant 0 : index
    %c0_177 = arith.constant 0 : index
    %262 = vector.load %arg15[%c1_175, %c0_176, %c0_177] : memref<2x1x128xf32, #tpu.memory_space<vmem>>, vector<1x1x128xf32>
    %263 = vector.shape_cast %262 : vector<1x1x128xf32> to vector<1x128xf32>
    %c0_178 = arith.constant 0 : index
    %c0_179 = arith.constant 0 : index
    %264 = vector.load %arg23[%c0_178, %c0_179] : memref<16x128xf32, #tpu.memory_space<vmem>>, vector<16x128xf32>
    %265 = arith.truncf %264 : vector<16x128xf32> to vector<16x128xbf16>
    %cst_180 = arith.constant dense<0.000000e+00> : vector<16x384xf32>
    %266 = tpu.matmul %265, %241, %cst_180 {dimension_numbers = #tpu.dot_dimension_numbers<[1], [0], [0], [1], [0, 0, 1, 1], [], []>} : vector<16x128xbf16>, vector<128x384xbf16>, vector<16x384xf32> -> vector<16x384xf32>
    %267 = vector.broadcast %243 : vector<1x384xf32> to vector<16x384xf32>
    %268 = arith.addf %266, %267 : vector<16x384xf32>
    %269 = arith.truncf %268 : vector<16x384xf32> to vector<16x384xbf16>
    %c0_181 = arith.constant 0 : index
    %c0_182 = arith.constant 0 : index
    %270 = vector.load %arg24[%c0_181, %c0_182] : memref<16x384xbf16, #tpu.memory_space<vmem>>, vector<16x384xbf16>
    tpu.vector_store %arg24[%c0_181, %c0_182], %269 {strides = array<i32>} : memref<16x384xbf16, #tpu.memory_space<vmem>>, vector<16x384xbf16>,
    %c0_183 = arith.constant 0 : index
    %c0_184 = arith.constant 0 : index
    %271 = vector.load %arg24[%c0_183, %c0_184] : memref<16x384xbf16, #tpu.memory_space<vmem>>, vector<16x16xbf16>
    %c0_185 = arith.constant 0 : index
    %c128_186 = arith.constant 128 : index
    %272 = vector.load %arg24[%c0_185, %c128_186] : memref<16x384xbf16, #tpu.memory_space<vmem>>, vector<16x16xbf16>
    %c0_187 = arith.constant 0 : index
    %c256_188 = arith.constant 256 : index
    %273 = vector.load %arg24[%c0_187, %c256_188] : memref<16x384xbf16, #tpu.memory_space<vmem>>, vector<16x16xbf16>
    %cst_189 = arith.constant dense<0.000000e+00> : vector<16x16xf32>
    %274 = tpu.matmul %271, %272, %cst_189 {dimension_numbers = #tpu.dot_dimension_numbers<[1], [1], [0], [0], [0, 0, 1, 0], [], []>} : vector<16x16xbf16>, vector<16x16xbf16>, vector<16x16xf32> -> vector<16x16xf32>
    %cst_190 = arith.constant dense<0xFF800000> : vector<16xf32>
    %275 = vector.multi_reduction <maximumf>, %274, %cst_190 [1] : vector<16x16xf32> to vector<16xf32>
    %276 = vector.shape_cast %275 : vector<16xf32> to vector<16x1xf32>
    %277 = vector.broadcast %276 : vector<16x1xf32> to vector<16x16xf32>
    %278 = arith.subf %274, %277 : vector<16x16xf32>
    %279 = math.exp %278 : vector<16x16xf32>
    %cst_191 = arith.constant dense<0.000000e+00> : vector<16xf32>
    %280 = vector.multi_reduction <add>, %279, %cst_191 [1] : vector<16x16xf32> to vector<16xf32>
    %281 = vector.shape_cast %280 : vector<16xf32> to vector<16x1xf32>
    %282 = tpu.reciprocal %281 {approx = true} : vector<16x1xf32> -> vector<16x1xf32>
    %283 = vector.broadcast %282 : vector<16x1xf32> to vector<16x16xf32>
    %284 = arith.mulf %279, %283 : vector<16x16xf32>
    %285 = arith.truncf %284 : vector<16x16xf32> to vector<16x16xbf16>
    %cst_192 = arith.constant dense<0.000000e+00> : vector<16x16xf32>
    %286 = tpu.matmul %285, %273, %cst_192 {dimension_numbers = #tpu.dot_dimension_numbers<[1], [0], [0], [1], [0, 0, 1, 1], [], []>} : vector<16x16xbf16>, vector<16x16xbf16>, vector<16x16xf32> -> vector<16x16xf32>
    %c0_193 = arith.constant 0 : index
    %c0_194 = arith.constant 0 : index
    %287 = vector.load %arg25[%c0_193, %c0_194] : memref<16x128xf32, #tpu.memory_space<vmem>>, vector<16x16xf32>
    tpu.vector_store %arg25[%c0_193, %c0_194], %286 {strides = array<i32>} : memref<16x128xf32, #tpu.memory_space<vmem>>, vector<16x16xf32>,
    %c0_195 = arith.constant 0 : index
    %c16_196 = arith.constant 16 : index
    %288 = vector.load %arg24[%c0_195, %c16_196] : memref<16x384xbf16, #tpu.memory_space<vmem>>, vector<16x16xbf16>
    %c0_197 = arith.constant 0 : index
    %c144_198 = arith.constant 144 : index
    %289 = vector.load %arg24[%c0_197, %c144_198] : memref<16x384xbf16, #tpu.memory_space<vmem>>, vector<16x16xbf16>
    %c0_199 = arith.constant 0 : index
    %c272_200 = arith.constant 272 : index
    %290 = vector.load %arg24[%c0_199, %c272_200] : memref<16x384xbf16, #tpu.memory_space<vmem>>, vector<16x16xbf16>
    %cst_201 = arith.constant dense<0.000000e+00> : vector<16x16xf32>
    %291 = tpu.matmul %288, %289, %cst_201 {dimension_numbers = #tpu.dot_dimension_numbers<[1], [1], [0], [0], [0, 0, 1, 0], [], []>} : vector<16x16xbf16>, vector<16x16xbf16>, vector<16x16xf32> -> vector<16x16xf32>
    %cst_202 = arith.constant dense<0xFF800000> : vector<16xf32>
    %292 = vector.multi_reduction <maximumf>, %291, %cst_202 [1] : vector<16x16xf32> to vector<16xf32>
    %293 = vector.shape_cast %292 : vector<16xf32> to vector<16x1xf32>
    %294 = vector.broadcast %293 : vector<16x1xf32> to vector<16x16xf32>
    %295 = arith.subf %291, %294 : vector<16x16xf32>
    %296 = math.exp %295 : vector<16x16xf32>
    %cst_203 = arith.constant dense<0.000000e+00> : vector<16xf32>
    %297 = vector.multi_reduction <add>, %296, %cst_203 [1] : vector<16x16xf32> to vector<16xf32>
    %298 = vector.shape_cast %297 : vector<16xf32> to vector<16x1xf32>
    %299 = tpu.reciprocal %298 {approx = true} : vector<16x1xf32> -> vector<16x1xf32>
    %300 = vector.broadcast %299 : vector<16x1xf32> to vector<16x16xf32>
    %301 = arith.mulf %296, %300 : vector<16x16xf32>
    %302 = arith.truncf %301 : vector<16x16xf32> to vector<16x16xbf16>
    %cst_204 = arith.constant dense<0.000000e+00> : vector<16x16xf32>
    %303 = tpu.matmul %302, %290, %cst_204 {dimension_numbers = #tpu.dot_dimension_numbers<[1], [0], [0], [1], [0, 0, 1, 1], [], []>} : vector<16x16xbf16>, vector<16x16xbf16>, vector<16x16xf32> -> vector<16x16xf32>
    %c0_205 = arith.constant 0 : index
    %c16_206 = arith.constant 16 : index
    %304 = vector.load %arg25[%c0_205, %c16_206] : memref<16x128xf32, #tpu.memory_space<vmem>>, vector<16x16xf32>
    tpu.vector_store %arg25[%c0_205, %c16_206], %303 {strides = array<i32>} : memref<16x128xf32, #tpu.memory_space<vmem>>, vector<16x16xf32>,
    %c0_207 = arith.constant 0 : index
    %c32_208 = arith.constant 32 : index
    %305 = vector.load %arg24[%c0_207, %c32_208] : memref<16x384xbf16, #tpu.memory_space<vmem>>, vector<16x16xbf16>
    %c0_209 = arith.constant 0 : index
    %c160_210 = arith.constant 160 : index
    %306 = vector.load %arg24[%c0_209, %c160_210] : memref<16x384xbf16, #tpu.memory_space<vmem>>, vector<16x16xbf16>
    %c0_211 = arith.constant 0 : index
    %c288_212 = arith.constant 288 : index
    %307 = vector.load %arg24[%c0_211, %c288_212] : memref<16x384xbf16, #tpu.memory_space<vmem>>, vector<16x16xbf16>
    %cst_213 = arith.constant dense<0.000000e+00> : vector<16x16xf32>
    %308 = tpu.matmul %305, %306, %cst_213 {dimension_numbers = #tpu.dot_dimension_numbers<[1], [1], [0], [0], [0, 0, 1, 0], [], []>} : vector<16x16xbf16>, vector<16x16xbf16>, vector<16x16xf32> -> vector<16x16xf32>
    %cst_214 = arith.constant dense<0xFF800000> : vector<16xf32>
    %309 = vector.multi_reduction <maximumf>, %308, %cst_214 [1] : vector<16x16xf32> to vector<16xf32>
    %310 = vector.shape_cast %309 : vector<16xf32> to vector<16x1xf32>
    %311 = vector.broadcast %310 : vector<16x1xf32> to vector<16x16xf32>
    %312 = arith.subf %308, %311 : vector<16x16xf32>
    %313 = math.exp %312 : vector<16x16xf32>
    %cst_215 = arith.constant dense<0.000000e+00> : vector<16xf32>
    %314 = vector.multi_reduction <add>, %313, %cst_215 [1] : vector<16x16xf32> to vector<16xf32>
    %315 = vector.shape_cast %314 : vector<16xf32> to vector<16x1xf32>
    %316 = tpu.reciprocal %315 {approx = true} : vector<16x1xf32> -> vector<16x1xf32>
    %317 = vector.broadcast %316 : vector<16x1xf32> to vector<16x16xf32>
    %318 = arith.mulf %313, %317 : vector<16x16xf32>
    %319 = arith.truncf %318 : vector<16x16xf32> to vector<16x16xbf16>
    %cst_216 = arith.constant dense<0.000000e+00> : vector<16x16xf32>
    %320 = tpu.matmul %319, %307, %cst_216 {dimension_numbers = #tpu.dot_dimension_numbers<[1], [0], [0], [1], [0, 0, 1, 1], [], []>} : vector<16x16xbf16>, vector<16x16xbf16>, vector<16x16xf32> -> vector<16x16xf32>
    %c0_217 = arith.constant 0 : index
    %c32_218 = arith.constant 32 : index
    %321 = vector.load %arg25[%c0_217, %c32_218] : memref<16x128xf32, #tpu.memory_space<vmem>>, vector<16x16xf32>
    tpu.vector_store %arg25[%c0_217, %c32_218], %320 {strides = array<i32>} : memref<16x128xf32, #tpu.memory_space<vmem>>, vector<16x16xf32>,
    %c0_219 = arith.constant 0 : index
    %c48_220 = arith.constant 48 : index
    %322 = vector.load %arg24[%c0_219, %c48_220] : memref<16x384xbf16, #tpu.memory_space<vmem>>, vector<16x16xbf16>
    %c0_221 = arith.constant 0 : index
    %c176_222 = arith.constant 176 : index
    %323 = vector.load %arg24[%c0_221, %c176_222] : memref<16x384xbf16, #tpu.memory_space<vmem>>, vector<16x16xbf16>
    %c0_223 = arith.constant 0 : index
    %c304_224 = arith.constant 304 : index
    %324 = vector.load %arg24[%c0_223, %c304_224] : memref<16x384xbf16, #tpu.memory_space<vmem>>, vector<16x16xbf16>
    %cst_225 = arith.constant dense<0.000000e+00> : vector<16x16xf32>
    %325 = tpu.matmul %322, %323, %cst_225 {dimension_numbers = #tpu.dot_dimension_numbers<[1], [1], [0], [0], [0, 0, 1, 0], [], []>} : vector<16x16xbf16>, vector<16x16xbf16>, vector<16x16xf32> -> vector<16x16xf32>
    %cst_226 = arith.constant dense<0xFF800000> : vector<16xf32>
    %326 = vector.multi_reduction <maximumf>, %325, %cst_226 [1] : vector<16x16xf32> to vector<16xf32>
    %327 = vector.shape_cast %326 : vector<16xf32> to vector<16x1xf32>
    %328 = vector.broadcast %327 : vector<16x1xf32> to vector<16x16xf32>
    %329 = arith.subf %325, %328 : vector<16x16xf32>
    %330 = math.exp %329 : vector<16x16xf32>
    %cst_227 = arith.constant dense<0.000000e+00> : vector<16xf32>
    %331 = vector.multi_reduction <add>, %330, %cst_227 [1] : vector<16x16xf32> to vector<16xf32>
    %332 = vector.shape_cast %331 : vector<16xf32> to vector<16x1xf32>
    %333 = tpu.reciprocal %332 {approx = true} : vector<16x1xf32> -> vector<16x1xf32>
    %334 = vector.broadcast %333 : vector<16x1xf32> to vector<16x16xf32>
    %335 = arith.mulf %330, %334 : vector<16x16xf32>
    %336 = arith.truncf %335 : vector<16x16xf32> to vector<16x16xbf16>
    %cst_228 = arith.constant dense<0.000000e+00> : vector<16x16xf32>
    %337 = tpu.matmul %336, %324, %cst_228 {dimension_numbers = #tpu.dot_dimension_numbers<[1], [0], [0], [1], [0, 0, 1, 1], [], []>} : vector<16x16xbf16>, vector<16x16xbf16>, vector<16x16xf32> -> vector<16x16xf32>
    %c0_229 = arith.constant 0 : index
    %c48_230 = arith.constant 48 : index
    %338 = vector.load %arg25[%c0_229, %c48_230] : memref<16x128xf32, #tpu.memory_space<vmem>>, vector<16x16xf32>
    tpu.vector_store %arg25[%c0_229, %c48_230], %337 {strides = array<i32>} : memref<16x128xf32, #tpu.memory_space<vmem>>, vector<16x16xf32>,
    %c0_231 = arith.constant 0 : index
    %c64_232 = arith.constant 64 : index
    %339 = vector.load %arg24[%c0_231, %c64_232] : memref<16x384xbf16, #tpu.memory_space<vmem>>, vector<16x16xbf16>
    %c0_233 = arith.constant 0 : index
    %c192_234 = arith.constant 192 : index
    %340 = vector.load %arg24[%c0_233, %c192_234] : memref<16x384xbf16, #tpu.memory_space<vmem>>, vector<16x16xbf16>
    %c0_235 = arith.constant 0 : index
    %c320_236 = arith.constant 320 : index
    %341 = vector.load %arg24[%c0_235, %c320_236] : memref<16x384xbf16, #tpu.memory_space<vmem>>, vector<16x16xbf16>
    %cst_237 = arith.constant dense<0.000000e+00> : vector<16x16xf32>
    %342 = tpu.matmul %339, %340, %cst_237 {dimension_numbers = #tpu.dot_dimension_numbers<[1], [1], [0], [0], [0, 0, 1, 0], [], []>} : vector<16x16xbf16>, vector<16x16xbf16>, vector<16x16xf32> -> vector<16x16xf32>
    %cst_238 = arith.constant dense<0xFF800000> : vector<16xf32>
    %343 = vector.multi_reduction <maximumf>, %342, %cst_238 [1] : vector<16x16xf32> to vector<16xf32>
    %344 = vector.shape_cast %343 : vector<16xf32> to vector<16x1xf32>
    %345 = vector.broadcast %344 : vector<16x1xf32> to vector<16x16xf32>
    %346 = arith.subf %342, %345 : vector<16x16xf32>
    %347 = math.exp %346 : vector<16x16xf32>
    %cst_239 = arith.constant dense<0.000000e+00> : vector<16xf32>
    %348 = vector.multi_reduction <add>, %347, %cst_239 [1] : vector<16x16xf32> to vector<16xf32>
    %349 = vector.shape_cast %348 : vector<16xf32> to vector<16x1xf32>
    %350 = tpu.reciprocal %349 {approx = true} : vector<16x1xf32> -> vector<16x1xf32>
    %351 = vector.broadcast %350 : vector<16x1xf32> to vector<16x16xf32>
    %352 = arith.mulf %347, %351 : vector<16x16xf32>
    %353 = arith.truncf %352 : vector<16x16xf32> to vector<16x16xbf16>
    %cst_240 = arith.constant dense<0.000000e+00> : vector<16x16xf32>
    %354 = tpu.matmul %353, %341, %cst_240 {dimension_numbers = #tpu.dot_dimension_numbers<[1], [0], [0], [1], [0, 0, 1, 1], [], []>} : vector<16x16xbf16>, vector<16x16xbf16>, vector<16x16xf32> -> vector<16x16xf32>
    %c0_241 = arith.constant 0 : index
    %c64_242 = arith.constant 64 : index
    %355 = vector.load %arg25[%c0_241, %c64_242] : memref<16x128xf32, #tpu.memory_space<vmem>>, vector<16x16xf32>
    tpu.vector_store %arg25[%c0_241, %c64_242], %354 {strides = array<i32>} : memref<16x128xf32, #tpu.memory_space<vmem>>, vector<16x16xf32>,
    %c0_243 = arith.constant 0 : index
    %c80_244 = arith.constant 80 : index
    %356 = vector.load %arg24[%c0_243, %c80_244] : memref<16x384xbf16, #tpu.memory_space<vmem>>, vector<16x16xbf16>
    %c0_245 = arith.constant 0 : index
    %c208_246 = arith.constant 208 : index
    %357 = vector.load %arg24[%c0_245, %c208_246] : memref<16x384xbf16, #tpu.memory_space<vmem>>, vector<16x16xbf16>
    %c0_247 = arith.constant 0 : index
    %c336_248 = arith.constant 336 : index
    %358 = vector.load %arg24[%c0_247, %c336_248] : memref<16x384xbf16, #tpu.memory_space<vmem>>, vector<16x16xbf16>
    %cst_249 = arith.constant dense<0.000000e+00> : vector<16x16xf32>
    %359 = tpu.matmul %356, %357, %cst_249 {dimension_numbers = #tpu.dot_dimension_numbers<[1], [1], [0], [0], [0, 0, 1, 0], [], []>} : vector<16x16xbf16>, vector<16x16xbf16>, vector<16x16xf32> -> vector<16x16xf32>
    %cst_250 = arith.constant dense<0xFF800000> : vector<16xf32>
    %360 = vector.multi_reduction <maximumf>, %359, %cst_250 [1] : vector<16x16xf32> to vector<16xf32>
    %361 = vector.shape_cast %360 : vector<16xf32> to vector<16x1xf32>
    %362 = vector.broadcast %361 : vector<16x1xf32> to vector<16x16xf32>
    %363 = arith.subf %359, %362 : vector<16x16xf32>
    %364 = math.exp %363 : vector<16x16xf32>
    %cst_251 = arith.constant dense<0.000000e+00> : vector<16xf32>
    %365 = vector.multi_reduction <add>, %364, %cst_251 [1] : vector<16x16xf32> to vector<16xf32>
    %366 = vector.shape_cast %365 : vector<16xf32> to vector<16x1xf32>
    %367 = tpu.reciprocal %366 {approx = true} : vector<16x1xf32> -> vector<16x1xf32>
    %368 = vector.broadcast %367 : vector<16x1xf32> to vector<16x16xf32>
    %369 = arith.mulf %364, %368 : vector<16x16xf32>
    %370 = arith.truncf %369 : vector<16x16xf32> to vector<16x16xbf16>
    %cst_252 = arith.constant dense<0.000000e+00> : vector<16x16xf32>
    %371 = tpu.matmul %370, %358, %cst_252 {dimension_numbers = #tpu.dot_dimension_numbers<[1], [0], [0], [1], [0, 0, 1, 1], [], []>} : vector<16x16xbf16>, vector<16x16xbf16>, vector<16x16xf32> -> vector<16x16xf32>
    %c0_253 = arith.constant 0 : index
    %c80_254 = arith.constant 80 : index
    %372 = vector.load %arg25[%c0_253, %c80_254] : memref<16x128xf32, #tpu.memory_space<vmem>>, vector<16x16xf32>
    tpu.vector_store %arg25[%c0_253, %c80_254], %371 {strides = array<i32>} : memref<16x128xf32, #tpu.memory_space<vmem>>, vector<16x16xf32>,
    %c0_255 = arith.constant 0 : index
    %c96_256 = arith.constant 96 : index
    %373 = vector.load %arg24[%c0_255, %c96_256] : memref<16x384xbf16, #tpu.memory_space<vmem>>, vector<16x16xbf16>
    %c0_257 = arith.constant 0 : index
    %c224_258 = arith.constant 224 : index
    %374 = vector.load %arg24[%c0_257, %c224_258] : memref<16x384xbf16, #tpu.memory_space<vmem>>, vector<16x16xbf16>
    %c0_259 = arith.constant 0 : index
    %c352_260 = arith.constant 352 : index
    %375 = vector.load %arg24[%c0_259, %c352_260] : memref<16x384xbf16, #tpu.memory_space<vmem>>, vector<16x16xbf16>
    %cst_261 = arith.constant dense<0.000000e+00> : vector<16x16xf32>
    %376 = tpu.matmul %373, %374, %cst_261 {dimension_numbers = #tpu.dot_dimension_numbers<[1], [1], [0], [0], [0, 0, 1, 0], [], []>} : vector<16x16xbf16>, vector<16x16xbf16>, vector<16x16xf32> -> vector<16x16xf32>
    %cst_262 = arith.constant dense<0xFF800000> : vector<16xf32>
    %377 = vector.multi_reduction <maximumf>, %376, %cst_262 [1] : vector<16x16xf32> to vector<16xf32>
    %378 = vector.shape_cast %377 : vector<16xf32> to vector<16x1xf32>
    %379 = vector.broadcast %378 : vector<16x1xf32> to vector<16x16xf32>
    %380 = arith.subf %376, %379 : vector<16x16xf32>
    %381 = math.exp %380 : vector<16x16xf32>
    %cst_263 = arith.constant dense<0.000000e+00> : vector<16xf32>
    %382 = vector.multi_reduction <add>, %381, %cst_263 [1] : vector<16x16xf32> to vector<16xf32>
    %383 = vector.shape_cast %382 : vector<16xf32> to vector<16x1xf32>
    %384 = tpu.reciprocal %383 {approx = true} : vector<16x1xf32> -> vector<16x1xf32>
    %385 = vector.broadcast %384 : vector<16x1xf32> to vector<16x16xf32>
    %386 = arith.mulf %381, %385 : vector<16x16xf32>
    %387 = arith.truncf %386 : vector<16x16xf32> to vector<16x16xbf16>
    %cst_264 = arith.constant dense<0.000000e+00> : vector<16x16xf32>
    %388 = tpu.matmul %387, %375, %cst_264 {dimension_numbers = #tpu.dot_dimension_numbers<[1], [0], [0], [1], [0, 0, 1, 1], [], []>} : vector<16x16xbf16>, vector<16x16xbf16>, vector<16x16xf32> -> vector<16x16xf32>
    %c0_265 = arith.constant 0 : index
    %c96_266 = arith.constant 96 : index
    %389 = vector.load %arg25[%c0_265, %c96_266] : memref<16x128xf32, #tpu.memory_space<vmem>>, vector<16x16xf32>
    tpu.vector_store %arg25[%c0_265, %c96_266], %388 {strides = array<i32>} : memref<16x128xf32, #tpu.memory_space<vmem>>, vector<16x16xf32>,
    %c0_267 = arith.constant 0 : index
    %c112_268 = arith.constant 112 : index
    %390 = vector.load %arg24[%c0_267, %c112_268] : memref<16x384xbf16, #tpu.memory_space<vmem>>, vector<16x16xbf16>
    %c0_269 = arith.constant 0 : index
    %c240_270 = arith.constant 240 : index
    %391 = vector.load %arg24[%c0_269, %c240_270] : memref<16x384xbf16, #tpu.memory_space<vmem>>, vector<16x16xbf16>
    %c0_271 = arith.constant 0 : index
    %c368_272 = arith.constant 368 : index
    %392 = vector.load %arg24[%c0_271, %c368_272] : memref<16x384xbf16, #tpu.memory_space<vmem>>, vector<16x16xbf16>
    %cst_273 = arith.constant dense<0.000000e+00> : vector<16x16xf32>
    %393 = tpu.matmul %390, %391, %cst_273 {dimension_numbers = #tpu.dot_dimension_numbers<[1], [1], [0], [0], [0, 0, 1, 0], [], []>} : vector<16x16xbf16>, vector<16x16xbf16>, vector<16x16xf32> -> vector<16x16xf32>
    %cst_274 = arith.constant dense<0xFF800000> : vector<16xf32>
    %394 = vector.multi_reduction <maximumf>, %393, %cst_274 [1] : vector<16x16xf32> to vector<16xf32>
    %395 = vector.shape_cast %394 : vector<16xf32> to vector<16x1xf32>
    %396 = vector.broadcast %395 : vector<16x1xf32> to vector<16x16xf32>
    %397 = arith.subf %393, %396 : vector<16x16xf32>
    %398 = math.exp %397 : vector<16x16xf32>
    %cst_275 = arith.constant dense<0.000000e+00> : vector<16xf32>
    %399 = vector.multi_reduction <add>, %398, %cst_275 [1] : vector<16x16xf32> to vector<16xf32>
    %400 = vector.shape_cast %399 : vector<16xf32> to vector<16x1xf32>
    %401 = tpu.reciprocal %400 {approx = true} : vector<16x1xf32> -> vector<16x1xf32>
    %402 = vector.broadcast %401 : vector<16x1xf32> to vector<16x16xf32>
    %403 = arith.mulf %398, %402 : vector<16x16xf32>
    %404 = arith.truncf %403 : vector<16x16xf32> to vector<16x16xbf16>
    %cst_276 = arith.constant dense<0.000000e+00> : vector<16x16xf32>
    %405 = tpu.matmul %404, %392, %cst_276 {dimension_numbers = #tpu.dot_dimension_numbers<[1], [0], [0], [1], [0, 0, 1, 1], [], []>} : vector<16x16xbf16>, vector<16x16xbf16>, vector<16x16xf32> -> vector<16x16xf32>
    %c0_277 = arith.constant 0 : index
    %c112_278 = arith.constant 112 : index
    %406 = vector.load %arg25[%c0_277, %c112_278] : memref<16x128xf32, #tpu.memory_space<vmem>>, vector<16x16xf32>
    tpu.vector_store %arg25[%c0_277, %c112_278], %405 {strides = array<i32>} : memref<16x128xf32, #tpu.memory_space<vmem>>, vector<16x16xf32>,
    %c0_279 = arith.constant 0 : index
    %c0_280 = arith.constant 0 : index
    %407 = vector.load %arg25[%c0_279, %c0_280] : memref<16x128xf32, #tpu.memory_space<vmem>>, vector<16x128xf32>
    %408 = arith.truncf %407 : vector<16x128xf32> to vector<16x128xbf16>
    %cst_281 = arith.constant dense<0.000000e+00> : vector<16x128xf32>
    %409 = tpu.matmul %408, %245, %cst_281 {dimension_numbers = #tpu.dot_dimension_numbers<[1], [0], [0], [1], [0, 0, 1, 1], [], []>} : vector<16x128xbf16>, vector<128x128xbf16>, vector<16x128xf32> -> vector<16x128xf32>
    %410 = vector.broadcast %247 : vector<1x128xf32> to vector<16x128xf32>
    %411 = arith.addf %409, %410 : vector<16x128xf32>
    %c0_282 = arith.constant 0 : index
    %c0_283 = arith.constant 0 : index
    %412 = vector.load %arg23[%c0_282, %c0_283] : memref<16x128xf32, #tpu.memory_space<vmem>>, vector<16x128xf32>
    %413 = arith.addf %412, %411 : vector<16x128xf32>
    %cst_284 = arith.constant dense<0.000000e+00> : vector<16xf32>
    %414 = vector.multi_reduction <add>, %413, %cst_284 [1] : vector<16x128xf32> to vector<16xf32>
    %415 = vector.shape_cast %414 : vector<16xf32> to vector<16x1xf32>
    %cst_285 = arith.constant 1.280000e+02 : f32
    %416 = vector.broadcast %cst_285 : f32 to vector<16x1xf32>
    %417 = arith.divf %415, %416 : vector<16x1xf32>
    %418 = vector.broadcast %417 : vector<16x1xf32> to vector<16x128xf32>
    %419 = arith.subf %413, %418 : vector<16x128xf32>
    %420 = arith.mulf %419, %419 : vector<16x128xf32>
    %cst_286 = arith.constant dense<0.000000e+00> : vector<16xf32>
    %421 = vector.multi_reduction <add>, %420, %cst_286 [1] : vector<16x128xf32> to vector<16xf32>
    %422 = vector.shape_cast %421 : vector<16xf32> to vector<16x1xf32>
    %cst_287 = arith.constant 1.280000e+02 : f32
    %423 = vector.broadcast %cst_287 : f32 to vector<16x1xf32>
    %424 = arith.divf %422, %423 : vector<16x1xf32>
    %425 = vector.broadcast %417 : vector<16x1xf32> to vector<16x128xf32>
    %426 = arith.subf %413, %425 : vector<16x128xf32>
    %cst_288 = arith.constant 9.99999974E-6 : f32
    %427 = vector.broadcast %cst_288 : f32 to vector<16x1xf32>
    %428 = arith.addf %424, %427 : vector<16x1xf32>
    %429 = math.rsqrt %428 : vector<16x1xf32>
    %430 = vector.broadcast %429 : vector<16x1xf32> to vector<16x128xf32>
    %431 = arith.mulf %426, %430 : vector<16x128xf32>
    %432 = vector.broadcast %257 : vector<1x128xf32> to vector<16x128xf32>
    %433 = arith.mulf %431, %432 : vector<16x128xf32>
    %434 = vector.broadcast %259 : vector<1x128xf32> to vector<16x128xf32>
    %435 = arith.addf %433, %434 : vector<16x128xf32>
    %436 = arith.truncf %435 : vector<16x128xf32> to vector<16x128xbf16>
    %cst_289 = arith.constant dense<0.000000e+00> : vector<16x2048xf32>
    %437 = tpu.matmul %436, %249, %cst_289 {dimension_numbers = #tpu.dot_dimension_numbers<[1], [0], [0], [1], [0, 0, 1, 1], [], []>} : vector<16x128xbf16>, vector<128x2048xbf16>, vector<16x2048xf32> -> vector<16x2048xf32>
    %438 = vector.broadcast %251 : vector<1x2048xf32> to vector<16x2048xf32>
    %439 = arith.addf %437, %438 : vector<16x2048xf32>
    %cst_290 = arith.constant 0.000000e+00 : f32
    %440 = vector.broadcast %cst_290 : f32 to vector<16x2048xf32>
    %441 = arith.maximumf %439, %440 : vector<16x2048xf32>
    %442 = arith.truncf %441 : vector<16x2048xf32> to vector<16x2048xbf16>
    %cst_291 = arith.constant dense<0.000000e+00> : vector<16x128xf32>
    %443 = tpu.matmul %442, %253, %cst_291 {dimension_numbers = #tpu.dot_dimension_numbers<[1], [0], [0], [1], [0, 0, 1, 1], [], []>} : vector<16x2048xbf16>, vector<2048x128xbf16>, vector<16x128xf32> -> vector<16x128xf32>
    %444 = vector.broadcast %255 : vector<1x128xf32> to vector<16x128xf32>
    %445 = arith.addf %443, %444 : vector<16x128xf32>
    %446 = arith.addf %435, %445 : vector<16x128xf32>
    %cst_292 = arith.constant dense<0.000000e+00> : vector<16xf32>
    %447 = vector.multi_reduction <add>, %446, %cst_292 [1] : vector<16x128xf32> to vector<16xf32>
    %448 = vector.shape_cast %447 : vector<16xf32> to vector<16x1xf32>
    %cst_293 = arith.constant 1.280000e+02 : f32
    %449 = vector.broadcast %cst_293 : f32 to vector<16x1xf32>
    %450 = arith.divf %448, %449 : vector<16x1xf32>
    %451 = vector.broadcast %450 : vector<16x1xf32> to vector<16x128xf32>
    %452 = arith.subf %446, %451 : vector<16x128xf32>
    %453 = arith.mulf %452, %452 : vector<16x128xf32>
    %cst_294 = arith.constant dense<0.000000e+00> : vector<16xf32>
    %454 = vector.multi_reduction <add>, %453, %cst_294 [1] : vector<16x128xf32> to vector<16xf32>
    %455 = vector.shape_cast %454 : vector<16xf32> to vector<16x1xf32>
    %cst_295 = arith.constant 1.280000e+02 : f32
    %456 = vector.broadcast %cst_295 : f32 to vector<16x1xf32>
    %457 = arith.divf %455, %456 : vector<16x1xf32>
    %458 = vector.broadcast %450 : vector<16x1xf32> to vector<16x128xf32>
    %459 = arith.subf %446, %458 : vector<16x128xf32>
    %cst_296 = arith.constant 9.99999974E-6 : f32
    %460 = vector.broadcast %cst_296 : f32 to vector<16x1xf32>
    %461 = arith.addf %457, %460 : vector<16x1xf32>
    %462 = math.rsqrt %461 : vector<16x1xf32>
    %463 = vector.broadcast %462 : vector<16x1xf32> to vector<16x128xf32>
    %464 = arith.mulf %459, %463 : vector<16x128xf32>
    %465 = vector.broadcast %261 : vector<1x128xf32> to vector<16x128xf32>
    %466 = arith.mulf %464, %465 : vector<16x128xf32>
    %467 = vector.broadcast %263 : vector<1x128xf32> to vector<16x128xf32>
    %468 = arith.addf %466, %467 : vector<16x128xf32>
    %c0_297 = arith.constant 0 : index
    %c0_298 = arith.constant 0 : index
    %469 = vector.load %arg23[%c0_297, %c0_298] : memref<16x128xf32, #tpu.memory_space<vmem>>, vector<16x128xf32>
    tpu.vector_store %arg23[%c0_297, %c0_298], %468 {strides = array<i32>} : memref<16x128xf32, #tpu.memory_space<vmem>>, vector<16x128xf32>,
    %c0_299 = arith.constant 0 : index
    %c0_300 = arith.constant 0 : index
    %470 = vector.load %arg23[%c0_299, %c0_300] : memref<16x128xf32, #tpu.memory_space<vmem>>, vector<16x128xf32>
    %cst_301 = arith.constant dense<0.000000e+00> : vector<128xf32>
    %471 = vector.multi_reduction <add>, %470, %cst_301 [0] : vector<16x128xf32> to vector<128xf32>
    %472 = vector.shape_cast %471 : vector<128xf32> to vector<1x128xf32>
    %cst_302 = arith.constant 6.250000e-02 : f32
    %473 = vector.broadcast %cst_302 : f32 to vector<1x128xf32>
    %474 = arith.mulf %472, %473 : vector<1x128xf32>
    %c0_303 = arith.constant 0 : index
    %c0_304 = arith.constant 0 : index
    %475 = vector.load %arg16[%c0_303, %c0_304] : memref<128x128xf32, #tpu.memory_space<vmem>>, vector<128x128xf32>
    %cst_305 = arith.constant dense<0.000000e+00> : vector<1x128xf32>
    %476 = tpu.matmul %474, %475, %cst_305 {dimension_numbers = #tpu.dot_dimension_numbers<[1], [0], [0], [1], [0, 0, 1, 1], [], []>} : vector<1x128xf32>, vector<128x128xf32>, vector<1x128xf32> -> vector<1x128xf32>
    %c0_306 = arith.constant 0 : index
    %c0_307 = arith.constant 0 : index
    %477 = vector.load %arg17[%c0_306, %c0_307] : memref<1x128xf32, #tpu.memory_space<vmem>>, vector<1x128xf32>
    %478 = arith.addf %476, %477 : vector<1x128xf32>
    %cst_308 = arith.constant 0.000000e+00 : f32
    %479 = vector.broadcast %cst_308 : f32 to vector<1x128xf32>
    %480 = arith.maximumf %478, %479 : vector<1x128xf32>
    %c0_309 = arith.constant 0 : index
    %c0_310 = arith.constant 0 : index
    %481 = vector.load %arg18[%c0_309, %c0_310] : memref<128x128xf32, #tpu.memory_space<vmem>>, vector<128x128xf32>
    %cst_311 = arith.constant dense<0.000000e+00> : vector<1x128xf32>
    %482 = tpu.matmul %480, %481, %cst_311 {dimension_numbers = #tpu.dot_dimension_numbers<[1], [0], [0], [1], [0, 0, 1, 1], [], []>} : vector<1x128xf32>, vector<128x128xf32>, vector<1x128xf32> -> vector<1x128xf32>
    %c0_312 = arith.constant 0 : index
    %c0_313 = arith.constant 0 : index
    %483 = vector.load %arg19[%c0_312, %c0_313] : memref<1x128xf32, #tpu.memory_space<vmem>>, vector<1x128xf32>
    %484 = arith.addf %482, %483 : vector<1x128xf32>
    %cst_314 = arith.constant 0.000000e+00 : f32
    %485 = vector.broadcast %cst_314 : f32 to vector<1x128xf32>
    %486 = arith.maximumf %484, %485 : vector<1x128xf32>
    %c0_315 = arith.constant 0 : index
    %c0_316 = arith.constant 0 : index
    %487 = vector.load %arg20[%c0_315, %c0_316] : memref<128x128xf32, #tpu.memory_space<vmem>>, vector<128x128xf32>
    %cst_317 = arith.constant dense<0.000000e+00> : vector<1x128xf32>
    %488 = tpu.matmul %486, %487, %cst_317 {dimension_numbers = #tpu.dot_dimension_numbers<[1], [0], [0], [1], [0, 0, 1, 1], [], []>} : vector<1x128xf32>, vector<128x128xf32>, vector<1x128xf32> -> vector<1x128xf32>
    %c0_318 = arith.constant 0 : index
    %c0_319 = arith.constant 0 : index
    %489 = vector.load %arg21[%c0_318, %c0_319] : memref<1x128xf32, #tpu.memory_space<vmem>>, vector<1x128xf32>
    %490 = arith.addf %488, %489 : vector<1x128xf32>
    %491 = vector.shape_cast %490 : vector<1x128xf32> to vector<1x1x128xf32>
    %c0_320 = arith.constant 0 : index
    %c0_321 = arith.constant 0 : index
    %c0_322 = arith.constant 0 : index
    %492 = vector.load %arg22[%c0_320, %c0_321, %c0_322] : memref<1x1x128xf32, #tpu.memory_space<vmem>>, vector<1x1x128xf32>
    tpu.vector_store %arg22[%c0_320, %c0_321, %c0_322], %491 {strides = array<i32>} : memref<1x1x128xf32, #tpu.memory_space<vmem>>, vector<1x1x128xf32>,
    return
  }
  func.func @transform_0(%arg0: i32) -> (i32, i32, i32) {
    %c0_i32 = arith.constant 0 : i32
    %c0_i32_0 = arith.constant 0 : i32
    %c0_i32_1 = arith.constant 0 : i32
    return %arg0, %c0_i32, %c0_i32_0 : i32, i32, i32
  }
  func.func @transform_1(%arg0: i32) -> (i32, i32) {
    %c0_i32 = arith.constant 0 : i32
    %c0_i32_0 = arith.constant 0 : i32
    %c0_i32_1 = arith.constant 0 : i32
    return %c0_i32, %c0_i32_0 : i32, i32
  }
  func.func @transform_2(%arg0: i32) -> (i32, i32) {
    %c0_i32 = arith.constant 0 : i32
    %c0_i32_0 = arith.constant 0 : i32
    %c0_i32_1 = arith.constant 0 : i32
    return %c0_i32, %c0_i32_0 : i32, i32
  }
  func.func @transform_3(%arg0: i32) -> (i32, i32, i32) {
    %c0_i32 = arith.constant 0 : i32
    %c0_i32_0 = arith.constant 0 : i32
    %c0_i32_1 = arith.constant 0 : i32
    %c0_i32_2 = arith.constant 0 : i32
    return %c0_i32, %c0_i32_0, %c0_i32_1 : i32, i32, i32
  }
  func.func @transform_4(%arg0: i32) -> (i32, i32, i32) {
    %c0_i32 = arith.constant 0 : i32
    %c0_i32_0 = arith.constant 0 : i32
    %c0_i32_1 = arith.constant 0 : i32
    %c0_i32_2 = arith.constant 0 : i32
    return %c0_i32, %c0_i32_0, %c0_i32_1 : i32, i32, i32
  }
  func.func @transform_5(%arg0: i32) -> (i32, i32, i32) {
    %c0_i32 = arith.constant 0 : i32
    %c0_i32_0 = arith.constant 0 : i32
    %c0_i32_1 = arith.constant 0 : i32
    %c0_i32_2 = arith.constant 0 : i32
    return %c0_i32, %c0_i32_0, %c0_i32_1 : i32, i32, i32
  }
  func.func @transform_6(%arg0: i32) -> (i32, i32, i32) {
    %c0_i32 = arith.constant 0 : i32
    %c0_i32_0 = arith.constant 0 : i32
    %c0_i32_1 = arith.constant 0 : i32
    %c0_i32_2 = arith.constant 0 : i32
    return %c0_i32, %c0_i32_0, %c0_i32_1 : i32, i32, i32
  }
  func.func @transform_7(%arg0: i32) -> (i32, i32, i32) {
    %c0_i32 = arith.constant 0 : i32
    %c0_i32_0 = arith.constant 0 : i32
    %c0_i32_1 = arith.constant 0 : i32
    %c0_i32_2 = arith.constant 0 : i32
    return %c0_i32, %c0_i32_0, %c0_i32_1 : i32, i32, i32
  }
  func.func @transform_8(%arg0: i32) -> (i32, i32, i32) {
    %c0_i32 = arith.constant 0 : i32
    %c0_i32_0 = arith.constant 0 : i32
    %c0_i32_1 = arith.constant 0 : i32
    %c0_i32_2 = arith.constant 0 : i32
    return %c0_i32, %c0_i32_0, %c0_i32_1 : i32, i32, i32
  }
  func.func @transform_9(%arg0: i32) -> (i32, i32, i32) {
    %c0_i32 = arith.constant 0 : i32
    %c0_i32_0 = arith.constant 0 : i32
    %c0_i32_1 = arith.constant 0 : i32
    %c0_i32_2 = arith.constant 0 : i32
    return %c0_i32, %c0_i32_0, %c0_i32_1 : i32, i32, i32
  }
  func.func @transform_10(%arg0: i32) -> (i32, i32, i32) {
    %c0_i32 = arith.constant 0 : i32
    %c0_i32_0 = arith.constant 0 : i32
    %c0_i32_1 = arith.constant 0 : i32
    %c0_i32_2 = arith.constant 0 : i32
    return %c0_i32, %c0_i32_0, %c0_i32_1 : i32, i32, i32
  }
  func.func @transform_11(%arg0: i32) -> (i32, i32, i32) {
    %c0_i32 = arith.constant 0 : i32
    %c0_i32_0 = arith.constant 0 : i32
    %c0_i32_1 = arith.constant 0 : i32
    %c0_i32_2 = arith.constant 0 : i32
    return %c0_i32, %c0_i32_0, %c0_i32_1 : i32, i32, i32
  }
  func.func @transform_12(%arg0: i32) -> (i32, i32, i32) {
    %c0_i32 = arith.constant 0 : i32
    %c0_i32_0 = arith.constant 0 : i32
    %c0_i32_1 = arith.constant 0 : i32
    %c0_i32_2 = arith.constant 0 : i32
    return %c0_i32, %c0_i32_0, %c0_i32_1 : i32, i32, i32
  }
  func.func @transform_13(%arg0: i32) -> (i32, i32, i32) {
    %c0_i32 = arith.constant 0 : i32
    %c0_i32_0 = arith.constant 0 : i32
    %c0_i32_1 = arith.constant 0 : i32
    %c0_i32_2 = arith.constant 0 : i32
    return %c0_i32, %c0_i32_0, %c0_i32_1 : i32, i32, i32
  }
  func.func @transform_14(%arg0: i32) -> (i32, i32, i32) {
    %c0_i32 = arith.constant 0 : i32
    %c0_i32_0 = arith.constant 0 : i32
    %c0_i32_1 = arith.constant 0 : i32
    %c0_i32_2 = arith.constant 0 : i32
    return %c0_i32, %c0_i32_0, %c0_i32_1 : i32, i32, i32
  }
  func.func @transform_15(%arg0: i32) -> (i32, i32) {
    %c0_i32 = arith.constant 0 : i32
    %c0_i32_0 = arith.constant 0 : i32
    %c0_i32_1 = arith.constant 0 : i32
    return %c0_i32, %c0_i32_0 : i32, i32
  }
  func.func @transform_16(%arg0: i32) -> (i32, i32) {
    %c0_i32 = arith.constant 0 : i32
    %c0_i32_0 = arith.constant 0 : i32
    %c0_i32_1 = arith.constant 0 : i32
    return %c0_i32, %c0_i32_0 : i32, i32
  }
  func.func @transform_17(%arg0: i32) -> (i32, i32) {
    %c0_i32 = arith.constant 0 : i32
    %c0_i32_0 = arith.constant 0 : i32
    %c0_i32_1 = arith.constant 0 : i32
    return %c0_i32, %c0_i32_0 : i32, i32
  }
  func.func @transform_18(%arg0: i32) -> (i32, i32) {
    %c0_i32 = arith.constant 0 : i32
    %c0_i32_0 = arith.constant 0 : i32
    %c0_i32_1 = arith.constant 0 : i32
    return %c0_i32, %c0_i32_0 : i32, i32
  }
  func.func @transform_19(%arg0: i32) -> (i32, i32) {
    %c0_i32 = arith.constant 0 : i32
    %c0_i32_0 = arith.constant 0 : i32
    %c0_i32_1 = arith.constant 0 : i32
    return %c0_i32, %c0_i32_0 : i32, i32
  }
  func.func @transform_20(%arg0: i32) -> (i32, i32) {
    %c0_i32 = arith.constant 0 : i32
    %c0_i32_0 = arith.constant 0 : i32
    %c0_i32_1 = arith.constant 0 : i32
    return %c0_i32, %c0_i32_0 : i32, i32
  }
  func.func @transform_21(%arg0: i32) -> (i32, i32, i32) {
    %c0_i32 = arith.constant 0 : i32
    %c0_i32_0 = arith.constant 0 : i32
    %c0_i32_1 = arith.constant 0 : i32
    return %arg0, %c0_i32, %c0_i32_0 : i32, i32, i32
  }
}

</mosaic_0001>

<bundles_post_ra>
// kernel: tpu_custom_call.1
= control target key start
LH: loop header
LB: loop body
LE: loop exit
PB: predicated region body
PF: predicated region fallthrough
CT: control target
= control target key end

     0   :  { %s13680_s0 = inlined_call_operand.vmem [shape: f32[2,16,8], index: 0, kind: input, shape index: {}]   ;;  %s13681_s1 = inlined_call_operand.vmem [shape: f32[8,128], index: 1, kind: input, shape index: {}]   ;;  %s13682_s2 = inlined_call_operand.vmem [shape: f32[1,128], index: 2, kind: input, shape index: {}]   ;;  %s13683_s3 = inlined_call_operand.hbm [shape: bf16[2,128,384], index: 3, kind: input, shape index: {}]   ;;  %s13684_s4 = inlined_call_operand.vmem [shape: f32[2,1,384], index: 4, kind: input, shape index: {}]   ;;  %s13685_s5 = inlined_call_operand.hbm [shape: bf16[2,128,128], index: 5, kind: input, shape index: {}]   ;;  %s13686_s6 = inlined_call_operand.vmem [shape: f32[2,1,128], index: 6, kind: input, shape index: {}]   ;;  %s13687_s7 = inlined_call_operand.hbm [shape: bf16[2,128,2048], index: 7, kind: input, shape index: {}]   ;;  %s13688_s8 = inlined_call_operand.vmem [shape: f32[2,1,2048], index: 8, kind: input, shape index: {}]   ;;  %s13689_s9 = inlined_call_operand.hbm [shape: bf16[2,2048,128], index: 9, kind: input, shape index: {}]   ;;  %s13690_s10 = inlined_call_operand.vmem [shape: f32[2,1,128], index: 10, kind: input, shape index: {}]   ;;  %s13691_s11 = inlined_call_operand.vmem [shape: f32[2,1,128], index: 11, kind: input, shape index: {}]   ;;  %s13692_s12 = inlined_call_operand.vmem [shape: f32[2,1,128], index: 12, kind: input, shape index: {}]   ;;  %s13693_s13 = inlined_call_operand.vmem [shape: f32[2,1,128], index: 13, kind: input, shape index: {}]   ;;  %s13694_s14 = inlined_call_operand.vmem [shape: f32[2,1,128], index: 14, kind: input, shape index: {}]   ;;  %s13695_s15 = inlined_call_operand.hbm [shape: f32[128,128], index: 15, kind: input, shape index: {}]   ;;  %s13696_s16 = inlined_call_operand.vmem [shape: f32[1,128], index: 16, kind: input, shape index: {}]   ;;  %s13697_s17 = inlined_call_operand.hbm [shape: f32[128,128], index: 17, kind: input, shape index: {}]   ;;  %s13698_s18 = inlined_call_operand.vmem [shape: f32[1,128], index: 18, kind: input, shape index: {}]   ;;  %s13699_s19 = inlined_call_operand.hbm [shape: f32[128,128], index: 19, kind: input, shape index: {}]   ;;  %s13700_s20 = inlined_call_operand.vmem [shape: f32[1,128], index: 20, kind: input, shape index: {}]   ;;  %s13701_s21 = inlined_call_operand.hbm [shape: f32[2,1,128], index: 21, kind: output, shape index: {}]  }
   0x1   :  { %13716 = sst [smem:[#allocation29_spill]] %s13680_s0 }
   0x2   :  { %13717 = sst [smem:[#allocation30_spill]] %s13681_s1 }
   0x3   :  { %13718 = sst [smem:[#allocation31_spill]] %s13682_s2 }
   0x4   :  { %13719 = sst [smem:[#allocation32_spill]] %s13683_s3 }
   0x5   :  { %13720 = sst [smem:[#allocation33_spill]] %s13684_s4 }
   0x6   :  { %13721 = sst [smem:[#allocation34_spill]] %s13685_s5 }
   0x7   :  { %13722 = sst [smem:[#allocation35_spill]] %s13689_s9 }
   0x8   :  { %13723 = sst [smem:[#allocation36_spill]] %s13700_s20 }
   0x9   :  { %13724 = sst [smem:[#allocation37_spill]] %s13701_s21 }
   0xa   :  { %26 = vsyncpa [#allocation6], 0 }
   0xb   :  { %27 = vsyncpa [#allocation9], 0 }
   0xc   :  { %28 = vsyncpa [#allocation12], 0 }
   0xd   :  { %29 = vsyncpa [#allocation15], 0 }
   0xe   :  { %30 = vsyncpa [#allocation7], 0 }
   0xf   :  { %32 = vsyncpa [#allocation7 + $0x1], 0  ;;  %s12537_s2 = smov 0   ;;  %s12539_s25 = smov 0  }
  0x10   :  { %s12541_s26 = smov 0   ;;  %s12543_s27 = smov 0  }
  0x11 LB: > { %13725 = sst [smem:[#allocation23_spill]] %s12388_s2  ;;  %s12558_s3 = sadd.s32 4294967295, %s12400_s27   ;;  %s12400_s27 = sphi %s12543_s27, %s13761_s27   ;;  %s12396_s26 = sphi %s12541_s26, %s13763_s26   ;;  %s12392_s25 = sphi %s12539_s25, %s13765_s25   ;;  %s12388_s2 = sphi %s12537_s2, %s13764_s2  }
  0x12   : > { %13726 = sst [smem:[#allocation24_spill]] %s12396_s26  ;;  %s9879_s28 = sadd.s32 4294967294, %s12400_s27  }
  0x13   : > { %13727 = sst [smem:[#allocation25_spill]] %s12400_s27  ;;  %s12562_s29 = sadd.s32 1, %s12400_s27  }
  0x14   : > { %13728 = sst [smem:[#allocation26_spill]] %s12562_s29  ;;  %s491_s0 = sadd.s32 1, %s12396_s26 }
  0x15   : > { %s488_s4 = ssub.s32 %s12400_s27, %s12562_s29  ;;  %p501_p0 = scmp.ne.s32.totalorder %s12396_s26, %s12392_s25 }
  0x16   : > { %p489_p1 = scmp.eq.s32.totalorder %s488_s4, 0  ;;  %p502_p2 = scmp.eq.s32.totalorder %s12558_s3, 1 }
  0x17   : > { %p507_p3 = scmp.ne.s32.totalorder %s12392_s25, %s12388_s2  ;;  %p508_p4 = scmp.eq.s32.totalorder %s9879_s28, 1 }
  0x18   : > { %s12573_s30 = scalar_select %p489_p1, %s12396_s26, %s491_s0  }
  0x19   : > { %p12575_p5 = por %p502_p2, %p501_p0  ;;  %p12579_p6 = por %p508_p4, %p507_p3 }
  0x1a   : > { %13729 = sst [smem:[#allocation27_spill]] %s12573_s30  ;;  %p9880_p7 = scmp.ge.s32.totalorder %s12400_s27, 1 }
  0x1b   : > { %s13731_s22 = scalar_select %p12579_p6, 1, 0 }
  0x1c   : > { %p515_p8 = scmp.lt.s32.totalorder %s12400_s27, 3  ;;  %p13709_p9 = scmp.eq.s32.totalorder %s12558_s3, 0 }
  0x1d   : > { %13732 = sst [smem:[#allocation28_spill]] %s13731_s22  ;;  %s12402_s1 = smov [#allocation8]  }
  0x1e   : > { %p12586_p10 = pnand %p9880_p7, %p515_p8  ;;  %s549_s24 = sshll.u32 %s12402_s1, 4  ;;  %s550_s24 = int_to_ptr.vmem [resolvable:$true] %s549_s24 }
  0x1f   : > { %s12403_s0 = smov [#allocation11]   ;;  %s12153_s26 = scalar_lea.vmem %s550_s24, 2048 }
  0x20   : > { %p11517_p11 = pneg %p12586_p10  ;;  %s581_s4 = sshll.u32 %s12403_s0, 4  ;;  %s582_s4 = int_to_ptr.vmem [resolvable:$true] %s581_s4 }
  0x21   : > { %p12154_p0 = scmp.ne.s32.totalorder %s550_s24, %s12153_s26  ;;  %p12161_p3 = scmp.lt.s32.totalorder %s550_s24, %s550_s24 }
  0x22   : > { %p12594_p12 = pnand %p13709_p9, %p11517_p11  ;;  %p12162_p4 = scmp.lt.s32.totalorder %s12153_s26, %s12153_s26 }
  0x24   : > { %p12600_p13 = pneg %p12594_p12  ;;  %p12163_p7 = por %p12162_p4, %p12161_p3 }
  0x26   : > { %p12156_p1 = pnand %p12154_p0, %p12600_p13 }
  0x28   : > { %p12157_p2 = pneg %p12156_p1 }
  0x2a   : > { %p12164_p8 = pnand %p12163_p7, %p12157_p2 }
  0x2c   : > { %12167 = shalt.err (!%p12164_p8)
}
  0x2d   : > { %s13711_s1 = smov 64   ;;  %s12405_s0 = smov 4  }
  0x2e   : > { %s13736_s2 = sld [smem:[#allocation34_spill]]  ;;  %s12179_s27 = scalar_lea.vmem %s582_s4, 32768 }
  0x2f   : > { %p12180_p11 = scmp.ne.s32.totalorder %s582_s4, %s12179_s27  ;;  %p12187_p9 = scmp.lt.s32.totalorder %s582_s4, %s582_s4 }
  0x30   : > { %p12188_p3 = scmp.lt.s32.totalorder %s12179_s27, %s12179_s27 }
  0x31   : > { %p12182_p0 = pnand %p12180_p11, %p12600_p13 }
  0x32   : > { %p12189_p2 = por %p12188_p3, %p12187_p9 }
  0x33   : > { %p12183_p1 = pneg %p12182_p0 }
  0x34   : > { %11523 = dma.hbm_to_vmem [thread:$0]  (!%p12594_p12), %s13736_s2, 2048, %s550_s24, [#allocation9], %s13711_s1, %s13711_s1, %s12405_s0  }
  0x35   : > { %p12190_p4 = pnand %p12189_p2, %p12183_p1 }
  0x37   : > { %12193 = shalt.err (!%p12190_p4)
}
  0x38   : > { %s13737_s9 = sld [smem:[#allocation35_spill]]  ;;  %s12406_s2 = smov [#allocation14]  }
  0x39   : > { %s625_s29 = sshll.u32 %s12406_s2, 4  ;;  %s12407_s22 = smov [#allocation5]   ;;  %s626_s29 = int_to_ptr.vmem [resolvable:$true] %s625_s29 }
  0x3a   : > { %s533_s24 = sshll.u32 %s12407_s22, 4  ;;  %s12205_s20 = scalar_lea.vmem %s626_s29, 2048  ;;  %s534_s24 = int_to_ptr.vmem [resolvable:$true] %s533_s24 }
  0x3b   : > { %p12206_p7 = scmp.ne.s32.totalorder %s626_s29, %s12205_s20  ;;  %p12213_p11 = scmp.lt.s32.totalorder %s626_s29, %s626_s29 }
  0x3c   : > { %p12214_p0 = scmp.lt.s32.totalorder %s12205_s20, %s12205_s20 }
  0x3d   : > { %p12208_p9 = pnand %p12206_p7, %p12600_p13 }
  0x3e   : > { %11529 = dma.hbm_to_vmem [thread:$0]  (!%p12594_p12), %s13737_s9, 32768, %s582_s4, [#allocation12], %s13711_s1, %s13711_s1, %s12405_s0  }
  0x3f   : > { %p12209_p8 = pneg %p12208_p9  ;;  %p12215_p1 = por %p12214_p0, %p12213_p11 }
  0x41   : > { %p12216_p3 = pnand %p12215_p1, %p12209_p8 }
  0x43   : > { %12219 = shalt.err (!%p12216_p3)
}
  0x44   : > { %s13712_s27 = smov 128   ;;  %s13714_s21 = smov 8  }
  0x45   : > { %11535 = dma.hbm_to_vmem [thread:$0]  (!%p12594_p12), %s13697_s17, 2048, %s626_s29, [#allocation15], %s13712_s27, %s13712_s27, %s13714_s21  }
  0x46   : > { %s12231_s26 = scalar_lea.vmem %s534_s24, 6144  ;;  %p12239_p9 = scmp.lt.s32.totalorder %s534_s24, %s534_s24 }
  0x47   : > { %p12232_p2 = scmp.ne.s32.totalorder %s534_s24, %s12231_s26  ;;  %p12240_p8 = scmp.lt.s32.totalorder %s12231_s26, %s12231_s26 }
  0x49   : > { %p12234_p4 = pnand %p12232_p2, %p12600_p13  ;;  %p12241_p11 = por %p12240_p8, %p12239_p9 }
  0x4b   : > { %p12235_p7 = pneg %p12234_p4 }
  0x4d   : > { %p12242_p0 = pnand %p12241_p11, %p12235_p7 }
  0x4f   : > { %12245 = shalt.err (!%p12242_p0)
}
  0x50   : > { %s12410_s20 = smov 192   ;;  %s12411_s2 = smov 12  }
  0x51   : > { %s13738_s9 = sld [smem:[#allocation32_spill]]  ;;  %s12412_s29 = smov [#allocation10]  }
  0x52   : > { %s565_s4 = sshll.u32 %s12412_s29, 4  ;;  %s12413_s0 = smov [#allocation13]   ;;  %s566_s4 = int_to_ptr.vmem [resolvable:$true] %s565_s4 }
  0x53   : > { %s609_s27 = sshll.u32 %s12413_s0, 4  ;;  %s12257_s21 = scalar_lea.vmem %s566_s4, 32768  ;;  %s610_s27 = int_to_ptr.vmem [resolvable:$true] %s609_s27 }
  0x54   : > { %p12258_p1 = scmp.ne.s32.totalorder %s566_s4, %s12257_s21  ;;  %p12265_p4 = scmp.lt.s32.totalorder %s566_s4, %s566_s4 }
  0x55   : > { %p12266_p7 = scmp.lt.s32.totalorder %s12257_s21, %s12257_s21 }
  0x56   : > { %p12260_p3 = pnand %p12258_p1, %p12600_p13 }
  0x57   : > { %11520 = dma.hbm_to_vmem [thread:$0]  (!%p12594_p12), %s13738_s9, 6144, %s534_s24, [#allocation6], %s12410_s20, %s12410_s20, %s12411_s2  }
  0x58   : > { %p12261_p2 = pneg %p12260_p3  ;;  %p12267_p9 = por %p12266_p7, %p12265_p4 }
  0x5a   : > { %p12268_p8 = pnand %p12267_p9, %p12261_p2 }
  0x5c   : > { %12271 = shalt.err (!%p12268_p8)
}
  0x5d   : > { %s12414_s26 = smov 1024   ;;  %s13739_s1 = smov 64  }
  0x5e   : > { %11526 = dma.hbm_to_vmem [thread:$0]  (!%p12594_p12), %s13687_s7, 32768, %s566_s4, [#allocation9], %s12414_s26, %s12414_s26, %s13739_s1  }
  0x5f   : > { %s12283_s20 = scalar_lea.vmem %s610_s27, 2048  ;;  %p12291_p3 = scmp.lt.s32.totalorder %s610_s27, %s610_s27 }
  0x60   : > { %p12284_p11 = scmp.ne.s32.totalorder %s610_s27, %s12283_s20  ;;  %p12292_p6 = scmp.lt.s32.totalorder %s12283_s20, %s12283_s20 }
  0x62   : > { %p12286_p0 = pnand %p12284_p11, %p12600_p13  ;;  %p12293_p4 = por %p12292_p6, %p12291_p3 }
  0x64   : > { %p12287_p1 = pneg %p12286_p0 }
  0x66   : > { %p12294_p2 = pnand %p12293_p4, %p12287_p1 }
  0x68   : > { %12297 = shalt.err (!%p12294_p2)
}
  0x69   : > { %s13740_s21 = smov 8   ;;  %s13741_s2 = smov 128  }
  0x6a   : > { %11532 = dma.hbm_to_vmem [thread:$0]  (!%p12594_p12), %s13695_s15, 2048, %s610_s27, [#allocation12], %s13741_s2, %s13741_s2, %s13740_s21  }
  0x6b   : > { %s12415_s4 = smov [#allocation16]  }
  0x6c   : > { %s641_s0 = sshll.u32 %s12415_s4, 4  ;;  %s642_s0 = int_to_ptr.vmem [resolvable:$true] %s641_s0 }
  0x6d   : > { %s12309_s26 = scalar_lea.vmem %s642_s0, 2048  ;;  %p12317_p8 = scmp.lt.s32.totalorder %s642_s0, %s642_s0 }
  0x6e   : > { %p12310_p7 = scmp.ne.s32.totalorder %s642_s0, %s12309_s26  ;;  %p12318_p11 = scmp.lt.s32.totalorder %s12309_s26, %s12309_s26 }
  0x70   : > { %p12312_p9 = pnand %p12310_p7, %p12600_p13  ;;  %p12319_p0 = por %p12318_p11, %p12317_p8 }
  0x72   : > { %p12313_p6 = pneg %p12312_p9 }
  0x74   : > { %p12320_p1 = pnand %p12319_p0, %p12313_p6 }
  0x76   : > { %12323 = shalt.err (!%p12320_p1)
}
  0x77   : > { %11538 = dma.hbm_to_vmem [thread:$0]  (!%p12594_p12), %s13699_s19, 2048, %s642_s0, [#allocation15], %s13741_s2, %s13741_s2, %s13740_s21  }
  0x78   : > { %668 = sbr.rel (%p12586_p10) target bundleno = 6533 (0x1985), region = 104  ;;  %p13742_p13 = scmp.eq.s32.totalorder (!%p12586_p10), %s12558_s3, 0 }
  0x7d   : > { %12367 = dma.done.wait (%p13742_p13), [#allocation6], 6144   ;;  %p13743_p3 = pmov %p13742_p13 }
  0x7f   : > { %12369 = vsyncadd (%p13743_p3), [#allocation6], 4294961152  ;;  %p13744_p4 = pmov %p13743_p3 }
  0x80   : > { %p13745_p2 = pmov %p13743_p3 }
  0x81   : > { %12371 = dma.done.wait (%p13744_p4), [#allocation9], 34816  }
  0x82   : > { %12373 = vsyncadd (%p13745_p2), [#allocation9], 4294932480  ;;  %p13746_p7 = pmov %p13745_p2 }
  0x83   : > { %p13747_p12 = pmov %p13745_p2 }
  0x84   : > { %12375 = dma.done.wait (%p13746_p7), [#allocation12], 34816  }
  0x85   : > { %12377 = vsyncadd (%p13747_p12), [#allocation12], 4294932480  ;;  %p13748_p10 = pmov %p13745_p2 }
  0x86   : > { %p13749_p9 = pmov %p13745_p2 }
  0x87   : > { %12379 = dma.done.wait (%p13748_p10), [#allocation15], 4096  }
  0x88   : > { %12381 = vsyncadd (%p13749_p9), [#allocation15], 4294963200  ;;  %p751_p6 = scmp.lt.s32.totalorder %s12558_s3, 1  ;;  %s13750_s24 = sld [smem:[#allocation29_spill]]  ;;  %vm767_vm0 = vcmask 64512   ;;  %v12416_v6 = vmov 0.0   ;;  %v1298_v37 = vlaneseq }
  0x89   : > { %s13751_s22 = sld [smem:[#allocation30_spill]]  ;;  %v11614_v3 = vld [vmem:[#allocation5 + $0xac] ss:$12 sps:$4 sm:$0xff]   ;;  %v11616_v4 = vld [vmem:[#allocation5 + $0xa8] ss:$12 sps:$4 sm:$0xff]   ;;  %v12417_v28 = vmov 0  }
  0x8a   : > { %s752_s30 = scalar_select %p751_p6, %s12558_s3, 1  ;;  %1441 = vmatprep.subr.bf16.mxu1 %v11614_v3  ;;  %v11617_v5 = vld [vmem:[#allocation5 + $0xb0] ss:$12 sps:$4 sm:$0xff]   ;;  %v11618_v7 = vld [vmem:[#allocation5 + $0x94] ss:$12 sps:$4 sm:$0xff]   ;;  %1473 = vmatprep.mubr.bf16.mxu1 %v12417_v28  ;;  %vm12418_vm1 = vmmov 0  }
  0x8b   : > { %1442 = vmatpush1.bf16.msra.mxu1 %v11616_v4  ;;  %v11620_v8 = vld [vmem:[#allocation5 + $0x90] ss:$12 sps:$4 sm:$0xff]   ;;  %v11621_v9 = vld [vmem:[#allocation5 + $0x98] ss:$12 sps:$4 sm:$0xff]   ;;  %v11625_v12 = vld [vmem:[#allocation5 + $0x80] ss:$12 sps:$4 sm:$0xff]  }
  0x8c   : > { %s10590_s23 = sshll.u32 %s752_s30, 4  ;;  %1443 = vmatprep.subr.bf16.mxu1 %v11618_v7  ;;  %v11622_v10 = vld [vmem:[#allocation5 + $0x7c] ss:$12 sps:$4 sm:$0xff]   ;;  %v11624_v11 = vld [vmem:[#allocation5 + $0x78] ss:$12 sps:$4 sm:$0xff]   ;;  %s13752_s0 = sld [smem:[#allocation31_spill]] }
  0x8d   : > { %v11626_v13 = vld [vmem:[#allocation5 + $0x64] ss:$12 sps:$4 sm:$0xff]   ;;  %v11628_v14 = vld [vmem:[#allocation5 + $0x60] ss:$12 sps:$4 sm:$0xff]   ;;  %v11629_v15 = vld [vmem:[#allocation5 + $0x68] ss:$12 sps:$4 sm:$0xff]  }
  0x8e   : > { %s755_s20 = scalar_lea.vmem %s13750_s24, %s10590_s23  ;;  %v11630_v16 = vld [vmem:[#allocation5 + $0x4c] ss:$12 sps:$4 sm:$0xff]   ;;  %v11632_v17 = vld [vmem:[#allocation5 + $0x48] ss:$12 sps:$4 sm:$0xff]   ;;  %v11633_v18 = vld [vmem:[#allocation5 + $0x50] ss:$12 sps:$4 sm:$0xff]  }
  0x8f   : > { %v759_v0 = vld [vmem:[%s13751_s22] sm:$0xff]  ;;  %v758_v2 = vld [vmem:[%s755_s20 + $0x8] sm:$0xff]  ;;  %1444 = vmatpush1.bf16.msra.mxu1 %v11620_v8  ;;  %v11645_v27 = vld [vmem:[#allocation5 + $0x8] ss:$12 sps:$4 sm:$0xff]   ;;  %v12723_v38 = vshrl.u32 %v1298_v37, 7  ;;  %s13753_s27 = sld [smem:[#allocation33_spill]] }
  0x90   : > { %v757_v1 = vld [vmem:[%s755_s20] sm:$0xff]  ;;  %11105 = vmatprep.subr.mxu0 %v759_v0  ;;  %1445 = vmatprep.subr.bf16.mxu1 %v11622_v10  ;;  %v11634_v19 = vld [vmem:[#allocation5 + $0x34] ss:$12 sps:$4 sm:$0xff]   ;;  %v11642_v25 = vld [vmem:[#allocation5 + $0x4] ss:$12 sps:$4 sm:$0xff]   ;;  %vm1565_vm2 = vcmask 130048  }
  0x91   : > { %11107 = vmatprep.mubr.msk.f32.mxu0 %vm767_vm0, %v757_v1  ;;  %11106 = vmatpush3.msra.mxu0 %v759_v0  ;;  %v11636_v20 = vld [vmem:[#allocation5 + $0x30] ss:$12 sps:$4 sm:$0xff]   ;;  %v11637_v21 = vld [vmem:[#allocation5 + $0x38] ss:$12 sps:$4 sm:$0xff]   ;;  %v11641_v24 = vld [vmem:[#allocation5 + $0x20] ss:$12 sps:$4 sm:$0xff]  }
  0x92   : > { %11108 = vmatmul.mubr.msk.f32.vlgmr.msra.gmra.mxu0 %vm767_vm0, %v758_v2  ;;  %11110 = vmatprep.subr.bf16.mxu0 %v12416_v6  ;;  %v11638_v22 = vld [vmem:[#allocation5 + $0x1c] ss:$12 sps:$4 sm:$0xff]   ;;  %v11640_v23 = vld [vmem:[#allocation5 + $0x18] ss:$12 sps:$4 sm:$0xff]   ;;  %v11644_v26 = vld [vmem:[#allocation5] ss:$12 sps:$4 sm:$0xff]  }
  0x93   : > { %11111 = vmatpush3.bf16.msra.mxu0 %v11617_v5  ;;  %1446 = vmatpush1.bf16.msra.mxu1 %v11624_v11  ;;  %v9899_v29 = vld [vmem:[%s13752_s0] ss:$0 sm:$0xff]  ;;  %v12726_v39 = vsub.s32 2, %v12723_v38  ;;  %v12732_v41 = vsub.s32 0, %v12723_v38  ;;  %v12735_v42 = vsub.s32 1, %v12723_v38  ;;  %s12419_s23 = smov 96  }
  0x94   : > { %11112 = vmatprep.subr.bf16.mxu0 %v12416_v6  ;;  %1447 = vmatprep.subr.bf16.mxu1 %v11626_v13  ;;  %s12420_s28 = smov 112   ;;  %s12421_s9 = smov 80   ;;  %vm1838_vm3 = vcmask 261248   ;;  %vm1991_vm4 = vcmask 392448   ;;  %vm2144_vm5 = vcmask 523648   ;;  %vm2297_vm6 = vcmask 654848  }
  0x95   : > { %11126 = vmatprep.mubr.msk.bf16.mxu0 %vm12418_vm1, %v12416_v6  ;;  %s13754_s30 = smov %s13753_s27  ;;  %v885_v40 = vld [vmem:[%s13753_s27] sm:$0x7]  ;;  %s12422_s24 = smov 64   ;;  %vm2450_vm7 = vcmask 786048   ;;  %vm2603_vm8 = vcmask 917248   ;;  %vm2756_vm9 = vcmask 1048448  }
  0x96   : > { %v1309_v43 = vrot.slane %v885_v40, %v12726_v39  ;;  %v1301_v44 = vrot.slane %v885_v40, %v12732_v41  ;;  %v1305_v45 = vrot.slane %v885_v40, %v12735_v42  ;;  %s12423_s20 = smov 48   ;;  %s12424_s21 = smov 32  }
  0x97   : > { %11113 = vmatpush3.bf16.msra.mxu0 %v11621_v9  ;;  %1448 = vmatpush1.bf16.msra.mxu1 %v11628_v14  ;;  %s12425_s2 = smov 16   ;;  %s13755_s27 = sld [smem:[#allocation36_spill]] }
  0x98   : > { %11114 = vmatprep.subr.bf16.mxu0 %v12416_v6  ;;  %1449 = vmatprep.subr.bf16.mxu1 %v11630_v16  ;;  %s10587_s22 = sshll.u32 %s12558_s3, 4 }
  0x9b   : > { %11115 = vmatpush3.bf16.msra.mxu0 %v11625_v12  ;;  %1450 = vmatpush1.bf16.msra.mxu1 %v11632_v17 }
  0x9c   : > { %11116 = vmatprep.subr.bf16.mxu0 %v12416_v6  ;;  %1451 = vmatprep.subr.bf16.mxu1 %v11634_v19 }
  0x9f   : > { %11117 = vmatpush3.bf16.msra.mxu0 %v11629_v15  ;;  %1452 = vmatpush1.bf16.msra.mxu1 %v11636_v20 }
  0xa0   : > { %11118 = vmatprep.subr.bf16.mxu0 %v12416_v6  ;;  %1453 = vmatprep.subr.bf16.mxu1 %v11638_v22 }
  0xa3   : > { %11119 = vmatpush3.bf16.msra.mxu0 %v11633_v18  ;;  %1454 = vmatpush1.bf16.msra.mxu1 %v11640_v23 }
  0xa4   : > { %11120 = vmatprep.subr.bf16.mxu0 %v12416_v6  ;;  %1455 = vmatprep.subr.bf16.mxu1 %v11642_v25 }
  0xa7   : > { %11121 = vmatpush3.bf16.msra.mxu0 %v11637_v21  ;;  %1456 = vmatpush1.bf16.msra.mxu1 %v11644_v26 }
  0xa8   : > { %11122 = vmatprep.subr.bf16.mxu0 %v12416_v6  ;;  %11130 = vmatprep.subr.bf16.mxu1 %v12416_v6 }
  0xab   : > { %11123 = vmatpush3.bf16.msra.mxu0 %v11641_v24 }
  0xac   : > { %11124 = vmatprep.subr.bf16.mxu0 %v12416_v6 }
  0xaf   : > { %11125 = vmatpush3.bf16.msra.mxu0 %v11645_v27 }
  0xb0   : > { %11136 = vmatprep.subr.bf16.mxu0 %v12416_v6 }
 0x152   : > { %v11109_v30 = vpop.f32.mrf.mxu0 }
 0x153   : > { %v12709_v31 = vadd.f32 %v11109_v30, %v9899_v29 }
 0x154   : > { %v840_v32 = vpop.f32.mrf.mxu0 }
 0x155   : > { %v12711_v33 = vadd.f32 %v9899_v29, %v840_v32  ;;  %v850_v34 = vmax.f32 %v12709_v31, 0.0 }
 0x157   : > { %v849_v35 = vmax.f32 %v12711_v33, 0.0 }
 0x159   : > { %v1296_v36 = vpack.c.bf16 %v850_v34, %v849_v35 }
 0x15b   : > { %1474 = vmatmul.mubr.bf16.vlgmr.msra.gmra.mxu1 %v1296_v36  ;;  %11127 = vmatmul.mubr.bf16.vlgmr.msra.gmra.mxu0 %v1296_v36 }
 0x15c   : > { %11132 = vmatprep.mubr.msk.bf16.mxu1 %vm12418_vm1, %v12416_v6  ;;  %11138 = vmatprep.mubr.msk.bf16.mxu0 %vm12418_vm1, %v12416_v6 }
 0x21b   : > { %v1475_v46 = vpop.f32.mrf.mxu1  ;;  %v1518_v47 = vpop.f32.mrf.mxu0 }
 0x21c   : > { %v1519_v48 = vadd.f32 %v1518_v47, %v1309_v43  ;;  %v1476_v51 = vadd.f32 %v1475_v46, %v1301_v44 }
 0x21d   : > { %v1477_v49 = vpop.f32.mrf.mxu1  ;;  %v11128_v50 = vpop.f32.mrf.mxu0 }
 0x21e   : > { %v10592_v52 = vpack.c.bf16 %v1519_v48, %v1519_v48  ;;  %v1478_v53 = vadd.f32 %v1477_v49, %v1305_v45 }
 0x21f   : > { %v1479_v54 = vpop.f32.mrf.mxu1  ;;  %v1521_v55 = vpop.f32.mrf.mxu0 }
 0x220   : > { %1546 = vst [vmem:[#allocation3 + $0x8] sm:$0xf] %v10592_v52  ;;  %v10591_v56 = vpack.c.bf16 %v1478_v53, %v1476_v51  ;;  %v1522_v57 = vadd.f32 %v1521_v55, %v1309_v43  ;;  %v1480_v60 = vadd.f32 %v1479_v54, %v1301_v44 }
 0x221   : > { %v1481_v58 = vpop.f32.mrf.mxu1  ;;  %v11129_v59 = vpop.f32.mrf.mxu0 }
 0x222   : > { %1545 = vst [vmem:[#allocation3] sm:$0xff] %v10591_v56  ;;  %v10594_v61 = vpack.c.bf16 %v1522_v57, %v1522_v57  ;;  %v1482_v62 = vadd.f32 %v1481_v58, %v1305_v45 }
 0x224   : > { %1548 = vst [vmem:[#allocation3 + $0x14] sm:$0xf] %v10594_v61  ;;  %v10593_v63 = vpack.c.bf16 %v1482_v62, %v1480_v60 }
 0x226   : > { %1547 = vst [vmem:[#allocation3 + $0xc] sm:$0xff] %v10593_v63 }
 0x22b   : > { %v11646_v0 = vld [vmem:[#allocation3 + $0x8] ss:$12 sps:$4 sm:$0xff]  }
 0x22c   : > { %11137 = vmatpush3.bf16.msra.mxu0 %v11646_v0  ;;  %v11663_v55 = vld [vmem:[#allocation3 + $0x8] ss:$12 sps:$4 sm:$0xff]  }
 0x22d   : > { %v11647_v1 = vld [vmem:[#allocation3 + $0x4] ss:$12 sps:$4 sm:$0xff]   ;;  %11148 = vmatprep.subr.bf16.mxu0 %v12416_v6  ;;  %v11650_v5 = vld [vmem:[#allocation3] ss:$12 sps:$4 sm:$0xff]  }
 0x22e   : > { %v11648_v2 = vld [vmem:[#allocation3 + $0x4] ss:$12 sps:$4 sm:$0xff]   ;;  %1859 = vrot.lane.b32.xlu1 %v11647_v1, %s12419_s23  ;;  %v11651_v7 = vld [vmem:[#allocation3] ss:$12 sps:$4 sm:$0xff]  }
 0x22f   : > { %v11649_v3 = vld [vmem:[#allocation3 + $0x4] ss:$12 sps:$4 sm:$0xff]   ;;  %1706 = vrot.lane.b32.xlu0 %v11648_v2, %s12420_s28  ;;  %v11652_v8 = vld [vmem:[#allocation3] ss:$12 sps:$4 sm:$0xff]  }
 0x230   : > { %v1570_v4 = vsel %vm1565_vm2, %v11649_v3, 0  ;;  %v11653_v9 = vld [vmem:[#allocation3 + $0x4] ss:$12 sps:$4 sm:$0xff]   ;;  %v11654_v10 = vld [vmem:[#allocation3] ss:$12 sps:$4 sm:$0xff]  }
 0x231   : > { %11131 = vmatpush3.bf16.xpose.msra.mxu1 %v1570_v4  ;;  %v11655_v11 = vld [vmem:[#allocation3] ss:$12 sps:$4 sm:$0xff]   ;;  %v11656_v12 = vld [vmem:[#allocation3 + $0x4] ss:$12 sps:$4 sm:$0xff]  }
 0x232   : > { %11142 = vmatprep.subr.bf16.mxu1 %v12416_v6  ;;  %1852 = vrot.lane.b32.xlu1 %v11650_v5, %s12419_s23  ;;  %v11657_v13 = vld [vmem:[#allocation3] ss:$12 sps:$4 sm:$0xff]   ;;  %v11658_v14 = vld [vmem:[#allocation3 + $0x4] ss:$12 sps:$4 sm:$0xff]  }
 0x233   : > { %1699 = vrot.lane.b32.xlu0 %v11651_v7, %s12420_s28  ;;  %v11659_v15 = vld [vmem:[#allocation3] ss:$12 sps:$4 sm:$0xff]   ;;  %v11660_v16 = vld [vmem:[#allocation3 + $0x4] ss:$12 sps:$4 sm:$0xff]  }
 0x234   : > { %v11661_v17 = vld [vmem:[#allocation3] ss:$12 sps:$4 sm:$0xff]   ;;  %v11662_v18 = vld [vmem:[#allocation3 + $0x4] ss:$12 sps:$4 sm:$0xff]  }
 0x236   : > { %2005 = vrot.lane.b32.xlu1 %v11652_v8, %s12421_s9 }
 0x237   : > { %2012 = vrot.lane.b32.xlu0 %v11653_v9, %s12421_s9 }
 0x238   : > { %11133 = vmatmul.mubr.msk.bf16.vlgmr.msra.gmra.mxu1 %vm1565_vm2, %v11654_v10 }
 0x239   : > { %11144 = vmatprep.mubr.msk.bf16.mxu1 %vm12418_vm1, %v12416_v6 }
 0x23a   : > { %2158 = vrot.lane.b32.xlu1 %v11655_v11, %s12422_s24 }
 0x23b   : > { %2165 = vrot.lane.b32.xlu0 %v11656_v12, %s12422_s24 }
 0x23e   : > { %2311 = vrot.lane.b32.xlu1 %v11657_v13, %s12423_s20 }
 0x23f   : > { %2318 = vrot.lane.b32.xlu0 %v11658_v14, %s12423_s20 }
 0x242   : > { %2464 = vrot.lane.b32.xlu1 %v11659_v15, %s12424_s21 }
 0x243   : > { %2471 = vrot.lane.b32.xlu0 %v11660_v16, %s12424_s21 }
 0x246   : > { %2617 = vrot.lane.b32.xlu1 %v11661_v17, %s12425_s2 }
 0x247   : > { %2624 = vrot.lane.b32.xlu0 %v11662_v18, %s12425_s2 }
 0x2a0   : > { %v1860_v21 = vpop.permute.xlu1 %1859 }
 0x2a1   : > { %v1707_v19 = vpop.permute.xlu0 %1706  ;;  %v1865_v23 = vsel %vm1565_vm2, %v1860_v21, 0 }
 0x2a2   : > { %v1712_v20 = vsel %vm1565_vm2, %v1707_v19, 0 }
 0x2a3   : > { %11143 = vmatpush3.bf16.xpose.msra.mxu1 %v1712_v20 }
 0x2a4   : > { %11154 = vmatprep.subr.bf16.mxu1 %v12416_v6  ;;  %v1853_v25 = vpop.permute.xlu1 %1852 }
 0x2a5   : > { %v1700_v22 = vpop.permute.xlu0 %1699 }
 0x2a8   : > { %v2006_v29 = vpop.permute.xlu1 %2005 }
 0x2a9   : > { %v2013_v24 = vpop.permute.xlu0 %2012 }
 0x2aa   : > { %11145 = vmatmul.mubr.msk.bf16.vlgmr.msra.gmra.mxu1 %vm1565_vm2, %v1700_v22  ;;  %v2018_v26 = vsel %vm1565_vm2, %v2013_v24, 0 }
 0x2ab   : > { %11155 = vmatpush3.bf16.xpose.msra.mxu1 %v1865_v23  ;;  %11156 = vmatprep.mubr.msk.bf16.mxu1 %vm12418_vm1, %v12416_v6 }
 0x2ac   : > { %11166 = vmatprep.subr.bf16.mxu1 %v12416_v6  ;;  %v2159_v36 = vpop.permute.xlu1 %2158 }
 0x2ad   : > { %v2166_v27 = vpop.permute.xlu0 %2165 }
 0x2ae   : > { %v2171_v30 = vsel %vm1565_vm2, %v2166_v27, 0 }
 0x2b0   : > { %v2312_v43 = vpop.permute.xlu1 %2311 }
 0x2b1   : > { %v2319_v32 = vpop.permute.xlu0 %2318 }
 0x2b2   : > { %11157 = vmatmul.mubr.msk.bf16.vlgmr.msra.gmra.mxu1 %vm1565_vm2, %v1853_v25  ;;  %v2324_v37 = vsel %vm1565_vm2, %v2319_v32, 0 }
 0x2b3   : > { %11167 = vmatpush3.bf16.xpose.msra.mxu1 %v2018_v26  ;;  %11168 = vmatprep.mubr.msk.bf16.mxu1 %vm12418_vm1, %v12416_v6 }
 0x2b4   : > { %11178 = vmatprep.subr.bf16.mxu1 %v12416_v6  ;;  %v2465_v46 = vpop.permute.xlu1 %2464 }
 0x2b5   : > { %v2472_v40 = vpop.permute.xlu0 %2471 }
 0x2b6   : > { %v2477_v44 = vsel %vm1565_vm2, %v2472_v40, 0 }
 0x2b8   : > { %v2618_v48 = vpop.permute.xlu1 %2617 }
 0x2b9   : > { %v2625_v45 = vpop.permute.xlu0 %2624 }
 0x2ba   : > { %11169 = vmatmul.mubr.msk.bf16.vlgmr.msra.gmra.mxu1 %vm1565_vm2, %v2006_v29  ;;  %v2630_v47 = vsel %vm1565_vm2, %v2625_v45, 0 }
 0x2bb   : > { %11179 = vmatpush3.bf16.xpose.msra.mxu1 %v2171_v30  ;;  %11180 = vmatprep.mubr.msk.bf16.mxu1 %vm12418_vm1, %v12416_v6 }
 0x2bc   : > { %11190 = vmatprep.subr.bf16.mxu1 %v12416_v6 }
 0x2c2   : > { %11181 = vmatmul.mubr.msk.bf16.vlgmr.msra.gmra.mxu1 %vm1565_vm2, %v2159_v36 }
 0x2c3   : > { %11191 = vmatpush3.bf16.xpose.msra.mxu1 %v2324_v37  ;;  %11192 = vmatprep.mubr.msk.bf16.mxu1 %vm12418_vm1, %v12416_v6 }
 0x2c4   : > { %11202 = vmatprep.subr.bf16.mxu1 %v12416_v6 }
 0x2ca   : > { %11193 = vmatmul.mubr.msk.bf16.vlgmr.msra.gmra.mxu1 %vm1565_vm2, %v2312_v43 }
 0x2cb   : > { %11203 = vmatpush3.bf16.xpose.msra.mxu1 %v2477_v44  ;;  %11204 = vmatprep.mubr.msk.bf16.mxu1 %vm12418_vm1, %v12416_v6 }
 0x2cc   : > { %11214 = vmatprep.subr.bf16.mxu1 %v12416_v6 }
 0x2d2   : > { %11205 = vmatmul.mubr.msk.bf16.vlgmr.msra.gmra.mxu1 %vm1565_vm2, %v2465_v46 }
 0x2d3   : > { %11215 = vmatpush3.bf16.xpose.msra.mxu1 %v2630_v47  ;;  %11216 = vmatprep.mubr.msk.bf16.mxu1 %vm12418_vm1, %v12416_v6 }
 0x2d4   : > { %11226 = vmatprep.subr.bf16.mxu1 %v12416_v6 }
 0x2da   : > { %11217 = vmatmul.mubr.msk.bf16.vlgmr.msra.gmra.mxu1 %vm1565_vm2, %v2618_v48 }
 0x2db   : > { %11242 = vmatprep.mubr.msk.bf16.mxu1 %vm12418_vm1, %v12416_v6 }
 0x2f8   : > { %v1606_v49 = vpop.f32.mrf.mxu1 }
 0x2f9   : > { %v1613_v50 = vsel %vm1565_vm2, %v1606_v49, -inf }
 0x2fa   : > { %1614 = vmax.xlane.f32.xlu0 %v1613_v50  ;;  %v11134_v51 = vpop.f32.mrf.mxu1 }
 0x2fc   : > { %v1609_v52 = vpop.f32.mrf.mxu1 }
 0x2fd   : > { %v1616_v53 = vsel %vm1565_vm2, %v1609_v52, -inf }
 0x2fe   : > { %1617 = vmax.xlane.f32.xlu1 %v1616_v53  ;;  %v11135_v54 = vpop.f32.mrf.mxu1 }
 0x2ff   : > { %v11664_v54 = vld [vmem:[#allocation3 + $0x8] ss:$12 sps:$4 sm:$0xff]  }
 0x30f   : > { %1783 = vrot.lane.b32.xlu1 %v11663_v55, %s12420_s28  ;;  %v11665_v55 = vld [vmem:[#allocation3 + $0x8] ss:$12 sps:$4 sm:$0xff]  }
 0x36a   : > { %v12798_v56 = vpop.f32.mrf.mxu1 }
 0x36b   : > { %v1755_v57 = vsel %vm1565_vm2, %v12798_v56, -inf }
 0x36c   : > { %1756 = vmax.xlane.f32.xlu0 %v1755_v57  ;;  %v11146_v58 = vpop.f32.mrf.mxu1 }
 0x36e   : > { %v12802_v59 = vpop.f32.mrf.mxu1 }
 0x36f   : > { %v1758_v60 = vsel %vm1565_vm2, %v12802_v59, -inf }
 0x370   : > { %1759 = vmax.xlane.f32.xlu0 %v1758_v60  ;;  %v11147_v61 = vpop.f32.mrf.mxu1 }
 0x372   : > { %v12806_v62 = vpop.f32.mrf.mxu1 }
 0x373   : > { %v1908_v63 = vsel %vm1565_vm2, %v12806_v62, -inf }
 0x374   : > { %1909 = vmax.xlane.f32.xlu1 %v1908_v63  ;;  %v11158_v0 = vpop.f32.mrf.mxu1 }
 0x376   : > { %v12810_v1 = vpop.f32.mrf.mxu1 }
 0x377   : > { %v1911_v2 = vsel %vm1565_vm2, %v12810_v1, -inf }
 0x378   : > { %1912 = vmax.xlane.f32.xlu0 %v1911_v2  ;;  %v11159_v3 = vpop.f32.mrf.mxu1 }
 0x37a   : > { %v12814_v4 = vpop.f32.mrf.mxu1 }
 0x37b   : > { %v2061_v5 = vsel %vm1565_vm2, %v12814_v4, -inf }
 0x37c   : > { %2062 = vmax.xlane.f32.xlu1 %v2061_v5  ;;  %v11170_v7 = vpop.f32.mrf.mxu1 }
 0x37e   : > { %v12818_v8 = vpop.f32.mrf.mxu1 }
 0x37f   : > { %v2064_v9 = vsel %vm1565_vm2, %v12818_v8, -inf }
 0x380   : > { %2065 = vmax.xlane.f32.xlu0 %v2064_v9  ;;  %v11171_v10 = vpop.f32.mrf.mxu1 }
 0x382   : > { %v12822_v12 = vpop.f32.mrf.mxu1 }
 0x383   : > { %v1615_v11 = vpop.xlane.xlu0 %1614  ;;  %v2214_v14 = vsel %vm1565_vm2, %v12822_v12, -inf }
 0x384   : > { %v1619_v13 = vsub.f32 %v1606_v49, %v1615_v11  ;;  %2215 = vmax.xlane.f32.xlu1 %v2214_v14  ;;  %v11182_v15 = vpop.f32.mrf.mxu1 }
 0x386   : > { %v1621_v16 = vmul.f32 1.442695, %v1619_v13  ;;  %v12826_v18 = vpop.f32.mrf.mxu1 }
 0x387   : > { %v1618_v17 = vpop.xlane.xlu1 %1617  ;;  %v2217_v20 = vsel %vm1565_vm2, %v12826_v18, -inf }
 0x388   : > { %11998 = vpow2.f32 %v1621_v16  ;;  %v1620_v19 = vsub.f32 %v1609_v52, %v1618_v17  ;;  %2218 = vmax.xlane.f32.xlu0 %v2217_v20  ;;  %v11183_v21 = vpop.f32.mrf.mxu1 }
 0x38a   : > { %v1623_v22 = vmul.f32 1.442695, %v1620_v19  ;;  %v12830_v23 = vpop.f32.mrf.mxu1 }
 0x38b   : > { %v2367_v24 = vsel %vm1565_vm2, %v12830_v23, -inf  ;;  %v12865_v61 = vpop.permute.xlu1 %1783 }
 0x38c   : > { %12000 = vpow2.f32 %v1623_v22  ;;  %2368 = vmax.xlane.f32.xlu1 %v2367_v24  ;;  %v11194_v25 = vpop.f32.mrf.mxu1 }
 0x38e   : > { %v12834_v26 = vpop.f32.mrf.mxu1 }
 0x38f   : > { %v2370_v27 = vsel %vm1565_vm2, %v12834_v26, -inf }
 0x390   : > { %2371 = vmax.xlane.f32.xlu0 %v2370_v27  ;;  %v11195_v29 = vpop.f32.mrf.mxu1 }
 0x392   : > { %v12838_v30 = vpop.f32.mrf.mxu1 }
 0x393   : > { %v2520_v32 = vsel %vm1565_vm2, %v12838_v30, -inf }
 0x394   : > { %2521 = vmax.xlane.f32.xlu1 %v2520_v32  ;;  %v11206_v37 = vpop.f32.mrf.mxu1 }
 0x395   : > { %v12842_v36 = vpop.eup %11998 }
 0x396   : > { %v12844_v40 = vpop.f32.mrf.mxu1  ;;  %v1625_v43 = vsel %vm1565_vm2, %v12842_v36, 0.0 }
 0x397   : > { %v2523_v44 = vsel %vm1565_vm2, %v12844_v40, -inf }
 0x398   : > { %1626 = vadd.xlane.f32.xlu1 %v1625_v43  ;;  %2524 = vmax.xlane.f32.xlu0 %v2523_v44  ;;  %v11207_v46 = vpop.f32.mrf.mxu1 }
 0x399   : > { %v12850_v45 = vpop.eup %12000 }
 0x39a   : > { %v12852_v47 = vpop.f32.mrf.mxu1  ;;  %v1628_v48 = vsel %vm1565_vm2, %v12850_v45, 0.0 }
 0x39b   : > { %v2673_v49 = vsel %vm1565_vm2, %v12852_v47, -inf }
 0x39c   : > { %1629 = vadd.xlane.f32.xlu0 %v1628_v48  ;;  %2674 = vmax.xlane.f32.xlu1 %v2673_v49  ;;  %v11218_v50 = vpop.f32.mrf.mxu1 }
 0x39e   : > { %v12858_v51 = vpop.f32.mrf.mxu1 }
 0x39f   : > { %v2676_v52 = vsel %vm1565_vm2, %v12858_v51, -inf }
 0x3a0   : > { %2677 = vmax.xlane.f32.xlu0 %v2676_v52  ;;  %v11219_v53 = vpop.f32.mrf.mxu1 }
 0x3ad   : > { %2089 = vrot.lane.b32.xlu1 %v11664_v54, %s12421_s9 }
 0x3b6   : > { %1936 = vrot.lane.b32.xlu0 %v11665_v55, %s12419_s23 }
 0x3f5   : > { %v1757_v57 = vpop.xlane.xlu0 %1756 }
 0x3f6   : > { %v1761_v58 = vsub.f32 %v12798_v56, %v1757_v57 }
 0x3f8   : > { %v1763_v60 = vmul.f32 1.442695, %v1761_v58 }
 0x3f9   : > { %v1760_v63 = vpop.xlane.xlu0 %1759 }
 0x3fa   : > { %12002 = vpow2.f32 %v1763_v60  ;;  %v1762_v0 = vsub.f32 %v12802_v59, %v1760_v63 }
 0x3fc   : > { %v1765_v2 = vmul.f32 1.442695, %v1762_v0 }
 0x3fd   : > { %v1910_v3 = vpop.xlane.xlu1 %1909 }
 0x3fe   : > { %12004 = vpow2.f32 %v1765_v2  ;;  %v1914_v5 = vsub.f32 %v12806_v62, %v1910_v3 }
 0x400   : > { %v1916_v7 = vmul.f32 1.442695, %v1914_v5 }
 0x401   : > { %v1913_v9 = vpop.xlane.xlu0 %1912 }
 0x402   : > { %12006 = vpow2.f32 %v1916_v7  ;;  %v1915_v10 = vsub.f32 %v12810_v1, %v1913_v9 }
 0x404   : > { %v1918_v11 = vmul.f32 1.442695, %v1915_v10 }
 0x405   : > { %v2063_v13 = vpop.xlane.xlu1 %2062 }
 0x406   : > { %12008 = vpow2.f32 %v1918_v11  ;;  %v2067_v56 = vsub.f32 %v12814_v4, %v2063_v13 }
 0x407   : > { %v12871_v14 = vpop.eup %12002 }
 0x408   : > { %v2069_v15 = vmul.f32 1.442695, %v2067_v56  ;;  %v1767_v59 = vsel %vm1565_vm2, %v12871_v14, 0.0 }
 0x409   : > { %v2066_v16 = vpop.xlane.xlu0 %2065  ;;  %1768 = vadd.xlane.f32.xlu1 %v1767_v59 }
 0x40a   : > { %12010 = vpow2.f32 %v2069_v15  ;;  %v2068_v62 = vsub.f32 %v12818_v8, %v2066_v16 }
 0x40b   : > { %v12876_v17 = vpop.eup %12004 }
 0x40c   : > { %v2071_v19 = vmul.f32 1.442695, %v2068_v62  ;;  %v1770_v1 = vsel %vm1565_vm2, %v12876_v17, 0.0 }
 0x40d   : > { %v2216_v20 = vpop.xlane.xlu1 %2215  ;;  %1771 = vadd.xlane.f32.xlu0 %v1770_v1 }
 0x40e   : > { %12012 = vpow2.f32 %v2071_v19  ;;  %v2220_v4 = vsub.f32 %v12822_v12, %v2216_v20 }
 0x40f   : > { %v12881_v21 = vpop.eup %12006 }
 0x410   : > { %v2222_v22 = vmul.f32 1.442695, %v2220_v4  ;;  %v1920_v24 = vsel %vm1565_vm2, %v12881_v21, 0.0 }
 0x411   : > { %v2219_v25 = vpop.xlane.xlu0 %2218  ;;  %1921 = vadd.xlane.f32.xlu1 %v1920_v24 }
 0x412   : > { %12014 = vpow2.f32 %v2222_v22  ;;  %v2221_v8 = vsub.f32 %v12826_v18, %v2219_v25  ;;  %v11667_v25 = vld [vmem:[#allocation3 + $0x8] ss:$12 sps:$4 sm:$0xff]  }
 0x413   : > { %v12886_v27 = vpop.eup %12008 }
 0x414   : > { %v2224_v29 = vmul.f32 1.442695, %v2221_v8  ;;  %v1923_v32 = vsel %vm1565_vm2, %v12886_v27, 0.0 }
 0x415   : > { %v2369_v37 = vpop.xlane.xlu1 %2368  ;;  %1924 = vadd.xlane.f32.xlu0 %v1923_v32  ;;  %v11669_v32 = vld [vmem:[#allocation3 + $0x8] ss:$12 sps:$4 sm:$0xff]  }
 0x416   : > { %12016 = vpow2.f32 %v2224_v29  ;;  %v2373_v12 = vsub.f32 %v12830_v23, %v2369_v37  ;;  %v11668_v29 = vld [vmem:[#allocation3 + $0x8] ss:$12 sps:$4 sm:$0xff]  }
 0x417   : > { %v12891_v43 = vpop.eup %12010 }
 0x418   : > { %v2375_v44 = vmul.f32 1.442695, %v2373_v12  ;;  %v2073_v46 = vsel %vm1565_vm2, %v12891_v43, 0.0 }
 0x419   : > { %v2372_v48 = vpop.xlane.xlu0 %2371  ;;  %2074 = vadd.xlane.f32.xlu1 %v2073_v46 }
 0x41a   : > { %12018 = vpow2.f32 %v2375_v44  ;;  %v2374_v18 = vsub.f32 %v12834_v26, %v2372_v48 }
 0x41b   : > { %v12896_v49 = vpop.eup %12012 }
 0x41c   : > { %v2377_v50 = vmul.f32 1.442695, %v2374_v18  ;;  %v2076_v52 = vsel %vm1565_vm2, %v12896_v49, 0.0 }
 0x41d   : > { %v2522_v53 = vpop.xlane.xlu1 %2521  ;;  %2077 = vadd.xlane.f32.xlu0 %v2076_v52 }
 0x41e   : > { %12020 = vpow2.f32 %v2377_v50 }
 0x41f   : > { %v12900_v23 = vpop.eup %12014 }
 0x420   : > { %v2226_v54 = vsel %vm1565_vm2, %v12900_v23, 0.0 }
 0x421   : > { %v1627_v55 = vpop.xlane.xlu1 %1626  ;;  %v2525_v57 = vpop.xlane.xlu0 %2524  ;;  %2227 = vadd.xlane.f32.xlu1 %v2226_v54 }
 0x422   : > { %v2527_v58 = vsub.f32 %v12844_v40, %v2525_v57  ;;  %12022 = vrcp.f32 %v1627_v55 }
 0x423   : > { %v12905_v26 = vpop.eup %12016 }
 0x424   : > { %v2530_v60 = vmul.f32 1.442695, %v2527_v58  ;;  %v2229_v63 = vsel %vm1565_vm2, %v12905_v26, 0.0 }
 0x425   : > { %v1630_v0 = vpop.xlane.xlu0 %1629  ;;  %v2675_v2 = vpop.xlane.xlu1 %2674  ;;  %2230 = vadd.xlane.f32.xlu0 %v2229_v63 }
 0x426   : > { %12024 = vpow2.f32 %v2530_v60  ;;  %v2679_v3 = vsub.f32 %v12852_v47, %v2675_v2  ;;  %v11666_v47 = vld [vmem:[#allocation3 + $0x8] ss:$12 sps:$4 sm:$0xff]  }
 0x427   : > { %v12910_v5 = vpop.eup %12018  ;;  %12026 = vrcp.f32 %v1630_v0 }
 0x428   : > { %v2681_v7 = vmul.f32 1.442695, %v2679_v3  ;;  %v2379_v40 = vsel %vm1565_vm2, %v12910_v5, 0.0 }
 0x429   : > { %2380 = vadd.xlane.f32.xlu0 %v2379_v40  ;;  %v2678_v9 = vpop.xlane.xlu0 %2677  ;;  %v2090_v37 = vpop.permute.xlu1 %2089 }
 0x42a   : > { %12028 = vpow2.f32 %v2681_v7  ;;  %v2680_v10 = vsub.f32 %v12858_v51, %v2678_v9 }
 0x42b   : > { %v12915_v11 = vpop.eup %12020 }
 0x42c   : > { %v2683_v13 = vmul.f32 1.442695, %v2680_v10  ;;  %v2382_v56 = vsel %vm1565_vm2, %v12915_v11, 0.0 }
 0x42d   : > { %2383 = vadd.xlane.f32.xlu0 %v2382_v56 }
 0x42e   : > { %12030 = vpow2.f32 %v2683_v13 }
 0x42f   : > { %v12023_v15 = vpop.eup %12022 }
 0x430   : > { %v1633_v51 = vmul.f32 %v12023_v15, %v12842_v36 }
 0x432   : > { %2242 = vrot.lane.b32.xlu1 %v11666_v47, %s12422_s24 }
 0x433   : > { %v12920_v59 = vpop.eup %12024 }
 0x434   : > { %v12027_v16 = vpop.eup %12026  ;;  %v2535_v62 = vsel %vm1565_vm2, %v12920_v59, 0.0 }
 0x435   : > { %2536 = vadd.xlane.f32.xlu0 %v2535_v62  ;;  %v1634_v19 = vmul.f32 %v12027_v16, %v12850_v45  ;;  %v2526_v45 = vsub.f32 %v12838_v30, %v2522_v53  ;;  %v1937_v30 = vpop.permute.xlu0 %1936 }
 0x437   : > { %v12926_v1 = vpop.eup %12028  ;;  %v1635_v20 = vpack.c.bf16 %v1634_v19, %v1633_v51  ;;  %v2528_v24 = vmul.f32 1.442695, %v2526_v45 }
 0x438   : > { %v2685_v4 = vsel %vm1565_vm2, %v12926_v1, 0.0 }
 0x439   : > { %11139 = vmatmul.mubr.msk.bf16.vlgmr.msra.gmra.mxu0 %vm1565_vm2, %v1635_v20  ;;  %2686 = vadd.xlane.f32.xlu0 %v2685_v4  ;;  %12032 = vpow2.f32 %v2528_v24 }
 0x43a   : > { %11149 = vmatpush3.bf16.msra.mxu0 %v12865_v61  ;;  %11150 = vmatprep.mubr.msk.bf16.mxu0 %vm12418_vm1, %v12416_v6 }
 0x43b   : > { %v12934_v22 = vpop.eup %12030  ;;  %11160 = vmatprep.subr.bf16.mxu0 %v12416_v6 }
 0x43c   : > { %v2688_v36 = vsel %vm1565_vm2, %v12934_v22, 0.0 }
 0x43d   : > { %2689 = vadd.xlane.f32.xlu0 %v2688_v36 }
 0x446   : > { %v12940_v8 = vpop.eup %12032 }
 0x447   : > { %v2532_v61 = vsel %vm1565_vm2, %v12940_v8, 0.0 }
 0x453   : > { %2395 = vrot.lane.b32.xlu0 %v11667_v25, %s12423_s20 }
 0x456   : > { %2533 = vadd.xlane.f32.xlu1 %v2532_v61 }
 0x467   : > { %2548 = vrot.lane.b32.xlu1 %v11668_v29, %s12424_s21 }
 0x46b   : > { %2701 = vrot.lane.b32.xlu1 %v11669_v32, %s12425_s2 }
 0x492   : > { %v1769_v12 = vpop.xlane.xlu1 %1768 }
 0x493   : > { %12034 = vrcp.f32 %v1769_v12 }
 0x496   : > { %v1772_v44 = vpop.xlane.xlu0 %1771 }
 0x497   : > { %12036 = vrcp.f32 %v1772_v44 }
 0x49a   : > { %v1922_v46 = vpop.xlane.xlu1 %1921 }
 0x49b   : > { %12038 = vrcp.f32 %v1922_v46 }
 0x49e   : > { %v1925_v48 = vpop.xlane.xlu0 %1924 }
 0x49f   : > { %12040 = vrcp.f32 %v1925_v48 }
 0x4a0   : > { %v12035_v18 = vpop.eup %12034 }
 0x4a1   : > { %v1775_v53 = vmul.f32 %v12035_v18, %v12871_v14 }
 0x4a2   : > { %v2075_v50 = vpop.xlane.xlu1 %2074 }
 0x4a3   : > { %12042 = vrcp.f32 %v2075_v50 }
 0x4a4   : > { %v12037_v52 = vpop.eup %12036 }
 0x4a5   : > { %v1776_v54 = vmul.f32 %v12037_v52, %v12876_v17 }
 0x4a6   : > { %v2078_v55 = vpop.xlane.xlu0 %2077 }
 0x4a7   : > { %12044 = vrcp.f32 %v2078_v55  ;;  %v1777_v57 = vpack.c.bf16 %v1776_v54, %v1775_v53 }
 0x4a8   : > { %v12039_v58 = vpop.eup %12038 }
 0x4a9   : > { %11151 = vmatmul.mubr.msk.bf16.vlgmr.msra.gmra.mxu0 %vm1565_vm2, %v1777_v57  ;;  %v1928_v0 = vmul.f32 %v12039_v58, %v12881_v21 }
 0x4aa   : > { %11161 = vmatpush3.bf16.msra.mxu0 %v1937_v30  ;;  %v2228_v60 = vpop.xlane.xlu1 %2227  ;;  %11162 = vmatprep.mubr.msk.bf16.mxu0 %vm12418_vm1, %v12416_v6 }
 0x4ab   : > { %11172 = vmatprep.subr.bf16.mxu0 %v12416_v6  ;;  %12046 = vrcp.f32 %v2228_v60 }
 0x4ac   : > { %v12041_v63 = vpop.eup %12040 }
 0x4ad   : > { %v1929_v14 = vmul.f32 %v12041_v63, %v12886_v27 }
 0x4ae   : > { %v2231_v17 = vpop.xlane.xlu0 %2230  ;;  %v2243_v13 = vpop.permute.xlu1 %2242 }
 0x4af   : > { %12048 = vrcp.f32 %v2231_v17  ;;  %v1930_v2 = vpack.c.bf16 %v1929_v14, %v1928_v0 }
 0x4b0   : > { %v12043_v3 = vpop.eup %12042 }
 0x4b1   : > { %11163 = vmatmul.mubr.msk.bf16.vlgmr.msra.gmra.mxu0 %vm1565_vm2, %v1930_v2  ;;  %v2081_v9 = vmul.f32 %v12043_v3, %v12891_v43  ;;  %v11670_v3 = vld [vmem:[#allocation8 + $0x38] sm:$0xff]  }
 0x4b2   : > { %11173 = vmatpush3.bf16.msra.mxu0 %v2090_v37  ;;  %v2381_v7 = vpop.xlane.xlu0 %2380  ;;  %11174 = vmatprep.mubr.msk.bf16.mxu0 %vm12418_vm1, %v12416_v6 }
 0x4b3   : > { %11184 = vmatprep.subr.bf16.mxu0 %v12416_v6  ;;  %11227 = vmatpush3.bf16.msra.mxu1 %v11670_v3 }
 0x4b4   : > { %v12045_v40 = vpop.eup %12044  ;;  %11228 = vmatprep.subr.bf16.mxu1 %v12416_v6 }
 0x4b5   : > { %v2082_v21 = vmul.f32 %v12045_v40, %v12896_v49  ;;  %v11671_v40 = vld [vmem:[#allocation8 + $0x30] sm:$0xff]  }
 0x4b6   : > { %v2384_v10 = vpop.xlane.xlu0 %2383 }
 0x4b7   : > { %v2083_v27 = vpack.c.bf16 %v2082_v21, %v2081_v9  ;;  %12050 = vrcp.f32 %v2384_v10  ;;  %11229 = vmatpush3.bf16.msra.mxu1 %v11671_v40  ;;  %v11672_v9 = vld [vmem:[#allocation8 + $0x28] sm:$0xff]  }
 0x4b8   : > { %v12047_v56 = vpop.eup %12046  ;;  %12052 = vrcp.f32 %v2381_v7  ;;  %11230 = vmatprep.subr.bf16.mxu1 %v12416_v6 }
 0x4b9   : > { %11175 = vmatmul.mubr.msk.bf16.vlgmr.msra.gmra.mxu0 %vm1565_vm2, %v2083_v27  ;;  %v2234_v15 = vmul.f32 %v12047_v56, %v12900_v23  ;;  %v11673_v56 = vld [vmem:[#allocation8 + $0x20] sm:$0xff]  }
 0x4ba   : > { %11185 = vmatpush3.bf16.msra.mxu0 %v2243_v13  ;;  %11186 = vmatprep.mubr.msk.bf16.mxu0 %vm12418_vm1, %v12416_v6 }
 0x4bb   : > { %11196 = vmatprep.subr.bf16.mxu0 %v12416_v6  ;;  %11231 = vmatpush3.bf16.msra.mxu1 %v11672_v9 }
 0x4bc   : > { %v12049_v47 = vpop.eup %12048  ;;  %11232 = vmatprep.subr.bf16.mxu1 %v12416_v6 }
 0x4bd   : > { %v2235_v43 = vmul.f32 %v12049_v47, %v12905_v26  ;;  %v11674_v47 = vld [vmem:[#allocation8 + $0x18] sm:$0xff]  }
 0x4be   : > { %v2537_v49 = vpop.xlane.xlu0 %2536 }
 0x4bf   : > { %v2236_v16 = vpack.c.bf16 %v2235_v43, %v2234_v15  ;;  %12054 = vrcp.f32 %v2537_v49  ;;  %11233 = vmatpush3.bf16.msra.mxu1 %v11673_v56  ;;  %v11675_v15 = vld [vmem:[#allocation8 + $0x10] sm:$0xff]   ;;  %v11676_v49 = vld [vmem:[#allocation8 + $0x8] sm:$0xff]  }
 0x4c0   : > { %11234 = vmatprep.subr.bf16.mxu1 %v12416_v6 }
 0x4c1   : > { %11187 = vmatmul.mubr.msk.bf16.vlgmr.msra.gmra.mxu0 %vm1565_vm2, %v2236_v16 }
 0x4c2   : > { %v2687_v62 = vpop.xlane.xlu0 %2686  ;;  %11198 = vmatprep.mubr.msk.bf16.mxu0 %vm12418_vm1, %v12416_v6 }
 0x4c3   : > { %11235 = vmatpush3.bf16.msra.mxu1 %v11674_v47  ;;  %v1008_v47 = vld [vmem:[#allocation10 + $0x348] sm:$0xff] }
 0x4c4   : > { %v12051_v51 = vpop.eup %12050  ;;  %11236 = vmatprep.subr.bf16.mxu1 %v12416_v6 }
 0x4c5   : > { %v12053_v20 = vpop.eup %12052  ;;  %v2388_v4 = vmul.f32 %v12051_v51, %v12915_v11 }
 0x4c6   : > { %v2690_v19 = vpop.xlane.xlu0 %2689  ;;  %v2387_v45 = vmul.f32 %v12053_v20, %v12910_v5 }
 0x4c7   : > { %11237 = vmatpush3.bf16.msra.mxu1 %v11675_v15 }
 0x4c8   : > { %v2389_v23 = vpack.c.bf16 %v2388_v4, %v2387_v45  ;;  %11238 = vmatprep.subr.bf16.mxu1 %v12416_v6 }
 0x4ca   : > { %v2396_v36 = vpop.permute.xlu0 %2395 }
 0x4cb   : > { %11197 = vmatpush3.bf16.msra.mxu0 %v2396_v36  ;;  %11239 = vmatpush3.bf16.msra.mxu1 %v11676_v49 }
 0x4cc   : > { %11208 = vmatprep.subr.bf16.mxu0 %v12416_v6  ;;  %v12055_v11 = vpop.eup %12054  ;;  %11240 = vmatprep.subr.bf16.mxu1 %v12416_v6 }
 0x4cd   : > { %v2541_v61 = vmul.f32 %v12055_v11, %v12920_v59 }
 0x4ce   : > { %11199 = vmatmul.mubr.msk.bf16.vlgmr.msra.gmra.mxu0 %vm1565_vm2, %v2389_v23 }
 0x4cf   : > { %11210 = vmatprep.mubr.msk.bf16.mxu0 %vm12418_vm1, %v12416_v6 }
 0x4df   : > { %v2534_v26 = vpop.xlane.xlu1 %2533 }
 0x4e0   : > { %12056 = vrcp.f32 %v2534_v26 }
 0x4e1   : > { %12058 = vrcp.f32 %v2690_v19 }
 0x4e2   : > { %12060 = vrcp.f32 %v2687_v62  ;;  %v11677_v62 = vld [vmem:[#allocation8] sm:$0xff]  }
 0x4e3   : > { %v2549_v24 = vpop.permute.xlu1 %2548  ;;  %11241 = vmatpush3.bf16.msra.mxu1 %v11677_v62  ;;  %v991_v62 = vld [vmem:[#allocation10 + $0x2c0] sm:$0xff] }
 0x4e4   : > { %11209 = vmatpush3.bf16.msra.mxu0 %v2549_v24 }
 0x4e5   : > { %11220 = vmatprep.subr.bf16.mxu0 %v12416_v6 }
 0x4e7   : > { %v2702_v37 = vpop.permute.xlu1 %2701 }
 0x4ed   : > { %v12057_v5 = vpop.eup %12056 }
 0x4ee   : > { %v2540_v25 = vmul.f32 %v12057_v5, %v12940_v8  ;;  %v12059_v32 = vpop.eup %12058 }
 0x4ef   : > { %v12061_v30 = vpop.eup %12060  ;;  %v2694_v12 = vmul.f32 %v12059_v32, %v12934_v22 }
 0x4f0   : > { %v2542_v29 = vpack.c.bf16 %v2541_v61, %v2540_v25  ;;  %v2693_v44 = vmul.f32 %v12061_v30, %v12926_v1 }
 0x4f2   : > { %11211 = vmatmul.mubr.msk.bf16.vlgmr.msra.gmra.mxu0 %vm1565_vm2, %v2542_v29  ;;  %v2695_v46 = vpack.c.bf16 %v2694_v12, %v2693_v44 }
 0x4f3   : > { %11221 = vmatpush3.bf16.msra.mxu0 %v2702_v37  ;;  %11222 = vmatprep.mubr.msk.bf16.mxu0 %vm12418_vm1, %v12416_v6 }
 0x4f9   : > { %v1679_v48 = vpop.f32.mrf.mxu0 }
 0x4fa   : > { %1686 = vst.msk [vmem:[#allocation4] sm:$0xff] %vm1565_vm2, %v1679_v48  ;;  %11223 = vmatmul.mubr.msk.bf16.vlgmr.msra.gmra.mxu0 %vm1565_vm2, %v2695_v46 }
 0x4fb   : > { %v11140_v59 = vpop.f32.mrf.mxu0  ;;  %3655 = vmatprep.mubr.bf16.mxu0 %v12417_v28 }
 0x4fd   : > { %v1682_v8 = vpop.f32.mrf.mxu0 }
 0x4fe   : > { %1687 = vst.msk [vmem:[#allocation4 + $0x8] sm:$0xff] %vm1565_vm2, %v1682_v8 }
 0x4ff   : > { %v11141_v18 = vpop.f32.mrf.mxu0 }
 0x500   : > { %v9970_v18 = vld [vmem:[%s13686_s6] ss:$0 sm:$0xff] }
 0x569   : > { %v1823_v50 = vpop.f32.mrf.mxu0 }
 0x56a   : > { %1832 = vrot.lane.b32.xlu1 %v1823_v50, %s12425_s2 }
 0x56b   : > { %v11152_v52 = vpop.f32.mrf.mxu0 }
 0x56d   : > { %v1826_v22 = vpop.f32.mrf.mxu0 }
 0x56e   : > { %1834 = vrot.lane.b32.xlu1 %v1826_v22, %s12425_s2 }
 0x56f   : > { %v11153_v1 = vpop.f32.mrf.mxu0 }
 0x571   : > { %v1976_v53 = vpop.f32.mrf.mxu0 }
 0x572   : > { %1985 = vrot.lane.b32.xlu1 %v1976_v53, %s12424_s21 }
 0x573   : > { %v11164_v54 = vpop.f32.mrf.mxu0 }
 0x575   : > { %v1979_v55 = vpop.f32.mrf.mxu0 }
 0x576   : > { %1987 = vrot.lane.b32.xlu0 %v1979_v55, %s12424_s21 }
 0x577   : > { %v11165_v57 = vpop.f32.mrf.mxu0 }
 0x579   : > { %v2129_v58 = vpop.f32.mrf.mxu0 }
 0x57a   : > { %2138 = vrot.lane.b32.xlu1 %v2129_v58, %s12423_s20  ;;  %v1015_v58 = vld [vmem:[#allocation10 + $0x380] sm:$0xff] }
 0x57b   : > { %v11176_v60 = vpop.f32.mrf.mxu0 }
 0x57c   : > { %v1023_v60 = vld [vmem:[#allocation10 + $0x3c0] sm:$0xff] }
 0x57d   : > { %v2132_v63 = vpop.f32.mrf.mxu0 }
 0x57e   : > { %2140 = vrot.lane.b32.xlu0 %v2132_v63, %s12423_s20  ;;  %v1016_v63 = vld [vmem:[#allocation10 + $0x388] sm:$0xff] }
 0x57f   : > { %v11177_v0 = vpop.f32.mrf.mxu0 }
 0x580   : > { %v10093_v0 = vcombine.low %v1015_v58, %v1023_v60 }
 0x581   : > { %v2282_v14 = vpop.f32.mrf.mxu0 }
 0x582   : > { %2291 = vrot.lane.b32.xlu1 %v2282_v14, %s12422_s24  ;;  %v10094_v14 = vcombine.high %v1015_v58, %v1023_v60  ;;  %v13039_v58 = vld [vmem:[#allocation10 + $0x390] sm:$0xff] }
 0x583   : > { %v11188_v17 = vpop.f32.mrf.mxu0  ;;  %v13041_v60 = vld [vmem:[#allocation10 + $0x3d0] sm:$0xff] }
 0x584   : > { %v1024_v17 = vld [vmem:[#allocation10 + $0x3c8] sm:$0xff]  ;;  %3623 = vmatprep.subr.bf16.mxu0 %v10094_v14 }
 0x585   : > { %v2285_v2 = vpop.f32.mrf.mxu0  ;;  %v10096_v3 = vcombine.high %v1016_v63, %v1024_v17  ;;  %3624 = vmatpush1.bf16.msra.mxu0 %v10093_v0  ;;  %v13045_v0 = vld [vmem:[#allocation10 + $0x3d8] sm:$0xff] }
 0x586   : > { %2293 = vrot.lane.b32.xlu0 %v2285_v2, %s12422_s24  ;;  %v10095_v2 = vcombine.low %v1016_v63, %v1024_v17  ;;  %v13043_v63 = vld [vmem:[#allocation10 + $0x398] sm:$0xff]  ;;  %v10097_v17 = vcombine.low %v13039_v58, %v13041_v60 }
 0x587   : > { %v11189_v7 = vpop.f32.mrf.mxu0  ;;  %3666 = vmatprep.subr.bf16.mxu1 %v10096_v3 }
 0x58e   : > { %v2435_v21 = vpop.f32.mrf.mxu0 }
 0x58f   : > { %2444 = vrot.lane.b32.xlu1 %v2435_v21, %s12421_s9 }
 0x590   : > { %v11200_v10 = vpop.f32.mrf.mxu0 }
 0x591   : > { %v999_v10 = vld [vmem:[#allocation10 + $0x300] sm:$0xff] }
 0x592   : > { %v2438_v27 = vpop.f32.mrf.mxu0 }
 0x593   : > { %2446 = vrot.lane.b32.xlu0 %v2438_v27, %s12421_s9  ;;  %v1007_v27 = vld [vmem:[#allocation10 + $0x340] sm:$0xff] }
 0x594   : > { %v11201_v13 = vpop.f32.mrf.mxu0  ;;  %v10078_v56 = vcombine.high %v999_v10, %v1007_v27  ;;  %v10077_v15 = vcombine.low %v999_v10, %v1007_v27 }
 0x595   : > { %v1000_v13 = vld [vmem:[#allocation10 + $0x308] sm:$0xff] }
 0x596   : > { %v10080_v49 = vcombine.high %v1000_v13, %v1008_v47  ;;  %3625 = vmatprep.subr.bf16.mxu0 %v10078_v56 }
 0x597   : > { %3626 = vmatpush1.bf16.msra.mxu0 %v10077_v15 }
 0x5b2   : > { %v2588_v43 = vpop.f32.mrf.mxu0 }
 0x5b3   : > { %2597 = vrot.lane.b32.xlu1 %v2588_v43, %s12419_s23  ;;  %v10079_v43 = vcombine.low %v1000_v13, %v1008_v47 }
 0x5b4   : > { %v11212_v16 = vpop.f32.mrf.mxu0 }
 0x5b5   : > { %v983_v16 = vld [vmem:[#allocation10 + $0x280] sm:$0xff] }
 0x5b6   : > { %v2591_v51 = vpop.f32.mrf.mxu0 }
 0x5b7   : > { %2599 = vrot.lane.b32.xlu0 %v2591_v51, %s12419_s23  ;;  %v984_v51 = vld [vmem:[#allocation10 + $0x288] sm:$0xff] }
 0x5b8   : > { %v11213_v19 = vpop.f32.mrf.mxu0 }
 0x5b9   : > { %v10062_v19 = vcombine.high %v983_v16, %v991_v62 }
 0x5ba   : > { %v2741_v20 = vpop.f32.mrf.mxu0 }
 0x5bb   : > { %2750 = vrot.lane.b32.xlu1 %v2741_v20, %s12420_s28  ;;  %v992_v20 = vld [vmem:[#allocation10 + $0x2c8] sm:$0xff]  ;;  %3627 = vmatprep.subr.bf16.mxu0 %v10062_v19 }
 0x5bc   : > { %v11224_v4 = vpop.f32.mrf.mxu0 }
 0x5bd   : > { %v10061_v4 = vcombine.low %v983_v16, %v991_v62 }
 0x5be   : > { %v2744_v36 = vpop.f32.mrf.mxu0 }
 0x5bf   : > { %2752 = vrot.lane.b32.xlu0 %v2744_v36, %s12420_s28  ;;  %v10063_v36 = vcombine.low %v984_v51, %v992_v20  ;;  %3628 = vmatpush1.bf16.msra.mxu0 %v10061_v4 }
 0x5c0   : > { %v11225_v45 = vpop.f32.mrf.mxu0 }
 0x5c1   : > { %v10064_v45 = vcombine.high %v984_v51, %v992_v20 }
 0x5dc   : > { %v1833_v23 = vpop.permute.xlu1 %1832 }
 0x5dd   : > { %1839 = vst.msk [vmem:[#allocation4] sm:$0xff] %vm1838_vm3, %v1833_v23  ;;  %v967_v23 = vld [vmem:[#allocation10 + $0x200] sm:$0xff] }
 0x5e0   : > { %v1835_v26 = vpop.permute.xlu1 %1834 }
 0x5e1   : > { %1840 = vst.msk [vmem:[#allocation4 + $0x8] sm:$0xff] %vm1838_vm3, %v1835_v26  ;;  %v975_v26 = vld [vmem:[#allocation10 + $0x240] sm:$0xff] }
 0x5e4   : > { %v1986_v24 = vpop.permute.xlu1 %1985 }
 0x5e5   : > { %1992 = vst.msk [vmem:[#allocation4] sm:$0xff] %vm1991_vm4, %v1986_v24  ;;  %v968_v24 = vld [vmem:[#allocation10 + $0x208] sm:$0xff] }
 0x5e8   : > { %v1988_v11 = vpop.permute.xlu0 %1987 }
 0x5e9   : > { %1993 = vst.msk [vmem:[#allocation4 + $0x8] sm:$0xff] %vm1991_vm4, %v1988_v11  ;;  %v10045_v11 = vcombine.low %v967_v23, %v975_v26 }
 0x5ec   : > { %v2139_v5 = vpop.permute.xlu1 %2138 }
 0x5ed   : > { %2145 = vst.msk [vmem:[#allocation4] sm:$0xff] %vm2144_vm5, %v2139_v5  ;;  %v10046_v5 = vcombine.high %v967_v23, %v975_v26  ;;  %v9979_v23 = vld [vmem:[%s13691_s11] ss:$0 sm:$0xff] }
 0x5ef   : > { %3629 = vmatprep.subr.bf16.mxu0 %v10046_v5  ;;  %v9980_v5 = vld [vmem:[%s13692_s12] ss:$0 sm:$0xff] }
 0x5f0   : > { %v2141_v25 = vpop.permute.xlu0 %2140  ;;  %3630 = vmatpush1.bf16.msra.mxu0 %v10045_v11 }
 0x5f1   : > { %2146 = vst.msk [vmem:[#allocation4 + $0x8] sm:$0xff] %vm2144_vm5, %v2141_v25  ;;  %v976_v25 = vld [vmem:[#allocation10 + $0x248] sm:$0xff] }
 0x5f4   : > { %v2292_v61 = vpop.permute.xlu1 %2291 }
 0x5f5   : > { %2298 = vst.msk [vmem:[#allocation4] sm:$0xff] %vm2297_vm6, %v2292_v61  ;;  %v951_v61 = vld [vmem:[#allocation10 + $0x180] sm:$0xff] }
 0x5f8   : > { %v2294_v29 = vpop.permute.xlu0 %2293 }
 0x5f9   : > { %2299 = vst.msk [vmem:[#allocation4 + $0x8] sm:$0xff] %vm2297_vm6, %v2294_v29  ;;  %v959_v29 = vld [vmem:[#allocation10 + $0x1c0] sm:$0xff] }
 0x601   : > { %v2445_v32 = vpop.permute.xlu1 %2444 }
 0x602   : > { %2451 = vst.msk [vmem:[#allocation4] sm:$0xff] %vm2450_vm7, %v2445_v32  ;;  %v10047_v32 = vcombine.low %v968_v24, %v976_v25 }
 0x605   : > { %v2447_v37 = vpop.permute.xlu0 %2446 }
 0x606   : > { %2452 = vst.msk [vmem:[#allocation4 + $0x8] sm:$0xff] %vm2450_vm7, %v2447_v37  ;;  %v10048_v37 = vcombine.high %v968_v24, %v976_v25 }
 0x625   : > { %v2598_v30 = vpop.permute.xlu1 %2597 }
 0x626   : > { %2604 = vst.msk [vmem:[#allocation4] sm:$0xff] %vm2603_vm8, %v2598_v30  ;;  %v10030_v30 = vcombine.high %v951_v61, %v959_v29 }
 0x628   : > { %3631 = vmatprep.subr.bf16.mxu0 %v10030_v30 }
 0x629   : > { %v2600_v12 = vpop.permute.xlu0 %2599 }
 0x62a   : > { %2605 = vst.msk [vmem:[#allocation4 + $0x8] sm:$0xff] %vm2603_vm8, %v2600_v12  ;;  %v952_v12 = vld [vmem:[#allocation10 + $0x188] sm:$0xff] }
 0x62d   : > { %v2751_v44 = vpop.permute.xlu1 %2750 }
 0x62e   : > { %2757 = vst.msk [vmem:[#allocation4] sm:$0xff] %vm2756_vm9, %v2751_v44  ;;  %v960_v44 = vld [vmem:[#allocation10 + $0x1c8] sm:$0xff] }
 0x631   : > { %v2753_v46 = vpop.permute.xlu0 %2752 }
 0x632   : > { %2758 = vst.msk [vmem:[#allocation4 + $0x8] sm:$0xff] %vm2756_vm9, %v2753_v46  ;;  %v935_v46 = vld [vmem:[#allocation10 + $0x100] sm:$0xff] }
 0x635   : > { %v2759_v48 = vld [vmem:[#allocation4] sm:$0xff] }
 0x639   : > { %v2760_v59 = vld [vmem:[#allocation4 + $0x8] sm:$0xff] }
 0x63a   : > { %v2761_v8 = vpack.c.bf16 %v2760_v59, %v2759_v48  ;;  %v10032_v48 = vcombine.high %v952_v12, %v960_v44  ;;  %v943_v59 = vld [vmem:[#allocation10 + $0x140] sm:$0xff] }
 0x63b   : > { %v10013_v14 = vcombine.low %v935_v46, %v943_v59 }
 0x63c   : > { %11243 = vmatmul.mubr.bf16.vlgmr.msra.gmra.mxu1 %v2761_v8  ;;  %v936_v8 = vld [vmem:[#allocation10 + $0x108] sm:$0xff] }
 0x63d   : > { %3698 = vmatprep.mubr.bf16.mxu1 %v12417_v28  ;;  %3667 = vmatpush1.bf16.msra.mxu1 %v10095_v2  ;;  %v10099_v2 = vcombine.low %v13043_v63, %v13045_v0 }
 0x63e   : > { %3668 = vmatprep.subr.bf16.mxu1 %v10080_v49  ;;  %v10100_v49 = vcombine.high %v13043_v63, %v13045_v0  ;;  %v953_v0 = vld [vmem:[#allocation10 + $0x190] sm:$0xff] }
 0x641   : > { %3669 = vmatpush1.bf16.msra.mxu1 %v10079_v43  ;;  %v10098_v43 = vcombine.high %v13039_v58, %v13041_v60 }
 0x642   : > { %3670 = vmatprep.subr.bf16.mxu1 %v10064_v45 }
 0x645   : > { %3671 = vmatpush1.bf16.msra.mxu1 %v10063_v36 }
 0x646   : > { %3672 = vmatprep.subr.bf16.mxu1 %v10048_v37  ;;  %v1010_v37 = vld [vmem:[#allocation10 + $0x358] sm:$0xff] }
 0x649   : > { %3673 = vmatpush1.bf16.msra.mxu1 %v10047_v32  ;;  %v1002_v32 = vld [vmem:[#allocation10 + $0x318] sm:$0xff] }
 0x64a   : > { %3674 = vmatprep.subr.bf16.mxu1 %v10032_v48  ;;  %v993_v48 = vld [vmem:[#allocation10 + $0x2d0] sm:$0xff] }
 0x6fc   : > { %v2850_v50 = vpop.f32.mrf.mxu1 }
 0x6fd   : > { %v2851_v52 = vadd.f32 %v9970_v18, %v2850_v50  ;;  %v10029_v50 = vcombine.low %v951_v61, %v959_v29  ;;  %v1001_v61 = vld [vmem:[#allocation10 + $0x310] sm:$0xff] }
 0x6fe   : > { %v11244_v22 = vpop.f32.mrf.mxu1  ;;  %v1009_v29 = vld [vmem:[#allocation10 + $0x350] sm:$0xff] }
 0x6ff   : > { %v2859_v1 = vadd.f32 %v2851_v52, %v849_v35  ;;  %v10031_v52 = vcombine.low %v952_v12, %v960_v44  ;;  %v10014_v22 = vcombine.high %v935_v46, %v943_v59  ;;  %3632 = vmatpush1.bf16.msra.mxu0 %v10029_v50  ;;  %v10082_v44 = vcombine.high %v1001_v61, %v1009_v29  ;;  %v986_v59 = vld [vmem:[#allocation10 + $0x298] sm:$0xff] }
 0x700   : > { %v2853_v53 = vpop.f32.mrf.mxu1  ;;  %v10084_v46 = vcombine.high %v1002_v32, %v1010_v37  ;;  %v10083_v50 = vcombine.low %v1002_v32, %v1010_v37  ;;  %v1028_v32 = vld [vmem:[#allocation10 + $0x3e8] sm:$0xff] }
 0x701   : > { %v2854_v54 = vadd.f32 %v9970_v18, %v2853_v53  ;;  %2861 = vadd.xlane.f32.xlu1 %v2859_v1  ;;  %v944_v18 = vld [vmem:[#allocation10 + $0x148] sm:$0xff]  ;;  %v927_v53 = vld [vmem:[#allocation10 + $0xc0] sm:$0xff]  ;;  %3675 = vmatpush1.bf16.msra.mxu1 %v10031_v52 }
 0x702   : > { %v11245_v55 = vpop.f32.mrf.mxu1  ;;  %3633 = vmatprep.subr.bf16.mxu0 %v10014_v22  ;;  %v10015_v3 = vcombine.low %v936_v8, %v944_v18 }
 0x703   : > { %v2860_v57 = vadd.f32 %v2854_v54, %v850_v34  ;;  %v10016_v54 = vcombine.high %v936_v8, %v944_v18  ;;  %v920_v55 = vld [vmem:[#allocation10 + $0x88] sm:$0xff]  ;;  %3634 = vmatpush1.bf16.msra.mxu0 %v10013_v14  ;;  %v994_v8 = vld [vmem:[#allocation10 + $0x2d8] sm:$0xff]  ;;  %v10081_v18 = vcombine.low %v1001_v61, %v1009_v29  ;;  %v961_v14 = vld [vmem:[#allocation10 + $0x1d0] sm:$0xff] }
 0x704   : > { %v10068_v22 = vcombine.high %v986_v59, %v994_v8  ;;  %v10067_v58 = vcombine.low %v986_v59, %v994_v8  ;;  %v1027_v61 = vld [vmem:[#allocation10 + $0x3e0] sm:$0xff]  ;;  %v1020_v29 = vld [vmem:[#allocation10 + $0x3a8] sm:$0xff] }
 0x705   : > { %2863 = vadd.xlane.f32.xlu0 %v2860_v57  ;;  %3676 = vmatprep.subr.bf16.mxu1 %v10016_v54  ;;  %v970_v54 = vld [vmem:[#allocation10 + $0x218] sm:$0xff]  ;;  %v1011_v59 = vld [vmem:[#allocation10 + $0x360] sm:$0xff]  ;;  %v1004_v8 = vld [vmem:[#allocation10 + $0x328] sm:$0xff] }
 0x706   : > { %3677 = vmatpush1.bf16.msra.mxu1 %v10015_v3 }
 0x78a   : > { %v2862_v33 = vpop.xlane.xlu1 %2861 }
 0x78b   : > { %v2866_v35 = vmul.f32 0.0078125, %v2862_v33 }
 0x78d   : > { %v13031_v7 = vsub.f32 %v2859_v1, %v2866_v35  ;;  %v919_v1 = vld [vmem:[#allocation10 + $0x80] sm:$0xff] }
 0x78e   : > { %v2864_v40 = vpop.xlane.xlu0 %2863  ;;  %v9998_v33 = vcombine.high %v919_v1, %v927_v53  ;;  %v9997_v10 = vcombine.low %v919_v1, %v927_v53  ;;  %v969_v1 = vld [vmem:[#allocation10 + $0x210] sm:$0xff] }
 0x78f   : > { %v2867_v31 = vmul.f32 0.0078125, %v2864_v40  ;;  %v2870_v34 = vmul.f32 %v13031_v7, %v13031_v7  ;;  %v903_v40 = vld [vmem:[#allocation10] sm:$0xff]  ;;  %v977_v53 = vld [vmem:[#allocation10 + $0x250] sm:$0xff] }
 0x790   : > { %3635 = vmatprep.subr.bf16.mxu0 %v9998_v33  ;;  %v10050_v60 = vcombine.high %v969_v1, %v977_v53  ;;  %v10049_v3 = vcombine.low %v969_v1, %v977_v53  ;;  %v987_v53 = vld [vmem:[#allocation10 + $0x2a0] sm:$0xff] }
 0x791   : > { %v13035_v9 = vsub.f32 %v2860_v57, %v2867_v31  ;;  %2872 = vadd.xlane.f32.xlu0 %v2870_v34  ;;  %v928_v57 = vld [vmem:[#allocation10 + $0xc8] sm:$0xff]  ;;  %v911_v31 = vld [vmem:[#allocation10 + $0x40] sm:$0xff]  ;;  %3636 = vmatpush1.bf16.msra.mxu0 %v9997_v10  ;;  %v946_v10 = vld [vmem:[#allocation10 + $0x158] sm:$0xff] }
 0x792   : > { %v10000_v35 = vcombine.high %v920_v55, %v928_v57  ;;  %v904_v34 = vld [vmem:[#allocation10 + $0x8] sm:$0xff]  ;;  %v9999_v27 = vcombine.low %v920_v55, %v928_v57  ;;  %v9982_v13 = vcombine.high %v903_v40, %v911_v31  ;;  %v9981_v47 = vcombine.low %v903_v40, %v911_v31  ;;  %v978_v55 = vld [vmem:[#allocation10 + $0x258] sm:$0xff]  ;;  %v937_v31 = vld [vmem:[#allocation10 + $0x110] sm:$0xff] }
 0x793   : > { %v2871_v21 = vmul.f32 %v13035_v9, %v13035_v9  ;;  %v10052_v63 = vcombine.high %v970_v54, %v978_v55  ;;  %v10051_v33 = vcombine.low %v970_v54, %v978_v55  ;;  %v995_v54 = vld [vmem:[#allocation10 + $0x2e0] sm:$0xff]  ;;  %v988_v55 = vld [vmem:[#allocation10 + $0x2a8] sm:$0xff] }
 0x794   : > { %3678 = vmatprep.subr.bf16.mxu1 %v10000_v35  ;;  %3637 = vmatprep.subr.bf16.mxu0 %v9982_v13  ;;  %v10034_v35 = vcombine.high %v953_v0, %v961_v14 }
 0x795   : > { %2874 = vadd.xlane.f32.xlu1 %v2871_v21  ;;  %v912_v21 = vld [vmem:[#allocation10 + $0x48] sm:$0xff]  ;;  %3679 = vmatpush1.bf16.msra.mxu1 %v9999_v27  ;;  %v10033_v27 = vcombine.low %v953_v0, %v961_v14  ;;  %v971_v14 = vld [vmem:[#allocation10 + $0x220] sm:$0xff] }
 0x796   : > { %v9984_v56 = vcombine.high %v904_v34, %v912_v21  ;;  %v9983_v15 = vcombine.low %v904_v34, %v912_v21  ;;  %3638 = vmatpush1.bf16.msra.mxu0 %v9981_v47  ;;  %v945_v34 = vld [vmem:[#allocation10 + $0x150] sm:$0xff]  ;;  %v938_v21 = vld [vmem:[#allocation10 + $0x118] sm:$0xff] }
 0x797   : > { %3709 = vmatprep.subr.bf16.mxu0 %v10098_v43  ;;  %v10020_v47 = vcombine.high %v938_v21, %v946_v10  ;;  %v929_v43 = vld [vmem:[#allocation10 + $0xd0] sm:$0xff] }
 0x798   : > { %3680 = vmatprep.subr.bf16.mxu1 %v9984_v56  ;;  %v10018_v56 = vcombine.high %v937_v31, %v945_v34 }
 0x799   : > { %3681 = vmatpush1.bf16.msra.mxu1 %v9983_v15  ;;  %v921_v15 = vld [vmem:[#allocation10 + $0x90] sm:$0xff] }
 0x79a   : > { %3752 = vmatprep.subr.bf16.mxu1 %v10100_v49  ;;  %v922_v49 = vld [vmem:[#allocation10 + $0x98] sm:$0xff] }
 0x81a   : > { %v2873_v16 = vpop.xlane.xlu0 %2872 }
 0x81b   : > { %v2876_v62 = vmul.f32 0.0078125, %v2873_v16  ;;  %v930_v16 = vld [vmem:[#allocation10 + $0xd8] sm:$0xff] }
 0x81d   : > { %v2878_v51 = vadd.f32 1e-05, %v2876_v62  ;;  %v10017_v62 = vcombine.low %v937_v31, %v945_v34  ;;  %v955_v34 = vld [vmem:[#allocation10 + $0x1a0] sm:$0xff] }
 0x81e   : > { %v2875_v19 = vpop.xlane.xlu1 %2874 }
 0x81f   : > { %12062 = vrsqrt.f32 %v2878_v51  ;;  %v2877_v20 = vmul.f32 0.0078125, %v2875_v19  ;;  %v10019_v51 = vcombine.low %v938_v21, %v946_v10  ;;  %v10002_v19 = vcombine.high %v921_v15, %v929_v43  ;;  %v963_v21 = vld [vmem:[#allocation10 + $0x1e0] sm:$0xff]  ;;  %v956_v10 = vld [vmem:[#allocation10 + $0x1a8] sm:$0xff] }
 0x821   : > { %v2879_v4 = vadd.f32 1e-05, %v2877_v20  ;;  %v10004_v20 = vcombine.high %v922_v49, %v930_v16 }
 0x823   : > { %12064 = vrsqrt.f32 %v2879_v4  ;;  %v905_v4 = vld [vmem:[#allocation10 + $0x10] sm:$0xff] }
 0x82c   : > { %v12063_v36 = vpop.eup %12062 }
 0x82d   : > { %v2882_v45 = vmul.f32 %v12063_v36, %v13031_v7  ;;  %v913_v36 = vld [vmem:[#allocation10 + $0x50] sm:$0xff] }
 0x82e   : > { %v9985_v37 = vcombine.low %v905_v4, %v913_v36 }
 0x82f   : > { %v2890_v24 = vmul.f32 %v9979_v23, %v2882_v45  ;;  %v906_v45 = vld [vmem:[#allocation10 + $0x18] sm:$0xff] }
 0x830   : > { %v12065_v26 = vpop.eup %12064 }
 0x831   : > { %v2883_v11 = vmul.f32 %v12065_v26, %v13035_v9  ;;  %v13063_v30 = vadd.f32 %v9980_v5, %v2890_v24  ;;  %v985_v9 = vld [vmem:[#allocation10 + $0x290] sm:$0xff]  ;;  %v10001_v26 = vcombine.low %v921_v15, %v929_v43  ;;  %v10003_v24 = vcombine.low %v922_v49, %v930_v16  ;;  %v939_v43 = vld [vmem:[#allocation10 + $0x120] sm:$0xff]  ;;  %v940_v16 = vld [vmem:[#allocation10 + $0x128] sm:$0xff] }
 0x832   : > { %v10066_v52 = vcombine.high %v985_v9, %v993_v48  ;;  %v10065_v57 = vcombine.low %v985_v9, %v993_v48  ;;  %v10104_v9 = vcombine.high %v1020_v29, %v1028_v32  ;;  %v1003_v48 = vld [vmem:[#allocation10 + $0x320] sm:$0xff] }
 0x833   : > { %v2891_v25 = vmul.f32 %v9979_v23, %v2883_v11  ;;  %v914_v23 = vld [vmem:[#allocation10 + $0x58] sm:$0xff]  ;;  %v9986_v11 = vcombine.high %v905_v4, %v913_v36  ;;  %v947_v49 = vld [vmem:[#allocation10 + $0x160] sm:$0xff] }
 0x834   : > { %v923_v36 = vld [vmem:[#allocation10 + $0xa0] sm:$0xff] }
 0x835   : > { %v13065_v7 = vadd.f32 %v9980_v5, %v2891_v25  ;;  %v9988_v5 = vcombine.high %v906_v45, %v914_v23  ;;  %v1019_v25 = vld [vmem:[#allocation10 + $0x3a0] sm:$0xff] }
 0x837   : > { %v13069_v12 = vpack.c.bf16 %v13065_v7, %v13063_v30 }
 0x839   : > { %3656 = vmatmul.mubr.bf16.vlgmr.msra.gmra.mxu0 %v13069_v12  ;;  %3699 = vmatmul.mubr.bf16.vlgmr.msra.gmra.mxu1 %v13069_v12 }
 0x83a   : > { %3710 = vmatpush1.bf16.msra.mxu0 %v10097_v17  ;;  %3753 = vmatpush1.bf16.msra.mxu1 %v10099_v2  ;;  %v954_v17 = vld [vmem:[#allocation10 + $0x198] sm:$0xff] }
 0x83b   : > { %3711 = vmatprep.subr.bf16.mxu0 %v10082_v44  ;;  %3754 = vmatprep.subr.bf16.mxu1 %v10084_v46  ;;  %v962_v2 = vld [vmem:[#allocation10 + $0x1d8] sm:$0xff]  ;;  %v9987_v44 = vcombine.low %v906_v45, %v914_v23  ;;  %v10102_v46 = vcombine.high %v1019_v25, %v1027_v61  ;;  %v931_v45 = vld [vmem:[#allocation10 + $0xe0] sm:$0xff]  ;;  %v924_v23 = vld [vmem:[#allocation10 + $0xa8] sm:$0xff] }
 0x83c   : > { %3741 = vmatprep.mubr.bf16.mxu0 %v12417_v28  ;;  %3784 = vmatprep.mubr.bf16.mxu1 %v12417_v28  ;;  %v10036_v40 = vcombine.high %v954_v17, %v962_v2  ;;  %v10035_v13 = vcombine.low %v954_v17, %v962_v2  ;;  %v979_v17 = vld [vmem:[#allocation10 + $0x260] sm:$0xff]  ;;  %v972_v2 = vld [vmem:[#allocation10 + $0x228] sm:$0xff] }
 0x83e   : > { %3712 = vmatpush1.bf16.msra.mxu0 %v10081_v18  ;;  %3755 = vmatpush1.bf16.msra.mxu1 %v10083_v50  ;;  %v1012_v18 = vld [vmem:[#allocation10 + $0x368] sm:$0xff]  ;;  %v10101_v50 = vcombine.low %v1019_v25, %v1027_v61  ;;  %v907_v61 = vld [vmem:[#allocation10 + $0x20] sm:$0xff] }
 0x83f   : > { %3713 = vmatprep.subr.bf16.mxu0 %v10066_v52  ;;  %3756 = vmatprep.subr.bf16.mxu1 %v10068_v22  ;;  %v10103_v52 = vcombine.low %v1020_v29, %v1028_v32  ;;  %v10086_v22 = vcombine.high %v1003_v48, %v1011_v59  ;;  %v10088_v1 = vcombine.high %v1004_v8, %v1012_v18  ;;  %v915_v29 = vld [vmem:[#allocation10 + $0x60] sm:$0xff]  ;;  %v908_v32 = vld [vmem:[#allocation10 + $0x28] sm:$0xff] }
 0x842   : > { %3714 = vmatpush1.bf16.msra.mxu0 %v10065_v57  ;;  %3757 = vmatpush1.bf16.msra.mxu1 %v10067_v58  ;;  %v996_v57 = vld [vmem:[#allocation10 + $0x2e8] sm:$0xff]  ;;  %v10085_v58 = vcombine.low %v1003_v48, %v1011_v59  ;;  %v1021_v59 = vld [vmem:[#allocation10 + $0x3b0] sm:$0xff] }
 0x843   : > { %3715 = vmatprep.subr.bf16.mxu0 %v10050_v60  ;;  %3758 = vmatprep.subr.bf16.mxu1 %v10052_v63  ;;  %v10087_v60 = vcombine.low %v1004_v8, %v1012_v18  ;;  %v10070_v63 = vcombine.high %v987_v53, %v995_v54  ;;  %v10072_v0 = vcombine.high %v988_v55, %v996_v57  ;;  %v1029_v8 = vld [vmem:[#allocation10 + $0x3f0] sm:$0xff]  ;;  %v1022_v18 = vld [vmem:[#allocation10 + $0x3b8] sm:$0xff] }
 0x846   : > { %3716 = vmatpush1.bf16.msra.mxu0 %v10049_v3  ;;  %3759 = vmatpush1.bf16.msra.mxu1 %v10051_v33  ;;  %v980_v3 = vld [vmem:[#allocation10 + $0x268] sm:$0xff]  ;;  %v10069_v33 = vcombine.low %v987_v53, %v995_v54  ;;  %v1005_v54 = vld [vmem:[#allocation10 + $0x330] sm:$0xff] }
 0x847   : > { %3717 = vmatprep.subr.bf16.mxu0 %v10034_v35  ;;  %3760 = vmatprep.subr.bf16.mxu1 %v10036_v40  ;;  %v10071_v35 = vcombine.low %v988_v55, %v996_v57  ;;  %v10054_v40 = vcombine.high %v971_v14, %v979_v17  ;;  %v10056_v31 = vcombine.high %v972_v2, %v980_v3  ;;  %v1013_v55 = vld [vmem:[#allocation10 + $0x370] sm:$0xff]  ;;  %v1006_v57 = vld [vmem:[#allocation10 + $0x338] sm:$0xff] }
 0x84a   : > { %3718 = vmatpush1.bf16.msra.mxu0 %v10033_v27  ;;  %3761 = vmatpush1.bf16.msra.mxu1 %v10035_v13  ;;  %v964_v27 = vld [vmem:[#allocation10 + $0x1e8] sm:$0xff]  ;;  %v10053_v13 = vcombine.low %v971_v14, %v979_v17  ;;  %v989_v17 = vld [vmem:[#allocation10 + $0x2b0] sm:$0xff] }
 0x84b   : > { %3719 = vmatprep.subr.bf16.mxu0 %v10018_v56  ;;  %3762 = vmatprep.subr.bf16.mxu1 %v10020_v47  ;;  %v10055_v56 = vcombine.low %v972_v2, %v980_v3  ;;  %v10038_v47 = vcombine.high %v955_v34, %v963_v21  ;;  %v10040_v15 = vcombine.high %v956_v10, %v964_v27  ;;  %v997_v2 = vld [vmem:[#allocation10 + $0x2f0] sm:$0xff]  ;;  %v990_v3 = vld [vmem:[#allocation10 + $0x2b8] sm:$0xff] }
 0x84e   : > { %3720 = vmatpush1.bf16.msra.mxu0 %v10017_v62  ;;  %3763 = vmatpush1.bf16.msra.mxu1 %v10019_v51  ;;  %v948_v62 = vld [vmem:[#allocation10 + $0x168] sm:$0xff]  ;;  %v10037_v51 = vcombine.low %v955_v34, %v963_v21  ;;  %v973_v21 = vld [vmem:[#allocation10 + $0x230] sm:$0xff] }
 0x84f   : > { %3721 = vmatprep.subr.bf16.mxu0 %v10002_v19  ;;  %3764 = vmatprep.subr.bf16.mxu1 %v10004_v20  ;;  %v10039_v19 = vcombine.low %v956_v10, %v964_v27  ;;  %v10022_v20 = vcombine.high %v939_v43, %v947_v49  ;;  %v10024_v4 = vcombine.high %v940_v16, %v948_v62  ;;  %v981_v10 = vld [vmem:[#allocation10 + $0x270] sm:$0xff]  ;;  %v974_v27 = vld [vmem:[#allocation10 + $0x238] sm:$0xff] }
 0x852   : > { %3722 = vmatpush1.bf16.msra.mxu0 %v10001_v26  ;;  %3765 = vmatpush1.bf16.msra.mxu1 %v10003_v24  ;;  %v932_v26 = vld [vmem:[#allocation10 + $0xe8] sm:$0xff]  ;;  %v10021_v24 = vcombine.low %v939_v43, %v947_v49  ;;  %v957_v49 = vld [vmem:[#allocation10 + $0x1b0] sm:$0xff] }
 0x853   : > { %3723 = vmatprep.subr.bf16.mxu0 %v9986_v11  ;;  %3766 = vmatprep.subr.bf16.mxu1 %v9988_v5  ;;  %v10023_v11 = vcombine.low %v940_v16, %v948_v62  ;;  %v10006_v5 = vcombine.high %v923_v36, %v931_v45  ;;  %v10008_v25 = vcombine.high %v924_v23, %v932_v26  ;;  %v965_v16 = vld [vmem:[#allocation10 + $0x1f0] sm:$0xff]  ;;  %v958_v62 = vld [vmem:[#allocation10 + $0x1b8] sm:$0xff] }
 0x856   : > { %3724 = vmatpush1.bf16.msra.mxu0 %v9985_v37  ;;  %3767 = vmatpush1.bf16.msra.mxu1 %v9987_v44  ;;  %v916_v37 = vld [vmem:[#allocation10 + $0x68] sm:$0xff]  ;;  %v10005_v44 = vcombine.low %v923_v36, %v931_v45  ;;  %v941_v45 = vld [vmem:[#allocation10 + $0x130] sm:$0xff] }
 0x857   : > { %3795 = vmatprep.subr.bf16.mxu0 %v10102_v46  ;;  %3838 = vmatprep.subr.bf16.mxu1 %v10104_v9  ;;  %v10007_v46 = vcombine.low %v924_v23, %v932_v26  ;;  %v9990_v9 = vcombine.high %v907_v61, %v915_v29  ;;  %v9992_v48 = vcombine.high %v908_v32, %v916_v37  ;;  %v949_v23 = vld [vmem:[#allocation10 + $0x170] sm:$0xff]  ;;  %v942_v26 = vld [vmem:[#allocation10 + $0x138] sm:$0xff] }
 0x859   : > { %3742 = vmatmul.mubr.bf16.vlgmr.msra.gmra.mxu0 %v13069_v12  ;;  %3785 = vmatmul.mubr.bf16.vlgmr.msra.gmra.mxu1 %v13069_v12 }
 0x85a   : > { %3796 = vmatpush1.bf16.msra.mxu0 %v10101_v50  ;;  %3839 = vmatpush1.bf16.msra.mxu1 %v10103_v52  ;;  %v1030_v50 = vld [vmem:[#allocation10 + $0x3f8] sm:$0xff]  ;;  %v9989_v52 = vcombine.low %v907_v61, %v915_v29  ;;  %v925_v29 = vld [vmem:[#allocation10 + $0xb0] sm:$0xff] }
 0x85b   : > { %3797 = vmatprep.subr.bf16.mxu0 %v10086_v22  ;;  %3840 = vmatprep.subr.bf16.mxu1 %v10088_v1  ;;  %v9991_v22 = vcombine.low %v908_v32, %v916_v37  ;;  %v10106_v1 = vcombine.high %v1021_v59, %v1029_v8  ;;  %v10108_v53 = vcombine.high %v1022_v18, %v1030_v50  ;;  %v933_v32 = vld [vmem:[#allocation10 + $0xf0] sm:$0xff]  ;;  %v926_v37 = vld [vmem:[#allocation10 + $0xb8] sm:$0xff] }
 0x85c   : > { %3827 = vmatprep.mubr.bf16.mxu0 %v12417_v28  ;;  %3870 = vmatprep.mubr.bf16.mxu1 %v12417_v28 }
 0x85e   : > { %3798 = vmatpush1.bf16.msra.mxu0 %v10085_v58  ;;  %3841 = vmatpush1.bf16.msra.mxu1 %v10087_v60  ;;  %v1014_v58 = vld [vmem:[#allocation10 + $0x378] sm:$0xff]  ;;  %v10105_v60 = vcombine.low %v1021_v59, %v1029_v8  ;;  %v909_v8 = vld [vmem:[#allocation10 + $0x30] sm:$0xff] }
 0x85f   : > { %3799 = vmatprep.subr.bf16.mxu0 %v10070_v63  ;;  %3842 = vmatprep.subr.bf16.mxu1 %v10072_v0  ;;  %v10107_v63 = vcombine.low %v1022_v18, %v1030_v50  ;;  %v10090_v0 = vcombine.high %v1005_v54, %v1013_v55  ;;  %v10092_v14 = vcombine.high %v1006_v57, %v1014_v58  ;;  %v917_v18 = vld [vmem:[#allocation10 + $0x70] sm:$0xff]  ;;  %v910_v50 = vld [vmem:[#allocation10 + $0x38] sm:$0xff] }
 0x862   : > { %3800 = vmatpush1.bf16.msra.mxu0 %v10069_v33  ;;  %3843 = vmatpush1.bf16.msra.mxu1 %v10071_v35  ;;  %v998_v33 = vld [vmem:[#allocation10 + $0x2f8] sm:$0xff]  ;;  %v10089_v35 = vcombine.low %v1005_v54, %v1013_v55  ;;  %v9993_v55 = vcombine.low %v909_v8, %v917_v18 }
 0x863   : > { %3801 = vmatprep.subr.bf16.mxu0 %v10054_v40  ;;  %3844 = vmatprep.subr.bf16.mxu1 %v10056_v31  ;;  %v10091_v40 = vcombine.low %v1006_v57, %v1014_v58  ;;  %v10074_v31 = vcombine.high %v989_v17, %v997_v2  ;;  %v10076_v34 = vcombine.high %v990_v3, %v998_v33  ;;  %v11678_v58 = vld [vmem:[#allocation11 + $0x78] sm:$0xff]  }
 0x866   : > { %3802 = vmatpush1.bf16.msra.mxu0 %v10053_v13  ;;  %3845 = vmatpush1.bf16.msra.mxu1 %v10055_v56  ;;  %v982_v13 = vld [vmem:[#allocation10 + $0x278] sm:$0xff]  ;;  %v10073_v56 = vcombine.low %v989_v17, %v997_v2  ;;  %v11683_v17 = vld [vmem:[#allocation11 + $0xf0] sm:$0xff]  }
 0x867   : > { %3803 = vmatprep.subr.bf16.mxu0 %v10038_v47  ;;  %3846 = vmatprep.subr.bf16.mxu1 %v10040_v15  ;;  %v10075_v47 = vcombine.low %v990_v3, %v998_v33  ;;  %v10058_v15 = vcombine.high %v973_v21, %v981_v10  ;;  %v10060_v43 = vcombine.high %v974_v27, %v982_v13  ;;  %v11684_v2 = vld [vmem:[#allocation11 + $0x30] sm:$0xff]   ;;  %v11686_v33 = vld [vmem:[#allocation11 + $0x68] sm:$0xff]  }
 0x868   : > { %v11685_v3 = vld [vmem:[#allocation11 + $0xb0] sm:$0xff]  }
 0x86a   : > { %3804 = vmatpush1.bf16.msra.mxu0 %v10037_v51  ;;  %3847 = vmatpush1.bf16.msra.mxu1 %v10039_v19  ;;  %v966_v51 = vld [vmem:[#allocation10 + $0x1f8] sm:$0xff]  ;;  %v10057_v19 = vcombine.low %v973_v21, %v981_v10  ;;  %v11691_v21 = vld [vmem:[#allocation11 + $0xe0] sm:$0xff]  }
 0x86b   : > { %3805 = vmatprep.subr.bf16.mxu0 %v10022_v20  ;;  %3848 = vmatprep.subr.bf16.mxu1 %v10024_v4  ;;  %v10059_v20 = vcombine.low %v974_v27, %v982_v13  ;;  %v10042_v4 = vcombine.high %v957_v49, %v965_v16  ;;  %v10044_v36 = vcombine.high %v958_v62, %v966_v51  ;;  %v11692_v10 = vld [vmem:[#allocation11 + $0x20] sm:$0xff]   ;;  %v11694_v27 = vld [vmem:[#allocation11 + $0x58] sm:$0xff]  }
 0x86c   : > { %v11695_v13 = vld [vmem:[#allocation11 + $0xd8] sm:$0xff]  }
 0x86e   : > { %3806 = vmatpush1.bf16.msra.mxu0 %v10021_v24  ;;  %3849 = vmatpush1.bf16.msra.mxu1 %v10023_v11  ;;  %v950_v24 = vld [vmem:[#allocation10 + $0x178] sm:$0xff]  ;;  %v10041_v11 = vcombine.low %v957_v49, %v965_v16  ;;  %v11700_v49 = vld [vmem:[#allocation11 + $0x10] sm:$0xff]  }
 0x86f   : > { %3807 = vmatprep.subr.bf16.mxu0 %v10006_v5  ;;  %3850 = vmatprep.subr.bf16.mxu1 %v10008_v25  ;;  %v10043_v5 = vcombine.low %v958_v62, %v966_v51  ;;  %v10026_v25 = vcombine.high %v941_v45, %v949_v23  ;;  %v10028_v61 = vcombine.high %v942_v26, %v950_v24  ;;  %v11701_v16 = vld [vmem:[#allocation11 + $0x90] sm:$0xff]   ;;  %v11702_v62 = vld [vmem:[#allocation11 + $0x48] sm:$0xff]  }
 0x870   : > { %v11703_v51 = vld [vmem:[#allocation11 + $0xc8] sm:$0xff]  }
 0x872   : > { %3808 = vmatpush1.bf16.msra.mxu0 %v10005_v44  ;;  %3851 = vmatpush1.bf16.msra.mxu1 %v10007_v46  ;;  %v934_v44 = vld [vmem:[#allocation10 + $0xf8] sm:$0xff]  ;;  %v10025_v46 = vcombine.low %v941_v45, %v949_v23  ;;  %v11708_v45 = vld [vmem:[#allocation11] sm:$0xff]  }
 0x873   : > { %3809 = vmatprep.subr.bf16.mxu0 %v9990_v9  ;;  %3852 = vmatprep.subr.bf16.mxu1 %v9992_v48  ;;  %v10027_v9 = vcombine.low %v942_v26, %v950_v24  ;;  %v10010_v48 = vcombine.high %v925_v29, %v933_v32  ;;  %v10012_v59 = vcombine.high %v926_v37, %v934_v44  ;;  %v11709_v23 = vld [vmem:[#allocation11 + $0x80] sm:$0xff]   ;;  %v11710_v26 = vld [vmem:[#allocation11 + $0x178] sm:$0xff]  }
 0x874   : > { %v11711_v24 = vld [vmem:[#allocation11 + $0x1f8] sm:$0xff]  }
 0x876   : > { %3810 = vmatpush1.bf16.msra.mxu0 %v9989_v52  ;;  %3853 = vmatpush1.bf16.msra.mxu1 %v9991_v22  ;;  %v918_v52 = vld [vmem:[#allocation10 + $0x78] sm:$0xff]  ;;  %v10009_v22 = vcombine.low %v925_v29, %v933_v32 }
 0x877   : > { %3881 = vmatprep.subr.bf16.mxu0 %v10106_v1  ;;  %3924 = vmatprep.subr.bf16.mxu1 %v10108_v53  ;;  %v10011_v1 = vcombine.low %v926_v37, %v934_v44  ;;  %v9994_v53 = vcombine.high %v909_v8, %v917_v18  ;;  %v9996_v54 = vcombine.high %v910_v50, %v918_v52 }
 0x878   : > { %v9995_v57 = vcombine.low %v910_v50, %v918_v52 }
 0x879   : > { %3828 = vmatmul.mubr.bf16.vlgmr.msra.gmra.mxu0 %v13069_v12  ;;  %3871 = vmatmul.mubr.bf16.vlgmr.msra.gmra.mxu1 %v13069_v12 }
 0x87a   : > { %3882 = vmatpush1.bf16.msra.mxu0 %v10105_v60  ;;  %3925 = vmatpush1.bf16.msra.mxu1 %v10107_v63  ;;  %v11679_v60 = vld [vmem:[#allocation11 + $0xf8] sm:$0xff]  }
 0x87b   : > { %3883 = vmatprep.subr.bf16.mxu0 %v10090_v0  ;;  %3926 = vmatprep.subr.bf16.mxu1 %v10092_v14  ;;  %v11680_v63 = vld [vmem:[#allocation11 + $0x38] sm:$0xff]   ;;  %v11682_v14 = vld [vmem:[#allocation11 + $0x70] sm:$0xff]  }
 0x87c   : > { %3913 = vmatprep.mubr.bf16.mxu0 %v12417_v28  ;;  %3956 = vmatprep.mubr.bf16.mxu1 %v12417_v28  ;;  %v11681_v0 = vld [vmem:[#allocation11 + $0xb8] sm:$0xff]  }
 0x87e   : > { %3884 = vmatpush1.bf16.msra.mxu0 %v10089_v35  ;;  %3927 = vmatpush1.bf16.msra.mxu1 %v10091_v40  ;;  %v11687_v35 = vld [vmem:[#allocation11 + $0xe8] sm:$0xff]  }
 0x87f   : > { %3885 = vmatprep.subr.bf16.mxu0 %v10074_v31  ;;  %3928 = vmatprep.subr.bf16.mxu1 %v10076_v34  ;;  %v11688_v40 = vld [vmem:[#allocation11 + $0x28] sm:$0xff]   ;;  %v11690_v34 = vld [vmem:[#allocation11 + $0x60] sm:$0xff]  }
 0x880   : > { %v11689_v31 = vld [vmem:[#allocation11 + $0xa8] sm:$0xff]  }
 0x882   : > { %3886 = vmatpush1.bf16.msra.mxu0 %v10073_v56  ;;  %3929 = vmatpush1.bf16.msra.mxu1 %v10075_v47  ;;  %v11696_v56 = vld [vmem:[#allocation11 + $0x18] sm:$0xff]  }
 0x883   : > { %3887 = vmatprep.subr.bf16.mxu0 %v10058_v15  ;;  %3930 = vmatprep.subr.bf16.mxu1 %v10060_v43  ;;  %v11697_v47 = vld [vmem:[#allocation11 + $0x98] sm:$0xff]   ;;  %v11698_v15 = vld [vmem:[#allocation11 + $0x50] sm:$0xff]  }
 0x884   : > { %v11699_v43 = vld [vmem:[#allocation11 + $0xd0] sm:$0xff]  }
 0x886   : > { %3888 = vmatpush1.bf16.msra.mxu0 %v10057_v19  ;;  %3931 = vmatpush1.bf16.msra.mxu1 %v10059_v20  ;;  %v11704_v19 = vld [vmem:[#allocation11 + $0x8] sm:$0xff]  }
 0x887   : > { %3889 = vmatprep.subr.bf16.mxu0 %v10042_v4  ;;  %3932 = vmatprep.subr.bf16.mxu1 %v10044_v36  ;;  %v11705_v20 = vld [vmem:[#allocation11 + $0x88] sm:$0xff]   ;;  %v11706_v4 = vld [vmem:[#allocation11 + $0x40] sm:$0xff]  }
 0x888   : > { %v11707_v36 = vld [vmem:[#allocation11 + $0xc0] sm:$0xff]  }
 0x88a   : > { %3890 = vmatpush1.bf16.msra.mxu0 %v10041_v11  ;;  %3933 = vmatpush1.bf16.msra.mxu1 %v10043_v5  ;;  %v13086_v11 = vsub.s32 3, %v12723_v38  ;;  %v13091_v5 = vld [vmem:[%s13688_s8] sm:$0xff] }
 0x88b   : > { %3891 = vmatprep.subr.bf16.mxu0 %v10026_v25  ;;  %3934 = vmatprep.subr.bf16.mxu1 %v10028_v61  ;;  %v2910_v29 = vrot.slane %v13091_v5, %v12735_v42  ;;  %v2906_v37 = vrot.slane %v13091_v5, %v12732_v41  ;;  %v2914_v44 = vrot.slane %v13091_v5, %v12726_v39 }
 0x88c   : > { %v2918_v32 = vrot.slane %v13091_v5, %v13086_v11 }
 0x88e   : > { %3892 = vmatpush1.bf16.msra.mxu0 %v10025_v46  ;;  %3935 = vmatpush1.bf16.msra.mxu1 %v10027_v9 }
 0x88f   : > { %3893 = vmatprep.subr.bf16.mxu0 %v10010_v48  ;;  %3936 = vmatprep.subr.bf16.mxu1 %v10012_v59 }
 0x892   : > { %3894 = vmatpush1.bf16.msra.mxu0 %v10009_v22  ;;  %3937 = vmatpush1.bf16.msra.mxu1 %v10011_v1 }
 0x893   : > { %3895 = vmatprep.subr.bf16.mxu0 %v9994_v53  ;;  %3938 = vmatprep.subr.bf16.mxu1 %v9996_v54 }
 0x896   : > { %3896 = vmatpush1.bf16.msra.mxu0 %v9993_v55  ;;  %3939 = vmatpush1.bf16.msra.mxu1 %v9995_v57 }
 0x897   : > { %10652 = vmatprep.subr.bf16.mxu0 %v11678_v58  ;;  %10674 = vmatprep.subr.bf16.mxu1 %v11679_v60 }
 0x899   : > { %3914 = vmatmul.mubr.bf16.vlgmr.msra.gmra.mxu0 %v13069_v12  ;;  %3957 = vmatmul.mubr.bf16.vlgmr.msra.gmra.mxu1 %v13069_v12  ;;  %v11693_v12 = vld [vmem:[#allocation11 + $0xa0] sm:$0xff]  }
 0x89a   : > { %10653 = vmatpush3.bf16.msra.mxu0 %v11680_v63  ;;  %10675 = vmatpush3.bf16.msra.mxu1 %v11681_v0 }
 0x89b   : > { %10654 = vmatprep.subr.bf16.mxu0 %v11682_v14  ;;  %10676 = vmatprep.subr.bf16.mxu1 %v11683_v17 }
 0x89e   : > { %10655 = vmatpush3.bf16.msra.mxu0 %v11684_v2  ;;  %10677 = vmatpush3.bf16.msra.mxu1 %v11685_v3 }
 0x89f   : > { %10656 = vmatprep.subr.bf16.mxu0 %v11686_v33  ;;  %10678 = vmatprep.subr.bf16.mxu1 %v11687_v35 }
 0x8a2   : > { %10657 = vmatpush3.bf16.msra.mxu0 %v11688_v40  ;;  %10679 = vmatpush3.bf16.msra.mxu1 %v11689_v31  ;;  %v11712_v40 = vld [vmem:[#allocation11 + $0x138] sm:$0xff]  }
 0x8a3   : > { %10658 = vmatprep.subr.bf16.mxu0 %v11690_v34  ;;  %10680 = vmatprep.subr.bf16.mxu1 %v11691_v21  ;;  %v11713_v31 = vld [vmem:[#allocation11 + $0x1b8] sm:$0xff]  }
 0x8a6   : > { %10659 = vmatpush3.bf16.msra.mxu0 %v11692_v10  ;;  %10681 = vmatpush3.bf16.msra.mxu1 %v11693_v12  ;;  %v11714_v10 = vld [vmem:[#allocation11 + $0x170] sm:$0xff]  }
 0x8a7   : > { %10660 = vmatprep.subr.bf16.mxu0 %v11694_v27  ;;  %10682 = vmatprep.subr.bf16.mxu1 %v11695_v13  ;;  %v11715_v12 = vld [vmem:[#allocation11 + $0x1f0] sm:$0xff]  }
 0x8a8   : > { %v11716_v27 = vld [vmem:[#allocation11 + $0x130] sm:$0xff]  }
 0x8a9   : > { %v11717_v13 = vld [vmem:[#allocation11 + $0x1b0] sm:$0xff]  }
 0x8aa   : > { %10661 = vmatpush3.bf16.msra.mxu0 %v11696_v56  ;;  %10683 = vmatpush3.bf16.msra.mxu1 %v11697_v47  ;;  %v11718_v56 = vld [vmem:[#allocation11 + $0x168] sm:$0xff]  }
 0x8ab   : > { %10662 = vmatprep.subr.bf16.mxu0 %v11698_v15  ;;  %10684 = vmatprep.subr.bf16.mxu1 %v11699_v43  ;;  %v11719_v47 = vld [vmem:[#allocation11 + $0x1e8] sm:$0xff]  }
 0x8ac   : > { %v11720_v15 = vld [vmem:[#allocation11 + $0x128] sm:$0xff]  }
 0x8ad   : > { %v11721_v43 = vld [vmem:[#allocation11 + $0x1a8] sm:$0xff]  }
 0x8ae   : > { %10663 = vmatpush3.bf16.msra.mxu0 %v11700_v49  ;;  %10685 = vmatpush3.bf16.msra.mxu1 %v11701_v16  ;;  %v11722_v49 = vld [vmem:[#allocation11 + $0x160] sm:$0xff]  }
 0x8af   : > { %10664 = vmatprep.subr.bf16.mxu0 %v11702_v62  ;;  %10686 = vmatprep.subr.bf16.mxu1 %v11703_v51  ;;  %v11723_v16 = vld [vmem:[#allocation11 + $0x1e0] sm:$0xff]  }
 0x8b0   : > { %v11724_v62 = vld [vmem:[#allocation11 + $0x120] sm:$0xff]  }
 0x8b1   : > { %v11725_v51 = vld [vmem:[#allocation11 + $0x1a0] sm:$0xff]  }
 0x8b2   : > { %10665 = vmatpush3.bf16.msra.mxu0 %v11704_v19  ;;  %10687 = vmatpush3.bf16.msra.mxu1 %v11705_v20  ;;  %v11726_v19 = vld [vmem:[#allocation11 + $0x158] sm:$0xff]  }
 0x8b3   : > { %10666 = vmatprep.subr.bf16.mxu0 %v11706_v4  ;;  %10688 = vmatprep.subr.bf16.mxu1 %v11707_v36  ;;  %v11727_v20 = vld [vmem:[#allocation11 + $0x1d8] sm:$0xff]  }
 0x8b4   : > { %v11728_v4 = vld [vmem:[#allocation11 + $0x118] sm:$0xff]  }
 0x8b5   : > { %v11729_v36 = vld [vmem:[#allocation11 + $0x198] sm:$0xff]  }
 0x8b6   : > { %10667 = vmatpush3.bf16.msra.mxu0 %v11708_v45  ;;  %10689 = vmatpush3.bf16.msra.mxu1 %v11709_v23  ;;  %v11730_v45 = vld [vmem:[#allocation11 + $0x150] sm:$0xff]  }
 0x8b7   : > { %10696 = vmatprep.subr.bf16.mxu0 %v11710_v26  ;;  %10718 = vmatprep.subr.bf16.mxu1 %v11711_v24  ;;  %v11731_v23 = vld [vmem:[#allocation11 + $0x1d0] sm:$0xff]   ;;  %v13102_v26 = vsub.s32 5, %v12723_v38  ;;  %v13105_v24 = vsub.s32 7, %v12723_v38 }
 0x8f9   : > { %v3657_v25 = vpop.f32.mrf.mxu0  ;;  %v3700_v61 = vpop.f32.mrf.mxu1 }
 0x8fa   : > { %v3658_v22 = vadd.f32 %v3657_v25, %v2906_v37  ;;  %v3701_v1 = vadd.f32 %v3700_v61, %v2914_v44  ;;  %v13108_v25 = vsub.s32 4, %v12723_v38  ;;  %v13111_v61 = vsub.s32 6, %v12723_v38 }
 0x8fb   : > { %v3659_v46 = vpop.f32.mrf.mxu0  ;;  %v3702_v9 = vpop.f32.mrf.mxu1 }
 0x8fc   : > { %v3660_v8 = vadd.f32 %v3659_v46, %v2910_v29  ;;  %v3703_v18 = vadd.f32 %v3702_v9, %v2918_v32  ;;  %v3967_v2 = vmax.f32 %v3658_v22, 0.0  ;;  %v3969_v3 = vmax.f32 %v3701_v1, 0.0  ;;  %v11734_v46 = vld [vmem:[#allocation11 + $0x148] sm:$0xff]  }
 0x8fd   : > { %v3661_v48 = vpop.f32.mrf.mxu0  ;;  %v3704_v59 = vpop.f32.mrf.mxu1  ;;  %v11735_v9 = vld [vmem:[#allocation11 + $0x1c8] sm:$0xff]   ;;  %v2922_v38 = vrot.slane %v13091_v5, %v13108_v25 }
 0x8fe   : > { %v3662_v50 = vadd.f32 %v3661_v48, %v2906_v37  ;;  %v3705_v52 = vadd.f32 %v3704_v59, %v2914_v44  ;;  %v3968_v63 = vmax.f32 %v3660_v8, 0.0  ;;  %v3970_v0 = vmax.f32 %v3703_v18, 0.0  ;;  %v11737_v22 = vld [vmem:[#allocation11 + $0x188] sm:$0xff]  }
 0x8ff   : > { %v3663_v53 = vpop.f32.mrf.mxu0  ;;  %v3706_v54 = vpop.f32.mrf.mxu1  ;;  %v2926_v48 = vrot.slane %v13091_v5, %v13102_v26  ;;  %v2934_v59 = vrot.slane %v13091_v5, %v13105_v24  ;;  %v2930_v8 = vrot.slane %v13091_v5, %v13111_v61 }
 0x900   : > { %v3664_v55 = vadd.f32 %v3663_v53, %v2910_v29  ;;  %v3707_v57 = vadd.f32 %v3706_v54, %v2918_v32  ;;  %v3983_v58 = vmax.f32 %v3662_v50, 0.0  ;;  %v3985_v60 = vmax.f32 %v3705_v52, 0.0  ;;  %v11732_v29 = vld [vmem:[#allocation11 + $0x110] sm:$0xff]   ;;  %v11736_v52 = vld [vmem:[#allocation11 + $0x108] sm:$0xff]   ;;  %v11738_v54 = vld [vmem:[#allocation11 + $0x140] sm:$0xff]  }
 0x901   : > { %v11733_v32 = vld [vmem:[#allocation11 + $0x190] sm:$0xff]  }
 0x902   : > { %v3984_v14 = vmax.f32 %v3664_v55, 0.0  ;;  %v3986_v17 = vmax.f32 %v3707_v57, 0.0  ;;  %v3999_v34 = vpack.c.bf16 %v3983_v58, %v3967_v2  ;;  %v4001_v21 = vpack.c.bf16 %v3985_v60, %v3969_v3  ;;  %v11739_v55 = vld [vmem:[#allocation11 + $0x1c0] sm:$0xff]  }
 0x904   : > { %v4000_v33 = vpack.c.bf16 %v3984_v14, %v3968_v63  ;;  %v4002_v35 = vpack.c.bf16 %v3986_v17, %v3970_v0 }
 0x906   : > { %4821 = vmatprep.mubr.bf16.mxu0 %v4000_v33  ;;  %4862 = vmatprep.mubr.bf16.mxu1 %v4002_v35  ;;  %v11740_v33 = vld [vmem:[#allocation11 + $0x100] sm:$0xff]  }
 0x907   : > { %4822 = vmatmul.mubr.bf16.vlgmr.msra.gmra.mxu0 %v3999_v34  ;;  %4863 = vmatmul.mubr.bf16.vlgmr.msra.gmra.mxu1 %v4001_v21  ;;  %v11741_v35 = vld [vmem:[#allocation11 + $0x180] sm:$0xff]   ;;  %v11742_v34 = vld [vmem:[#allocation11 + $0x278] sm:$0xff]  }
 0x908   : > { %10697 = vmatpush3.bf16.msra.mxu0 %v11712_v40  ;;  %10719 = vmatpush3.bf16.msra.mxu1 %v11713_v31  ;;  %v11743_v21 = vld [vmem:[#allocation11 + $0x2f8] sm:$0xff]  }
 0x909   : > { %10698 = vmatprep.subr.bf16.mxu0 %v11714_v10  ;;  %10720 = vmatprep.subr.bf16.mxu1 %v11715_v12 }
 0x90c   : > { %10699 = vmatpush3.bf16.msra.mxu0 %v11716_v27  ;;  %10721 = vmatpush3.bf16.msra.mxu1 %v11717_v13 }
 0x90d   : > { %10700 = vmatprep.subr.bf16.mxu0 %v11718_v56  ;;  %10722 = vmatprep.subr.bf16.mxu1 %v11719_v47 }
 0x910   : > { %10701 = vmatpush3.bf16.msra.mxu0 %v11720_v15  ;;  %10723 = vmatpush3.bf16.msra.mxu1 %v11721_v43 }
 0x911   : > { %10702 = vmatprep.subr.bf16.mxu0 %v11722_v49  ;;  %10724 = vmatprep.subr.bf16.mxu1 %v11723_v16  ;;  %v11744_v49 = vld [vmem:[#allocation11 + $0x238] sm:$0xff]  }
 0x912   : > { %v11745_v16 = vld [vmem:[#allocation11 + $0x2b8] sm:$0xff]  }
 0x914   : > { %10703 = vmatpush3.bf16.msra.mxu0 %v11724_v62  ;;  %10725 = vmatpush3.bf16.msra.mxu1 %v11725_v51 }
 0x915   : > { %10704 = vmatprep.subr.bf16.mxu0 %v11726_v19  ;;  %10726 = vmatprep.subr.bf16.mxu1 %v11727_v20  ;;  %v11746_v19 = vld [vmem:[#allocation11 + $0x270] sm:$0xff]  }
 0x916   : > { %v11747_v20 = vld [vmem:[#allocation11 + $0x2f0] sm:$0xff]  }
 0x918   : > { %10705 = vmatpush3.bf16.msra.mxu0 %v11728_v4  ;;  %10727 = vmatpush3.bf16.msra.mxu1 %v11729_v36  ;;  %v11748_v4 = vld [vmem:[#allocation11 + $0x230] sm:$0xff]  }
 0x919   : > { %v3743_v37 = vpop.f32.mrf.mxu0  ;;  %v3786_v44 = vpop.f32.mrf.mxu1  ;;  %10706 = vmatprep.subr.bf16.mxu0 %v11730_v45  ;;  %10728 = vmatprep.subr.bf16.mxu1 %v11731_v23  ;;  %v11749_v36 = vld [vmem:[#allocation11 + $0x2b0] sm:$0xff]   ;;  %v11750_v45 = vld [vmem:[#allocation11 + $0x268] sm:$0xff]  }
 0x91a   : > { %v3744_v0 = vadd.f32 %v3743_v37, %v2922_v38  ;;  %v3787_v14 = vadd.f32 %v3786_v44, %v2930_v8  ;;  %v11751_v23 = vld [vmem:[#allocation11 + $0x2e8] sm:$0xff]   ;;  %v11754_v37 = vld [vmem:[#allocation11 + $0x260] sm:$0xff]  }
 0x91b   : > { %v3745_v18 = vpop.f32.mrf.mxu0  ;;  %v3788_v50 = vpop.f32.mrf.mxu1  ;;  %v11755_v44 = vld [vmem:[#allocation11 + $0x2e0] sm:$0xff]  }
 0x91c   : > { %10707 = vmatpush3.bf16.msra.mxu0 %v11732_v29  ;;  %10729 = vmatpush3.bf16.msra.mxu1 %v11733_v32  ;;  %v3746_v57 = vadd.f32 %v3745_v18, %v2926_v48  ;;  %v3789_v58 = vadd.f32 %v3788_v50, %v2934_v59  ;;  %v3971_v56 = vmax.f32 %v3744_v0, 0.0  ;;  %v3973_v47 = vmax.f32 %v3787_v14, 0.0  ;;  %v11752_v29 = vld [vmem:[#allocation11 + $0x228] sm:$0xff]   ;;  %v11762_v18 = vld [vmem:[#allocation11 + $0x250] sm:$0xff]  }
 0x91d   : > { %v3747_v1 = vpop.f32.mrf.mxu0  ;;  %v3790_v53 = vpop.f32.mrf.mxu1  ;;  %10708 = vmatprep.subr.bf16.mxu0 %v11734_v46  ;;  %10730 = vmatprep.subr.bf16.mxu1 %v11735_v9  ;;  %v11753_v32 = vld [vmem:[#allocation11 + $0x2a8] sm:$0xff]   ;;  %v11756_v46 = vld [vmem:[#allocation11 + $0x220] sm:$0xff]   ;;  %v11763_v50 = vld [vmem:[#allocation11 + $0x2d0] sm:$0xff]  }
 0x91e   : > { %v3748_v60 = vadd.f32 %v3747_v1, %v2922_v38  ;;  %v3791_v63 = vadd.f32 %v3790_v53, %v2930_v8  ;;  %v3972_v10 = vmax.f32 %v3746_v57, 0.0  ;;  %v3974_v12 = vmax.f32 %v3789_v58, 0.0  ;;  %v11757_v9 = vld [vmem:[#allocation11 + $0x2a0] sm:$0xff]   ;;  %v11760_v38 = vld [vmem:[#allocation11 + $0x218] sm:$0xff]   ;;  %v11765_v1 = vld [vmem:[#allocation11 + $0x290] sm:$0xff]  }
 0x91f   : > { %v3749_v17 = vpop.f32.mrf.mxu0  ;;  %v3792_v5 = vpop.f32.mrf.mxu1  ;;  %v11761_v8 = vld [vmem:[#allocation11 + $0x298] sm:$0xff]   ;;  %v11767_v57 = vld [vmem:[#allocation11 + $0x2c8] sm:$0xff]  }
 0x920   : > { %v3750_v2 = vadd.f32 %v3749_v17, %v2926_v48  ;;  %v3793_v3 = vadd.f32 %v3792_v5, %v2934_v59  ;;  %10709 = vmatpush3.bf16.msra.mxu0 %v11736_v52  ;;  %10731 = vmatpush3.bf16.msra.mxu1 %v11737_v22  ;;  %v3987_v40 = vmax.f32 %v3748_v60, 0.0  ;;  %v3989_v31 = vmax.f32 %v3791_v63, 0.0  ;;  %v11758_v48 = vld [vmem:[#allocation11 + $0x258] sm:$0xff]   ;;  %v13124_v52 = vld [vmem:[%s13688_s8 + $0x8] sm:$0xff]  ;;  %v11764_v22 = vld [vmem:[#allocation11 + $0x210] sm:$0xff]  }
 0x921   : > { %10710 = vmatprep.subr.bf16.mxu0 %v11738_v54  ;;  %10732 = vmatprep.subr.bf16.mxu1 %v11739_v55  ;;  %v11759_v59 = vld [vmem:[#allocation11 + $0x2d8] sm:$0xff]   ;;  %v11766_v55 = vld [vmem:[#allocation11 + $0x248] sm:$0xff]   ;;  %v2942_v58 = vrot.slane %v13124_v52, %v12735_v42  ;;  %v2950_v60 = vrot.slane %v13124_v52, %v13086_v11  ;;  %v2938_v63 = vrot.slane %v13124_v52, %v12732_v41 }
 0x922   : > { %v3988_v27 = vmax.f32 %v3750_v2, 0.0  ;;  %v3990_v13 = vmax.f32 %v3793_v3, 0.0  ;;  %v4003_v62 = vpack.c.bf16 %v3987_v40, %v3971_v56  ;;  %v4005_v51 = vpack.c.bf16 %v3989_v31, %v3973_v47  ;;  %v11768_v5 = vld [vmem:[#allocation11 + $0x208] sm:$0xff]   ;;  %v11771_v40 = vld [vmem:[#allocation11 + $0x2c0] sm:$0xff]  }
 0x923   : > { %v2946_v0 = vrot.slane %v13124_v52, %v12726_v39  ;;  %v11769_v2 = vld [vmem:[#allocation11 + $0x288] sm:$0xff]  }
 0x924   : > { %v4004_v15 = vpack.c.bf16 %v3988_v27, %v3972_v10  ;;  %v4006_v43 = vpack.c.bf16 %v3990_v13, %v3974_v12  ;;  %10711 = vmatpush3.bf16.msra.mxu0 %v11740_v33  ;;  %10733 = vmatpush3.bf16.msra.mxu1 %v11741_v35  ;;  %v11770_v35 = vld [vmem:[#allocation11 + $0x240] sm:$0xff]  }
 0x925   : > { %10740 = vmatprep.subr.bf16.mxu0 %v11742_v34  ;;  %10762 = vmatprep.subr.bf16.mxu1 %v11743_v21 }
 0x926   : > { %4903 = vmatprep.mubr.bf16.mxu0 %v4004_v15  ;;  %4944 = vmatprep.mubr.bf16.mxu1 %v4006_v43  ;;  %v11772_v43 = vld [vmem:[#allocation11 + $0x200] sm:$0xff]  }
 0x927   : > { %4904 = vmatmul.mubr.bf16.vlgmr.msra.gmra.mxu0 %v4003_v62  ;;  %4945 = vmatmul.mubr.bf16.vlgmr.msra.gmra.mxu1 %v4005_v51  ;;  %v11774_v51 = vld [vmem:[#allocation11 + $0x378] sm:$0xff]  }
 0x928   : > { %10741 = vmatpush3.bf16.msra.mxu0 %v11744_v49  ;;  %10763 = vmatpush3.bf16.msra.mxu1 %v11745_v16  ;;  %v11773_v49 = vld [vmem:[#allocation11 + $0x280] sm:$0xff]  }
 0x929   : > { %10742 = vmatprep.subr.bf16.mxu0 %v11746_v19  ;;  %10764 = vmatprep.subr.bf16.mxu1 %v11747_v20  ;;  %v11775_v19 = vld [vmem:[#allocation11 + $0x3f8] sm:$0xff]  }
 0x92c   : > { %10743 = vmatpush3.bf16.msra.mxu0 %v11748_v4  ;;  %10765 = vmatpush3.bf16.msra.mxu1 %v11749_v36 }
 0x92d   : > { %10744 = vmatprep.subr.bf16.mxu0 %v11750_v45  ;;  %10766 = vmatprep.subr.bf16.mxu1 %v11751_v23 }
 0x930   : > { %10745 = vmatpush3.bf16.msra.mxu0 %v11752_v29  ;;  %10767 = vmatpush3.bf16.msra.mxu1 %v11753_v32 }
 0x931   : > { %10746 = vmatprep.subr.bf16.mxu0 %v11754_v37  ;;  %10768 = vmatprep.subr.bf16.mxu1 %v11755_v44  ;;  %v11776_v44 = vld [vmem:[#allocation11 + $0x338] sm:$0xff]  }
 0x934   : > { %10747 = vmatpush3.bf16.msra.mxu0 %v11756_v46  ;;  %10769 = vmatpush3.bf16.msra.mxu1 %v11757_v9  ;;  %v11777_v46 = vld [vmem:[#allocation11 + $0x3b8] sm:$0xff]  }
 0x935   : > { %10748 = vmatprep.subr.bf16.mxu0 %v11758_v48  ;;  %10770 = vmatprep.subr.bf16.mxu1 %v11759_v59  ;;  %v11778_v59 = vld [vmem:[#allocation11 + $0x370] sm:$0xff]  }
 0x938   : > { %10749 = vmatpush3.bf16.msra.mxu0 %v11760_v38  ;;  %10771 = vmatpush3.bf16.msra.mxu1 %v11761_v8  ;;  %v11779_v38 = vld [vmem:[#allocation11 + $0x3f0] sm:$0xff]  }
 0x939   : > { %v3829_v53 = vpop.f32.mrf.mxu0  ;;  %v3872_v54 = vpop.f32.mrf.mxu1  ;;  %10750 = vmatprep.subr.bf16.mxu0 %v11762_v18  ;;  %10772 = vmatprep.subr.bf16.mxu1 %v11763_v50  ;;  %v11780_v8 = vld [vmem:[#allocation11 + $0x330] sm:$0xff]   ;;  %v11782_v50 = vld [vmem:[#allocation11 + $0x368] sm:$0xff]  }
 0x93a   : > { %v3830_v12 = vadd.f32 %v3829_v53, %v2938_v63  ;;  %v3873_v27 = vadd.f32 %v3872_v54, %v2946_v0  ;;  %v11781_v18 = vld [vmem:[#allocation11 + $0x3b0] sm:$0xff]   ;;  %v11785_v53 = vld [vmem:[#allocation11 + $0x3a8] sm:$0xff]   ;;  %v11786_v54 = vld [vmem:[#allocation11 + $0x360] sm:$0xff]  }
 0x93b   : > { %v3831_v14 = vpop.f32.mrf.mxu0  ;;  %v3874_v17 = vpop.f32.mrf.mxu1 }
 0x93c   : > { %10751 = vmatpush3.bf16.msra.mxu0 %v11764_v22  ;;  %10773 = vmatpush3.bf16.msra.mxu1 %v11765_v1  ;;  %v3832_v31 = vadd.f32 %v3831_v14, %v2942_v58  ;;  %v3875_v34 = vadd.f32 %v3874_v17, %v2950_v60  ;;  %v3975_v23 = vmax.f32 %v3830_v12, 0.0  ;;  %v3977_v29 = vmax.f32 %v3873_v27, 0.0  ;;  %v11783_v22 = vld [vmem:[#allocation11 + $0x3e8] sm:$0xff]   ;;  %v11793_v14 = vld [vmem:[#allocation11 + $0x398] sm:$0xff]   ;;  %v11794_v17 = vld [vmem:[#allocation11 + $0x350] sm:$0xff]  }
 0x93d   : > { %v3833_v3 = vpop.f32.mrf.mxu0  ;;  %v3876_v33 = vpop.f32.mrf.mxu1  ;;  %10752 = vmatprep.subr.bf16.mxu0 %v11766_v55  ;;  %10774 = vmatprep.subr.bf16.mxu1 %v11767_v57  ;;  %v11784_v1 = vld [vmem:[#allocation11 + $0x328] sm:$0xff]   ;;  %v11787_v55 = vld [vmem:[#allocation11 + $0x3e0] sm:$0xff]   ;;  %v2962_v12 = vrot.slane %v13124_v52, %v13111_v61 }
 0x93e   : > { %v3834_v21 = vadd.f32 %v3833_v3, %v2938_v63  ;;  %v3877_v10 = vadd.f32 %v3876_v33, %v2946_v0  ;;  %v3976_v20 = vmax.f32 %v3832_v31, 0.0  ;;  %v3978_v4 = vmax.f32 %v3875_v34, 0.0  ;;  %v11788_v57 = vld [vmem:[#allocation11 + $0x320] sm:$0xff]   ;;  %v11791_v63 = vld [vmem:[#allocation11 + $0x3d8] sm:$0xff]   ;;  %v11797_v3 = vld [vmem:[#allocation11 + $0x390] sm:$0xff]  }
 0x93f   : > { %v3835_v13 = vpop.f32.mrf.mxu0  ;;  %v3878_v56 = vpop.f32.mrf.mxu1  ;;  %v11792_v0 = vld [vmem:[#allocation11 + $0x318] sm:$0xff]   ;;  %v11799_v31 = vld [vmem:[#allocation11 + $0x3c8] sm:$0xff]   ;;  %v2958_v34 = vrot.slane %v13124_v52, %v13102_v26 }
 0x940   : > { %v3836_v47 = vadd.f32 %v3835_v13, %v2942_v58  ;;  %v3879_v15 = vadd.f32 %v3878_v56, %v2950_v60  ;;  %10753 = vmatpush3.bf16.msra.mxu0 %v11768_v5  ;;  %10775 = vmatpush3.bf16.msra.mxu1 %v11769_v2  ;;  %v3991_v16 = vmax.f32 %v3834_v21, 0.0  ;;  %v3993_v62 = vmax.f32 %v3877_v10, 0.0  ;;  %v11789_v58 = vld [vmem:[#allocation11 + $0x3a0] sm:$0xff]   ;;  %v11790_v60 = vld [vmem:[#allocation11 + $0x358] sm:$0xff]   ;;  %v11795_v5 = vld [vmem:[#allocation11 + $0x3d0] sm:$0xff]  }
 0x941   : > { %10754 = vmatprep.subr.bf16.mxu0 %v11770_v35  ;;  %10776 = vmatprep.subr.bf16.mxu1 %v11771_v40  ;;  %v11796_v2 = vld [vmem:[#allocation11 + $0x310] sm:$0xff]   ;;  %v11798_v40 = vld [vmem:[#allocation11 + $0x348] sm:$0xff]   ;;  %v2966_v21 = vrot.slane %v13124_v52, %v13105_v24  ;;  %v2954_v10 = vrot.slane %v13124_v52, %v13108_v25 }
 0x942   : > { %v3992_v36 = vmax.f32 %v3836_v47, 0.0  ;;  %v3994_v45 = vmax.f32 %v3879_v15, 0.0  ;;  %v4007_v9 = vpack.c.bf16 %v3991_v16, %v3975_v23  ;;  %v4009_v48 = vpack.c.bf16 %v3993_v62, %v3977_v29  ;;  %v11800_v56 = vld [vmem:[#allocation11 + $0x308] sm:$0xff]   ;;  %v11803_v16 = vld [vmem:[#allocation11 + $0x3c0] sm:$0xff]  }
 0x943   : > { %v11801_v47 = vld [vmem:[#allocation11 + $0x388] sm:$0xff]  }
 0x944   : > { %v4008_v32 = vpack.c.bf16 %v3992_v36, %v3976_v20  ;;  %v4010_v37 = vpack.c.bf16 %v3994_v45, %v3978_v4  ;;  %10755 = vmatpush3.bf16.msra.mxu0 %v11772_v43  ;;  %10777 = vmatpush3.bf16.msra.mxu1 %v11773_v49  ;;  %v11802_v49 = vld [vmem:[#allocation11 + $0x340] sm:$0xff]  }
 0x945   : > { %10784 = vmatprep.subr.bf16.mxu0 %v11774_v51  ;;  %10806 = vmatprep.subr.bf16.mxu1 %v11775_v19 }
 0x946   : > { %4985 = vmatprep.mubr.bf16.mxu0 %v4008_v32  ;;  %5026 = vmatprep.mubr.bf16.mxu1 %v4010_v37  ;;  %v11804_v32 = vld [vmem:[#allocation11 + $0x300] sm:$0xff]  }
 0x947   : > { %4986 = vmatmul.mubr.bf16.vlgmr.msra.gmra.mxu0 %v4007_v9  ;;  %5027 = vmatmul.mubr.bf16.vlgmr.msra.gmra.mxu1 %v4009_v48  ;;  %v11805_v37 = vld [vmem:[#allocation11 + $0x380] sm:$0xff]  }
 0x948   : > { %10785 = vmatpush3.bf16.msra.mxu0 %v11776_v44  ;;  %10807 = vmatpush3.bf16.msra.mxu1 %v11777_v46 }
 0x949   : > { %10786 = vmatprep.subr.bf16.mxu0 %v11778_v59  ;;  %10808 = vmatprep.subr.bf16.mxu1 %v11779_v38 }
 0x94c   : > { %10787 = vmatpush3.bf16.msra.mxu0 %v11780_v8  ;;  %10809 = vmatpush3.bf16.msra.mxu1 %v11781_v18 }
 0x94d   : > { %10788 = vmatprep.subr.bf16.mxu0 %v11782_v50  ;;  %10810 = vmatprep.subr.bf16.mxu1 %v11783_v22 }
 0x950   : > { %10789 = vmatpush3.bf16.msra.mxu0 %v11784_v1  ;;  %10811 = vmatpush3.bf16.msra.mxu1 %v11785_v53 }
 0x951   : > { %10790 = vmatprep.subr.bf16.mxu0 %v11786_v54  ;;  %10812 = vmatprep.subr.bf16.mxu1 %v11787_v55 }
 0x954   : > { %10791 = vmatpush3.bf16.msra.mxu0 %v11788_v57  ;;  %10813 = vmatpush3.bf16.msra.mxu1 %v11789_v58 }
 0x955   : > { %10792 = vmatprep.subr.bf16.mxu0 %v11790_v60  ;;  %10814 = vmatprep.subr.bf16.mxu1 %v11791_v63 }
 0x958   : > { %10793 = vmatpush3.bf16.msra.mxu0 %v11792_v0  ;;  %10815 = vmatpush3.bf16.msra.mxu1 %v11793_v14 }
 0x959   : > { %v3915_v33 = vpop.f32.mrf.mxu0  ;;  %v3958_v35 = vpop.f32.mrf.mxu1  ;;  %10794 = vmatprep.subr.bf16.mxu0 %v11794_v17  ;;  %10816 = vmatprep.subr.bf16.mxu1 %v11795_v5 }
 0x95a   : > { %v3916_v4 = vadd.f32 %v3915_v33, %v2954_v10  ;;  %v3959_v36 = vadd.f32 %v3958_v35, %v2962_v12 }
 0x95b   : > { %v3917_v27 = vpop.f32.mrf.mxu0  ;;  %v3960_v13 = vpop.f32.mrf.mxu1 }
 0x95c   : > { %10795 = vmatpush3.bf16.msra.mxu0 %v11796_v2  ;;  %10817 = vmatpush3.bf16.msra.mxu1 %v11797_v3  ;;  %v3918_v62 = vadd.f32 %v3917_v27, %v2958_v34  ;;  %v3961_v51 = vadd.f32 %v3960_v13, %v2966_v21  ;;  %v3979_v8 = vmax.f32 %v3916_v4, 0.0  ;;  %v3981_v18 = vmax.f32 %v3959_v36, 0.0 }
 0x95d   : > { %v3919_v15 = vpop.f32.mrf.mxu0  ;;  %v3962_v43 = vpop.f32.mrf.mxu1  ;;  %10796 = vmatprep.subr.bf16.mxu0 %v11798_v40  ;;  %10818 = vmatprep.subr.bf16.mxu1 %v11799_v31 }
 0x95e   : > { %v3920_v19 = vadd.f32 %v3919_v15, %v2954_v10  ;;  %v3963_v20 = vadd.f32 %v3962_v43, %v2962_v12  ;;  %v3980_v9 = vmax.f32 %v3918_v62, 0.0  ;;  %v3982_v48 = vmax.f32 %v3961_v51, 0.0 }
 0x95f   : > { %v3921_v45 = vpop.f32.mrf.mxu0  ;;  %v3964_v52 = vpop.f32.mrf.mxu1 }
 0x960   : > { %v3922_v23 = vadd.f32 %v3921_v45, %v2958_v34  ;;  %v3965_v29 = vadd.f32 %v3964_v52, %v2966_v21  ;;  %10797 = vmatpush3.bf16.msra.mxu0 %v11800_v56  ;;  %10819 = vmatpush3.bf16.msra.mxu1 %v11801_v47  ;;  %v3995_v44 = vmax.f32 %v3920_v19, 0.0  ;;  %v3997_v46 = vmax.f32 %v3963_v20, 0.0  ;;  %v10109_v34 = vld [vmem:[%s13690_s10] ss:$0 sm:$0xff] }
 0x961   : > { %10798 = vmatprep.subr.bf16.mxu0 %v11802_v49  ;;  %10820 = vmatprep.subr.bf16.mxu1 %v11803_v16 }
 0x962   : > { %v3996_v59 = vmax.f32 %v3922_v23, 0.0  ;;  %v3998_v38 = vmax.f32 %v3965_v29, 0.0  ;;  %v4011_v1 = vpack.c.bf16 %v3995_v44, %v3979_v8  ;;  %v4013_v53 = vpack.c.bf16 %v3997_v46, %v3981_v18 }
 0x964   : > { %v4012_v50 = vpack.c.bf16 %v3996_v59, %v3980_v9  ;;  %v4014_v22 = vpack.c.bf16 %v3998_v38, %v3982_v48  ;;  %10799 = vmatpush3.bf16.msra.mxu0 %v11804_v32  ;;  %10821 = vmatpush3.bf16.msra.mxu1 %v11805_v37 }
 0x965   : > { %11246 = vmatprep.subr.bf16.mxu1 %v12416_v6 }
 0x966   : > { %5067 = vmatprep.mubr.bf16.mxu0 %v4012_v50  ;;  %5108 = vmatprep.mubr.bf16.mxu1 %v4014_v22 }
 0x967   : > { %5068 = vmatmul.mubr.bf16.vlgmr.msra.gmra.mxu0 %v4011_v1  ;;  %5109 = vmatmul.mubr.bf16.vlgmr.msra.gmra.mxu1 %v4013_v53 }
 0x968   : > { %5791 = vmatprep.mubr.bf16.mxu0 %v12417_v28  ;;  %11262 = vmatprep.mubr.msk.bf16.mxu1 %vm12418_vm1, %v12416_v6 }
 0x9c7   : > { %v10668_v54 = vpop.f32.mrf.mxu0  ;;  %v10690_v55 = vpop.f32.mrf.mxu1 }
 0x9c9   : > { %v10669_v57 = vpop.f32.mrf.mxu0  ;;  %v10691_v58 = vpop.f32.mrf.mxu1 }
 0x9ca   : > { %v10670_v31 = vadd.f32 %v10669_v57, %v10668_v54  ;;  %v10692_v47 = vadd.f32 %v10691_v58, %v10690_v55 }
 0x9cb   : > { %v10671_v60 = vpop.f32.mrf.mxu0  ;;  %v10693_v63 = vpop.f32.mrf.mxu1 }
 0x9cc   : > { %v4824_v27 = vadd.f32 %v10670_v31, %v10109_v34  ;;  %v11806_v31 = vld [vmem:[#allocation5 + $0x168] ss:$12 sps:$4 sm:$0xff]  }
 0x9cd   : > { %v10672_v0 = vpop.f32.mrf.mxu0  ;;  %v10694_v14 = vpop.f32.mrf.mxu1 }
 0x9ce   : > { %v10673_v13 = vadd.f32 %v10672_v0, %v10671_v60  ;;  %v4865_v49 = vadd.f32 %v10692_v47, %v4824_v27  ;;  %v10695_v51 = vadd.f32 %v10694_v14, %v10693_v63 }
 0x9d0   : > { %v4827_v16 = vadd.f32 %v10673_v13, %v10109_v34  ;;  %v11808_v34 = vld [vmem:[#allocation5 + $0x16c] ss:$12 sps:$4 sm:$0xff]  }
 0x9d1   : > { %5759 = vmatprep.subr.bf16.mxu0 %v11808_v34 }
 0x9d2   : > { %v4868_v36 = vadd.f32 %v10695_v51, %v4827_v16  ;;  %5760 = vmatpush1.bf16.msra.mxu0 %v11806_v31  ;;  %v11814_v16 = vld [vmem:[#allocation5 + $0x138] ss:$12 sps:$4 sm:$0xff]   ;;  %v11817_v51 = vld [vmem:[#allocation5 + $0x140] ss:$12 sps:$4 sm:$0xff]  }
 0x9e7   : > { %v10712_v17 = vpop.f32.mrf.mxu0  ;;  %v10734_v5 = vpop.f32.mrf.mxu1 }
 0x9e9   : > { %v10713_v2 = vpop.f32.mrf.mxu0  ;;  %v10735_v3 = vpop.f32.mrf.mxu1 }
 0x9ea   : > { %v10714_v15 = vadd.f32 %v10713_v2, %v10712_v17  ;;  %v10736_v45 = vadd.f32 %v10735_v3, %v10734_v5 }
 0x9eb   : > { %v10715_v33 = vpop.f32.mrf.mxu0  ;;  %v10737_v35 = vpop.f32.mrf.mxu1 }
 0x9ec   : > { %v4906_v19 = vadd.f32 %v10714_v15, %v4865_v49  ;;  %v11810_v15 = vld [vmem:[#allocation5 + $0x150] ss:$12 sps:$4 sm:$0xff]   ;;  %v11813_v49 = vld [vmem:[#allocation5 + $0x158] ss:$12 sps:$4 sm:$0xff]  }
 0x9ed   : > { %v10716_v40 = vpop.f32.mrf.mxu0  ;;  %v10738_v21 = vpop.f32.mrf.mxu1 }
 0x9ee   : > { %v10717_v20 = vadd.f32 %v10716_v40, %v10715_v33  ;;  %v4947_v29 = vadd.f32 %v10736_v45, %v4906_v19  ;;  %v10739_v44 = vadd.f32 %v10738_v21, %v10737_v35  ;;  %v11809_v21 = vld [vmem:[#allocation5 + $0x170] ss:$12 sps:$4 sm:$0xff]  }
 0x9ef   : > { %11247 = vmatpush3.bf16.msra.mxu1 %v11809_v21  ;;  %v11820_v19 = vld [vmem:[#allocation5 + $0x124] ss:$12 sps:$4 sm:$0xff]  }
 0x9f0   : > { %v4909_v32 = vadd.f32 %v10717_v20, %v4868_v36  ;;  %11248 = vmatprep.subr.bf16.mxu1 %v12416_v6  ;;  %v11821_v20 = vld [vmem:[#allocation5 + $0x128] ss:$12 sps:$4 sm:$0xff]   ;;  %v11824_v36 = vld [vmem:[#allocation5 + $0x10c] ss:$12 sps:$4 sm:$0xff]   ;;  %v11825_v45 = vld [vmem:[#allocation5 + $0x110] ss:$12 sps:$4 sm:$0xff]  }
 0x9f2   : > { %v4950_v38 = vadd.f32 %v10739_v44, %v4909_v32  ;;  %v11826_v32 = vld [vmem:[#allocation5 + $0xf0] ss:$12 sps:$4 sm:$0xff]   ;;  %v11833_v44 = vld [vmem:[#allocation5 + $0xe0] ss:$12 sps:$4 sm:$0xff]  }
 0x9f3   : > { %11249 = vmatpush3.bf16.msra.mxu1 %v11813_v49 }
 0x9f4   : > { %11250 = vmatprep.subr.bf16.mxu1 %v12416_v6 }
 0x9f7   : > { %11251 = vmatpush3.bf16.msra.mxu1 %v11817_v51 }
 0x9f8   : > { %11252 = vmatprep.subr.bf16.mxu1 %v12416_v6 }
 0x9fb   : > { %11253 = vmatpush3.bf16.msra.mxu1 %v11821_v20 }
 0x9fc   : > { %11254 = vmatprep.subr.bf16.mxu1 %v12416_v6 }
 0x9ff   : > { %11255 = vmatpush3.bf16.msra.mxu1 %v11825_v45 }
 0xa00   : > { %11256 = vmatprep.subr.bf16.mxu1 %v12416_v6 }
 0xa07   : > { %v10756_v10 = vpop.f32.mrf.mxu0  ;;  %v10778_v12 = vpop.f32.mrf.mxu1 }
 0xa09   : > { %v10757_v56 = vpop.f32.mrf.mxu0  ;;  %v10779_v43 = vpop.f32.mrf.mxu1 }
 0xa0a   : > { %v10758_v52 = vadd.f32 %v10757_v56, %v10756_v10  ;;  %v10780_v8 = vadd.f32 %v10779_v43, %v10778_v12  ;;  %v11812_v43 = vld [vmem:[#allocation5 + $0x154] ss:$12 sps:$4 sm:$0xff]  }
 0xa0b   : > { %v10759_v62 = vpop.f32.mrf.mxu0  ;;  %v10781_v4 = vpop.f32.mrf.mxu1  ;;  %5761 = vmatprep.subr.bf16.mxu0 %v11812_v43 }
 0xa0c   : > { %v4988_v46 = vadd.f32 %v10758_v52, %v4947_v29  ;;  %5762 = vmatpush1.bf16.msra.mxu0 %v11810_v15  ;;  %v11822_v52 = vld [vmem:[#allocation5 + $0x108] ss:$12 sps:$4 sm:$0xff]   ;;  %v11829_v29 = vld [vmem:[#allocation5 + $0xf8] ss:$12 sps:$4 sm:$0xff]  }
 0xa0d   : > { %v10760_v23 = vpop.f32.mrf.mxu0  ;;  %v10782_v37 = vpop.f32.mrf.mxu1  ;;  %11257 = vmatpush3.bf16.msra.mxu1 %v11829_v29 }
 0xa0e   : > { %v10761_v9 = vadd.f32 %v10760_v23, %v10759_v62  ;;  %v5029_v22 = vadd.f32 %v10780_v8, %v4988_v46  ;;  %v10783_v57 = vadd.f32 %v10782_v37, %v10781_v4  ;;  %v11816_v62 = vld [vmem:[#allocation5 + $0x13c] ss:$12 sps:$4 sm:$0xff]   ;;  %v11818_v4 = vld [vmem:[#allocation5 + $0x120] ss:$12 sps:$4 sm:$0xff]   ;;  %v11830_v46 = vld [vmem:[#allocation5 + $0xd8] ss:$12 sps:$4 sm:$0xff]   ;;  %11258 = vmatprep.subr.bf16.mxu1 %v12416_v6 }
 0xa0f   : > { %5763 = vmatprep.subr.bf16.mxu0 %v11816_v62  ;;  %v11828_v23 = vld [vmem:[#allocation5 + $0xf4] ss:$12 sps:$4 sm:$0xff]   ;;  %v11832_v37 = vld [vmem:[#allocation5 + $0xdc] ss:$12 sps:$4 sm:$0xff]  }
 0xa10   : > { %v4991_v1 = vadd.f32 %v10761_v9, %v4950_v38  ;;  %5764 = vmatpush1.bf16.msra.mxu0 %v11814_v16  ;;  %v11836_v9 = vld [vmem:[#allocation5 + $0xc4] ss:$12 sps:$4 sm:$0xff]  }
 0xa11   : > { %5765 = vmatprep.subr.bf16.mxu0 %v11820_v19  ;;  %11259 = vmatpush3.bf16.msra.mxu1 %v11833_v44 }
 0xa12   : > { %v5032_v14 = vadd.f32 %v10783_v57, %v4991_v1  ;;  %11260 = vmatprep.subr.bf16.mxu1 %v12416_v6 }
 0xa14   : > { %5766 = vmatpush1.bf16.msra.mxu0 %v11818_v4 }
 0xa15   : > { %5767 = vmatprep.subr.bf16.mxu0 %v11824_v36 }
 0xa18   : > { %5768 = vmatpush1.bf16.msra.mxu0 %v11822_v52 }
 0xa19   : > { %5769 = vmatprep.subr.bf16.mxu0 %v11828_v23 }
 0xa1c   : > { %5770 = vmatpush1.bf16.msra.mxu0 %v11826_v32 }
 0xa1d   : > { %5771 = vmatprep.subr.bf16.mxu0 %v11832_v37 }
 0xa20   : > { %5772 = vmatpush1.bf16.msra.mxu0 %v11830_v46 }
 0xa21   : > { %5773 = vmatprep.subr.bf16.mxu0 %v11836_v9 }
 0xa27   : > { %v10800_v48 = vpop.f32.mrf.mxu0  ;;  %v10822_v59 = vpop.f32.mrf.mxu1 }
 0xa29   : > { %v10801_v18 = vpop.f32.mrf.mxu0  ;;  %v10823_v50 = vpop.f32.mrf.mxu1 }
 0xa2a   : > { %v10802_v53 = vadd.f32 %v10801_v18, %v10800_v48  ;;  %v10824_v60 = vadd.f32 %v10823_v50, %v10822_v59  ;;  %v11837_v48 = vld [vmem:[#allocation5 + $0xc8] ss:$12 sps:$4 sm:$0xff]   ;;  %v11834_v59 = vld [vmem:[#allocation5 + $0xc0] ss:$12 sps:$4 sm:$0xff]  }
 0xa2b   : > { %v10803_v54 = vpop.f32.mrf.mxu0  ;;  %v10825_v55 = vpop.f32.mrf.mxu1  ;;  %11261 = vmatpush3.bf16.msra.mxu1 %v11837_v48  ;;  %5774 = vmatpush1.bf16.msra.mxu0 %v11834_v59 }
 0xa2c   : > { %v5070_v58 = vadd.f32 %v10802_v53, %v5029_v22  ;;  %11290 = vmatprep.subr.bf16.mxu1 %v12416_v6  ;;  %11266 = vmatprep.subr.bf16.mxu0 %v12416_v6 }
 0xa2d   : > { %v10804_v63 = vpop.f32.mrf.mxu0  ;;  %v10826_v0 = vpop.f32.mrf.mxu1 }
 0xa2e   : > { %v5111_v17 = vadd.f32 %v10824_v60, %v5070_v58  ;;  %v10805_v5 = vadd.f32 %v10804_v63, %v10803_v54  ;;  %v10827_v3 = vadd.f32 %v10826_v0, %v10825_v55  ;;  %v10238_v55 = vld [vmem:[%s13693_s13] ss:$0 sm:$0xff] }
 0xa2f   : > { %v10239_v63 = vld [vmem:[%s13694_s14] ss:$0 sm:$0xff] }
 0xa30   : > { %v5073_v2 = vadd.f32 %v10805_v5, %v5032_v14  ;;  %v5117_v33 = vadd.f32 %v5111_v17, %v13063_v30 }
 0xa32   : > { %v5114_v35 = vadd.f32 %v10827_v3, %v5073_v2  ;;  %5119 = vadd.xlane.f32.xlu0 %v5117_v33  ;;  %v10240_v2 = vld [vmem:[%s13754_s30 + $0x3] sm:$0x7] }
 0xa33   : > { %v5627_v3 = vrot.slane %v10240_v2, %v12726_v39 }
 0xa34   : > { %v5118_v40 = vadd.f32 %v5114_v35, %v13065_v7  ;;  %v5623_v35 = vrot.slane %v10240_v2, %v12735_v42 }
 0xa36   : > { %5121 = vadd.xlane.f32.xlu1 %v5118_v40 }
 0xabb   : > { %v5120_v10 = vpop.xlane.xlu0 %5119 }
 0xabc   : > { %v5123_v12 = vmul.f32 0.0078125, %v5120_v10 }
 0xabe   : > { %v13152_v27 = vsub.f32 %v5117_v33, %v5123_v12  ;;  %v5619_v33 = vrot.slane %v10240_v2, %v12732_v41 }
 0xabf   : > { %v5122_v13 = vpop.xlane.xlu1 %5121 }
 0xac0   : > { %v5124_v56 = vmul.f32 0.0078125, %v5122_v13  ;;  %v5127_v30 = vmul.f32 %v13152_v27, %v13152_v27 }
 0xac2   : > { %v13156_v47 = vsub.f32 %v5118_v40, %v5124_v56  ;;  %5129 = vadd.xlane.f32.xlu0 %v5127_v30 }
 0xac4   : > { %v5128_v7 = vmul.f32 %v13156_v47, %v13156_v47 }
 0xac6   : > { %5131 = vadd.xlane.f32.xlu1 %v5128_v7 }
 0xb4b   : > { %v5130_v38 = vpop.xlane.xlu0 %5129 }
 0xb4c   : > { %v5133_v8 = vmul.f32 0.0078125, %v5130_v38 }
 0xb4e   : > { %v5135_v18 = vadd.f32 1e-05, %v5133_v8 }
 0xb4f   : > { %v5132_v50 = vpop.xlane.xlu1 %5131 }
 0xb50   : > { %12066 = vrsqrt.f32 %v5135_v18  ;;  %v5134_v22 = vmul.f32 0.0078125, %v5132_v50 }
 0xb52   : > { %v5136_v1 = vadd.f32 1e-05, %v5134_v22 }
 0xb54   : > { %12068 = vrsqrt.f32 %v5136_v1 }
 0xb5d   : > { %v12067_v53 = vpop.eup %12066 }
 0xb5e   : > { %v5139_v54 = vmul.f32 %v12067_v53, %v13152_v27 }
 0xb60   : > { %v5147_v60 = vmul.f32 %v10238_v55, %v5139_v54 }
 0xb61   : > { %v12069_v57 = vpop.eup %12068 }
 0xb62   : > { %v5140_v58 = vmul.f32 %v12069_v57, %v13156_v47  ;;  %v13176_v14 = vadd.f32 %v10239_v63, %v5147_v60 }
 0xb64   : > { %v5148_v0 = vmul.f32 %v10238_v55, %v5140_v58 }
 0xb66   : > { %v13178_v17 = vadd.f32 %v10239_v63, %v5148_v0 }
 0xb68   : > { %v5614_v5 = vpack.c.bf16 %v13178_v17, %v13176_v14 }
 0xb6a   : > { %5792 = vmatmul.mubr.bf16.vlgmr.msra.gmra.mxu0 %v5614_v5  ;;  %11263 = vmatmul.mubr.bf16.vlgmr.msra.gmra.mxu1 %v5614_v5 }
 0xb6b   : > { %11268 = vmatprep.mubr.msk.bf16.mxu0 %vm12418_vm1, %v12416_v6  ;;  %11292 = vmatprep.mubr.msk.bf16.mxu1 %vm12418_vm1, %v12416_v6 }
 0xc2a   : > { %v5793_v40 = vpop.f32.mrf.mxu0  ;;  %v5836_v31 = vpop.f32.mrf.mxu1 }
 0xc2b   : > { %v5837_v34 = vadd.f32 %v5836_v31, %v5627_v3  ;;  %v5794_v12 = vadd.f32 %v5793_v40, %v5619_v33 }
 0xc2c   : > { %v5795_v21 = vpop.f32.mrf.mxu0  ;;  %v11264_v10 = vpop.f32.mrf.mxu1 }
 0xc2d   : > { %v10596_v27 = vpack.c.bf16 %v5837_v34, %v5837_v34  ;;  %v5796_v13 = vadd.f32 %v5795_v21, %v5623_v35 }
 0xc2e   : > { %v5797_v56 = vpop.f32.mrf.mxu0  ;;  %v5839_v30 = vpop.f32.mrf.mxu1 }
 0xc2f   : > { %5864 = vst [vmem:[#allocation3 + $0x8] sm:$0xf] %v10596_v27  ;;  %v10595_v47 = vpack.c.bf16 %v5796_v13, %v5794_v12  ;;  %v5840_v7 = vadd.f32 %v5839_v30, %v5627_v3  ;;  %v5798_v49 = vadd.f32 %v5797_v56, %v5619_v33 }
 0xc30   : > { %v5799_v15 = vpop.f32.mrf.mxu0  ;;  %v11265_v43 = vpop.f32.mrf.mxu1 }
 0xc31   : > { %5863 = vst [vmem:[#allocation3] sm:$0xff] %v10595_v47  ;;  %v10598_v16 = vpack.c.bf16 %v5840_v7, %v5840_v7  ;;  %v5800_v62 = vadd.f32 %v5799_v15, %v5623_v35 }
 0xc33   : > { %5866 = vst [vmem:[#allocation3 + $0x14] sm:$0xf] %v10598_v16  ;;  %v10597_v51 = vpack.c.bf16 %v5800_v62, %v5798_v49 }
 0xc35   : > { %5865 = vst [vmem:[#allocation3 + $0xc] sm:$0xff] %v10597_v51 }
 0xc3a   : > { %v11840_v36 = vld [vmem:[#allocation3 + $0x8] ss:$12 sps:$4 sm:$0xff]  }
 0xc3c   : > { %v11838_v19 = vld [vmem:[#allocation3 + $0x4] ss:$12 sps:$4 sm:$0xff]   ;;  %v11839_v4 = vld [vmem:[#allocation3] ss:$12 sps:$4 sm:$0xff]  }
 0xc3d   : > { %v5887_v20 = vsel %vm1565_vm2, %v11838_v19, 0  ;;  %v11841_v1 = vld [vmem:[#allocation3] ss:$12 sps:$4 sm:$0xff]   ;;  %v11842_v53 = vld [vmem:[#allocation3 + $0x4] ss:$12 sps:$4 sm:$0xff]  }
 0xc3e   : > { %11267 = vmatpush3.bf16.xpose.msra.mxu0 %v5887_v20  ;;  %v11843_v54 = vld [vmem:[#allocation3 + $0x4] ss:$12 sps:$4 sm:$0xff]   ;;  %v11844_v55 = vld [vmem:[#allocation3] ss:$12 sps:$4 sm:$0xff]  }
 0xc3f   : > { %11272 = vmatprep.subr.bf16.mxu0 %v12416_v6  ;;  %v11845_v57 = vld [vmem:[#allocation3 + $0x4] ss:$12 sps:$4 sm:$0xff]   ;;  %v11846_v58 = vld [vmem:[#allocation3] ss:$12 sps:$4 sm:$0xff]  }
 0xc40   : > { %v11847_v60 = vld [vmem:[#allocation3 + $0x4] ss:$12 sps:$4 sm:$0xff]   ;;  %v11848_v63 = vld [vmem:[#allocation3] ss:$12 sps:$4 sm:$0xff]  }
 0xc41   : > { %v11849_v0 = vld [vmem:[#allocation3 + $0x4] ss:$12 sps:$4 sm:$0xff]   ;;  %v11850_v5 = vld [vmem:[#allocation3] ss:$12 sps:$4 sm:$0xff]  }
 0xc42   : > { %v11851_v2 = vld [vmem:[#allocation3 + $0x4] ss:$12 sps:$4 sm:$0xff]   ;;  %v11852_v3 = vld [vmem:[#allocation3] ss:$12 sps:$4 sm:$0xff]  }
 0xc43   : > { %v11853_v33 = vld [vmem:[#allocation3 + $0x4] ss:$12 sps:$4 sm:$0xff]   ;;  %v11854_v35 = vld [vmem:[#allocation3] ss:$12 sps:$4 sm:$0xff]  }
 0xc45   : > { %11269 = vmatmul.mubr.msk.bf16.vlgmr.msra.gmra.mxu0 %vm1565_vm2, %v11839_v4 }
 0xc46   : > { %11273 = vmatpush3.bf16.msra.mxu0 %v11840_v36  ;;  %11274 = vmatprep.mubr.msk.bf16.mxu0 %vm12418_vm1, %v12416_v6 }
 0xc47   : > { %11278 = vmatprep.subr.bf16.mxu0 %v12416_v6 }
 0xd05   : > { %v5923_v45 = vpop.f32.mrf.mxu0 }
 0xd06   : > { %v5930_v52 = vsel %vm1565_vm2, %v5923_v45, -inf }
 0xd07   : > { %5931 = vmax.xlane.f32.xlu0 %v5930_v52  ;;  %v11270_v23 = vpop.f32.mrf.mxu0 }
 0xd09   : > { %v5926_v29 = vpop.f32.mrf.mxu0 }
 0xd0a   : > { %v5933_v32 = vsel %vm1565_vm2, %v5926_v29, -inf }
 0xd0b   : > { %5934 = vmax.xlane.f32.xlu1 %v5933_v32  ;;  %v11271_v37 = vpop.f32.mrf.mxu0 }
 0xd90   : > { %v5932_v44 = vpop.xlane.xlu0 %5931 }
 0xd91   : > { %v5936_v46 = vsub.f32 %v5923_v45, %v5932_v44 }
 0xd93   : > { %v5938_v9 = vmul.f32 1.442695, %v5936_v46 }
 0xd94   : > { %v5935_v48 = vpop.xlane.xlu1 %5934 }
 0xd95   : > { %12070 = vpow2.f32 %v5938_v9  ;;  %v5937_v59 = vsub.f32 %v5926_v29, %v5935_v48 }
 0xd97   : > { %v5940_v38 = vmul.f32 1.442695, %v5937_v59 }
 0xd99   : > { %12072 = vpow2.f32 %v5940_v38 }
 0xda2   : > { %v12071_v8 = vpop.eup %12070 }
 0xda3   : > { %v5942_v18 = vsel %vm1565_vm2, %v12071_v8, 0.0 }
 0xda4   : > { %5943 = vadd.xlane.f32.xlu0 %v5942_v18 }
 0xda6   : > { %v12073_v50 = vpop.eup %12072 }
 0xda7   : > { %v5945_v22 = vsel %vm1565_vm2, %v12073_v50, 0.0 }
 0xda8   : > { %5946 = vadd.xlane.f32.xlu1 %v5945_v22 }
 0xdb9   : > { %6016 = vrot.lane.b32.xlu1 %v11841_v1, %s12420_s28 }
 0xdba   : > { %6023 = vrot.lane.b32.xlu0 %v11842_v53, %s12420_s28 }
 0xdbd   : > { %6175 = vrot.lane.b32.xlu1 %v11843_v54, %s12419_s23 }
 0xdbe   : > { %6168 = vrot.lane.b32.xlu0 %v11844_v55, %s12419_s23 }
 0xdc1   : > { %6327 = vrot.lane.b32.xlu1 %v11845_v57, %s12421_s9 }
 0xdc2   : > { %6320 = vrot.lane.b32.xlu0 %v11846_v58, %s12421_s9 }
 0xdc5   : > { %6479 = vrot.lane.b32.xlu1 %v11847_v60, %s12422_s24 }
 0xdc6   : > { %6472 = vrot.lane.b32.xlu0 %v11848_v63, %s12422_s24 }
 0xdc9   : > { %6631 = vrot.lane.b32.xlu1 %v11849_v0, %s12423_s20 }
 0xdca   : > { %6624 = vrot.lane.b32.xlu0 %v11850_v5, %s12423_s20 }
 0xdcd   : > { %6783 = vrot.lane.b32.xlu1 %v11851_v2, %s12424_s21 }
 0xdce   : > { %6776 = vrot.lane.b32.xlu0 %v11852_v3, %s12424_s21 }
 0xdd1   : > { %6935 = vrot.lane.b32.xlu1 %v11853_v33, %s12425_s2 }
 0xdd2   : > { %6928 = vrot.lane.b32.xlu0 %v11854_v35, %s12425_s2 }
 0xe2d   : > { %v5944_v40 = vpop.xlane.xlu0 %5943 }
 0xe2e   : > { %12074 = vrcp.f32 %v5944_v40 }
 0xe31   : > { %v5947_v31 = vpop.xlane.xlu1 %5946  ;;  %v6024_v12 = vpop.permute.xlu0 %6023 }
 0xe32   : > { %12076 = vrcp.f32 %v5947_v31  ;;  %v6029_v49 = vsel %vm1565_vm2, %v6024_v12, 0 }
 0xe35   : > { %v6017_v34 = vpop.permute.xlu1 %6016  ;;  %v6169_v7 = vpop.permute.xlu0 %6168 }
 0xe39   : > { %v6176_v21 = vpop.permute.xlu1 %6175  ;;  %v6321_v62 = vpop.permute.xlu0 %6320 }
 0xe3a   : > { %v6181_v10 = vsel %vm1565_vm2, %v6176_v21, 0 }
 0xe3b   : > { %11291 = vmatpush3.bf16.xpose.msra.mxu1 %v6181_v10  ;;  %v12075_v27 = vpop.eup %12074 }
 0xe3c   : > { %11302 = vmatprep.subr.bf16.mxu1 %v12416_v6  ;;  %v5950_v30 = vmul.f32 %v12075_v27, %v12071_v8 }
 0xe3d   : > { %v6328_v56 = vpop.permute.xlu1 %6327  ;;  %v6473_v20 = vpop.permute.xlu0 %6472 }
 0xe3e   : > { %v6333_v15 = vsel %vm1565_vm2, %v6328_v56, 0 }
 0xe3f   : > { %v12077_v13 = vpop.eup %12076 }
 0xe40   : > { %v5951_v47 = vmul.f32 %v12077_v13, %v12073_v50 }
 0xe41   : > { %v6480_v16 = vpop.permute.xlu1 %6479  ;;  %v6625_v45 = vpop.permute.xlu0 %6624 }
 0xe42   : > { %11293 = vmatmul.mubr.msk.bf16.vlgmr.msra.gmra.mxu1 %vm1565_vm2, %v6169_v7  ;;  %v5952_v43 = vpack.c.bf16 %v5951_v47, %v5950_v30  ;;  %v6485_v51 = vsel %vm1565_vm2, %v6480_v16, 0 }
 0xe43   : > { %11303 = vmatpush3.bf16.xpose.msra.mxu1 %v6333_v15  ;;  %11304 = vmatprep.mubr.msk.bf16.mxu1 %vm12418_vm1, %v12416_v6 }
 0xe44   : > { %11275 = vmatmul.mubr.msk.bf16.vlgmr.msra.gmra.mxu0 %vm1565_vm2, %v5952_v43  ;;  %11314 = vmatprep.subr.bf16.mxu1 %v12416_v6 }
 0xe45   : > { %11279 = vmatpush3.bf16.xpose.msra.mxu0 %v6029_v49  ;;  %11280 = vmatprep.mubr.msk.bf16.mxu0 %vm12418_vm1, %v12416_v6  ;;  %v6632_v19 = vpop.permute.xlu1 %6631  ;;  %v6777_v29 = vpop.permute.xlu0 %6776 }
 0xe46   : > { %11284 = vmatprep.subr.bf16.mxu0 %v12416_v6  ;;  %v6637_v4 = vsel %vm1565_vm2, %v6632_v19, 0 }
 0xe49   : > { %v6784_v36 = vpop.permute.xlu1 %6783  ;;  %v6929_v37 = vpop.permute.xlu0 %6928 }
 0xe4a   : > { %11305 = vmatmul.mubr.msk.bf16.vlgmr.msra.gmra.mxu1 %vm1565_vm2, %v6321_v62  ;;  %v6789_v52 = vsel %vm1565_vm2, %v6784_v36, 0 }
 0xe4b   : > { %11315 = vmatpush3.bf16.xpose.msra.mxu1 %v6485_v51  ;;  %11316 = vmatprep.mubr.msk.bf16.mxu1 %vm12418_vm1, %v12416_v6 }
 0xe4c   : > { %11281 = vmatmul.mubr.msk.bf16.vlgmr.msra.gmra.mxu0 %vm1565_vm2, %v6017_v34  ;;  %11326 = vmatprep.subr.bf16.mxu1 %v12416_v6 }
 0xe4d   : > { %11286 = vmatprep.mubr.msk.bf16.mxu0 %vm12418_vm1, %v12416_v6  ;;  %v6936_v23 = vpop.permute.xlu1 %6935 }
 0xe4e   : > { %v6941_v32 = vsel %vm1565_vm2, %v6936_v23, 0 }
 0xe52   : > { %11317 = vmatmul.mubr.msk.bf16.vlgmr.msra.gmra.mxu1 %vm1565_vm2, %v6473_v20 }
 0xe53   : > { %11327 = vmatpush3.bf16.xpose.msra.mxu1 %v6637_v4  ;;  %11328 = vmatprep.mubr.msk.bf16.mxu1 %vm12418_vm1, %v12416_v6 }
 0xe54   : > { %11338 = vmatprep.subr.bf16.mxu1 %v12416_v6 }
 0xe5a   : > { %11329 = vmatmul.mubr.msk.bf16.vlgmr.msra.gmra.mxu1 %vm1565_vm2, %v6625_v45 }
 0xe5b   : > { %11339 = vmatpush3.bf16.xpose.msra.mxu1 %v6789_v52  ;;  %11340 = vmatprep.mubr.msk.bf16.mxu1 %vm12418_vm1, %v12416_v6 }
 0xe5c   : > { %11350 = vmatprep.subr.bf16.mxu1 %v12416_v6 }
 0xe62   : > { %11341 = vmatmul.mubr.msk.bf16.vlgmr.msra.gmra.mxu1 %vm1565_vm2, %v6777_v29 }
 0xe63   : > { %11351 = vmatpush3.bf16.xpose.msra.mxu1 %v6941_v32  ;;  %11352 = vmatprep.mubr.msk.bf16.mxu1 %vm12418_vm1, %v12416_v6 }
 0xe64   : > { %11362 = vmatprep.subr.bf16.mxu1 %v12416_v6 }
 0xe6a   : > { %11353 = vmatmul.mubr.msk.bf16.vlgmr.msra.gmra.mxu1 %vm1565_vm2, %v6929_v37 }
 0xe6b   : > { %11378 = vmatprep.mubr.msk.bf16.mxu1 %vm12418_vm1, %v12416_v6 }
 0xf02   : > { %v13254_v44 = vpop.f32.mrf.mxu1 }
 0xf03   : > { %v6224_v33 = vsel %vm1565_vm2, %v13254_v44, -inf }
 0xf04   : > { %v5996_v46 = vpop.f32.mrf.mxu0  ;;  %v11294_v9 = vpop.f32.mrf.mxu1 }
 0xf05   : > { %6003 = vst.msk [vmem:[#allocation4] sm:$0xff] %vm1565_vm2, %v5996_v46 }
 0xf06   : > { %v11276_v48 = vpop.f32.mrf.mxu0  ;;  %v6220_v59 = vpop.f32.mrf.mxu1 }
 0xf07   : > { %v6227_v60 = vsel %vm1565_vm2, %v6220_v59, -inf }
 0xf08   : > { %v5999_v38 = vpop.f32.mrf.mxu0  ;;  %v11295_v8 = vpop.f32.mrf.mxu1 }
 0xf09   : > { %6004 = vst.msk [vmem:[#allocation4 + $0x8] sm:$0xff] %vm1565_vm2, %v5999_v38 }
 0xf0a   : > { %v11277_v18 = vpop.f32.mrf.mxu0  ;;  %v13258_v50 = vpop.f32.mrf.mxu1 }
 0xf0b   : > { %v6376_v34 = vsel %vm1565_vm2, %v13258_v50, -inf }
 0xf0c   : > { %v13260_v22 = vpop.f32.mrf.mxu0  ;;  %v11306_v1 = vpop.f32.mrf.mxu1 }
 0xf0d   : > { %v6072_v53 = vsel %vm1565_vm2, %v13260_v22, -inf }
 0xf0e   : > { %v6372_v54 = vpop.f32.mrf.mxu1  ;;  %6073 = vmax.xlane.f32.xlu1 %v6072_v53  ;;  %v11282_v55 = vpop.f32.mrf.mxu0 }
 0xf0f   : > { %v6379_v3 = vsel %vm1565_vm2, %v6372_v54, -inf }
 0xf10   : > { %v13264_v57 = vpop.f32.mrf.mxu0  ;;  %v11307_v58 = vpop.f32.mrf.mxu1 }
 0xf11   : > { %v6075_v63 = vsel %vm1565_vm2, %v13264_v57, -inf }
 0xf12   : > { %v13269_v0 = vpop.f32.mrf.mxu1  ;;  %6228 = vmax.xlane.f32.xlu1 %v6227_v60  ;;  %6076 = vmax.xlane.f32.xlu0 %v6075_v63  ;;  %v11283_v5 = vpop.f32.mrf.mxu0 }
 0xf13   : > { %v6528_v12 = vsel %vm1565_vm2, %v13269_v0, -inf }
 0xf14   : > { %v11318_v2 = vpop.f32.mrf.mxu1 }
 0xf16   : > { %v6524_v35 = vpop.f32.mrf.mxu1  ;;  %6380 = vmax.xlane.f32.xlu1 %v6379_v3  ;;  %6225 = vmax.xlane.f32.xlu0 %v6224_v33 }
 0xf17   : > { %v6531_v31 = vsel %vm1565_vm2, %v6524_v35, -inf }
 0xf18   : > { %v11319_v40 = vpop.f32.mrf.mxu1 }
 0xf1a   : > { %v13277_v21 = vpop.f32.mrf.mxu1  ;;  %6532 = vmax.xlane.f32.xlu1 %v6531_v31  ;;  %6377 = vmax.xlane.f32.xlu0 %v6376_v34 }
 0xf1b   : > { %v6680_v30 = vsel %vm1565_vm2, %v13277_v21, -inf }
 0xf1c   : > { %v11330_v10 = vpop.f32.mrf.mxu1 }
 0xf1e   : > { %v6676_v27 = vpop.f32.mrf.mxu1  ;;  %6529 = vmax.xlane.f32.xlu0 %v6528_v12 }
 0xf1f   : > { %v6683_v13 = vsel %vm1565_vm2, %v6676_v27, -inf }
 0xf20   : > { %v11331_v56 = vpop.f32.mrf.mxu1  ;;  %6684 = vmax.xlane.f32.xlu1 %v6683_v13 }
 0xf22   : > { %v13284_v47 = vpop.f32.mrf.mxu1  ;;  %6681 = vmax.xlane.f32.xlu0 %v6680_v30 }
 0xf23   : > { %v6832_v15 = vsel %vm1565_vm2, %v13284_v47, -inf }
 0xf24   : > { %v11342_v7 = vpop.f32.mrf.mxu1 }
 0xf26   : > { %v13288_v43 = vpop.f32.mrf.mxu1  ;;  %6833 = vmax.xlane.f32.xlu0 %v6832_v15 }
 0xf27   : > { %v6835_v49 = vsel %vm1565_vm2, %v13288_v43, -inf }
 0xf28   : > { %v11343_v16 = vpop.f32.mrf.mxu1  ;;  %6836 = vmax.xlane.f32.xlu1 %v6835_v49 }
 0xf2a   : > { %v13292_v62 = vpop.f32.mrf.mxu1 }
 0xf2b   : > { %v6984_v51 = vsel %vm1565_vm2, %v13292_v62, -inf }
 0xf2c   : > { %v11354_v19 = vpop.f32.mrf.mxu1  ;;  %6985 = vmax.xlane.f32.xlu0 %v6984_v51 }
 0xf2e   : > { %v13296_v20 = vpop.f32.mrf.mxu1 }
 0xf2f   : > { %v6987_v4 = vsel %vm1565_vm2, %v13296_v20, -inf }
 0xf30   : > { %v11355_v36 = vpop.f32.mrf.mxu1  ;;  %6988 = vmax.xlane.f32.xlu1 %v6987_v4 }
 0xf97   : > { %v6074_v45 = vpop.xlane.xlu1 %6073 }
 0xf9b   : > { %v6229_v52 = vpop.xlane.xlu1 %6228  ;;  %v6077_v23 = vpop.xlane.xlu0 %6076 }
 0xf9c   : > { %v6231_v29 = vsub.f32 %v6220_v59, %v6229_v52  ;;  %v6078_v59 = vsub.f32 %v13260_v22, %v6074_v45 }
 0xf9e   : > { %v6234_v32 = vmul.f32 1.442695, %v6231_v29  ;;  %v6080_v3 = vmul.f32 1.442695, %v6078_v59  ;;  %v11856_v29 = vld [vmem:[#allocation3 + $0x8] ss:$12 sps:$4 sm:$0xff]  }
 0xf9f   : > { %v6381_v37 = vpop.xlane.xlu1 %6380  ;;  %v6226_v46 = vpop.xlane.xlu0 %6225 }
 0xfa0   : > { %12078 = vpow2.f32 %v6234_v32  ;;  %v6383_v9 = vsub.f32 %v6372_v54, %v6381_v37  ;;  %v6230_v48 = vsub.f32 %v13254_v44, %v6226_v46 }
 0xfa2   : > { %v6386_v38 = vmul.f32 1.442695, %v6383_v9  ;;  %v6232_v8 = vmul.f32 1.442695, %v6230_v48 }
 0xfa3   : > { %v6533_v18 = vpop.xlane.xlu1 %6532  ;;  %v6378_v1 = vpop.xlane.xlu0 %6377 }
 0xfa4   : > { %12080 = vpow2.f32 %v6386_v38  ;;  %v6535_v53 = vsub.f32 %v6524_v35, %v6533_v18  ;;  %v6382_v55 = vsub.f32 %v13258_v50, %v6378_v1  ;;  %v6079_v50 = vsub.f32 %v13264_v57, %v6077_v23  ;;  %v11855_v23 = vld [vmem:[#allocation3 + $0x8] ss:$12 sps:$4 sm:$0xff]  }
 0xfa5   : > { %12082 = vpow2.f32 %v6232_v8 }
 0xfa6   : > { %v6538_v58 = vmul.f32 1.442695, %v6535_v53  ;;  %v6384_v60 = vmul.f32 1.442695, %v6382_v55  ;;  %v6082_v12 = vmul.f32 1.442695, %v6079_v50 }
 0xfa7   : > { %v6530_v63 = vpop.xlane.xlu0 %6529 }
 0xfa8   : > { %12084 = vpow2.f32 %v6538_v58  ;;  %v6534_v5 = vsub.f32 %v13269_v0, %v6530_v63 }
 0xfa9   : > { %12086 = vpow2.f32 %v6384_v60  ;;  %v6685_v54 = vpop.xlane.xlu1 %6684 }
 0xfaa   : > { %v6536_v44 = vmul.f32 1.442695, %v6534_v5  ;;  %v6687_v2 = vsub.f32 %v6676_v27, %v6685_v54  ;;  %v11857_v54 = vld [vmem:[#allocation3 + $0x8] ss:$12 sps:$4 sm:$0xff]  }
 0xfab   : > { %v6682_v33 = vpop.xlane.xlu0 %6681 }
 0xfac   : > { %12088 = vpow2.f32 %v6536_v44  ;;  %v6686_v35 = vsub.f32 %v13277_v21, %v6682_v33  ;;  %v6690_v31 = vmul.f32 1.442695, %v6687_v2  ;;  %v11858_v44 = vld [vmem:[#allocation3 + $0x8] ss:$12 sps:$4 sm:$0xff]  }
 0xfad   : > { %v13305_v40 = vpop.eup %12078  ;;  %12090 = vpow2.f32 %v6080_v3  ;;  %v11859_v2 = vld [vmem:[#allocation3 + $0x8] ss:$12 sps:$4 sm:$0xff]  }
 0xfae   : > { %v6688_v34 = vmul.f32 1.442695, %v6686_v35  ;;  %v6239_v22 = vsel %vm1565_vm2, %v13305_v40, 0.0  ;;  %v11860_v3 = vld [vmem:[#allocation3 + $0x8] ss:$12 sps:$4 sm:$0xff]  }
 0xfaf   : > { %6240 = vadd.xlane.f32.xlu1 %v6239_v22  ;;  %v6834_v32 = vpop.xlane.xlu0 %6833  ;;  %v11861_v33 = vld [vmem:[#allocation3 + $0x8] ss:$12 sps:$4 sm:$0xff]  }
 0xfb0   : > { %12092 = vpow2.f32 %v6688_v34  ;;  %v6838_v37 = vsub.f32 %v13284_v47, %v6834_v32 }
 0xfb1   : > { %v13310_v0 = vpop.eup %12080  ;;  %12094 = vpow2.f32 %v6690_v31  ;;  %v6837_v9 = vpop.xlane.xlu1 %6836 }
 0xfb2   : > { %v13312_v10 = vpop.eup %12082  ;;  %v6391_v21 = vsel %vm1565_vm2, %v13310_v0, 0.0  ;;  %12096 = vpow2.f32 %v6082_v12  ;;  %v6840_v46 = vmul.f32 1.442695, %v6838_v37  ;;  %v6839_v48 = vsub.f32 %v13288_v43, %v6837_v9 }
 0xfb3   : > { %6392 = vadd.xlane.f32.xlu1 %v6391_v21  ;;  %v6236_v57 = vsel %vm1565_vm2, %v13312_v10, 0.0 }
 0xfb4   : > { %6237 = vadd.xlane.f32.xlu0 %v6236_v57  ;;  %12098 = vpow2.f32 %v6840_v46  ;;  %v6842_v8 = vmul.f32 1.442695, %v6839_v48 }
 0xfb5   : > { %v13318_v27 = vpop.eup %12084  ;;  %v6986_v38 = vpop.xlane.xlu0 %6985 }
 0xfb6   : > { %v13320_v13 = vpop.eup %12086  ;;  %v6543_v56 = vsel %vm1565_vm2, %v13318_v27, 0.0  ;;  %v6990_v18 = vsub.f32 %v13292_v62, %v6986_v38  ;;  %12100 = vpow2.f32 %v6842_v8 }
 0xfb7   : > { %6544 = vadd.xlane.f32.xlu1 %v6543_v56  ;;  %v6388_v30 = vsel %vm1565_vm2, %v13320_v13, 0.0 }
 0xfb8   : > { %6389 = vadd.xlane.f32.xlu0 %v6388_v30  ;;  %v6992_v53 = vmul.f32 1.442695, %v6990_v18 }
 0xfb9   : > { %v13326_v7 = vpop.eup %12088  ;;  %v6989_v1 = vpop.xlane.xlu1 %6988 }
 0xfba   : > { %v6540_v15 = vsel %vm1565_vm2, %v13326_v7, 0.0  ;;  %v13330_v49 = vpop.eup %12090  ;;  %v6991_v55 = vsub.f32 %v13296_v20, %v6989_v1  ;;  %12102 = vpow2.f32 %v6992_v53 }
 0xfbb   : > { %v6084_v4 = vsel %vm1565_vm2, %v13330_v49, 0.0 }
 0xfbc   : > { %6541 = vadd.xlane.f32.xlu0 %v6540_v15  ;;  %v6994_v58 = vmul.f32 1.442695, %v6991_v55 }
 0xfbd   : > { %v13332_v16 = vpop.eup %12092 }
 0xfbe   : > { %v6692_v51 = vsel %vm1565_vm2, %v13332_v16, 0.0  ;;  %v13336_v19 = vpop.eup %12094  ;;  %12104 = vpow2.f32 %v6994_v58 }
 0xfbf   : > { %6693 = vadd.xlane.f32.xlu1 %v6692_v51  ;;  %v6695_v36 = vsel %vm1565_vm2, %v13336_v19, 0.0  ;;  %v13342_v45 = vpop.eup %12096 }
 0xfc0   : > { %6085 = vadd.xlane.f32.xlu0 %v6084_v4  ;;  %v6087_v52 = vsel %vm1565_vm2, %v13342_v45, 0.0 }
 0xfc1   : > { %v13352_v60 = vpop.eup %12098 }
 0xfc2   : > { %v6844_v47 = vsel %vm1565_vm2, %v13352_v60, 0.0 }
 0xfc3   : > { %6696 = vadd.xlane.f32.xlu1 %v6695_v36  ;;  %v13356_v43 = vpop.eup %12100 }
 0xfc4   : > { %v6847_v59 = vsel %vm1565_vm2, %v13356_v43, 0.0 }
 0xfc7   : > { %6088 = vadd.xlane.f32.xlu1 %v6087_v52  ;;  %v13360_v62 = vpop.eup %12102 }
 0xfc8   : > { %v6996_v20 = vsel %vm1565_vm2, %v13360_v62, 0.0 }
 0xfcb   : > { %v13364_v63 = vpop.eup %12104 }
 0xfcc   : > { %v6999_v5 = vsel %vm1565_vm2, %v13364_v63, 0.0 }
 0xfd6   : > { %6100 = vrot.lane.b32.xlu0 %v11855_v23, %s12420_s28 }
 0xfd8   : > { %6252 = vrot.lane.b32.xlu1 %v11856_v29, %s12419_s23 }
 0xff5   : > { %6845 = vadd.xlane.f32.xlu0 %v6844_v47 }
 0xffc   : > { %6848 = vadd.xlane.f32.xlu1 %v6847_v59 }
0x1000   : > { %6997 = vadd.xlane.f32.xlu1 %v6996_v20 }
0x1004   : > { %7000 = vadd.xlane.f32.xlu1 %v6999_v5 }
0x100b   : > { %6404 = vrot.lane.b32.xlu0 %v11857_v54, %s12421_s9 }
0x100f   : > { %6708 = vrot.lane.b32.xlu0 %v11858_v44, %s12423_s20 }
0x1013   : > { %6860 = vrot.lane.b32.xlu0 %v11859_v2, %s12424_s21 }
0x1015   : > { %6556 = vrot.lane.b32.xlu1 %v11860_v3, %s12422_s24 }
0x1017   : > { %7012 = vrot.lane.b32.xlu0 %v11861_v33, %s12425_s2 }
0x1038   : > { %v6241_v35 = vpop.xlane.xlu1 %6240 }
0x103c   : > { %v6393_v31 = vpop.xlane.xlu1 %6392 }
0x103d   : > { %v6238_v50 = vpop.xlane.xlu0 %6237 }
0x1040   : > { %v6545_v22 = vpop.xlane.xlu1 %6544 }
0x1041   : > { %v6390_v34 = vpop.xlane.xlu0 %6389 }
0x1045   : > { %v6542_v12 = vpop.xlane.xlu0 %6541 }
0x1048   : > { %v6694_v21 = vpop.xlane.xlu1 %6693 }
0x1049   : > { %v6086_v57 = vpop.xlane.xlu0 %6085 }
0x104a   : > { %12106 = vrcp.f32 %v6086_v57 }
0x104c   : > { %v6697_v56 = vpop.xlane.xlu1 %6696 }
0x104d   : > { %v6101_v30 = vpop.permute.xlu0 %6100 }
0x104e   : > { %11285 = vmatpush3.bf16.msra.mxu0 %v6101_v30 }
0x104f   : > { %11296 = vmatprep.subr.bf16.mxu0 %v12416_v6 }
0x1050   : > { %v6089_v15 = vpop.xlane.xlu1 %6088 }
0x1051   : > { %12108 = vrcp.f32 %v6089_v15 }
0x1052   : > { %12110 = vrcp.f32 %v6238_v50 }
0x1053   : > { %12112 = vrcp.f32 %v6241_v35 }
0x1054   : > { %v6253_v32 = vpop.permute.xlu1 %6252  ;;  %12114 = vrcp.f32 %v6390_v34 }
0x1055   : > { %12116 = vrcp.f32 %v6393_v31 }
0x1056   : > { %12118 = vrcp.f32 %v6542_v12 }
0x1057   : > { %v12107_v51 = vpop.eup %12106  ;;  %12120 = vrcp.f32 %v6545_v22 }
0x1058   : > { %v6092_v36 = vmul.f32 %v12107_v51, %v13330_v49  ;;  %12122 = vrcp.f32 %v6697_v56 }
0x1059   : > { %12124 = vrcp.f32 %v6694_v21 }
0x105e   : > { %v12109_v4 = vpop.eup %12108 }
0x105f   : > { %v6093_v52 = vmul.f32 %v12109_v4, %v13342_v45  ;;  %v12111_v29 = vpop.eup %12110 }
0x1060   : > { %v12113_v37 = vpop.eup %12112  ;;  %v6244_v46 = vmul.f32 %v12111_v29, %v13312_v10  ;;  %v11862_v29 = vld [vmem:[#allocation8 + $0x78] sm:$0xff]  }
0x1061   : > { %v6094_v23 = vpack.c.bf16 %v6093_v52, %v6092_v36  ;;  %v6245_v9 = vmul.f32 %v12113_v37, %v13305_v40  ;;  %v12115_v49 = vpop.eup %12114  ;;  %11363 = vmatpush3.bf16.msra.mxu1 %v11862_v29  ;;  %v5327_v29 = vld [vmem:[#allocation10 + $0x788] sm:$0xff] }
0x1062   : > { %v12117_v38 = vpop.eup %12116  ;;  %v6396_v8 = vmul.f32 %v12115_v49, %v13320_v13  ;;  %11364 = vmatprep.subr.bf16.mxu1 %v12416_v6  ;;  %v11865_v49 = vld [vmem:[#allocation8 + $0x60] sm:$0xff]  }
0x1063   : > { %11287 = vmatmul.mubr.msk.bf16.vlgmr.msra.gmra.mxu0 %vm1565_vm2, %v6094_v23  ;;  %v6246_v48 = vpack.c.bf16 %v6245_v9, %v6244_v46  ;;  %v6397_v18 = vmul.f32 %v12117_v38, %v13310_v0  ;;  %v12119_v55 = vpop.eup %12118  ;;  %v11864_v46 = vld [vmem:[#allocation8 + $0x68] sm:$0xff]  }
0x1064   : > { %11297 = vmatpush3.bf16.msra.mxu0 %v6253_v32  ;;  %11298 = vmatprep.mubr.msk.bf16.mxu0 %vm12418_vm1, %v12416_v6  ;;  %v12121_v13 = vpop.eup %12120  ;;  %v6548_v47 = vmul.f32 %v12119_v55, %v13326_v7  ;;  %v11863_v32 = vld [vmem:[#allocation8 + $0x70] sm:$0xff]   ;;  %v11868_v55 = vld [vmem:[#allocation8 + $0x48] sm:$0xff]  }
0x1065   : > { %11308 = vmatprep.subr.bf16.mxu0 %v12416_v6  ;;  %v6398_v40 = vpack.c.bf16 %v6397_v18, %v6396_v8  ;;  %v6549_v59 = vmul.f32 %v12121_v13, %v13318_v27  ;;  %v12123_v5 = vpop.eup %12122  ;;  %11365 = vmatpush3.bf16.msra.mxu1 %v11863_v32  ;;  %v11866_v8 = vld [vmem:[#allocation8 + $0x58] sm:$0xff]   ;;  %v11869_v13 = vld [vmem:[#allocation8 + $0x40] sm:$0xff]  }
0x1066   : > { %v12125_v44 = vpop.eup %12124  ;;  %v6701_v7 = vmul.f32 %v12123_v5, %v13336_v19  ;;  %11366 = vmatprep.subr.bf16.mxu1 %v12416_v6 }
0x1067   : > { %v6550_v20 = vpack.c.bf16 %v6549_v59, %v6548_v47  ;;  %v6700_v27 = vmul.f32 %v12125_v44, %v13332_v16 }
0x1069   : > { %v6702_v2 = vpack.c.bf16 %v6701_v7, %v6700_v27  ;;  %11367 = vmatpush3.bf16.msra.mxu1 %v11864_v46  ;;  %v5335_v46 = vld [vmem:[#allocation10 + $0x7c8] sm:$0xff] }
0x106a   : > { %11368 = vmatprep.subr.bf16.mxu1 %v12416_v6 }
0x106b   : > { %11299 = vmatmul.mubr.msk.bf16.vlgmr.msra.gmra.mxu0 %vm1565_vm2, %v6246_v48 }
0x106c   : > { %11310 = vmatprep.mubr.msk.bf16.mxu0 %vm12418_vm1, %v12416_v6 }
0x106d   : > { %11369 = vmatpush3.bf16.msra.mxu1 %v11865_v49 }
0x106e   : > { %11370 = vmatprep.subr.bf16.mxu1 %v12416_v6 }
0x1071   : > { %11371 = vmatpush3.bf16.msra.mxu1 %v11866_v8 }
0x1072   : > { %11372 = vmatprep.subr.bf16.mxu1 %v12416_v6 }
0x107e   : > { %v6846_v45 = vpop.xlane.xlu0 %6845 }
0x1082   : > { %v6405_v10 = vpop.permute.xlu0 %6404 }
0x1083   : > { %11309 = vmatpush3.bf16.msra.mxu0 %v6405_v10 }
0x1084   : > { %11320 = vmatprep.subr.bf16.mxu0 %v12416_v6 }
0x1085   : > { %v6849_v1 = vpop.xlane.xlu1 %6848 }
0x1086   : > { %11311 = vmatmul.mubr.msk.bf16.vlgmr.msra.gmra.mxu0 %vm1565_vm2, %v6398_v40  ;;  %12126 = vrcp.f32 %v6849_v1  ;;  %v6709_v54 = vpop.permute.xlu0 %6708  ;;  %v11867_v40 = vld [vmem:[#allocation8 + $0x50] sm:$0xff]  }
0x1087   : > { %11322 = vmatprep.mubr.msk.bf16.mxu0 %vm12418_vm1, %v12416_v6  ;;  %12128 = vrcp.f32 %v6846_v45  ;;  %11373 = vmatpush3.bf16.msra.mxu1 %v11867_v40  ;;  %v5310_v40 = vld [vmem:[#allocation10 + $0x700] sm:$0xff] }
0x1088   : > { %11374 = vmatprep.subr.bf16.mxu1 %v12416_v6 }
0x1089   : > { %v6998_v53 = vpop.xlane.xlu1 %6997 }
0x108a   : > { %v6861_v33 = vpop.permute.xlu0 %6860 }
0x108b   : > { %11375 = vmatpush3.bf16.msra.mxu1 %v11868_v55 }
0x108c   : > { %11376 = vmatprep.subr.bf16.mxu1 %v12416_v6 }
0x108d   : > { %v7001_v58 = vpop.xlane.xlu1 %7000 }
0x108e   : > { %12130 = vrcp.f32 %v7001_v58  ;;  %v7013_v22 = vpop.permute.xlu0 %7012 }
0x108f   : > { %12132 = vrcp.f32 %v6998_v53  ;;  %11377 = vmatpush3.bf16.msra.mxu1 %v11869_v13  ;;  %v5319_v13 = vld [vmem:[#allocation10 + $0x748] sm:$0xff] }
0x1091   : > { %v6557_v0 = vpop.permute.xlu1 %6556 }
0x1092   : > { %11321 = vmatpush3.bf16.msra.mxu0 %v6557_v0 }
0x1093   : > { %11332 = vmatprep.subr.bf16.mxu0 %v12416_v6  ;;  %v12127_v3 = vpop.eup %12126 }
0x1094   : > { %v12129_v35 = vpop.eup %12128  ;;  %v6853_v50 = vmul.f32 %v12127_v3, %v13356_v43 }
0x1095   : > { %11323 = vmatmul.mubr.msk.bf16.vlgmr.msra.gmra.mxu0 %vm1565_vm2, %v6550_v20  ;;  %v6852_v31 = vmul.f32 %v12129_v35, %v13352_v60 }
0x1096   : > { %11333 = vmatpush3.bf16.msra.mxu0 %v6709_v54  ;;  %11334 = vmatprep.mubr.msk.bf16.mxu0 %vm12418_vm1, %v12416_v6 }
0x1097   : > { %11344 = vmatprep.subr.bf16.mxu0 %v12416_v6  ;;  %v6854_v19 = vpack.c.bf16 %v6853_v50, %v6852_v31 }
0x109b   : > { %v12131_v34 = vpop.eup %12130 }
0x109c   : > { %v12133_v16 = vpop.eup %12132  ;;  %v7005_v12 = vmul.f32 %v12131_v34, %v13364_v63 }
0x109d   : > { %11335 = vmatmul.mubr.msk.bf16.vlgmr.msra.gmra.mxu0 %vm1565_vm2, %v6702_v2  ;;  %v7004_v21 = vmul.f32 %v12133_v16, %v13360_v62 }
0x109e   : > { %11345 = vmatpush3.bf16.msra.mxu0 %v6861_v33  ;;  %11346 = vmatprep.mubr.msk.bf16.mxu0 %vm12418_vm1, %v12416_v6 }
0x109f   : > { %11356 = vmatprep.subr.bf16.mxu0 %v12416_v6  ;;  %v7006_v57 = vpack.c.bf16 %v7005_v12, %v7004_v21 }
0x10a5   : > { %11347 = vmatmul.mubr.msk.bf16.vlgmr.msra.gmra.mxu0 %vm1565_vm2, %v6854_v19 }
0x10a6   : > { %11357 = vmatpush3.bf16.msra.mxu0 %v7013_v22  ;;  %11358 = vmatprep.mubr.msk.bf16.mxu0 %vm12418_vm1, %v12416_v6 }
0x10ad   : > { %11359 = vmatmul.mubr.msk.bf16.vlgmr.msra.gmra.mxu0 %vm1565_vm2, %v7006_v57 }
0x10ae   : > { %7964 = vmatprep.mubr.bf16.mxu0 %v12417_v28 }
0x1123   : > { %v6140_v60 = vpop.f32.mrf.mxu0 }
0x1124   : > { %6149 = vrot.lane.b32.xlu0 %v6140_v60, %s12425_s2 }
0x1125   : > { %v11288_v43 = vpop.f32.mrf.mxu0 }
0x1126   : > { %v10317_v43 = vld [vmem:[%s13686_s6 + $0x1] ss:$0 sm:$0xff] }
0x1127   : > { %v6143_v56 = vpop.f32.mrf.mxu0 }
0x1128   : > { %6151 = vrot.lane.b32.xlu1 %v6143_v56, %s12425_s2  ;;  %s749_s2 = sand.u32 1, %s12392_s25  }
0x1129   : > { %v11289_v30 = vpop.f32.mrf.mxu0  ;;  %s750_s29 = scalar_lea.vmem [#allocation17], %s749_s2 }
0x112a   : > { %s9755_s4 = sshll.u32 %s750_s29, 4  ;;  %s9756_s4 = int_to_ptr.vmem [resolvable:$true] %s9755_s4 }
0x112b   : > { %v6292_v15 = vpop.f32.mrf.mxu0 }
0x112c   : > { %6301 = vrot.lane.b32.xlu0 %v6292_v15, %s12424_s21 }
0x112d   : > { %v11300_v51 = vpop.f32.mrf.mxu0 }
0x112f   : > { %v6295_v63 = vpop.f32.mrf.mxu0 }
0x1130   : > { %6303 = vrot.lane.b32.xlu1 %v6295_v63, %s12424_s21  ;;  %s12426_s21 = smov [#allocation17]  }
0x1131   : > { %v11301_v62 = vpop.f32.mrf.mxu0  ;;  %s12328_s3 = sshll.u32 %s12426_s21, 4  ;;  %s12329_s3 = int_to_ptr.vmem [resolvable:$false] %s12328_s3 }
0x1132   : > { %s12330_s26 = scalar_lea.vmem %s12329_s3, 32  ;;  %p12331_p1 = scmp.lt.s32.totalorder %s9756_s4, %s12329_s3 }
0x1146   : > { %v6444_v4 = vpop.f32.mrf.mxu0 }
0x1147   : > { %6453 = vrot.lane.b32.xlu0 %v6444_v4, %s12423_s20 }
0x1148   : > { %v11312_v36 = vpop.f32.mrf.mxu0 }
0x114a   : > { %v6447_v52 = vpop.f32.mrf.mxu0 }
0x114b   : > { %6455 = vrot.lane.b32.xlu1 %v6447_v52, %s12423_s20  ;;  %v5326_v52 = vld [vmem:[#allocation10 + $0x780] sm:$0xff]  ;;  %s12324_s20 = scalar_lea.vmem %s9756_s4, 16 }
0x114c   : > { %v11313_v23 = vpop.f32.mrf.mxu0  ;;  %p12325_p8 = scmp.ne.s32.totalorder %s9756_s4, %s12324_s20  ;;  %p12332_p13 = scmp.lt.s32.totalorder %s12330_s26, %s12324_s20 }
0x114d   : > { %v5334_v23 = vld [vmem:[#allocation10 + $0x7c0] sm:$0xff] }
0x114e   : > { %v10440_v32 = vcombine.low %v5326_v52, %v5334_v23  ;;  %p12326_p11 = pnand %p12325_p8, %p12575_p5  ;;  %p12333_p3 = por %p12332_p13, %p12331_p1 }
0x1150   : > { %p12327_p0 = pneg %p12326_p11 }
0x1152   : > { %p12334_p4 = pnand %p12333_p3, %p12327_p0 }
0x1155   : > { %v6596_v37 = vpop.f32.mrf.mxu0 }
0x1156   : > { %6605 = vrot.lane.b32.xlu0 %v6596_v37, %s12422_s24  ;;  %v10441_v37 = vcombine.high %v5326_v52, %v5334_v23  ;;  %v5238_v52 = vld [vmem:[#allocation10 + $0x4c0] sm:$0xff]  ;;  %v13462_v23 = vld [vmem:[#allocation10 + $0x790] sm:$0xff] }
0x1157   : > { %v11324_v9 = vpop.f32.mrf.mxu0 }
0x1158   : > { %v10442_v9 = vcombine.low %v5327_v29, %v5335_v46  ;;  %7932 = vmatprep.subr.bf16.mxu0 %v10441_v37  ;;  %v13466_v37 = vld [vmem:[#allocation10 + $0x798] sm:$0xff] }
0x1159   : > { %v6599_v48 = vpop.f32.mrf.mxu0  ;;  %7933 = vmatpush1.bf16.msra.mxu0 %v10440_v32  ;;  %v13464_v32 = vld [vmem:[#allocation10 + $0x7d0] sm:$0xff] }
0x115a   : > { %6607 = vrot.lane.b32.xlu1 %v6599_v48, %s12422_s24  ;;  %v10443_v48 = vcombine.high %v5327_v29, %v5335_v46  ;;  %v13468_v46 = vld [vmem:[#allocation10 + $0x7d8] sm:$0xff]  ;;  %s9743_s24 = scalar_lea.sflag [#allocation7], %s749_s2 }
0x115b   : > { %v11325_v45 = vpop.f32.mrf.mxu0 }
0x115c   : > { %7975 = vmatprep.subr.bf16.mxu1 %v10443_v48  ;;  %v5239_v48 = vld [vmem:[#allocation10 + $0x4c8] sm:$0xff] }
0x115d   : > { %v6748_v38 = vpop.f32.mrf.mxu0 }
0x115e   : > { %6757 = vrot.lane.b32.xlu0 %v6748_v38, %s12421_s9 }
0x115f   : > { %v11336_v10 = vpop.f32.mrf.mxu0 }
0x1161   : > { %v6751_v18 = vpop.f32.mrf.mxu0 }
0x1162   : > { %6759 = vrot.lane.b32.xlu1 %v6751_v18, %s12421_s9 }
0x1163   : > { %v11337_v1 = vpop.f32.mrf.mxu0 }
0x1164   : > { %v5318_v1 = vld [vmem:[#allocation10 + $0x740] sm:$0xff] }
0x1165   : > { %v6900_v53 = vpop.f32.mrf.mxu0  ;;  %v10424_v55 = vcombine.low %v5310_v40, %v5318_v1 }
0x1166   : > { %6909 = vrot.lane.b32.xlu0 %v6900_v53, %s12419_s23  ;;  %v5311_v53 = vld [vmem:[#allocation10 + $0x708] sm:$0xff] }
0x1167   : > { %v11348_v58 = vpop.f32.mrf.mxu0 }
0x1168   : > { %v10425_v58 = vcombine.high %v5310_v40, %v5318_v1  ;;  %v5214_v40 = vld [vmem:[#allocation10 + $0x400] sm:$0xff] }
0x1169   : > { %v6903_v47 = vpop.f32.mrf.mxu0  ;;  %v5222_v1 = vld [vmem:[#allocation10 + $0x440] sm:$0xff] }
0x116a   : > { %6911 = vrot.lane.b32.xlu1 %v6903_v47, %s12419_s23  ;;  %v10426_v47 = vcombine.low %v5311_v53, %v5319_v13  ;;  %7934 = vmatprep.subr.bf16.mxu0 %v10425_v58 }
0x116b   : > { %v11349_v0 = vpop.f32.mrf.mxu0  ;;  %7935 = vmatpush1.bf16.msra.mxu0 %v10424_v55  ;;  %v5223_v55 = vld [vmem:[#allocation10 + $0x448] sm:$0xff] }
0x116c   : > { %v10427_v0 = vcombine.high %v5311_v53, %v5319_v13  ;;  %v5215_v53 = vld [vmem:[#allocation10 + $0x408] sm:$0xff] }
0x116d   : > { %v7052_v59 = vpop.f32.mrf.mxu0 }
0x116e   : > { %7061 = vrot.lane.b32.xlu0 %v7052_v59, %s12420_s28  ;;  %v5294_v59 = vld [vmem:[#allocation10 + $0x680] sm:$0xff] }
0x116f   : > { %v11360_v20 = vpop.f32.mrf.mxu0 }
0x1170   : > { %v5302_v20 = vld [vmem:[#allocation10 + $0x6c0] sm:$0xff] }
0x1171   : > { %v7055_v5 = vpop.f32.mrf.mxu0 }
0x1172   : > { %7063 = vrot.lane.b32.xlu1 %v7055_v5, %s12420_s28  ;;  %v5295_v5 = vld [vmem:[#allocation10 + $0x688] sm:$0xff]  ;;  %s13756_s28 = sld [smem:[#allocation37_spill]] }
0x1173   : > { %v11361_v54 = vpop.f32.mrf.mxu0 }
0x1174   : > { %v10409_v54 = vcombine.high %v5294_v59, %v5302_v20 }
0x1176   : > { %7936 = vmatprep.subr.bf16.mxu0 %v10409_v54  ;;  %v10447_v54 = vcombine.high %v13466_v37, %v13468_v46 }
0x1178   : > { %s13645_s9 = scalar_lea.hbm %s13756_s28, %s10587_s22 }
0x1196   : > { %v6150_v44 = vpop.permute.xlu0 %6149 }
0x1197   : > { %6155 = vst.msk [vmem:[#allocation4] sm:$0xff] %vm1838_vm3, %v6150_v44  ;;  %v5303_v44 = vld [vmem:[#allocation10 + $0x6c8] sm:$0xff] }
0x119a   : > { %v6152_v7 = vpop.permute.xlu1 %6151 }
0x119b   : > { %6156 = vst.msk [vmem:[#allocation4 + $0x8] sm:$0xff] %vm1838_vm3, %v6152_v7  ;;  %v10408_v7 = vcombine.low %v5294_v59, %v5302_v20  ;;  %v10328_v59 = vcombine.low %v5214_v40, %v5222_v1  ;;  %v10330_v20 = vcombine.low %v5215_v53, %v5223_v55 }
0x119d   : > { %7937 = vmatpush1.bf16.msra.mxu0 %v10408_v7 }
0x119e   : > { %v6302_v27 = vpop.permute.xlu0 %6301 }
0x119f   : > { %6307 = vst.msk [vmem:[#allocation4] sm:$0xff] %vm1991_vm4, %v6302_v27  ;;  %v10410_v27 = vcombine.low %v5295_v5, %v5303_v44 }
0x11a2   : > { %v6304_v2 = vpop.permute.xlu1 %6303 }
0x11a3   : > { %6308 = vst.msk [vmem:[#allocation4 + $0x8] sm:$0xff] %vm1991_vm4, %v6304_v2  ;;  %v10411_v2 = vcombine.high %v5295_v5, %v5303_v44  ;;  %v10445_v5 = vcombine.high %v13462_v23, %v13464_v32 }
0x11b9   : > { %v6454_v3 = vpop.permute.xlu0 %6453 }
0x11ba   : > { %6459 = vst.msk [vmem:[#allocation4] sm:$0xff] %vm2144_vm5, %v6454_v3  ;;  %v5278_v3 = vld [vmem:[#allocation10 + $0x600] sm:$0xff] }
0x11bd   : > { %v6456_v33 = vpop.permute.xlu1 %6455 }
0x11be   : > { %6460 = vst.msk [vmem:[#allocation4 + $0x8] sm:$0xff] %vm2144_vm5, %v6456_v33  ;;  %v5286_v33 = vld [vmem:[#allocation10 + $0x640] sm:$0xff] }
0x11c8   : > { %v6606_v35 = vpop.permute.xlu0 %6605 }
0x11c9   : > { %6611 = vst.msk [vmem:[#allocation4] sm:$0xff] %vm2297_vm6, %v6606_v35  ;;  %v5279_v35 = vld [vmem:[#allocation10 + $0x608] sm:$0xff] }
0x11cc   : > { %v6608_v50 = vpop.permute.xlu1 %6607 }
0x11cd   : > { %6612 = vst.msk [vmem:[#allocation4 + $0x8] sm:$0xff] %vm2297_vm6, %v6608_v50  ;;  %v10392_v50 = vcombine.low %v5278_v3, %v5286_v33 }
0x11d0   : > { %v6758_v31 = vpop.permute.xlu0 %6757 }
0x11d1   : > { %6763 = vst.msk [vmem:[#allocation4] sm:$0xff] %vm2450_vm7, %v6758_v31  ;;  %v10393_v31 = vcombine.high %v5278_v3, %v5286_v33 }
0x11d3   : > { %7938 = vmatprep.subr.bf16.mxu0 %v10393_v31  ;;  %v10326_v31 = vld [vmem:[%s13691_s11 + $0x1] ss:$0 sm:$0xff] }
0x11d4   : > { %v6760_v19 = vpop.permute.xlu1 %6759  ;;  %7939 = vmatpush1.bf16.msra.mxu0 %v10392_v50 }
0x11d5   : > { %6764 = vst.msk [vmem:[#allocation4 + $0x8] sm:$0xff] %vm2450_vm7, %v6760_v19  ;;  %v5287_v19 = vld [vmem:[#allocation10 + $0x648] sm:$0xff] }
0x11d8   : > { %v6910_v34 = vpop.permute.xlu0 %6909 }
0x11d9   : > { %6915 = vst.msk [vmem:[#allocation4] sm:$0xff] %vm2603_vm8, %v6910_v34  ;;  %v5262_v34 = vld [vmem:[#allocation10 + $0x580] sm:$0xff] }
0x11dc   : > { %v6912_v22 = vpop.permute.xlu1 %6911 }
0x11dd   : > { %6916 = vst.msk [vmem:[#allocation4 + $0x8] sm:$0xff] %vm2603_vm8, %v6912_v22  ;;  %v5270_v22 = vld [vmem:[#allocation10 + $0x5c0] sm:$0xff] }
0x11e0   : > { %v7062_v16 = vpop.permute.xlu0 %7061 }
0x11e1   : > { %7067 = vst.msk [vmem:[#allocation4] sm:$0xff] %vm2756_vm9, %v7062_v16  ;;  %v10394_v16 = vcombine.low %v5279_v35, %v5287_v19 }
0x11e4   : > { %v7064_v12 = vpop.permute.xlu1 %7063 }
0x11e5   : > { %7068 = vst.msk [vmem:[#allocation4 + $0x8] sm:$0xff] %vm2756_vm9, %v7064_v12  ;;  %v10395_v12 = vcombine.high %v5279_v35, %v5287_v19 }
0x11e8   : > { %v7069_v21 = vld [vmem:[#allocation4] sm:$0xff] }
0x11ec   : > { %v7070_v57 = vld [vmem:[#allocation4 + $0x8] sm:$0xff] }
0x11ed   : > { %v7071_v60 = vpack.c.bf16 %v7070_v57, %v7069_v21  ;;  %v10377_v21 = vcombine.high %v5262_v34, %v5270_v22  ;;  %v5263_v57 = vld [vmem:[#allocation10 + $0x588] sm:$0xff] }
0x11ef   : > { %11379 = vmatmul.mubr.bf16.vlgmr.msra.gmra.mxu1 %v7071_v60  ;;  %v5271_v60 = vld [vmem:[#allocation10 + $0x5c8] sm:$0xff]  ;;  %7940 = vmatprep.subr.bf16.mxu0 %v10377_v21  ;;  %v5312_v21 = vld [vmem:[#allocation10 + $0x710] sm:$0xff] }
0x11f0   : > { %8007 = vmatprep.mubr.bf16.mxu1 %v12417_v28  ;;  %7976 = vmatpush1.bf16.msra.mxu1 %v10442_v9  ;;  %v5231_v9 = vld [vmem:[#allocation10 + $0x488] sm:$0xff] }
0x11f1   : > { %7977 = vmatprep.subr.bf16.mxu1 %v10427_v0  ;;  %v10346_v13 = vcombine.low %v5231_v9, %v5239_v48  ;;  %v10331_v0 = vcombine.high %v5215_v53, %v5223_v55 }
0x11f4   : > { %7978 = vmatpush1.bf16.msra.mxu1 %v10426_v47  ;;  %v10329_v47 = vcombine.high %v5214_v40, %v5222_v1  ;;  %v5273_v40 = vld [vmem:[#allocation10 + $0x5d8] sm:$0xff] }
0x11f5   : > { %7979 = vmatprep.subr.bf16.mxu1 %v10411_v2 }
0x11f8   : > { %7980 = vmatpush1.bf16.msra.mxu1 %v10410_v27 }
0x11f9   : > { %7981 = vmatprep.subr.bf16.mxu1 %v10395_v12 }
0x11fc   : > { %7982 = vmatpush1.bf16.msra.mxu1 %v10394_v16  ;;  %v10327_v16 = vld [vmem:[%s13692_s12 + $0x1] ss:$0 sm:$0xff] }
0x12af   : > { %v7160_v56 = vpop.f32.mrf.mxu1 }
0x12b0   : > { %v7161_v30 = vadd.f32 %v10317_v43, %v7160_v56  ;;  %v5246_v56 = vld [vmem:[#allocation10 + $0x500] sm:$0xff] }
0x12b1   : > { %v11380_v15 = vpop.f32.mrf.mxu1 }
0x12b2   : > { %v7169_v51 = vadd.f32 %v7161_v30, %v13176_v14  ;;  %v5254_v30 = vld [vmem:[#allocation10 + $0x540] sm:$0xff]  ;;  %v5247_v15 = vld [vmem:[#allocation10 + $0x508] sm:$0xff] }
0x12b3   : > { %v7163_v63 = vpop.f32.mrf.mxu1 }
0x12b4   : > { %v7164_v62 = vadd.f32 %v10317_v43, %v7163_v63  ;;  %7171 = vadd.xlane.f32.xlu0 %v7169_v51  ;;  %v10379_v43 = vcombine.high %v5263_v57, %v5271_v60  ;;  %v10376_v63 = vcombine.low %v5262_v34, %v5270_v22 }
0x12b5   : > { %v11381_v4 = vpop.f32.mrf.mxu1 }
0x12b6   : > { %v7170_v36 = vadd.f32 %v7164_v62, %v13178_v17  ;;  %v10378_v62 = vcombine.low %v5263_v57, %v5271_v60  ;;  %v10361_v4 = vcombine.high %v5246_v56, %v5254_v30  ;;  %7983 = vmatprep.subr.bf16.mxu1 %v10379_v43  ;;  %7941 = vmatpush1.bf16.msra.mxu0 %v10376_v63  ;;  %v5320_v57 = vld [vmem:[#allocation10 + $0x750] sm:$0xff]  ;;  %v5313_v60 = vld [vmem:[#allocation10 + $0x718] sm:$0xff] }
0x12b7   : > { %v5321_v43 = vld [vmem:[#allocation10 + $0x758] sm:$0xff]  ;;  %v5304_v63 = vld [vmem:[#allocation10 + $0x6d0] sm:$0xff] }
0x12b8   : > { %7173 = vadd.xlane.f32.xlu1 %v7170_v36  ;;  %7984 = vmatpush1.bf16.msra.mxu1 %v10378_v62  ;;  %v5297_v62 = vld [vmem:[#allocation10 + $0x698] sm:$0xff] }
0x12b9   : > { %7942 = vmatprep.subr.bf16.mxu0 %v10361_v4  ;;  %v5305_v4 = vld [vmem:[#allocation10 + $0x6d8] sm:$0xff] }
0x133d   : > { %v7172_v14 = vpop.xlane.xlu0 %7171 }
0x133e   : > { %v7175_v49 = vmul.f32 0.0078125, %v7172_v14  ;;  %v10444_v14 = vcombine.low %v13462_v23, %v13464_v32  ;;  %v10414_v32 = vcombine.low %v5297_v62, %v5305_v4 }
0x1340   : > { %v13454_v45 = vsub.f32 %v7169_v51, %v7175_v49  ;;  %v5255_v51 = vld [vmem:[#allocation10 + $0x548] sm:$0xff]  ;;  %v10446_v49 = vcombine.low %v13466_v37, %v13468_v46 }
0x1341   : > { %v7174_v38 = vpop.xlane.xlu1 %7173  ;;  %v10363_v29 = vcombine.high %v5247_v15, %v5255_v51 }
0x1342   : > { %v7176_v8 = vmul.f32 0.0078125, %v7174_v38  ;;  %v7179_v17 = vmul.f32 %v13454_v45, %v13454_v45  ;;  %v10360_v38 = vcombine.low %v5246_v56, %v5254_v30 }
0x1343   : > { %7985 = vmatprep.subr.bf16.mxu1 %v10363_v29 }
0x1344   : > { %v13458_v10 = vsub.f32 %v7170_v36, %v7176_v8  ;;  %7181 = vadd.xlane.f32.xlu0 %v7179_v17  ;;  %v5230_v36 = vld [vmem:[#allocation10 + $0x480] sm:$0xff]  ;;  %v10362_v8 = vcombine.low %v5247_v15, %v5255_v51  ;;  %7943 = vmatpush1.bf16.msra.mxu0 %v10360_v38  ;;  %v10429_v15 = vcombine.high %v5312_v21, %v5320_v57  ;;  %v5288_v38 = vld [vmem:[#allocation10 + $0x650] sm:$0xff] }
0x1345   : > { %v10345_v17 = vcombine.high %v5230_v36, %v5238_v52  ;;  %v10344_v58 = vcombine.low %v5230_v36, %v5238_v52  ;;  %v10431_v51 = vcombine.high %v5313_v60, %v5321_v43  ;;  %v10428_v36 = vcombine.low %v5312_v21, %v5320_v57 }
0x1346   : > { %v7180_v18 = vmul.f32 %v13458_v10, %v13458_v10  ;;  %7986 = vmatpush1.bf16.msra.mxu1 %v10362_v8  ;;  %v10430_v52 = vcombine.low %v5313_v60, %v5321_v43  ;;  %v5281_v8 = vld [vmem:[#allocation10 + $0x618] sm:$0xff]  ;;  %v5330_v43 = vld [vmem:[#allocation10 + $0x7a0] sm:$0xff] }
0x1347   : > { %7944 = vmatprep.subr.bf16.mxu0 %v10345_v17  ;;  %v5289_v17 = vld [vmem:[#allocation10 + $0x658] sm:$0xff] }
0x1348   : > { %7183 = vadd.xlane.f32.xlu0 %v7180_v18  ;;  %v10347_v18 = vcombine.high %v5231_v9, %v5239_v48  ;;  %7945 = vmatpush1.bf16.msra.mxu0 %v10344_v58  ;;  %v10415_v9 = vcombine.high %v5297_v62, %v5305_v4  ;;  %v5280_v48 = vld [vmem:[#allocation10 + $0x610] sm:$0xff]  ;;  %v10399_v46 = vcombine.high %v5281_v8, %v5289_v17 }
0x1349   : > { %7946 = vmatprep.subr.bf16.mxu0 %v10329_v47  ;;  %v10397_v37 = vcombine.high %v5280_v48, %v5288_v38  ;;  %v10396_v1 = vcombine.low %v5280_v48, %v5288_v38  ;;  %v10398_v53 = vcombine.low %v5281_v8, %v5289_v17  ;;  %v5256_v47 = vld [vmem:[#allocation10 + $0x550] sm:$0xff]  ;;  %v5323_v48 = vld [vmem:[#allocation10 + $0x768] sm:$0xff] }
0x134a   : > { %7987 = vmatprep.subr.bf16.mxu1 %v10347_v18  ;;  %v5265_v18 = vld [vmem:[#allocation10 + $0x598] sm:$0xff] }
0x134b   : > { %7988 = vmatpush1.bf16.msra.mxu1 %v10346_v13  ;;  %v10383_v58 = vcombine.high %v5265_v18, %v5273_v40  ;;  %v5248_v13 = vld [vmem:[#allocation10 + $0x510] sm:$0xff] }
0x134c   : > { %7989 = vmatprep.subr.bf16.mxu1 %v10331_v0  ;;  %7947 = vmatpush1.bf16.msra.mxu0 %v10328_v59  ;;  %v5249_v0 = vld [vmem:[#allocation10 + $0x518] sm:$0xff] }
0x134d   : > { %8018 = vmatprep.subr.bf16.mxu0 %v10445_v5  ;;  %v5257_v59 = vld [vmem:[#allocation10 + $0x558] sm:$0xff]  ;;  %v10382_v5 = vcombine.low %v5265_v18, %v5273_v40 }
0x134f   : > { %7990 = vmatpush1.bf16.msra.mxu1 %v10330_v20 }
0x1350   : > { %8061 = vmatprep.subr.bf16.mxu1 %v10447_v54  ;;  %v10365_v54 = vcombine.high %v5248_v13, %v5256_v47 }
0x13cd   : > { %v7182_v44 = vpop.xlane.xlu0 %7181 }
0x13ce   : > { %v7185_v7 = vmul.f32 0.0078125, %v7182_v44  ;;  %v10367_v44 = vcombine.high %v5249_v0, %v5257_v59 }
0x13d0   : > { %v7187_v27 = vadd.f32 1e-05, %v7185_v7  ;;  %v5232_v7 = vld [vmem:[#allocation10 + $0x490] sm:$0xff] }
0x13d1   : > { %v7184_v2 = vpop.xlane.xlu0 %7183 }
0x13d2   : > { %12134 = vrsqrt.f32 %v7187_v27  ;;  %v7186_v3 = vmul.f32 0.0078125, %v7184_v2  ;;  %v5240_v27 = vld [vmem:[#allocation10 + $0x4d0] sm:$0xff]  ;;  %v5233_v2 = vld [vmem:[#allocation10 + $0x498] sm:$0xff] }
0x13d4   : > { %v7188_v33 = vadd.f32 1e-05, %v7186_v3  ;;  %v5241_v3 = vld [vmem:[#allocation10 + $0x4d8] sm:$0xff] }
0x13d5   : > { %v10350_v21 = vcombine.low %v5233_v2, %v5241_v3 }
0x13d6   : > { %12136 = vrsqrt.f32 %v7188_v33  ;;  %v10364_v33 = vcombine.low %v5248_v13, %v5256_v47  ;;  %v5291_v13 = vld [vmem:[#allocation10 + $0x668] sm:$0xff] }
0x13df   : > { %v12135_v35 = vpop.eup %12134 }
0x13e0   : > { %v7191_v50 = vmul.f32 %v12135_v35, %v13454_v45  ;;  %v10366_v35 = vcombine.low %v5249_v0, %v5257_v59 }
0x13e2   : > { %v7199_v34 = vmul.f32 %v10326_v31, %v7191_v50  ;;  %v10349_v50 = vcombine.high %v5232_v7, %v5240_v27 }
0x13e3   : > { %v12137_v19 = vpop.eup %12136 }
0x13e4   : > { %v7192_v22 = vmul.f32 %v12137_v19, %v13458_v10  ;;  %v13486_v56 = vadd.f32 %v10327_v16, %v7199_v34  ;;  %v5296_v10 = vld [vmem:[#allocation10 + $0x690] sm:$0xff] }
0x13e5   : > { %v10413_v29 = vcombine.high %v5296_v10, %v5304_v63  ;;  %v10412_v23 = vcombine.low %v5296_v10, %v5304_v63  ;;  %v5216_v19 = vld [vmem:[#allocation10 + $0x410] sm:$0xff]  ;;  %v5339_v10 = vld [vmem:[#allocation10 + $0x7e8] sm:$0xff] }
0x13e6   : > { %v7200_v12 = vmul.f32 %v10326_v31, %v7192_v22  ;;  %v10351_v31 = vcombine.high %v5233_v2, %v5241_v3  ;;  %v5224_v34 = vld [vmem:[#allocation10 + $0x450] sm:$0xff]  ;;  %v5217_v22 = vld [vmem:[#allocation10 + $0x418] sm:$0xff] }
0x13e7   : > { %v10333_v57 = vcombine.high %v5216_v19, %v5224_v34  ;;  %v10332_v63 = vcombine.low %v5216_v19, %v5224_v34  ;;  %v5259_v19 = vld [vmem:[#allocation10 + $0x568] sm:$0xff] }
0x13e8   : > { %v13488_v45 = vadd.f32 %v10327_v16, %v7200_v12  ;;  %v5225_v16 = vld [vmem:[#allocation10 + $0x458] sm:$0xff]  ;;  %v10348_v12 = vcombine.low %v5232_v7, %v5240_v27  ;;  %v5275_v7 = vld [vmem:[#allocation10 + $0x5e8] sm:$0xff] }
0x13e9   : > { %v10335_v60 = vcombine.high %v5217_v22, %v5225_v16  ;;  %v10334_v62 = vcombine.low %v5217_v22, %v5225_v16 }
0x13ea   : > { %v13492_v30 = vpack.c.bf16 %v13488_v45, %v13486_v56 }
0x13ec   : > { %7965 = vmatmul.mubr.bf16.vlgmr.msra.gmra.mxu0 %v13492_v30  ;;  %8008 = vmatmul.mubr.bf16.vlgmr.msra.gmra.mxu1 %v13492_v30 }
0x13ed   : > { %8019 = vmatpush1.bf16.msra.mxu0 %v10444_v14  ;;  %8062 = vmatpush1.bf16.msra.mxu1 %v10446_v49  ;;  %v5264_v14 = vld [vmem:[#allocation10 + $0x590] sm:$0xff] }
0x13ee   : > { %8020 = vmatprep.subr.bf16.mxu0 %v10429_v15  ;;  %8063 = vmatprep.subr.bf16.mxu1 %v10431_v51  ;;  %v5272_v49 = vld [vmem:[#allocation10 + $0x5d0] sm:$0xff]  ;;  %v5338_v15 = vld [vmem:[#allocation10 + $0x7e0] sm:$0xff]  ;;  %v5331_v51 = vld [vmem:[#allocation10 + $0x7a8] sm:$0xff] }
0x13ef   : > { %8050 = vmatprep.mubr.bf16.mxu0 %v12417_v28  ;;  %8093 = vmatprep.mubr.bf16.mxu1 %v12417_v28  ;;  %v10381_v55 = vcombine.high %v5264_v14, %v5272_v49  ;;  %v10380_v20 = vcombine.low %v5264_v14, %v5272_v49  ;;  %v10449_v4 = vcombine.high %v5330_v43, %v5338_v15  ;;  %v5307_v14 = vld [vmem:[#allocation10 + $0x6e8] sm:$0xff] }
0x13f0   : > { %v10448_v38 = vcombine.low %v5330_v43, %v5338_v15  ;;  %v10450_v8 = vcombine.low %v5331_v51, %v5339_v10  ;;  %v5243_v43 = vld [vmem:[#allocation10 + $0x4e8] sm:$0xff] }
0x13f1   : > { %8021 = vmatpush1.bf16.msra.mxu0 %v10428_v36  ;;  %8064 = vmatpush1.bf16.msra.mxu1 %v10430_v52  ;;  %v10451_v36 = vcombine.high %v5331_v51, %v5339_v10  ;;  %v5314_v52 = vld [vmem:[#allocation10 + $0x720] sm:$0xff] }
0x13f2   : > { %8022 = vmatprep.subr.bf16.mxu0 %v10413_v29  ;;  %8065 = vmatprep.subr.bf16.mxu1 %v10415_v9  ;;  %v5322_v29 = vld [vmem:[#allocation10 + $0x760] sm:$0xff]  ;;  %v5315_v9 = vld [vmem:[#allocation10 + $0x728] sm:$0xff] }
0x13f3   : > { %v10433_v17 = vcombine.high %v5314_v52, %v5322_v29  ;;  %v10432_v49 = vcombine.low %v5314_v52, %v5322_v29  ;;  %v10434_v18 = vcombine.low %v5315_v9, %v5323_v48  ;;  %v5227_v52 = vld [vmem:[#allocation10 + $0x468] sm:$0xff] }
0x13f5   : > { %8023 = vmatpush1.bf16.msra.mxu0 %v10412_v23  ;;  %8066 = vmatpush1.bf16.msra.mxu1 %v10414_v32  ;;  %v10435_v23 = vcombine.high %v5315_v9, %v5323_v48  ;;  %v5298_v32 = vld [vmem:[#allocation10 + $0x6a0] sm:$0xff] }
0x13f6   : > { %8024 = vmatprep.subr.bf16.mxu0 %v10397_v37  ;;  %8067 = vmatprep.subr.bf16.mxu1 %v10399_v46  ;;  %v5306_v37 = vld [vmem:[#allocation10 + $0x6e0] sm:$0xff]  ;;  %v5299_v46 = vld [vmem:[#allocation10 + $0x6a8] sm:$0xff] }
0x13f7   : > { %v10417_v40 = vcombine.high %v5298_v32, %v5306_v37  ;;  %v10416_v47 = vcombine.low %v5298_v32, %v5306_v37  ;;  %v10418_v0 = vcombine.low %v5299_v46, %v5307_v14  ;;  %v5341_v32 = vld [vmem:[#allocation10 + $0x7f8] sm:$0xff] }
0x13f9   : > { %8025 = vmatpush1.bf16.msra.mxu0 %v10396_v1  ;;  %8068 = vmatpush1.bf16.msra.mxu1 %v10398_v53  ;;  %v10419_v1 = vcombine.high %v5299_v46, %v5307_v14  ;;  %v5282_v53 = vld [vmem:[#allocation10 + $0x620] sm:$0xff] }
0x13fa   : > { %8026 = vmatprep.subr.bf16.mxu0 %v10381_v55  ;;  %8069 = vmatprep.subr.bf16.mxu1 %v10383_v58  ;;  %v5290_v55 = vld [vmem:[#allocation10 + $0x660] sm:$0xff]  ;;  %v5283_v58 = vld [vmem:[#allocation10 + $0x628] sm:$0xff] }
0x13fb   : > { %v10401_v59 = vcombine.high %v5282_v53, %v5290_v55  ;;  %v10400_v27 = vcombine.low %v5282_v53, %v5290_v55  ;;  %v10402_v2 = vcombine.low %v5283_v58, %v5291_v13  ;;  %v5325_v53 = vld [vmem:[#allocation10 + $0x778] sm:$0xff] }
0x13fd   : > { %8027 = vmatpush1.bf16.msra.mxu0 %v10380_v20  ;;  %8070 = vmatpush1.bf16.msra.mxu1 %v10382_v5  ;;  %v10403_v20 = vcombine.high %v5283_v58, %v5291_v13  ;;  %v5266_v5 = vld [vmem:[#allocation10 + $0x5a0] sm:$0xff] }
0x13fe   : > { %8028 = vmatprep.subr.bf16.mxu0 %v10365_v54  ;;  %8071 = vmatprep.subr.bf16.mxu1 %v10367_v44  ;;  %v5274_v54 = vld [vmem:[#allocation10 + $0x5e0] sm:$0xff]  ;;  %v5267_v44 = vld [vmem:[#allocation10 + $0x5a8] sm:$0xff] }
0x13ff   : > { %v10385_v3 = vcombine.high %v5266_v5, %v5274_v54  ;;  %v10384_v34 = vcombine.low %v5266_v5, %v5274_v54  ;;  %v10386_v22 = vcombine.low %v5267_v44, %v5275_v7  ;;  %v5309_v5 = vld [vmem:[#allocation10 + $0x6f8] sm:$0xff] }
0x1401   : > { %8029 = vmatpush1.bf16.msra.mxu0 %v10364_v33  ;;  %8072 = vmatpush1.bf16.msra.mxu1 %v10366_v35  ;;  %v10387_v33 = vcombine.high %v5267_v44, %v5275_v7  ;;  %v5250_v35 = vld [vmem:[#allocation10 + $0x520] sm:$0xff] }
0x1402   : > { %8030 = vmatprep.subr.bf16.mxu0 %v10349_v50  ;;  %8073 = vmatprep.subr.bf16.mxu1 %v10351_v31  ;;  %v5258_v50 = vld [vmem:[#allocation10 + $0x560] sm:$0xff]  ;;  %v5251_v31 = vld [vmem:[#allocation10 + $0x528] sm:$0xff] }
0x1403   : > { %v10369_v16 = vcombine.high %v5250_v35, %v5258_v50  ;;  %v10368_v15 = vcombine.low %v5250_v35, %v5258_v50  ;;  %v10370_v51 = vcombine.low %v5251_v31, %v5259_v19  ;;  %v5293_v35 = vld [vmem:[#allocation10 + $0x678] sm:$0xff] }
0x1405   : > { %8031 = vmatpush1.bf16.msra.mxu0 %v10348_v12  ;;  %8074 = vmatpush1.bf16.msra.mxu1 %v10350_v21  ;;  %v10371_v12 = vcombine.high %v5251_v31, %v5259_v19  ;;  %v5234_v21 = vld [vmem:[#allocation10 + $0x4a0] sm:$0xff] }
0x1406   : > { %8032 = vmatprep.subr.bf16.mxu0 %v10333_v57  ;;  %8075 = vmatprep.subr.bf16.mxu1 %v10335_v60  ;;  %v5242_v57 = vld [vmem:[#allocation10 + $0x4e0] sm:$0xff]  ;;  %v5235_v60 = vld [vmem:[#allocation10 + $0x4a8] sm:$0xff] }
0x1407   : > { %v10353_v10 = vcombine.high %v5234_v21, %v5242_v57  ;;  %v10352_v29 = vcombine.low %v5234_v21, %v5242_v57  ;;  %v10354_v9 = vcombine.low %v5235_v60, %v5243_v43  ;;  %v5277_v21 = vld [vmem:[#allocation10 + $0x5f8] sm:$0xff] }
0x1409   : > { %8033 = vmatpush1.bf16.msra.mxu0 %v10332_v63  ;;  %8076 = vmatpush1.bf16.msra.mxu1 %v10334_v62  ;;  %v10355_v63 = vcombine.high %v5235_v60, %v5243_v43  ;;  %v5218_v62 = vld [vmem:[#allocation10 + $0x420] sm:$0xff] }
0x140a   : > { %8104 = vmatprep.subr.bf16.mxu0 %v10449_v4  ;;  %8147 = vmatprep.subr.bf16.mxu1 %v10451_v36  ;;  %v5226_v4 = vld [vmem:[#allocation10 + $0x460] sm:$0xff]  ;;  %v5219_v36 = vld [vmem:[#allocation10 + $0x428] sm:$0xff] }
0x140b   : > { %v10337_v48 = vcombine.high %v5218_v62, %v5226_v4  ;;  %v10336_v37 = vcombine.low %v5218_v62, %v5226_v4  ;;  %v10338_v46 = vcombine.low %v5219_v36, %v5227_v52 }
0x140c   : > { %8051 = vmatmul.mubr.bf16.vlgmr.msra.gmra.mxu0 %v13492_v30  ;;  %8094 = vmatmul.mubr.bf16.vlgmr.msra.gmra.mxu1 %v13492_v30 }
0x140d   : > { %8105 = vmatpush1.bf16.msra.mxu0 %v10448_v38  ;;  %8148 = vmatpush1.bf16.msra.mxu1 %v10450_v8  ;;  %v10339_v38 = vcombine.high %v5219_v36, %v5227_v52  ;;  %v5332_v8 = vld [vmem:[#allocation10 + $0x7b0] sm:$0xff] }
0x140e   : > { %8106 = vmatprep.subr.bf16.mxu0 %v10433_v17  ;;  %8149 = vmatprep.subr.bf16.mxu1 %v10435_v23  ;;  %v5340_v17 = vld [vmem:[#allocation10 + $0x7f0] sm:$0xff]  ;;  %v5333_v23 = vld [vmem:[#allocation10 + $0x7b8] sm:$0xff] }
0x140f   : > { %8136 = vmatprep.mubr.bf16.mxu0 %v12417_v28  ;;  %8179 = vmatprep.mubr.bf16.mxu1 %v12417_v28  ;;  %v10453_v14 = vcombine.high %v5332_v8, %v5340_v17  ;;  %v10452_v55 = vcombine.low %v5332_v8, %v5340_v17  ;;  %v10454_v58 = vcombine.low %v5333_v23, %v5341_v32 }
0x1411   : > { %8107 = vmatpush1.bf16.msra.mxu0 %v10432_v49  ;;  %8150 = vmatpush1.bf16.msra.mxu1 %v10434_v18  ;;  %v10455_v49 = vcombine.high %v5333_v23, %v5341_v32  ;;  %v5316_v18 = vld [vmem:[#allocation10 + $0x730] sm:$0xff] }
0x1412   : > { %8108 = vmatprep.subr.bf16.mxu0 %v10417_v40  ;;  %8151 = vmatprep.subr.bf16.mxu1 %v10419_v1  ;;  %v5324_v40 = vld [vmem:[#allocation10 + $0x770] sm:$0xff]  ;;  %v5317_v1 = vld [vmem:[#allocation10 + $0x738] sm:$0xff] }
0x1413   : > { %v10437_v13 = vcombine.high %v5316_v18, %v5324_v40  ;;  %v10436_v54 = vcombine.low %v5316_v18, %v5324_v40  ;;  %v10438_v44 = vcombine.low %v5317_v1, %v5325_v53 }
0x1415   : > { %8109 = vmatpush1.bf16.msra.mxu0 %v10416_v47  ;;  %8152 = vmatpush1.bf16.msra.mxu1 %v10418_v0  ;;  %v10439_v47 = vcombine.high %v5317_v1, %v5325_v53  ;;  %v5300_v0 = vld [vmem:[#allocation10 + $0x6b0] sm:$0xff] }
0x1416   : > { %8110 = vmatprep.subr.bf16.mxu0 %v10401_v59  ;;  %8153 = vmatprep.subr.bf16.mxu1 %v10403_v20  ;;  %v5308_v59 = vld [vmem:[#allocation10 + $0x6f0] sm:$0xff]  ;;  %v5301_v20 = vld [vmem:[#allocation10 + $0x6b8] sm:$0xff] }
0x1417   : > { %v10421_v7 = vcombine.high %v5300_v0, %v5308_v59  ;;  %v10420_v50 = vcombine.low %v5300_v0, %v5308_v59  ;;  %v10422_v31 = vcombine.low %v5301_v20, %v5309_v5  ;;  %v11872_v0 = vld [vmem:[#allocation11 + $0x438] sm:$0xff]  }
0x1418   : > { %v11873_v59 = vld [vmem:[#allocation11 + $0x4b8] sm:$0xff]  }
0x1419   : > { %8111 = vmatpush1.bf16.msra.mxu0 %v10400_v27  ;;  %8154 = vmatpush1.bf16.msra.mxu1 %v10402_v2  ;;  %v10423_v27 = vcombine.high %v5301_v20, %v5309_v5  ;;  %v5284_v2 = vld [vmem:[#allocation10 + $0x630] sm:$0xff] }
0x141a   : > { %8112 = vmatprep.subr.bf16.mxu0 %v10385_v3  ;;  %8155 = vmatprep.subr.bf16.mxu1 %v10387_v33  ;;  %v5292_v3 = vld [vmem:[#allocation10 + $0x670] sm:$0xff]  ;;  %v5285_v33 = vld [vmem:[#allocation10 + $0x638] sm:$0xff] }
0x141b   : > { %v10405_v19 = vcombine.high %v5284_v2, %v5292_v3  ;;  %v10404_v57 = vcombine.low %v5284_v2, %v5292_v3  ;;  %v10406_v60 = vcombine.low %v5285_v33, %v5293_v35  ;;  %v11874_v20 = vld [vmem:[#allocation11 + $0x470] sm:$0xff]   ;;  %v11880_v2 = vld [vmem:[#allocation11 + $0x428] sm:$0xff]  }
0x141c   : > { %v11875_v5 = vld [vmem:[#allocation11 + $0x4f0] sm:$0xff]   ;;  %v11881_v3 = vld [vmem:[#allocation11 + $0x4a8] sm:$0xff]  }
0x141d   : > { %8113 = vmatpush1.bf16.msra.mxu0 %v10384_v34  ;;  %8156 = vmatpush1.bf16.msra.mxu1 %v10386_v22  ;;  %v10407_v34 = vcombine.high %v5285_v33, %v5293_v35  ;;  %v5268_v22 = vld [vmem:[#allocation10 + $0x5b0] sm:$0xff]  ;;  %v11882_v33 = vld [vmem:[#allocation11 + $0x460] sm:$0xff]  }
0x141e   : > { %8114 = vmatprep.subr.bf16.mxu0 %v10369_v16  ;;  %8157 = vmatprep.subr.bf16.mxu1 %v10371_v12  ;;  %v5276_v16 = vld [vmem:[#allocation10 + $0x5f0] sm:$0xff]  ;;  %v5269_v12 = vld [vmem:[#allocation10 + $0x5b8] sm:$0xff]  ;;  %v11883_v35 = vld [vmem:[#allocation11 + $0x4e0] sm:$0xff]  }
0x141f   : > { %v10389_v43 = vcombine.high %v5268_v22, %v5276_v16  ;;  %v10388_v62 = vcombine.low %v5268_v22, %v5276_v16  ;;  %v10390_v4 = vcombine.low %v5269_v12, %v5277_v21  ;;  %v11889_v22 = vld [vmem:[#allocation11 + $0x498] sm:$0xff]   ;;  %v11890_v16 = vld [vmem:[#allocation11 + $0x450] sm:$0xff]  }
0x1421   : > { %8115 = vmatpush1.bf16.msra.mxu0 %v10368_v15  ;;  %8158 = vmatpush1.bf16.msra.mxu1 %v10370_v51  ;;  %v5252_v15 = vld [vmem:[#allocation10 + $0x530] sm:$0xff] }
0x1422   : > { %8116 = vmatprep.subr.bf16.mxu0 %v10353_v10  ;;  %8159 = vmatprep.subr.bf16.mxu1 %v10355_v63  ;;  %v5260_v51 = vld [vmem:[#allocation10 + $0x570] sm:$0xff]  ;;  %v5253_v10 = vld [vmem:[#allocation10 + $0x538] sm:$0xff] }
0x1423   : > { %v5261_v63 = vld [vmem:[#allocation10 + $0x578] sm:$0xff]  ;;  %v10373_v36 = vcombine.high %v5252_v15, %v5260_v51  ;;  %v10372_v8 = vcombine.low %v5252_v15, %v5260_v51  ;;  %v11897_v15 = vld [vmem:[#allocation11 + $0x488] sm:$0xff]   ;;  %v11898_v51 = vld [vmem:[#allocation11 + $0x440] sm:$0xff]  }
0x1424   : > { %v10375_v52 = vcombine.high %v5253_v10, %v5261_v63  ;;  %v10374_v17 = vcombine.low %v5253_v10, %v5261_v63  ;;  %v11899_v10 = vld [vmem:[#allocation11 + $0x4c0] sm:$0xff]  }
0x1425   : > { %8117 = vmatpush1.bf16.msra.mxu0 %v10352_v29  ;;  %8160 = vmatpush1.bf16.msra.mxu1 %v10354_v9  ;;  %v5236_v29 = vld [vmem:[#allocation10 + $0x4b0] sm:$0xff]  ;;  %v11900_v63 = vld [vmem:[#allocation11 + $0x400] sm:$0xff]  }
0x1426   : > { %8118 = vmatprep.subr.bf16.mxu0 %v10337_v48  ;;  %8161 = vmatprep.subr.bf16.mxu1 %v10339_v38  ;;  %v5244_v9 = vld [vmem:[#allocation10 + $0x4f0] sm:$0xff]  ;;  %v5237_v48 = vld [vmem:[#allocation10 + $0x4b8] sm:$0xff] }
0x1427   : > { %v5245_v38 = vld [vmem:[#allocation10 + $0x4f8] sm:$0xff]  ;;  %v10357_v23 = vcombine.high %v5236_v29, %v5244_v9  ;;  %v10356_v18 = vcombine.low %v5236_v29, %v5244_v9 }
0x1428   : > { %v10359_v32 = vcombine.high %v5237_v48, %v5245_v38  ;;  %v10358_v40 = vcombine.low %v5237_v48, %v5245_v38 }
0x1429   : > { %8119 = vmatpush1.bf16.msra.mxu0 %v10336_v37  ;;  %8162 = vmatpush1.bf16.msra.mxu1 %v10338_v46  ;;  %v5220_v37 = vld [vmem:[#allocation10 + $0x430] sm:$0xff] }
0x142a   : > { %8190 = vmatprep.subr.bf16.mxu0 %v10453_v14  ;;  %8233 = vmatprep.subr.bf16.mxu1 %v10455_v49  ;;  %v5228_v46 = vld [vmem:[#allocation10 + $0x470] sm:$0xff]  ;;  %v5221_v14 = vld [vmem:[#allocation10 + $0x438] sm:$0xff] }
0x142b   : > { %v5229_v49 = vld [vmem:[#allocation10 + $0x478] sm:$0xff]  ;;  %v10341_v1 = vcombine.high %v5220_v37, %v5228_v46 }
0x142c   : > { %8137 = vmatmul.mubr.bf16.vlgmr.msra.gmra.mxu0 %v13492_v30  ;;  %8180 = vmatmul.mubr.bf16.vlgmr.msra.gmra.mxu1 %v13492_v30  ;;  %v10343_v53 = vcombine.high %v5221_v14, %v5229_v49 }
0x142d   : > { %8191 = vmatpush1.bf16.msra.mxu0 %v10452_v55  ;;  %8234 = vmatpush1.bf16.msra.mxu1 %v10454_v58  ;;  %v10340_v55 = vcombine.low %v5220_v37, %v5228_v46  ;;  %v10342_v58 = vcombine.low %v5221_v14, %v5229_v49 }
0x142e   : > { %8192 = vmatprep.subr.bf16.mxu0 %v10437_v13  ;;  %8235 = vmatprep.subr.bf16.mxu1 %v10439_v47  ;;  %v11870_v13 = vld [vmem:[#allocation11 + $0x478] sm:$0xff]  }
0x142f   : > { %8222 = vmatprep.mubr.bf16.mxu0 %v12417_v28  ;;  %8265 = vmatprep.mubr.bf16.mxu1 %v12417_v28  ;;  %v10391_v28 = vcombine.high %v5269_v12, %v5277_v21  ;;  %v11871_v47 = vld [vmem:[#allocation11 + $0x4f8] sm:$0xff]   ;;  %v11891_v12 = vld [vmem:[#allocation11 + $0x4d0] sm:$0xff]  }
0x1430   : > { %v11892_v21 = vld [vmem:[#allocation11 + $0x410] sm:$0xff]  }
0x1431   : > { %8193 = vmatpush1.bf16.msra.mxu0 %v10436_v54  ;;  %8236 = vmatpush1.bf16.msra.mxu1 %v10438_v44  ;;  %v11876_v54 = vld [vmem:[#allocation11 + $0x430] sm:$0xff]  }
0x1432   : > { %8194 = vmatprep.subr.bf16.mxu0 %v10421_v7  ;;  %8237 = vmatprep.subr.bf16.mxu1 %v10423_v27  ;;  %v11877_v44 = vld [vmem:[#allocation11 + $0x4b0] sm:$0xff]   ;;  %v11878_v7 = vld [vmem:[#allocation11 + $0x468] sm:$0xff]  }
0x1433   : > { %v11879_v27 = vld [vmem:[#allocation11 + $0x4e8] sm:$0xff]  }
0x1435   : > { %8195 = vmatpush1.bf16.msra.mxu0 %v10420_v50  ;;  %8238 = vmatpush1.bf16.msra.mxu1 %v10422_v31  ;;  %v11884_v50 = vld [vmem:[#allocation11 + $0x420] sm:$0xff]   ;;  %v11886_v31 = vld [vmem:[#allocation11 + $0x458] sm:$0xff]  }
0x1436   : > { %8196 = vmatprep.subr.bf16.mxu0 %v10405_v19  ;;  %8239 = vmatprep.subr.bf16.mxu1 %v10407_v34  ;;  %v11887_v19 = vld [vmem:[#allocation11 + $0x4d8] sm:$0xff]  }
0x1437   : > { %v11888_v34 = vld [vmem:[#allocation11 + $0x418] sm:$0xff]  }
0x1439   : > { %8197 = vmatpush1.bf16.msra.mxu0 %v10404_v57  ;;  %8240 = vmatpush1.bf16.msra.mxu1 %v10406_v60  ;;  %v11893_v57 = vld [vmem:[#allocation11 + $0x490] sm:$0xff]   ;;  %v11894_v60 = vld [vmem:[#allocation11 + $0x448] sm:$0xff]  }
0x143a   : > { %8198 = vmatprep.subr.bf16.mxu0 %v10389_v43  ;;  %8241 = vmatprep.subr.bf16.mxu1 %v10391_v28  ;;  %v11895_v43 = vld [vmem:[#allocation11 + $0x4c8] sm:$0xff]  }
0x143b   : > { %v11896_v28 = vld [vmem:[#allocation11 + $0x408] sm:$0xff]  }
0x143d   : > { %8199 = vmatpush1.bf16.msra.mxu0 %v10388_v62  ;;  %8242 = vmatpush1.bf16.msra.mxu1 %v10390_v4  ;;  %v11901_v62 = vld [vmem:[#allocation11 + $0x480] sm:$0xff]   ;;  %v11902_v4 = vld [vmem:[#allocation11 + $0x578] sm:$0xff]  }
0x143e   : > { %8200 = vmatprep.subr.bf16.mxu0 %v10373_v36  ;;  %8243 = vmatprep.subr.bf16.mxu1 %v10375_v52  ;;  %v11903_v36 = vld [vmem:[#allocation11 + $0x5f8] sm:$0xff]   ;;  %v13517_v52 = vld [vmem:[%s13688_s8 + $0x10] sm:$0xff] }
0x143f   : > { %v7219_v48 = vrot.slane %v13517_v52, %v12735_v42  ;;  %v7227_v38 = vrot.slane %v13517_v52, %v13086_v11 }
0x1441   : > { %8201 = vmatpush1.bf16.msra.mxu0 %v10372_v8  ;;  %8244 = vmatpush1.bf16.msra.mxu1 %v10374_v17  ;;  %v7215_v8 = vrot.slane %v13517_v52, %v12732_v41  ;;  %v7223_v17 = vrot.slane %v13517_v52, %v12726_v39 }
0x1442   : > { %8202 = vmatprep.subr.bf16.mxu0 %v10357_v23  ;;  %8245 = vmatprep.subr.bf16.mxu1 %v10359_v32 }
0x1445   : > { %8203 = vmatpush1.bf16.msra.mxu0 %v10356_v18  ;;  %8246 = vmatpush1.bf16.msra.mxu1 %v10358_v40 }
0x1446   : > { %8204 = vmatprep.subr.bf16.mxu0 %v10341_v1  ;;  %8247 = vmatprep.subr.bf16.mxu1 %v10343_v53 }
0x1449   : > { %8205 = vmatpush1.bf16.msra.mxu0 %v10340_v55  ;;  %8248 = vmatpush1.bf16.msra.mxu1 %v10342_v58 }
0x144a   : > { %10878 = vmatprep.subr.bf16.mxu0 %v11870_v13  ;;  %10900 = vmatprep.subr.bf16.mxu1 %v11871_v47 }
0x144c   : > { %8223 = vmatmul.mubr.bf16.vlgmr.msra.gmra.mxu0 %v13492_v30  ;;  %8266 = vmatmul.mubr.bf16.vlgmr.msra.gmra.mxu1 %v13492_v30  ;;  %v11885_v30 = vld [vmem:[#allocation11 + $0x4a0] sm:$0xff]  }
0x144d   : > { %10879 = vmatpush3.bf16.msra.mxu0 %v11872_v0  ;;  %10901 = vmatpush3.bf16.msra.mxu1 %v11873_v59 }
0x144e   : > { %10880 = vmatprep.subr.bf16.mxu0 %v11874_v20  ;;  %10902 = vmatprep.subr.bf16.mxu1 %v11875_v5 }
0x1451   : > { %10881 = vmatpush3.bf16.msra.mxu0 %v11876_v54  ;;  %10903 = vmatpush3.bf16.msra.mxu1 %v11877_v44 }
0x1452   : > { %10882 = vmatprep.subr.bf16.mxu0 %v11878_v7  ;;  %10904 = vmatprep.subr.bf16.mxu1 %v11879_v27 }
0x1455   : > { %10883 = vmatpush3.bf16.msra.mxu0 %v11880_v2  ;;  %10905 = vmatpush3.bf16.msra.mxu1 %v11881_v3 }
0x1456   : > { %10884 = vmatprep.subr.bf16.mxu0 %v11882_v33  ;;  %10906 = vmatprep.subr.bf16.mxu1 %v11883_v35  ;;  %v11904_v33 = vld [vmem:[#allocation11 + $0x538] sm:$0xff]  }
0x1457   : > { %v11905_v35 = vld [vmem:[#allocation11 + $0x5b8] sm:$0xff]  }
0x1459   : > { %10885 = vmatpush3.bf16.msra.mxu0 %v11884_v50  ;;  %10907 = vmatpush3.bf16.msra.mxu1 %v11885_v30 }
0x145a   : > { %10886 = vmatprep.subr.bf16.mxu0 %v11886_v31  ;;  %10908 = vmatprep.subr.bf16.mxu1 %v11887_v19  ;;  %v11906_v31 = vld [vmem:[#allocation11 + $0x570] sm:$0xff]  }
0x145b   : > { %v11907_v19 = vld [vmem:[#allocation11 + $0x5f0] sm:$0xff]  }
0x145d   : > { %10887 = vmatpush3.bf16.msra.mxu0 %v11888_v34  ;;  %10909 = vmatpush3.bf16.msra.mxu1 %v11889_v22  ;;  %v11908_v34 = vld [vmem:[#allocation11 + $0x530] sm:$0xff]  }
0x145e   : > { %10888 = vmatprep.subr.bf16.mxu0 %v11890_v16  ;;  %10910 = vmatprep.subr.bf16.mxu1 %v11891_v12  ;;  %v11909_v22 = vld [vmem:[#allocation11 + $0x5b0] sm:$0xff]   ;;  %v11910_v16 = vld [vmem:[#allocation11 + $0x568] sm:$0xff]  }
0x145f   : > { %v11911_v12 = vld [vmem:[#allocation11 + $0x5e8] sm:$0xff]  }
0x1461   : > { %10889 = vmatpush3.bf16.msra.mxu0 %v11892_v21  ;;  %10911 = vmatpush3.bf16.msra.mxu1 %v11893_v57  ;;  %v11912_v21 = vld [vmem:[#allocation11 + $0x528] sm:$0xff]  }
0x1462   : > { %10890 = vmatprep.subr.bf16.mxu0 %v11894_v60  ;;  %10912 = vmatprep.subr.bf16.mxu1 %v11895_v43  ;;  %v11913_v57 = vld [vmem:[#allocation11 + $0x5a8] sm:$0xff]   ;;  %v11914_v60 = vld [vmem:[#allocation11 + $0x560] sm:$0xff]  }
0x1463   : > { %v11915_v43 = vld [vmem:[#allocation11 + $0x5e0] sm:$0xff]  }
0x1465   : > { %10891 = vmatpush3.bf16.msra.mxu0 %v11896_v28  ;;  %10913 = vmatpush3.bf16.msra.mxu1 %v11897_v15  ;;  %v11916_v28 = vld [vmem:[#allocation11 + $0x520] sm:$0xff]  }
0x1466   : > { %10892 = vmatprep.subr.bf16.mxu0 %v11898_v51  ;;  %10914 = vmatprep.subr.bf16.mxu1 %v11899_v10  ;;  %v11917_v15 = vld [vmem:[#allocation11 + $0x5a0] sm:$0xff]   ;;  %v11918_v51 = vld [vmem:[#allocation11 + $0x558] sm:$0xff]  }
0x1467   : > { %v11919_v10 = vld [vmem:[#allocation11 + $0x5d8] sm:$0xff]  }
0x1469   : > { %10893 = vmatpush3.bf16.msra.mxu0 %v11900_v63  ;;  %10915 = vmatpush3.bf16.msra.mxu1 %v11901_v62  ;;  %v11920_v63 = vld [vmem:[#allocation11 + $0x518] sm:$0xff]  }
0x146a   : > { %10922 = vmatprep.subr.bf16.mxu0 %v11902_v4  ;;  %10944 = vmatprep.subr.bf16.mxu1 %v11903_v36  ;;  %v11921_v62 = vld [vmem:[#allocation11 + $0x598] sm:$0xff]   ;;  %v11922_v4 = vld [vmem:[#allocation11 + $0x550] sm:$0xff]  }
0x146b   : > { %v11923_v36 = vld [vmem:[#allocation11 + $0x5d0] sm:$0xff]  }
0x14ac   : > { %v7966_v29 = vpop.f32.mrf.mxu0  ;;  %v8009_v9 = vpop.f32.mrf.mxu1 }
0x14ad   : > { %v7967_v1 = vadd.f32 %v7966_v29, %v7215_v8  ;;  %v8010_v53 = vadd.f32 %v8009_v9, %v7223_v17  ;;  %v11924_v29 = vld [vmem:[#allocation11 + $0x510] sm:$0xff]  }
0x14ae   : > { %v7968_v23 = vpop.f32.mrf.mxu0  ;;  %v8011_v32 = vpop.f32.mrf.mxu1  ;;  %v11925_v9 = vld [vmem:[#allocation11 + $0x590] sm:$0xff]  }
0x14af   : > { %v7969_v14 = vadd.f32 %v7968_v23, %v7219_v48  ;;  %v8012_v49 = vadd.f32 %v8011_v32, %v7227_v38  ;;  %v8276_v7 = vmax.f32 %v7967_v1, 0.0  ;;  %v8278_v27 = vmax.f32 %v8010_v53, 0.0 }
0x14b0   : > { %v7970_v37 = vpop.f32.mrf.mxu0  ;;  %v8013_v46 = vpop.f32.mrf.mxu1  ;;  %v7235_v23 = vrot.slane %v13517_v52, %v13102_v26  ;;  %v7243_v32 = vrot.slane %v13517_v52, %v13105_v24 }
0x14b1   : > { %v7971_v18 = vadd.f32 %v7970_v37, %v7215_v8  ;;  %v8014_v40 = vadd.f32 %v8013_v46, %v7223_v17  ;;  %v8277_v20 = vmax.f32 %v7969_v14, 0.0  ;;  %v8279_v5 = vmax.f32 %v8012_v49, 0.0  ;;  %v11926_v8 = vld [vmem:[#allocation11 + $0x548] sm:$0xff]  }
0x14b2   : > { %v7972_v55 = vpop.f32.mrf.mxu0  ;;  %v8015_v58 = vpop.f32.mrf.mxu1  ;;  %v11927_v17 = vld [vmem:[#allocation11 + $0x5c8] sm:$0xff]   ;;  %v7231_v37 = vrot.slane %v13517_v52, %v13108_v25  ;;  %v7239_v46 = vrot.slane %v13517_v52, %v13111_v61 }
0x14b3   : > { %v7973_v13 = vadd.f32 %v7972_v55, %v7219_v48  ;;  %v8016_v47 = vadd.f32 %v8015_v58, %v7227_v38  ;;  %v8292_v0 = vmax.f32 %v7971_v18, 0.0  ;;  %v8294_v59 = vmax.f32 %v8014_v40, 0.0  ;;  %v11928_v18 = vld [vmem:[#allocation11 + $0x508] sm:$0xff]   ;;  %v11930_v55 = vld [vmem:[#allocation11 + $0x540] sm:$0xff]  }
0x14b4   : > { %v11929_v40 = vld [vmem:[#allocation11 + $0x588] sm:$0xff]   ;;  %v11931_v58 = vld [vmem:[#allocation11 + $0x5c0] sm:$0xff]  }
0x14b5   : > { %v8293_v54 = vmax.f32 %v7973_v13, 0.0  ;;  %v8295_v44 = vmax.f32 %v8016_v47, 0.0  ;;  %v8308_v50 = vpack.c.bf16 %v8292_v0, %v8276_v7  ;;  %v8310_v30 = vpack.c.bf16 %v8294_v59, %v8278_v27  ;;  %v11932_v27 = vld [vmem:[#allocation11 + $0x500] sm:$0xff]  }
0x14b7   : > { %v8309_v2 = vpack.c.bf16 %v8293_v54, %v8277_v20  ;;  %v8311_v3 = vpack.c.bf16 %v8295_v44, %v8279_v5 }
0x14b9   : > { %9130 = vmatprep.mubr.bf16.mxu0 %v8309_v2  ;;  %9171 = vmatprep.mubr.bf16.mxu1 %v8311_v3  ;;  %v11933_v2 = vld [vmem:[#allocation11 + $0x580] sm:$0xff]  }
0x14ba   : > { %9131 = vmatmul.mubr.bf16.vlgmr.msra.gmra.mxu0 %v8308_v50  ;;  %9172 = vmatmul.mubr.bf16.vlgmr.msra.gmra.mxu1 %v8310_v30  ;;  %v11935_v50 = vld [vmem:[#allocation11 + $0x6f8] sm:$0xff]  }
0x14bb   : > { %10923 = vmatpush3.bf16.msra.mxu0 %v11904_v33  ;;  %10945 = vmatpush3.bf16.msra.mxu1 %v11905_v35  ;;  %v11934_v35 = vld [vmem:[#allocation11 + $0x678] sm:$0xff]  }
0x14bc   : > { %10924 = vmatprep.subr.bf16.mxu0 %v11906_v31  ;;  %10946 = vmatprep.subr.bf16.mxu1 %v11907_v19 }
0x14bf   : > { %10925 = vmatpush3.bf16.msra.mxu0 %v11908_v34  ;;  %10947 = vmatpush3.bf16.msra.mxu1 %v11909_v22 }
0x14c0   : > { %10926 = vmatprep.subr.bf16.mxu0 %v11910_v16  ;;  %10948 = vmatprep.subr.bf16.mxu1 %v11911_v12 }
0x14c3   : > { %10927 = vmatpush3.bf16.msra.mxu0 %v11912_v21  ;;  %10949 = vmatpush3.bf16.msra.mxu1 %v11913_v57  ;;  %v11936_v57 = vld [vmem:[#allocation11 + $0x638] sm:$0xff]  }
0x14c4   : > { %10928 = vmatprep.subr.bf16.mxu0 %v11914_v60  ;;  %10950 = vmatprep.subr.bf16.mxu1 %v11915_v43  ;;  %v11937_v60 = vld [vmem:[#allocation11 + $0x6b8] sm:$0xff]  }
0x14c7   : > { %10929 = vmatpush3.bf16.msra.mxu0 %v11916_v28  ;;  %10951 = vmatpush3.bf16.msra.mxu1 %v11917_v15  ;;  %v11938_v15 = vld [vmem:[#allocation11 + $0x670] sm:$0xff]  }
0x14c8   : > { %10930 = vmatprep.subr.bf16.mxu0 %v11918_v51  ;;  %10952 = vmatprep.subr.bf16.mxu1 %v11919_v10  ;;  %v11939_v51 = vld [vmem:[#allocation11 + $0x6f0] sm:$0xff]  }
0x14c9   : > { %v11940_v10 = vld [vmem:[#allocation11 + $0x630] sm:$0xff]  }
0x14cb   : > { %10931 = vmatpush3.bf16.msra.mxu0 %v11920_v63  ;;  %10953 = vmatpush3.bf16.msra.mxu1 %v11921_v62  ;;  %v11941_v63 = vld [vmem:[#allocation11 + $0x6b0] sm:$0xff]   ;;  %v11942_v62 = vld [vmem:[#allocation11 + $0x668] sm:$0xff]  }
0x14cc   : > { %v8052_v48 = vpop.f32.mrf.mxu0  ;;  %v8095_v38 = vpop.f32.mrf.mxu1  ;;  %10932 = vmatprep.subr.bf16.mxu0 %v11922_v4  ;;  %10954 = vmatprep.subr.bf16.mxu1 %v11923_v36  ;;  %v11943_v4 = vld [vmem:[#allocation11 + $0x6e8] sm:$0xff]  }
0x14cd   : > { %v8053_v20 = vadd.f32 %v8052_v48, %v7231_v37  ;;  %v8096_v5 = vadd.f32 %v8095_v38, %v7239_v46  ;;  %v11944_v36 = vld [vmem:[#allocation11 + $0x628] sm:$0xff]   ;;  %v11947_v48 = vld [vmem:[#allocation11 + $0x6e0] sm:$0xff]  }
0x14ce   : > { %v8054_v14 = vpop.f32.mrf.mxu0  ;;  %v8097_v49 = vpop.f32.mrf.mxu1  ;;  %v11948_v38 = vld [vmem:[#allocation11 + $0x620] sm:$0xff]  }
0x14cf   : > { %10933 = vmatpush3.bf16.msra.mxu0 %v11924_v29  ;;  %10955 = vmatpush3.bf16.msra.mxu1 %v11925_v9  ;;  %v8055_v13 = vadd.f32 %v8054_v14, %v7235_v23  ;;  %v8098_v47 = vadd.f32 %v8097_v49, %v7243_v32  ;;  %v8280_v22 = vmax.f32 %v8053_v20, 0.0  ;;  %v8282_v16 = vmax.f32 %v8096_v5, 0.0  ;;  %v11945_v29 = vld [vmem:[#allocation11 + $0x6a8] sm:$0xff]   ;;  %v11946_v9 = vld [vmem:[#allocation11 + $0x660] sm:$0xff]   ;;  %v11955_v14 = vld [vmem:[#allocation11 + $0x6d0] sm:$0xff]  }
0x14d0   : > { %v8056_v1 = vpop.f32.mrf.mxu0  ;;  %v8099_v53 = vpop.f32.mrf.mxu1  ;;  %10934 = vmatprep.subr.bf16.mxu0 %v11926_v8  ;;  %10956 = vmatprep.subr.bf16.mxu1 %v11927_v17  ;;  %v11949_v8 = vld [vmem:[#allocation11 + $0x6a0] sm:$0xff]   ;;  %v11950_v17 = vld [vmem:[#allocation11 + $0x658] sm:$0xff]   ;;  %v13538_v49 = vld [vmem:[%s13688_s8 + $0x18] sm:$0xff] }
0x14d1   : > { %v8057_v0 = vadd.f32 %v8056_v1, %v7231_v37  ;;  %v8100_v59 = vadd.f32 %v8099_v53, %v7239_v46  ;;  %v8281_v30 = vmax.f32 %v8055_v13, 0.0  ;;  %v8283_v31 = vmax.f32 %v8098_v47, 0.0  ;;  %v11953_v37 = vld [vmem:[#allocation11 + $0x698] sm:$0xff]   ;;  %v11954_v46 = vld [vmem:[#allocation11 + $0x650] sm:$0xff]  }
0x14d2   : > { %v8058_v54 = vpop.f32.mrf.mxu0  ;;  %v8101_v52 = vpop.f32.mrf.mxu1  ;;  %v7251_v13 = vrot.slane %v13538_v49, %v12735_v42  ;;  %v7259_v47 = vrot.slane %v13538_v49, %v13086_v11  ;;  %v11962_v42 = vld [vmem:[#allocation11 + $0x640] sm:$0xff]  }
0x14d3   : > { %v8059_v44 = vadd.f32 %v8058_v54, %v7235_v23  ;;  %v8102_v7 = vadd.f32 %v8101_v52, %v7243_v32  ;;  %10935 = vmatpush3.bf16.msra.mxu0 %v11928_v18  ;;  %10957 = vmatpush3.bf16.msra.mxu1 %v11929_v40  ;;  %v8296_v3 = vmax.f32 %v8057_v0, 0.0  ;;  %v8298_v33 = vmax.f32 %v8100_v59, 0.0  ;;  %v11951_v23 = vld [vmem:[#allocation11 + $0x6d8] sm:$0xff]   ;;  %v11956_v18 = vld [vmem:[#allocation11 + $0x610] sm:$0xff]   ;;  %v11960_v54 = vld [vmem:[#allocation11 + $0x608] sm:$0xff]  }
0x14d4   : > { %10936 = vmatprep.subr.bf16.mxu0 %v11930_v55  ;;  %10958 = vmatprep.subr.bf16.mxu1 %v11931_v58  ;;  %v11952_v32 = vld [vmem:[#allocation11 + $0x618] sm:$0xff]   ;;  %v11957_v40 = vld [vmem:[#allocation11 + $0x690] sm:$0xff]   ;;  %v11958_v55 = vld [vmem:[#allocation11 + $0x648] sm:$0xff]   ;;  %v7247_v0 = vrot.slane %v13538_v49, %v12732_v41  ;;  %v7255_v59 = vrot.slane %v13538_v49, %v12726_v39 }
0x14d5   : > { %v8297_v19 = vmax.f32 %v8059_v44, 0.0  ;;  %v8299_v34 = vmax.f32 %v8102_v7, 0.0  ;;  %v8312_v43 = vpack.c.bf16 %v8296_v3, %v8280_v22  ;;  %v8314_v28 = vpack.c.bf16 %v8298_v33, %v8282_v16  ;;  %v11959_v58 = vld [vmem:[#allocation11 + $0x6c8] sm:$0xff]  }
0x14d6   : > { %v11961_v52 = vld [vmem:[#allocation11 + $0x688] sm:$0xff]  }
0x14d7   : > { %v8313_v12 = vpack.c.bf16 %v8297_v19, %v8281_v30  ;;  %v8315_v21 = vpack.c.bf16 %v8299_v34, %v8283_v31  ;;  %10937 = vmatpush3.bf16.msra.mxu0 %v11932_v27  ;;  %10959 = vmatpush3.bf16.msra.mxu1 %v11933_v2  ;;  %v11963_v27 = vld [vmem:[#allocation11 + $0x6c0] sm:$0xff]  }
0x14d8   : > { %10966 = vmatprep.subr.bf16.mxu0 %v11934_v35  ;;  %10988 = vmatprep.subr.bf16.mxu1 %v11935_v50  ;;  %v11964_v19 = vld [vmem:[#allocation11 + $0x600] sm:$0xff]  }
0x14d9   : > { %9212 = vmatprep.mubr.bf16.mxu0 %v8313_v12  ;;  %9253 = vmatprep.mubr.bf16.mxu1 %v8315_v21  ;;  %v11965_v34 = vld [vmem:[#allocation11 + $0x680] sm:$0xff]   ;;  %v11966_v12 = vld [vmem:[#allocation11 + $0x778] sm:$0xff]  }
0x14da   : > { %9213 = vmatmul.mubr.bf16.vlgmr.msra.gmra.mxu0 %v8312_v43  ;;  %9254 = vmatmul.mubr.bf16.vlgmr.msra.gmra.mxu1 %v8314_v28  ;;  %v11967_v21 = vld [vmem:[#allocation11 + $0x7f8] sm:$0xff]  }
0x14db   : > { %10967 = vmatpush3.bf16.msra.mxu0 %v11936_v57  ;;  %10989 = vmatpush3.bf16.msra.mxu1 %v11937_v60 }
0x14dc   : > { %10968 = vmatprep.subr.bf16.mxu0 %v11938_v15  ;;  %10990 = vmatprep.subr.bf16.mxu1 %v11939_v51 }
0x14df   : > { %10969 = vmatpush3.bf16.msra.mxu0 %v11940_v10  ;;  %10991 = vmatpush3.bf16.msra.mxu1 %v11941_v63 }
0x14e0   : > { %10970 = vmatprep.subr.bf16.mxu0 %v11942_v62  ;;  %10992 = vmatprep.subr.bf16.mxu1 %v11943_v4  ;;  %v11968_v62 = vld [vmem:[#allocation11 + $0x738] sm:$0xff]  }
0x14e1   : > { %v11969_v4 = vld [vmem:[#allocation11 + $0x7b8] sm:$0xff]  }
0x14e3   : > { %10971 = vmatpush3.bf16.msra.mxu0 %v11944_v36  ;;  %10993 = vmatpush3.bf16.msra.mxu1 %v11945_v29 }
0x14e4   : > { %10972 = vmatprep.subr.bf16.mxu0 %v11946_v9  ;;  %10994 = vmatprep.subr.bf16.mxu1 %v11947_v48  ;;  %v11970_v9 = vld [vmem:[#allocation11 + $0x770] sm:$0xff]  }
0x14e5   : > { %v11971_v48 = vld [vmem:[#allocation11 + $0x7f0] sm:$0xff]  }
0x14e7   : > { %10973 = vmatpush3.bf16.msra.mxu0 %v11948_v38  ;;  %10995 = vmatpush3.bf16.msra.mxu1 %v11949_v8  ;;  %v11972_v38 = vld [vmem:[#allocation11 + $0x730] sm:$0xff]  }
0x14e8   : > { %10974 = vmatprep.subr.bf16.mxu0 %v11950_v17  ;;  %10996 = vmatprep.subr.bf16.mxu1 %v11951_v23  ;;  %v11973_v8 = vld [vmem:[#allocation11 + $0x7b0] sm:$0xff]   ;;  %v11974_v17 = vld [vmem:[#allocation11 + $0x768] sm:$0xff]  }
0x14e9   : > { %v11975_v23 = vld [vmem:[#allocation11 + $0x7e8] sm:$0xff]  }
0x14eb   : > { %10975 = vmatpush3.bf16.msra.mxu0 %v11952_v32  ;;  %10997 = vmatpush3.bf16.msra.mxu1 %v11953_v37  ;;  %v11976_v32 = vld [vmem:[#allocation11 + $0x728] sm:$0xff]  }
0x14ec   : > { %v8138_v1 = vpop.f32.mrf.mxu0  ;;  %v8181_v53 = vpop.f32.mrf.mxu1  ;;  %10976 = vmatprep.subr.bf16.mxu0 %v11954_v46  ;;  %10998 = vmatprep.subr.bf16.mxu1 %v11955_v14  ;;  %v11977_v37 = vld [vmem:[#allocation11 + $0x7a8] sm:$0xff]   ;;  %v11978_v46 = vld [vmem:[#allocation11 + $0x760] sm:$0xff]  }
0x14ed   : > { %v8139_v41 = vadd.f32 %v8138_v1, %v7247_v0  ;;  %v8182_v35 = vadd.f32 %v8181_v53, %v7255_v59  ;;  %v11979_v14 = vld [vmem:[#allocation11 + $0x7e0] sm:$0xff]   ;;  %v11982_v1 = vld [vmem:[#allocation11 + $0x758] sm:$0xff]  }
0x14ee   : > { %v8140_v20 = vpop.f32.mrf.mxu0  ;;  %v8183_v5 = vpop.f32.mrf.mxu1  ;;  %v11983_v53 = vld [vmem:[#allocation11 + $0x7d8] sm:$0xff]  }
0x14ef   : > { %10977 = vmatpush3.bf16.msra.mxu0 %v11956_v18  ;;  %10999 = vmatpush3.bf16.msra.mxu1 %v11957_v40  ;;  %v8141_v2 = vadd.f32 %v8140_v20, %v7251_v13  ;;  %v8184_v11 = vadd.f32 %v8183_v5, %v7259_v47  ;;  %v8284_v15 = vmax.f32 %v8139_v41, 0.0  ;;  %v8286_v51 = vmax.f32 %v8182_v35, 0.0  ;;  %v11980_v18 = vld [vmem:[#allocation11 + $0x720] sm:$0xff]  }
0x14f0   : > { %v8142_v44 = vpop.f32.mrf.mxu0  ;;  %v8185_v7 = vpop.f32.mrf.mxu1  ;;  %10978 = vmatprep.subr.bf16.mxu0 %v11958_v55  ;;  %11000 = vmatprep.subr.bf16.mxu1 %v11959_v58  ;;  %v11981_v40 = vld [vmem:[#allocation11 + $0x7a0] sm:$0xff]   ;;  %v11984_v55 = vld [vmem:[#allocation11 + $0x718] sm:$0xff]  }
0x14f1   : > { %v8143_v3 = vadd.f32 %v8142_v44, %v7247_v0  ;;  %v8186_v33 = vadd.f32 %v8185_v7, %v7255_v59  ;;  %v8285_v57 = vmax.f32 %v8141_v2, 0.0  ;;  %v8287_v60 = vmax.f32 %v8184_v11, 0.0  ;;  %v11985_v58 = vld [vmem:[#allocation11 + $0x798] sm:$0xff]   ;;  %v11988_v0 = vld [vmem:[#allocation11 + $0x710] sm:$0xff]  }
0x14f2   : > { %v8144_v50 = vpop.f32.mrf.mxu0  ;;  %v8187_v39 = vpop.f32.mrf.mxu1  ;;  %v11989_v59 = vld [vmem:[#allocation11 + $0x790] sm:$0xff]   ;;  %v7267_v44 = vrot.slane %v13538_v49, %v13102_v26  ;;  %v7275_v7 = vrot.slane %v13538_v49, %v13105_v24  ;;  %v11994_v26 = vld [vmem:[#allocation11 + $0x740] sm:$0xff]  }
0x14f3   : > { %v8145_v30 = vadd.f32 %v8144_v50, %v7251_v13  ;;  %v8188_v31 = vadd.f32 %v8187_v39, %v7259_v47  ;;  %10979 = vmatpush3.bf16.msra.mxu0 %v11960_v54  ;;  %11001 = vmatpush3.bf16.msra.mxu1 %v11961_v52  ;;  %v8300_v22 = vmax.f32 %v8143_v3, 0.0  ;;  %v8302_v16 = vmax.f32 %v8186_v33, 0.0  ;;  %v11986_v13 = vld [vmem:[#allocation11 + $0x750] sm:$0xff]   ;;  %v11990_v54 = vld [vmem:[#allocation11 + $0x748] sm:$0xff]   ;;  %v11995_v50 = vld [vmem:[#allocation11 + $0x7c0] sm:$0xff]  }
0x14f4   : > { %10980 = vmatprep.subr.bf16.mxu0 %v11962_v42  ;;  %11002 = vmatprep.subr.bf16.mxu1 %v11963_v27  ;;  %v11987_v47 = vld [vmem:[#allocation11 + $0x7d0] sm:$0xff]   ;;  %v11991_v52 = vld [vmem:[#allocation11 + $0x7c8] sm:$0xff]   ;;  %v7263_v42 = vrot.slane %v13538_v49, %v13108_v25  ;;  %v7271_v27 = vrot.slane %v13538_v49, %v13111_v61 }
0x14f5   : > { %v8301_v43 = vmax.f32 %v8145_v30, 0.0  ;;  %v8303_v28 = vmax.f32 %v8188_v31, 0.0  ;;  %v8316_v36 = vpack.c.bf16 %v8300_v22, %v8284_v15  ;;  %v8318_v29 = vpack.c.bf16 %v8302_v16, %v8286_v51  ;;  %v11992_v3 = vld [vmem:[#allocation11 + $0x708] sm:$0xff]   ;;  %v11996_v16 = vld [vmem:[#allocation11 + $0x700] sm:$0xff]  }
0x14f6   : > { %v11993_v33 = vld [vmem:[#allocation11 + $0x788] sm:$0xff]  }
0x14f7   : > { %v8317_v10 = vpack.c.bf16 %v8301_v43, %v8285_v57  ;;  %v8319_v63 = vpack.c.bf16 %v8303_v28, %v8287_v60  ;;  %10981 = vmatpush3.bf16.msra.mxu0 %v11964_v19  ;;  %11003 = vmatpush3.bf16.msra.mxu1 %v11965_v34 }
0x14f8   : > { %11010 = vmatprep.subr.bf16.mxu0 %v11966_v12  ;;  %11032 = vmatprep.subr.bf16.mxu1 %v11967_v21  ;;  %v11997_v12 = vld [vmem:[#allocation11 + $0x780] sm:$0xff]  }
0x14f9   : > { %9294 = vmatprep.mubr.bf16.mxu0 %v8317_v10  ;;  %9335 = vmatprep.mubr.bf16.mxu1 %v8319_v63 }
0x14fa   : > { %9295 = vmatmul.mubr.bf16.vlgmr.msra.gmra.mxu0 %v8316_v36  ;;  %9336 = vmatmul.mubr.bf16.vlgmr.msra.gmra.mxu1 %v8318_v29 }
0x14fb   : > { %11011 = vmatpush3.bf16.msra.mxu0 %v11968_v62  ;;  %11033 = vmatpush3.bf16.msra.mxu1 %v11969_v4 }
0x14fc   : > { %11012 = vmatprep.subr.bf16.mxu0 %v11970_v9  ;;  %11034 = vmatprep.subr.bf16.mxu1 %v11971_v48 }
0x14ff   : > { %11013 = vmatpush3.bf16.msra.mxu0 %v11972_v38  ;;  %11035 = vmatpush3.bf16.msra.mxu1 %v11973_v8 }
0x1500   : > { %11014 = vmatprep.subr.bf16.mxu0 %v11974_v17  ;;  %11036 = vmatprep.subr.bf16.mxu1 %v11975_v23 }
0x1503   : > { %11015 = vmatpush3.bf16.msra.mxu0 %v11976_v32  ;;  %11037 = vmatpush3.bf16.msra.mxu1 %v11977_v37 }
0x1504   : > { %11016 = vmatprep.subr.bf16.mxu0 %v11978_v46  ;;  %11038 = vmatprep.subr.bf16.mxu1 %v11979_v14 }
0x1507   : > { %11017 = vmatpush3.bf16.msra.mxu0 %v11980_v18  ;;  %11039 = vmatpush3.bf16.msra.mxu1 %v11981_v40 }
0x1508   : > { %11018 = vmatprep.subr.bf16.mxu0 %v11982_v1  ;;  %11040 = vmatprep.subr.bf16.mxu1 %v11983_v53 }
0x150b   : > { %11019 = vmatpush3.bf16.msra.mxu0 %v11984_v55  ;;  %11041 = vmatpush3.bf16.msra.mxu1 %v11985_v58  ;;  %v10456_v58 = vld [vmem:[%s13690_s10 + $0x1] ss:$0 sm:$0xff] }
0x150c   : > { %v8224_v20 = vpop.f32.mrf.mxu0  ;;  %v8267_v5 = vpop.f32.mrf.mxu1  ;;  %11020 = vmatprep.subr.bf16.mxu0 %v11986_v13  ;;  %11042 = vmatprep.subr.bf16.mxu1 %v11987_v47 }
0x150d   : > { %v8225_v25 = vadd.f32 %v8224_v20, %v7263_v42  ;;  %v8268_v19 = vadd.f32 %v8267_v5, %v7271_v27 }
0x150e   : > { %v8226_v2 = vpop.f32.mrf.mxu0  ;;  %v8269_v11 = vpop.f32.mrf.mxu1 }
0x150f   : > { %11021 = vmatpush3.bf16.msra.mxu0 %v11988_v0  ;;  %11043 = vmatpush3.bf16.msra.mxu1 %v11989_v59  ;;  %v8227_v39 = vadd.f32 %v8226_v2, %v7267_v44  ;;  %v8270_v24 = vadd.f32 %v8269_v11, %v7275_v7  ;;  %v8288_v51 = vmax.f32 %v8225_v25, 0.0  ;;  %v8290_v10 = vmax.f32 %v8268_v19, 0.0 }
0x1510   : > { %v8228_v41 = vpop.f32.mrf.mxu0  ;;  %v8271_v35 = vpop.f32.mrf.mxu1  ;;  %11022 = vmatprep.subr.bf16.mxu0 %v11990_v54  ;;  %11044 = vmatprep.subr.bf16.mxu1 %v11991_v52 }
0x1511   : > { %v8229_v30 = vadd.f32 %v8228_v41, %v7263_v42  ;;  %v8272_v31 = vadd.f32 %v8271_v35, %v7271_v27  ;;  %v8289_v60 = vmax.f32 %v8227_v39, 0.0  ;;  %v8291_v43 = vmax.f32 %v8270_v24, 0.0 }
0x1512   : > { %v8230_v34 = vpop.f32.mrf.mxu0  ;;  %v8273_v61 = vpop.f32.mrf.mxu1 }
0x1513   : > { %v8231_v49 = vadd.f32 %v8230_v34, %v7267_v44  ;;  %v8274_v22 = vadd.f32 %v8273_v61, %v7275_v7  ;;  %11023 = vmatpush3.bf16.msra.mxu0 %v11992_v3  ;;  %11045 = vmatpush3.bf16.msra.mxu1 %v11993_v33  ;;  %v8304_v21 = vmax.f32 %v8229_v30, 0.0  ;;  %v8306_v57 = vmax.f32 %v8272_v31, 0.0 }
0x1514   : > { %11024 = vmatprep.subr.bf16.mxu0 %v11994_v26  ;;  %11046 = vmatprep.subr.bf16.mxu1 %v11995_v50 }
0x1515   : > { %v8305_v28 = vmax.f32 %v8231_v49, 0.0  ;;  %v8307_v15 = vmax.f32 %v8274_v22, 0.0  ;;  %v8320_v4 = vpack.c.bf16 %v8304_v21, %v8288_v51  ;;  %v8322_v36 = vpack.c.bf16 %v8306_v57, %v8290_v10 }
0x1517   : > { %v8321_v63 = vpack.c.bf16 %v8305_v28, %v8289_v60  ;;  %v8323_v62 = vpack.c.bf16 %v8307_v15, %v8291_v43  ;;  %11025 = vmatpush3.bf16.msra.mxu0 %v11996_v16  ;;  %11047 = vmatpush3.bf16.msra.mxu1 %v11997_v12 }
0x1518   : > { %11382 = vmatprep.subr.mxu0 %v12416_v6  ;;  %11417 = vmatprep.subr.mxu1 %v12416_v6 }
0x1519   : > { %9376 = vmatprep.mubr.bf16.mxu0 %v8321_v63  ;;  %9417 = vmatprep.mubr.bf16.mxu1 %v8323_v62 }
0x151a   : > { %9377 = vmatmul.mubr.bf16.vlgmr.msra.gmra.mxu0 %v8320_v4  ;;  %9418 = vmatmul.mubr.bf16.vlgmr.msra.gmra.mxu1 %v8322_v36 }
0x151b   : > { %11414 = vmatprep.mubr.msk.f32.mxu0 %vm12418_vm1, %v12416_v6  ;;  %11449 = vmatprep.mubr.msk.f32.mxu1 %vm12418_vm1, %v12416_v6 }
0x157a   : > { %v10894_v29 = vpop.f32.mrf.mxu0  ;;  %v10916_v9 = vpop.f32.mrf.mxu1 }
0x157c   : > { %v10895_v48 = vpop.f32.mrf.mxu0  ;;  %v10917_v38 = vpop.f32.mrf.mxu1 }
0x157d   : > { %v10896_v55 = vadd.f32 %v10895_v48, %v10894_v29  ;;  %v10918_v54 = vadd.f32 %v10917_v38, %v10916_v9 }
0x157e   : > { %v10897_v8 = vpop.f32.mrf.mxu0  ;;  %v10919_v17 = vpop.f32.mrf.mxu1 }
0x157f   : > { %v9133_v59 = vadd.f32 %v10896_v55, %v10456_v58  ;;  %v9490_v55 = vld [vmem:[#allocation13 + $0x60] sm:$0xff] }
0x1580   : > { %v10898_v23 = vpop.f32.mrf.mxu0  ;;  %v10920_v32 = vpop.f32.mrf.mxu1 }
0x1581   : > { %v10899_v20 = vadd.f32 %v10898_v23, %v10897_v8  ;;  %v9174_v7 = vadd.f32 %v10918_v54, %v9133_v59  ;;  %v10921_v2 = vadd.f32 %v10920_v32, %v10919_v17  ;;  %v9485_v59 = vld [vmem:[#allocation13 + $0x38] sm:$0xff] }
0x1582   : > { %v9581_v54 = vld [vmem:[#allocation14 + $0x78] sm:$0xff] }
0x1583   : > { %v9136_v42 = vadd.f32 %v10899_v20, %v10456_v58  ;;  %v9489_v58 = vld [vmem:[#allocation13 + $0x58] sm:$0xff]  ;;  %v9484_v20 = vld [vmem:[#allocation13 + $0x30] sm:$0xff]  ;;  %11418 = vmatpush3.msra.mxu1 %v9581_v54 }
0x1584   : > { %11419 = vmatprep.subr.mxu1 %v12416_v6  ;;  %v9656_v54 = vld [vmem:[#allocation16 + $0x10] sm:$0xff] }
0x1585   : > { %v9177_v41 = vadd.f32 %v10921_v2, %v9136_v42  ;;  %v9481_v42 = vld [vmem:[#allocation13 + $0x18] sm:$0xff]  ;;  %v9480_v2 = vld [vmem:[#allocation13 + $0x10] sm:$0xff] }
0x159a   : > { %v10938_v37 = vpop.f32.mrf.mxu0  ;;  %v10960_v46 = vpop.f32.mrf.mxu1 }
0x159c   : > { %v10939_v14 = vpop.f32.mrf.mxu0  ;;  %v10961_v18 = vpop.f32.mrf.mxu1 }
0x159d   : > { %v10940_v52 = vadd.f32 %v10939_v14, %v10938_v37  ;;  %v10962_v35 = vadd.f32 %v10961_v18, %v10960_v46 }
0x159e   : > { %v10941_v40 = vpop.f32.mrf.mxu0  ;;  %v10963_v1 = vpop.f32.mrf.mxu1 }
0x159f   : > { %v9215_v11 = vadd.f32 %v10940_v52, %v9174_v7  ;;  %v9580_v52 = vld [vmem:[#allocation14 + $0x70] sm:$0xff]  ;;  %v9579_v7 = vld [vmem:[#allocation14 + $0x68] sm:$0xff] }
0x15a0   : > { %v10942_v53 = vpop.f32.mrf.mxu0  ;;  %v10964_v13 = vpop.f32.mrf.mxu1  ;;  %11420 = vmatpush3.msra.mxu1 %v9580_v52  ;;  %v9655_v52 = vld [vmem:[#allocation16 + $0x8] sm:$0xff] }
0x15a1   : > { %v10943_v3 = vadd.f32 %v10942_v53, %v10941_v40  ;;  %v9256_v39 = vadd.f32 %v10962_v35, %v9215_v11  ;;  %v10965_v31 = vadd.f32 %v10964_v13, %v10963_v1  ;;  %v9493_v1 = vld [vmem:[#allocation13 + $0x78] sm:$0xff]  ;;  %v9492_v53 = vld [vmem:[#allocation13 + $0x70] sm:$0xff]  ;;  %11421 = vmatprep.subr.mxu1 %v12416_v6  ;;  %v9575_v35 = vld [vmem:[#allocation14 + $0x48] sm:$0xff] }
0x15a2   : > { %11383 = vmatpush3.msra.mxu0 %v9493_v1  ;;  %v9488_v13 = vld [vmem:[#allocation13 + $0x50] sm:$0xff]  ;;  %11422 = vmatpush3.msra.mxu1 %v9579_v7  ;;  %v9577_v11 = vld [vmem:[#allocation14 + $0x58] sm:$0xff]  ;;  %v9662_v1 = vld [vmem:[#allocation16 + $0x40] sm:$0xff] }
0x15a3   : > { %v9218_v24 = vadd.f32 %v10943_v3, %v9177_v41  ;;  %11384 = vmatprep.subr.mxu0 %v12416_v6  ;;  %11423 = vmatprep.subr.mxu1 %v12416_v6  ;;  %v9479_v3 = vld [vmem:[#allocation13 + $0x8] sm:$0xff]  ;;  %v9478_v41 = vld [vmem:[#allocation13] sm:$0xff]  ;;  %v9582_v7 = vld [vmem:[%s13698_s18] sm:$0x1] }
0x15a4   : > { %11385 = vmatpush3.msra.mxu0 %v9492_v53  ;;  %v9661_v53 = vld [vmem:[#allocation16 + $0x38] sm:$0xff] }
0x15a5   : > { %v9259_v49 = vadd.f32 %v10965_v31, %v9218_v24  ;;  %11386 = vmatprep.subr.mxu0 %v12416_v6  ;;  %v9571_v24 = vld [vmem:[#allocation14 + $0x28] sm:$0xff]  ;;  %v9569_v31 = vld [vmem:[#allocation14 + $0x18] sm:$0xff] }
0x15ba   : > { %v10982_v47 = vpop.f32.mrf.mxu0  ;;  %v11004_v0 = vpop.f32.mrf.mxu1 }
0x15bc   : > { %v10983_v5 = vpop.f32.mrf.mxu0  ;;  %v11005_v44 = vpop.f32.mrf.mxu1 }
0x15bd   : > { %v10984_v26 = vadd.f32 %v10983_v5, %v10982_v47  ;;  %v11006_v22 = vadd.f32 %v11005_v44, %v11004_v0  ;;  %v9487_v47 = vld [vmem:[#allocation13 + $0x48] sm:$0xff]  ;;  %v9486_v0 = vld [vmem:[#allocation13 + $0x40] sm:$0xff] }
0x15be   : > { %v10985_v27 = vpop.f32.mrf.mxu0  ;;  %v11007_v33 = vpop.f32.mrf.mxu1  ;;  %v9483_v5 = vld [vmem:[#allocation13 + $0x28] sm:$0xff]  ;;  %v9482_v44 = vld [vmem:[#allocation13 + $0x20] sm:$0xff] }
0x15bf   : > { %v9297_v25 = vadd.f32 %v10984_v26, %v9256_v39  ;;  %v9574_v26 = vld [vmem:[#allocation14 + $0x40] sm:$0xff]  ;;  %v9572_v39 = vld [vmem:[#allocation14 + $0x30] sm:$0xff] }
0x15c0   : > { %v10986_v50 = vpop.f32.mrf.mxu0  ;;  %v11008_v30 = vpop.f32.mrf.mxu1 }
0x15c1   : > { %v10987_v19 = vadd.f32 %v10986_v50, %v10985_v27  ;;  %v9338_v21 = vadd.f32 %v11006_v22, %v9297_v25  ;;  %v11009_v15 = vadd.f32 %v11008_v30, %v11007_v33  ;;  %v9578_v27 = vld [vmem:[#allocation14 + $0x60] sm:$0xff]  ;;  %v9576_v33 = vld [vmem:[#allocation14 + $0x50] sm:$0xff]  ;;  %v9573_v50 = vld [vmem:[#allocation14 + $0x38] sm:$0xff] }
0x15c2   : > { %11424 = vmatpush3.msra.mxu1 %v9578_v27  ;;  %v9570_v30 = vld [vmem:[#allocation14 + $0x20] sm:$0xff] }
0x15c3   : > { %v9300_v57 = vadd.f32 %v10987_v19, %v9259_v49  ;;  %11425 = vmatprep.subr.mxu1 %v12416_v6 }
0x15c4   : > { %11426 = vmatpush3.msra.mxu1 %v9577_v11 }
0x15c5   : > { %v9341_v4 = vadd.f32 %v11009_v15, %v9300_v57  ;;  %11427 = vmatprep.subr.mxu1 %v12416_v6 }
0x15c6   : > { %11428 = vmatpush3.msra.mxu1 %v9576_v33 }
0x15c7   : > { %11429 = vmatprep.subr.mxu1 %v12416_v6 }
0x15c8   : > { %11430 = vmatpush3.msra.mxu1 %v9575_v35 }
0x15c9   : > { %11431 = vmatprep.subr.mxu1 %v12416_v6 }
0x15ca   : > { %11432 = vmatpush3.msra.mxu1 %v9574_v26 }
0x15cb   : > { %11433 = vmatprep.subr.mxu1 %v12416_v6 }
0x15cc   : > { %11434 = vmatpush3.msra.mxu1 %v9573_v50 }
0x15cd   : > { %11435 = vmatprep.subr.mxu1 %v12416_v6 }
0x15ce   : > { %11436 = vmatpush3.msra.mxu1 %v9572_v39 }
0x15cf   : > { %11437 = vmatprep.subr.mxu1 %v12416_v6 }
0x15d0   : > { %11438 = vmatpush3.msra.mxu1 %v9571_v24 }
0x15d1   : > { %11439 = vmatprep.subr.mxu1 %v12416_v6 }
0x15d2   : > { %11440 = vmatpush3.msra.mxu1 %v9570_v30 }
0x15d3   : > { %11441 = vmatprep.subr.mxu1 %v12416_v6 }
0x15d4   : > { %11442 = vmatpush3.msra.mxu1 %v9569_v31 }
0x15d5   : > { %11443 = vmatprep.subr.mxu1 %v12416_v6 }
0x15da   : > { %v11026_v34 = vpop.f32.mrf.mxu0  ;;  %v11048_v61 = vpop.f32.mrf.mxu1 }
0x15dc   : > { %v11027_v16 = vpop.f32.mrf.mxu0  ;;  %v11049_v12 = vpop.f32.mrf.mxu1 }
0x15dd   : > { %v11028_v60 = vadd.f32 %v11027_v16, %v11026_v34  ;;  %v11050_v10 = vadd.f32 %v11049_v12, %v11048_v61 }
0x15de   : > { %v11029_v43 = vpop.f32.mrf.mxu0  ;;  %v11051_v28 = vpop.f32.mrf.mxu1 }
0x15df   : > { %v9379_v51 = vadd.f32 %v11028_v60, %v9338_v21  ;;  %v10585_v21 = vld [vmem:[%s13693_s13 + $0x1] ss:$0 sm:$0xff] }
0x15e0   : > { %v11030_v63 = vpop.f32.mrf.mxu0  ;;  %v11052_v62 = vpop.f32.mrf.mxu1 }
0x15e1   : > { %v9420_v36 = vadd.f32 %v11050_v10, %v9379_v51  ;;  %v11031_v29 = vadd.f32 %v11030_v63, %v11029_v43  ;;  %v11053_v48 = vadd.f32 %v11052_v62, %v11051_v28  ;;  %v10586_v28 = vld [vmem:[%s13694_s14 + $0x1] ss:$0 sm:$0xff] }
0x15e3   : > { %v9382_v9 = vadd.f32 %v11031_v29, %v9341_v4  ;;  %v9426_v38 = vadd.f32 %v9420_v36, %v13486_v56 }
0x15e5   : > { %v9423_v8 = vadd.f32 %v11053_v48, %v9382_v9  ;;  %9428 = vadd.xlane.f32.xlu1 %v9426_v38 }
0x15e7   : > { %v9427_v17 = vadd.f32 %v9423_v8, %v13488_v45  ;;  %v9491_v45 = vld [vmem:[#allocation13 + $0x68] sm:$0xff]  ;;  %v9568_v8 = vld [vmem:[#allocation14 + $0x10] sm:$0xff] }
0x15e8   : > { %11387 = vmatpush3.msra.mxu0 %v9491_v45  ;;  %11444 = vmatpush3.msra.mxu1 %v9568_v8  ;;  %v9660_v45 = vld [vmem:[#allocation16 + $0x30] sm:$0xff] }
0x15e9   : > { %9430 = vadd.xlane.f32.xlu0 %v9427_v17  ;;  %11388 = vmatprep.subr.mxu0 %v12416_v6 }
0x15ea   : > { %11389 = vmatpush3.msra.mxu0 %v9490_v55  ;;  %11445 = vmatprep.subr.mxu1 %v12416_v6  ;;  %v9659_v55 = vld [vmem:[#allocation16 + $0x28] sm:$0xff] }
0x15eb   : > { %11390 = vmatprep.subr.mxu0 %v12416_v6 }
0x15ec   : > { %11391 = vmatpush3.msra.mxu0 %v9489_v58  ;;  %v9658_v58 = vld [vmem:[#allocation16 + $0x20] sm:$0xff] }
0x15ed   : > { %11392 = vmatprep.subr.mxu0 %v12416_v6 }
0x15ee   : > { %11393 = vmatpush3.msra.mxu0 %v9488_v13  ;;  %v9657_v13 = vld [vmem:[#allocation16 + $0x18] sm:$0xff] }
0x15ef   : > { %11394 = vmatprep.subr.mxu0 %v12416_v6 }
0x15f0   : > { %11395 = vmatpush3.msra.mxu0 %v9487_v47  ;;  %v9494_v47 = vld [vmem:[%s13696_s16] sm:$0x1] }
0x15f1   : > { %11396 = vmatprep.subr.mxu0 %v12416_v6 }
0x15f2   : > { %11397 = vmatpush3.msra.mxu0 %v9486_v0 }
0x15f3   : > { %11398 = vmatprep.subr.mxu0 %v12416_v6 }
0x15f4   : > { %11399 = vmatpush3.msra.mxu0 %v9485_v59 }
0x15f5   : > { %11400 = vmatprep.subr.mxu0 %v12416_v6 }
0x15f6   : > { %11401 = vmatpush3.msra.mxu0 %v9484_v20 }
0x15f7   : > { %11402 = vmatprep.subr.mxu0 %v12416_v6 }
0x15f8   : > { %11403 = vmatpush3.msra.mxu0 %v9483_v5 }
0x15f9   : > { %11404 = vmatprep.subr.mxu0 %v12416_v6 }
0x15fa   : > { %11405 = vmatpush3.msra.mxu0 %v9482_v44  ;;  %v9654_v44 = vld [vmem:[#allocation16] sm:$0xff] }
0x15fb   : > { %11406 = vmatprep.subr.mxu0 %v12416_v6 }
0x15fc   : > { %11407 = vmatpush3.msra.mxu0 %v9481_v42 }
0x15fd   : > { %11408 = vmatprep.subr.mxu0 %v12416_v6 }
0x15fe   : > { %11409 = vmatpush3.msra.mxu0 %v9480_v2 }
0x15ff   : > { %11410 = vmatprep.subr.mxu0 %v12416_v6 }
0x1600   : > { %11411 = vmatpush3.msra.mxu0 %v9479_v3  ;;  %v9670_v3 = vld [vmem:[%s13755_s27] sm:$0x1] }
0x1601   : > { %11412 = vmatprep.subr.mxu0 %v12416_v6 }
0x1602   : > { %11413 = vmatpush3.msra.mxu0 %v9478_v41 }
0x1603   : > { %11452 = vmatprep.subr.mxu0 %v12416_v6 }
0x166e   : > { %v9429_v23 = vpop.xlane.xlu1 %9428 }
0x166f   : > { %v9432_v32 = vmul.f32 0.0078125, %v9429_v23  ;;  %v9566_v23 = vld [vmem:[#allocation14] sm:$0xff] }
0x1671   : > { %v13567_v37 = vsub.f32 %v9426_v38, %v9432_v32  ;;  %v9669_v32 = vld [vmem:[#allocation16 + $0x78] sm:$0xff] }
0x1672   : > { %v9431_v46 = vpop.xlane.xlu0 %9430 }
0x1673   : > { %v9433_v14 = vmul.f32 0.0078125, %v9431_v46  ;;  %v9436_v18 = vmul.f32 %v13567_v37, %v13567_v37  ;;  %v9667_v46 = vld [vmem:[#allocation16 + $0x68] sm:$0xff] }
0x1675   : > { %v13571_v40 = vsub.f32 %v9427_v17, %v9433_v14  ;;  %9438 = vadd.xlane.f32.xlu1 %v9436_v18  ;;  %v9567_v17 = vld [vmem:[#allocation14 + $0x8] sm:$0xff]  ;;  %v9666_v14 = vld [vmem:[#allocation16 + $0x60] sm:$0xff]  ;;  %v9665_v18 = vld [vmem:[#allocation16 + $0x58] sm:$0xff] }
0x1676   : > { %11446 = vmatpush3.msra.mxu1 %v9567_v17 }
0x1677   : > { %v9437_v56 = vmul.f32 %v13571_v40, %v13571_v40  ;;  %11447 = vmatprep.subr.mxu1 %v12416_v6 }
0x1678   : > { %11448 = vmatpush3.msra.mxu1 %v9566_v23 }
0x1679   : > { %9440 = vadd.xlane.f32.xlu0 %v9437_v56  ;;  %v9663_v56 = vld [vmem:[#allocation16 + $0x48] sm:$0xff] }
0x16fe   : > { %v9439_v25 = vpop.xlane.xlu1 %9438 }
0x16ff   : > { %v9442_v19 = vmul.f32 0.0078125, %v9439_v25 }
0x1701   : > { %v9444_v34 = vadd.f32 1e-05, %v9442_v19 }
0x1702   : > { %v9441_v61 = vpop.xlane.xlu0 %9440 }
0x1703   : > { %12138 = vrsqrt.f32 %v9444_v34  ;;  %v9443_v49 = vmul.f32 0.0078125, %v9441_v61 }
0x1705   : > { %v9445_v22 = vadd.f32 1e-05, %v9443_v49 }
0x1707   : > { %12140 = vrsqrt.f32 %v9445_v22 }
0x1710   : > { %v12139_v16 = vpop.eup %12138 }
0x1711   : > { %v9448_v12 = vmul.f32 %v12139_v16, %v13567_v37  ;;  %v9668_v37 = vld [vmem:[#allocation16 + $0x70] sm:$0xff] }
0x1713   : > { %v9456_v60 = vmul.f32 %v10585_v21, %v9448_v12 }
0x1714   : > { %v12141_v57 = vpop.eup %12140 }
0x1715   : > { %v9449_v43 = vmul.f32 %v12141_v57, %v13571_v40  ;;  %v9464_v51 = vadd.f32 %v10586_v28, %v9456_v60  ;;  %v9664_v40 = vld [vmem:[#allocation16 + $0x50] sm:$0xff] }
0x1717   : > { %v9457_v15 = vmul.f32 %v10585_v21, %v9449_v43 }
0x1719   : > { %v9465_v10 = vadd.f32 %v10586_v28, %v9457_v15 }
0x171b   : > { %v9470_v63 = vadd.f32 %v9465_v10, %v9464_v51 }
0x171d   : > { %v9471_v62 = vrot.slane %v9470_v63, 4 }
0x171f   : > { %v9472_v4 = vadd.f32 %v9471_v62, %v9470_v63 }
0x1721   : > { %v9473_v36 = vrot.slane %v9472_v4, 2 }
0x1723   : > { %v9474_v29 = vadd.f32 %v9473_v36, %v9472_v4 }
0x1725   : > { %v9475_v9 = vrot.slane %v9474_v29, 1 }
0x1727   : > { %v9476_v48 = vadd.f32 %v9475_v9, %v9474_v29 }
0x1729   : > { %v9477_v38 = vmul.f32 0.0625, %v9476_v48 }
0x172b   : > { %11415 = vmatmul.mubr.f32.vlgmr.msra.gmra.mxu0 %v9477_v38 }
0x172c   : > { %11484 = vmatprep.mubr.msk.f32.mxu0 %vm12418_vm1, %v12416_v6  ;;  %11453 = vmatpush3.msra.mxu0 %v9669_v32 }
0x172d   : > { %11454 = vmatprep.subr.mxu0 %v12416_v6 }
0x172e   : > { %11455 = vmatpush3.msra.mxu0 %v9668_v37 }
0x172f   : > { %11456 = vmatprep.subr.mxu0 %v12416_v6 }
0x1730   : > { %11457 = vmatpush3.msra.mxu0 %v9667_v46 }
0x1731   : > { %11458 = vmatprep.subr.mxu0 %v12416_v6 }
0x1732   : > { %11459 = vmatpush3.msra.mxu0 %v9666_v14 }
0x1733   : > { %11460 = vmatprep.subr.mxu0 %v12416_v6 }
0x1734   : > { %11461 = vmatpush3.msra.mxu0 %v9665_v18 }
0x1735   : > { %11462 = vmatprep.subr.mxu0 %v12416_v6 }
0x1736   : > { %11463 = vmatpush3.msra.mxu0 %v9664_v40 }
0x1737   : > { %11464 = vmatprep.subr.mxu0 %v12416_v6 }
0x1738   : > { %11465 = vmatpush3.msra.mxu0 %v9663_v56 }
0x1739   : > { %11466 = vmatprep.subr.mxu0 %v12416_v6 }
0x173a   : > { %11467 = vmatpush3.msra.mxu0 %v9662_v1 }
0x173b   : > { %11468 = vmatprep.subr.mxu0 %v12416_v6 }
0x173c   : > { %11469 = vmatpush3.msra.mxu0 %v9661_v53 }
0x173d   : > { %11470 = vmatprep.subr.mxu0 %v12416_v6 }
0x173e   : > { %11471 = vmatpush3.msra.mxu0 %v9660_v45 }
0x173f   : > { %11472 = vmatprep.subr.mxu0 %v12416_v6 }
0x1740   : > { %11473 = vmatpush3.msra.mxu0 %v9659_v55 }
0x1741   : > { %11474 = vmatprep.subr.mxu0 %v12416_v6 }
0x1742   : > { %11475 = vmatpush3.msra.mxu0 %v9658_v58 }
0x1743   : > { %11476 = vmatprep.subr.mxu0 %v12416_v6 }
0x1744   : > { %11477 = vmatpush3.msra.mxu0 %v9657_v13 }
0x1745   : > { %11478 = vmatprep.subr.mxu0 %v12416_v6 }
0x1746   : > { %11479 = vmatpush3.msra.mxu0 %v9656_v54 }
0x1747   : > { %11480 = vmatprep.subr.mxu0 %v12416_v6 }
0x1748   : > { %11481 = vmatpush3.msra.mxu0 %v9655_v52 }
0x1749   : > { %11482 = vmatprep.subr.mxu0 %v12416_v6 }
0x174a   : > { %11483 = vmatpush3.msra.mxu0 %v9654_v44 }
0x17eb   : > { %v9561_v0 = vpop.f32.mrf.mxu0 }
0x17ec   : > { %v9562_v59 = vadd.f32 %v9561_v0, %v9494_v47 }
0x17ed   : > { %v11416_v20 = vpop.f32.mrf.mxu0 }
0x17ee   : > { %v9565_v5 = vmax.f32 %v9562_v59, 0.0 }
0x17f0   : > { %11450 = vmatmul.mubr.f32.vlgmr.msra.gmra.mxu1 %v9565_v5 }
0x18b0   : > { %v9649_v42 = vpop.f32.mrf.mxu1 }
0x18b1   : > { %v9650_v27 = vadd.f32 %v9649_v42, %v9582_v7 }
0x18b2   : > { %v11451_v2 = vpop.f32.mrf.mxu1 }
0x18b3   : > { %v9653_v11 = vmax.f32 %v9650_v27, 0.0 }
0x18b5   : > { %11485 = vmatmul.mubr.f32.vlgmr.msra.gmra.mxu0 %v9653_v11 }
0x1975   : > { %v9737_v6 = vpop.f32.mrf.mxu0 }
0x1976   : > { %v9738_v33 = vadd.f32 %v9737_v6, %v9670_v3 }
0x1977   : > { %v11486_v41 = vpop.f32.mrf.mxu0 }
0x1978   : > { %9741 = vst [vmem:[%s750_s29] sm:$0x1] %v9738_v33 }
0x1979   : > { %12337 = shalt.err (!%p12334_p4)
}
0x197a   : > { %s12338_s1 = scalar_lea.hbm %s13645_s9, 16  ;;  %s12342_s22 = scalar_lea.hbm %s13756_s28, 32 }
0x197b   : > { %p12339_p2 = scmp.ne.s32.totalorder %s13645_s9, %s12338_s1  ;;  %p12343_p10 = scmp.lt.s32.totalorder %s13645_s9, %s13756_s28 }
0x197c   : > { %p12344_p9 = scmp.lt.s32.totalorder %s12342_s22, %s12338_s1 }
0x197d   : > { %p12340_p7 = pnand %p12339_p2, %p12575_p5 }
0x197e   : > { %p12345_p6 = por %p12344_p9, %p12343_p10 }
0x197f   : > { %p12341_p12 = pneg %p12340_p7 }
0x1981   : > { %p12346_p8 = pnand %p12345_p6, %p12341_p12 }
0x1983   : > { %12349 = shalt.err (!%p12346_p8)
}
0x1984   : > { %11515 = dma.vmem_to_hbm [thread:$0]  (%p12575_p5), %s9756_s4, 16, %s13645_s9, %s9743_s24  }
0x1985 PF: > { %s13757_s23 = sld [smem:[#allocation25_spill]] }
0x1986   : > { %s13758_s20 = sld [smem:[#allocation23_spill]] }
0x1987   : > { %s13759_s21 = sld [smem:[#allocation28_spill]] }
0x198b   : > { %p11557_p11 = scmp.ge.s32.totalorder %s13757_s23, 2 }
0x198c   : > { %s9767_s3 = sand.u32 1, %s13758_s20  }
0x198d   : > { %p13760_p0 = scmp.ne.s32.totalorder %s13759_s21, 0  ;;  %s9768_s26 = scalar_lea.sflag [#allocation7], %s9767_s3 }
0x198f   : > { %p11540_p1 = pnand %p11557_p11, %p13760_p0 }
0x1991   : > { %p11541_p13 = pneg %p11540_p1 }
0x1993   : > { %12383 = dma.done.wait (%p11541_p13), %s9768_s26, 16  }
0x1994   : > { %12385 = vsyncadd (%p11541_p13), %s9768_s26, 4294967280  ;;  %s13761_s27 = sld [smem:[#allocation26_spill]]  ;;  %s13764_s2 = smov %s12392_s25 }
0x1995   : > { %s13762_s1 = sld [smem:[#allocation24_spill]] }
0x1996   : > { %s13763_s26 = sld [smem:[#allocation27_spill]] }
0x199a   : > { %p35_p3 = scmp.ge.s32.totalorder %s13761_s27, 4  }
0x199b   : > { %s13765_s25 = smov %s13762_s1 }
0x199c   :  { %37 = sbr.rel (!%p35_p3) target bundleno = 17 (0x11), region = 180 }
0x19a1   :  { %9772 = vsyncpa [#allocation6], 1 }
0x19a2   :  { %9774 = vsyncpa [#allocation6 + $0x1], 1 }
0x19a3   :  { %9775 = vsyncpa [#allocation9], 1 }
0x19a4   :  { %9776 = vsyncpa [#allocation12], 1 }
0x19a5   :  { %9777 = vsyncpa [#allocation15], 1 }
0x19a6   :  { %9778 = vsyncpa [#allocation7], 1 }
0x19a7   :  { %9780 = vsyncpa [#allocation7 + $0x1], 1 }

</bundles_post_ra>
